<compile_context>
chip_gen: v7x
topology: tpu7x:2x2x1
jax: 0.10.0
libtpu: 0.0.40
codegen_flags: <defaults>
</compile_context>

<pallas_src>
import functools

import jax
import jax.numpy as jnp
from jax.experimental import pallas as pl
from jax.experimental.pallas import tpu as pltpu

BN_EPS = 1e-5


def _round_up(x, m):
    return (x + m - 1) // m * m


# ----------------------------------------------------------------------------
# Pallas kernels
# ----------------------------------------------------------------------------
def _gemm_bn_act_kernel(a_ref, w_ref, sb_ref, o_ref, *, apply_relu):
    """Full-K single-block matmul with fused BN scale/bias and ReLU epilogue."""
    y = jnp.dot(a_ref[...], w_ref[...], preferred_element_type=jnp.float32)
    y = y * sb_ref[0:1, :] + sb_ref[1:2, :]
    if apply_relu:
        y = jnp.maximum(y, 0.0)
    o_ref[...] = y.astype(o_ref.dtype)


def _gemm_bn_res_act_kernel(a_ref, w_ref, sb_ref, res_ref, o_ref, *, apply_relu):
    """Same as above, plus a fused residual add (used once per bottleneck)."""
    y = jnp.dot(a_ref[...], w_ref[...], preferred_element_type=jnp.float32)
    y = y * sb_ref[0:1, :] + sb_ref[1:2, :] + res_ref[...]
    if apply_relu:
        y = jnp.maximum(y, 0.0)
    o_ref[...] = y.astype(o_ref.dtype)


def _rowmax_kernel(x_ref, o_ref):
    """Columnwise max of an (R, tn) block via a VPU maximum chain over rows."""
    m = x_ref[0:1, :]
    for i in range(1, x_ref.shape[0]):
        m = jnp.maximum(m, x_ref[i:i + 1, :])
    o_ref[...] = m


def _global_maxpool_kernel(x_ref, o_ref):
    """x_ref: (B, HW, C) -> o_ref: (B, 1, C) max over spatial, C lane-dense."""
    m = x_ref[:, 0:1, :]
    for i in range(1, x_ref.shape[1]):
        m = jnp.maximum(m, x_ref[:, i:i + 1, :])
    o_ref[...] = m


# ----------------------------------------------------------------------------
# Pallas wrappers
# ----------------------------------------------------------------------------
def _choose_tm(mp):
    """M-tile: big tiles to amortize per-step overhead, but keep >=2 blocks
    along the parallel axis where possible (v7x has 2 TensorCores)."""
    if mp >= 1024:
        return 512
    if mp >= 32 and mp % 32 == 0:
        return mp // 2
    return mp


def gemm_bn_act(A, W, scale, bias, res, apply_relu):
    """A: (M, K) f32, W: (K, N) f32, scale/bias: (N,), res: (M, N) f32 or None.

    Computes relu?((A @ W) * scale + bias [+ res]); A/W are cast to bf16 for
    the MXU, accumulation and epilogue stay f32.
    """
    M, K = A.shape
    _, N = W.shape

    Mp = _round_up(M, 16)
    tm = _choose_tm(Mp)
    Mp = _round_up(Mp, tm)
    Kp = _round_up(K, 16)          # full-K single block: no reduction grid axis
    Np = _round_up(N, 128)         # lane-dense output stores
    tn = min(Np, 512)

    if (Mp, Kp) != (M, K):
        A = jnp.pad(A, ((0, Mp - M), (0, Kp - K)))
    if (Kp, Np) != (K, N):
        W = jnp.pad(W, ((0, Kp - K), (0, Np - N)))
    if Np != N:
        scale = jnp.pad(scale, (0, Np - N))
        bias = jnp.pad(bias, (0, Np - N))

    A = A.astype(jnp.bfloat16)
    W = W.astype(jnp.bfloat16)
    # Pack BN scale + bias into a single (2, Np) operand -> one tile DMA.
    sb = jnp.stack([scale, bias], axis=0).astype(jnp.float32)

    in_specs = [
        pl.BlockSpec((tm, Kp), lambda i, j: (i, 0)),
        pl.BlockSpec((Kp, tn), lambda i, j: (0, j)),
        pl.BlockSpec((2, tn), lambda i, j: (0, j)),
    ]
    operands = [A, W, sb]
    bytes_accessed = Mp * Kp * 2 + Kp * Np * 2 + Mp * Np * 4 + 2 * Np * 4

    if res is None:
        kernel = functools.partial(_gemm_bn_act_kernel, apply_relu=apply_relu)
    else:
        kernel = functools.partial(_gemm_bn_res_act_kernel, apply_relu=apply_relu)
        if res.shape != (Mp, Np):
            res = jnp.pad(res, ((0, Mp - res.shape[0]), (0, Np - res.shape[1])))
        in_specs.append(pl.BlockSpec((tm, tn), lambda i, j: (i, j)))
        operands.append(res.astype(jnp.float32))
        bytes_accessed += Mp * Np * 4

    out = pl.pallas_call(
        kernel,
        out_shape=jax.ShapeDtypeStruct((Mp, Np), jnp.float32),
        grid_spec=pltpu.PrefetchScalarGridSpec(
            num_scalar_prefetch=0,
            grid=(Mp // tm, Np // tn),
            in_specs=in_specs,
            out_specs=pl.BlockSpec((tm, tn), lambda i, j: (i, j)),
        ),
        compiler_params=pltpu.CompilerParams(
            dimension_semantics=("parallel", "parallel")),
        cost_estimate=pl.CostEstimate(
            flops=2 * Mp * Np * Kp,
            transcendentals=0,
            bytes_accessed=bytes_accessed),
    )(*operands)
    if (Mp, Np) != (M, N):
        out = out[:M, :N]
    return out


def rowmax(x2d, tile_n=8192):
    """x2d: (R, N) -> (N,) columnwise max, tiled over the lane dimension."""
    R, N = x2d.shape
    neg = jnp.finfo(x2d.dtype).min
    tn = min(_round_up(N, 128), tile_n)
    Np = _round_up(N, tn)
    if Np != N:
        x2d = jnp.pad(x2d, ((0, 0), (0, Np - N)), constant_values=neg)
    out = pl.pallas_call(
        _rowmax_kernel,
        out_shape=jax.ShapeDtypeStruct((1, Np), x2d.dtype),
        grid_spec=pltpu.PrefetchScalarGridSpec(
            num_scalar_prefetch=0,
            grid=(Np // tn,),
            in_specs=[pl.BlockSpec((R, tn), lambda j: (0, j))],
            out_specs=pl.BlockSpec((1, tn), lambda j: (0, j)),
        ),
        compiler_params=pltpu.CompilerParams(dimension_semantics=("parallel",)),
    )(x2d)
    return out[0, :N]


def global_maxpool(x_nhwc):
    """(B, H, W, C) -> (B, C) spatial max; no HBM transpose, C stays lane-dense."""
    B, H, W, C = x_nhwc.shape
    x3 = x_nhwc.reshape(B, H * W, C)
    out = pl.pallas_call(
        _global_maxpool_kernel,
        out_shape=jax.ShapeDtypeStruct((B, 1, C), x3.dtype),
    )(x3)
    return out.reshape(B, C)


# ----------------------------------------------------------------------------
# Conv / pooling glue (reshapes only; compute lives in the kernels above)
# ----------------------------------------------------------------------------
def _im2col(x, kh, kw, stride, pad):
    """x: (B, H, W, C) -> patches (B*Ho*Wo, kh*kw*C)."""
    B, H, W, C = x.shape
    if kh == 1 and kw == 1 and pad == 0:
        # 1x1 conv fast path: strided slice + reshape, no patch stacking.
        xs = x[:, ::stride, ::stride, :]
        _, Ho, Wo, _ = xs.shape
        return xs.reshape(B * Ho * Wo, C), Ho, Wo
    xp = jnp.pad(x, ((0, 0), (pad, pad), (pad, pad), (0, 0)))
    Ho = (H + 2 * pad - kh) // stride + 1
    Wo = (W + 2 * pad - kw) // stride + 1
    cols = []
    for dy in range(kh):
        for dx in range(kw):
            cols.append(xp[:, dy:dy + stride * Ho:stride,
                           dx:dx + stride * Wo:stride, :])
    patches = jnp.stack(cols, axis=-2)                # (B, Ho, Wo, kh*kw, C)
    return patches.reshape(B * Ho * Wo, kh * kw * C), Ho, Wo


def conv_bn(x, p, stride, pad, relu=True, residual=None):
    """Fused Conv2d(bias=False) + BatchNorm(eval) [+ residual] [+ ReLU]."""
    w = p["w"]                                        # (Cout, Cin, kh, kw)
    cout, _, kh, kw = w.shape
    A, Ho, Wo = _im2col(x, kh, kw, stride, pad)
    Wm = jnp.transpose(w, (2, 3, 1, 0)).reshape(-1, cout)
    res2d = None if residual is None else residual.reshape(-1, cout)
    out = gemm_bn_act(A, Wm, p["scale"], p["bias"], res2d, relu)
    return out.reshape(x.shape[0], Ho, Wo, cout)


def maxpool_3x3_s2_p1(x):
    B, H, W, C = x.shape
    neg = jnp.finfo(x.dtype).min
    xp = jnp.pad(x, ((0, 0), (1, 1), (1, 1), (0, 0)), constant_values=neg)
    Ho = (H + 2 - 3) // 2 + 1
    Wo = (W + 2 - 3) // 2 + 1
    cols = [xp[:, dy:dy + 2 * Ho:2, dx:dx + 2 * Wo:2, :]
            for dy in range(3) for dx in range(3)]
    stacked = jnp.stack(cols, axis=0).reshape(9, B * Ho * Wo * C)
    return rowmax(stacked).reshape(B, Ho, Wo, C)


# ----------------------------------------------------------------------------
# Parameters (deterministic synthetic init; no checkpoint loading)
# ----------------------------------------------------------------------------
def _make_conv_bn(key, cin, cout, k):
    k1, k2, k3, k4, k5 = jax.random.split(key, 5)
    fan_in = cin * k * k
    w = jax.random.normal(k1, (cout, cin, k, k), jnp.float32) * (2.0 / fan_in) ** 0.5
    gamma = jax.random.uniform(k2, (cout,), jnp.float32, 0.5, 1.5)
    beta = jax.random.normal(k3, (cout,), jnp.float32) * 0.1
    mean = jax.random.normal(k4, (cout,), jnp.float32) * 0.1
    var = jax.random.uniform(k5, (cout,), jnp.float32, 0.5, 1.5)
    scale = gamma / jnp.sqrt(var + BN_EPS)            # eval-mode BN folding
    bias = beta - mean * scale
    return {"w": w, "scale": scale, "bias": bias}


def init_params(key, base=8, layers=(1, 1, 1, 1), in_ch=3):
    keys = iter(jax.random.split(key, 256))
    expansion = 4
    params = {"stem": _make_conv_bn(next(keys), in_ch, base, 7)}
    cin = base
    planes_list = [base, base * 2, base * 4, base * 8]
    for li, (planes, nblocks) in enumerate(zip(planes_list, layers)):
        blocks = []
        stage_stride = 1 if li == 0 else 2
        for bi in range(nblocks):
            s = stage_stride if bi == 0 else 1
            blk = {
                "c1": _make_conv_bn(next(keys), cin, planes, 1),
                "c2": _make_conv_bn(next(keys), planes, planes, 3),
                "c3": _make_conv_bn(next(keys), planes, planes * expansion, 1),
            }
            if s != 1 or cin != planes * expansion:
                blk["down"] = _make_conv_bn(next(keys), cin, planes * expansion, 1)
            blocks.append(blk)
            cin = planes * expansion
        params[f"layer{li + 1}"] = blocks
    return params


# ----------------------------------------------------------------------------
# Forward (== ImageEncoder.forward: resnet features + global max pool)
# ----------------------------------------------------------------------------
def bottleneck(x, p, stride):
    identity = x
    out = conv_bn(x, p["c1"], stride=1, pad=0, relu=True)
    out = conv_bn(out, p["c2"], stride=stride, pad=1, relu=True)
    if "down" in p:
        identity = conv_bn(x, p["down"], stride=stride, pad=0, relu=False)
    # relu(bn3(conv3(out)) + identity), all fused in the GEMM epilogue
    out = conv_bn(out, p["c3"], stride=1, pad=0, relu=True, residual=identity)
    return out


def image_encoder_forward(params, x_nchw):
    # layout: accepts NCHW like PyTorch, transposes to NHWC internally.
    x = jnp.transpose(x_nchw, (0, 2, 3, 1)).astype(jnp.float32)
    x = conv_bn(x, params["stem"], stride=2, pad=3, relu=True)
    x = maxpool_3x3_s2_p1(x)
    for li, stage_stride in enumerate([1, 2, 2, 2]):
        for bi, bp in enumerate(params[f"layer{li + 1}"]):
            x = bottleneck(x, bp, stage_stride if bi == 0 else 1)
    # global max pool over spatial -> (B, C)  (timm global_pool='max')
    return global_maxpool(x)


# ----------------------------------------------------------------------------
if __name__ == "__main__":
    key = jax.random.PRNGKey(0)
    pkey, xkey = jax.random.split(key)

    params = init_params(pkey, base=8, layers=(1, 1, 1, 1), in_ch=3)
    x = jax.random.normal(xkey, (2, 3, 64, 64), jnp.float32)   # NCHW

    fwd = jax.jit(image_encoder_forward)
    out = fwd(params, x)
    out = jax.block_until_ready(out)

    assert out.shape == (2, 256), out.shape            # (B, 8*8*expansion)
    assert bool(jnp.all(jnp.isfinite(out)))
    print("KERNEL_OK")
</pallas_src>

<mosaic_0001>
module attributes {stable_mosaic.version = 11 : i64} {
  func.func @_gemm_bn_act_kernel(%arg0: i32, %arg1: i32, %arg2: memref<512x160xbf16, #tpu.memory_space<vmem>>, %arg3: memref<160x128xbf16, #tpu.memory_space<vmem>>, %arg4: memref<2x128xf32, #tpu.memory_space<vmem>>, %arg5: memref<512x128xf32, #tpu.memory_space<vmem>>) attributes {dimension_semantics = [#tpu.dimension_semantics<parallel>, #tpu.dimension_semantics<parallel>], iteration_bounds = array<i64: 4, 1>, scalar_prefetch = 0 : i64, scratch_operands = 0 : i64, tpu.core_type = #tpu.core_type<tc>, window_params = [{transform_indices = @transform_0, window_bounds = array<i64: 512, 160>}, {transform_indices = @transform_1, window_bounds = array<i64: 160, 128>}, {transform_indices = @transform_2, window_bounds = array<i64: 2, 128>}, {transform_indices = @transform_3, window_bounds = array<i64: 512, 128>}]} {
    %c0 = arith.constant 0 : index
    %c0_0 = arith.constant 0 : index
    %0 = vector.load %arg2[%c0, %c0_0] : memref<512x160xbf16, #tpu.memory_space<vmem>>, vector<512x160xbf16>
    %c0_1 = arith.constant 0 : index
    %c0_2 = arith.constant 0 : index
    %1 = vector.load %arg3[%c0_1, %c0_2] : memref<160x128xbf16, #tpu.memory_space<vmem>>, vector<160x128xbf16>
    %cst = arith.constant dense<0.000000e+00> : vector<512x128xf32>
    %2 = tpu.matmul %0, %1, %cst {dimension_numbers = #tpu.dot_dimension_numbers<[1], [0], [0], [1], [0, 0, 1, 1], [], []>} : vector<512x160xbf16>, vector<160x128xbf16>, vector<512x128xf32> -> vector<512x128xf32>
    %c0_3 = arith.constant 0 : index
    %c0_4 = arith.constant 0 : index
    %3 = vector.load %arg4[%c0_3, %c0_4] : memref<2x128xf32, #tpu.memory_space<vmem>>, vector<1x128xf32>
    %4 = vector.broadcast %3 : vector<1x128xf32> to vector<512x128xf32>
    %5 = arith.mulf %2, %4 : vector<512x128xf32>
    %c1 = arith.constant 1 : index
    %c0_5 = arith.constant 0 : index
    %6 = vector.load %arg4[%c1, %c0_5] : memref<2x128xf32, #tpu.memory_space<vmem>>, vector<1x128xf32>
    %7 = vector.broadcast %6 : vector<1x128xf32> to vector<512x128xf32>
    %8 = arith.addf %5, %7 : vector<512x128xf32>
    %cst_6 = arith.constant 0.000000e+00 : f32
    %9 = vector.broadcast %cst_6 : f32 to vector<512x128xf32>
    %10 = arith.maximumf %8, %9 : vector<512x128xf32>
    %c0_7 = arith.constant 0 : index
    %c0_8 = arith.constant 0 : index
    %11 = vector.load %arg5[%c0_7, %c0_8] : memref<512x128xf32, #tpu.memory_space<vmem>>, vector<512x128xf32>
    tpu.vector_store %arg5[%c0_7, %c0_8], %10 {strides = array<i32>} : memref<512x128xf32, #tpu.memory_space<vmem>>, vector<512x128xf32>,
    return
  }
  func.func @transform_0(%arg0: i32, %arg1: i32) -> (i32, i32) {
    %c0_i32 = arith.constant 0 : i32
    %c0_i32_0 = arith.constant 0 : i32
    return %arg0, %c0_i32 : i32, i32
  }
  func.func @transform_1(%arg0: i32, %arg1: i32) -> (i32, i32) {
    %c0_i32 = arith.constant 0 : i32
    %c0_i32_0 = arith.constant 0 : i32
    return %c0_i32, %arg1 : i32, i32
  }
  func.func @transform_2(%arg0: i32, %arg1: i32) -> (i32, i32) {
    %c0_i32 = arith.constant 0 : i32
    %c0_i32_0 = arith.constant 0 : i32
    return %c0_i32, %arg1 : i32, i32
  }
  func.func @transform_3(%arg0: i32, %arg1: i32) -> (i32, i32) {
    %c0_i32 = arith.constant 0 : i32
    return %arg0, %arg1 : i32, i32
  }
}

module attributes {stable_mosaic.version = 11 : i64} {
  func.func @_rowmax_kernel(%arg0: i32, %arg1: memref<9x4096xf32, #tpu.memory_space<vmem>>, %arg2: memref<1x4096xf32, #tpu.memory_space<vmem>>) attributes {dimension_semantics = [#tpu.dimension_semantics<parallel>], iteration_bounds = array<i64: 1>, scalar_prefetch = 0 : i64, scratch_operands = 0 : i64, tpu.core_type = #tpu.core_type<tc>, window_params = [{transform_indices = @transform_0, window_bounds = array<i64: 9, 4096>}, {transform_indices = @transform_1, window_bounds = array<i64: 1, 4096>}]} {
    %c0 = arith.constant 0 : index
    %c0_0 = arith.constant 0 : index
    %0 = vector.load %arg1[%c0, %c0_0] : memref<9x4096xf32, #tpu.memory_space<vmem>>, vector<1x4096xf32>
    %c1 = arith.constant 1 : index
    %c0_1 = arith.constant 0 : index
    %1 = vector.load %arg1[%c1, %c0_1] : memref<9x4096xf32, #tpu.memory_space<vmem>>, vector<1x4096xf32>
    %2 = arith.maximumf %0, %1 : vector<1x4096xf32>
    %c2 = arith.constant 2 : index
    %c0_2 = arith.constant 0 : index
    %3 = vector.load %arg1[%c2, %c0_2] : memref<9x4096xf32, #tpu.memory_space<vmem>>, vector<1x4096xf32>
    %4 = arith.maximumf %2, %3 : vector<1x4096xf32>
    %c3 = arith.constant 3 : index
    %c0_3 = arith.constant 0 : index
    %5 = vector.load %arg1[%c3, %c0_3] : memref<9x4096xf32, #tpu.memory_space<vmem>>, vector<1x4096xf32>
    %6 = arith.maximumf %4, %5 : vector<1x4096xf32>
    %c4 = arith.constant 4 : index
    %c0_4 = arith.constant 0 : index
    %7 = vector.load %arg1[%c4, %c0_4] : memref<9x4096xf32, #tpu.memory_space<vmem>>, vector<1x4096xf32>
    %8 = arith.maximumf %6, %7 : vector<1x4096xf32>
    %c5 = arith.constant 5 : index
    %c0_5 = arith.constant 0 : index
    %9 = vector.load %arg1[%c5, %c0_5] : memref<9x4096xf32, #tpu.memory_space<vmem>>, vector<1x4096xf32>
    %10 = arith.maximumf %8, %9 : vector<1x4096xf32>
    %c6 = arith.constant 6 : index
    %c0_6 = arith.constant 0 : index
    %11 = vector.load %arg1[%c6, %c0_6] : memref<9x4096xf32, #tpu.memory_space<vmem>>, vector<1x4096xf32>
    %12 = arith.maximumf %10, %11 : vector<1x4096xf32>
    %c7 = arith.constant 7 : index
    %c0_7 = arith.constant 0 : index
    %13 = vector.load %arg1[%c7, %c0_7] : memref<9x4096xf32, #tpu.memory_space<vmem>>, vector<1x4096xf32>
    %14 = arith.maximumf %12, %13 : vector<1x4096xf32>
    %c8 = arith.constant 8 : index
    %c0_8 = arith.constant 0 : index
    %15 = vector.load %arg1[%c8, %c0_8] : memref<9x4096xf32, #tpu.memory_space<vmem>>, vector<1x4096xf32>
    %16 = arith.maximumf %14, %15 : vector<1x4096xf32>
    %c0_9 = arith.constant 0 : index
    %c0_10 = arith.constant 0 : index
    %17 = vector.load %arg2[%c0_9, %c0_10] : memref<1x4096xf32, #tpu.memory_space<vmem>>, vector<1x4096xf32>
    tpu.vector_store %arg2[%c0_9, %c0_10], %16 {strides = array<i32>} : memref<1x4096xf32, #tpu.memory_space<vmem>>, vector<1x4096xf32>,
    return
  }
  func.func @transform_0(%arg0: i32) -> (i32, i32) {
    %c0_i32 = arith.constant 0 : i32
    %c0_i32_0 = arith.constant 0 : i32
    return %c0_i32, %arg0 : i32, i32
  }
  func.func @transform_1(%arg0: i32) -> (i32, i32) {
    %c0_i32 = arith.constant 0 : i32
    %c0_i32_0 = arith.constant 0 : i32
    return %c0_i32, %arg0 : i32, i32
  }
}

module attributes {stable_mosaic.version = 11 : i64} {
  func.func @_gemm_bn_act_kernel(%arg0: i32, %arg1: i32, %arg2: memref<256x16xbf16, #tpu.memory_space<vmem>>, %arg3: memref<16x128xbf16, #tpu.memory_space<vmem>>, %arg4: memref<2x128xf32, #tpu.memory_space<vmem>>, %arg5: memref<256x128xf32, #tpu.memory_space<vmem>>) attributes {dimension_semantics = [#tpu.dimension_semantics<parallel>, #tpu.dimension_semantics<parallel>], iteration_bounds = array<i64: 2, 1>, scalar_prefetch = 0 : i64, scratch_operands = 0 : i64, tpu.core_type = #tpu.core_type<tc>, window_params = [{transform_indices = @transform_0, window_bounds = array<i64: 256, 16>}, {transform_indices = @transform_1, window_bounds = array<i64: 16, 128>}, {transform_indices = @transform_2, window_bounds = array<i64: 2, 128>}, {transform_indices = @transform_3, window_bounds = array<i64: 256, 128>}]} {
    %c0 = arith.constant 0 : index
    %c0_0 = arith.constant 0 : index
    %0 = vector.load %arg2[%c0, %c0_0] : memref<256x16xbf16, #tpu.memory_space<vmem>>, vector<256x16xbf16>
    %c0_1 = arith.constant 0 : index
    %c0_2 = arith.constant 0 : index
    %1 = vector.load %arg3[%c0_1, %c0_2] : memref<16x128xbf16, #tpu.memory_space<vmem>>, vector<16x128xbf16>
    %cst = arith.constant dense<0.000000e+00> : vector<256x128xf32>
    %2 = tpu.matmul %0, %1, %cst {dimension_numbers = #tpu.dot_dimension_numbers<[1], [0], [0], [1], [0, 0, 1, 1], [], []>} : vector<256x16xbf16>, vector<16x128xbf16>, vector<256x128xf32> -> vector<256x128xf32>
    %c0_3 = arith.constant 0 : index
    %c0_4 = arith.constant 0 : index
    %3 = vector.load %arg4[%c0_3, %c0_4] : memref<2x128xf32, #tpu.memory_space<vmem>>, vector<1x128xf32>
    %4 = vector.broadcast %3 : vector<1x128xf32> to vector<256x128xf32>
    %5 = arith.mulf %2, %4 : vector<256x128xf32>
    %c1 = arith.constant 1 : index
    %c0_5 = arith.constant 0 : index
    %6 = vector.load %arg4[%c1, %c0_5] : memref<2x128xf32, #tpu.memory_space<vmem>>, vector<1x128xf32>
    %7 = vector.broadcast %6 : vector<1x128xf32> to vector<256x128xf32>
    %8 = arith.addf %5, %7 : vector<256x128xf32>
    %cst_6 = arith.constant 0.000000e+00 : f32
    %9 = vector.broadcast %cst_6 : f32 to vector<256x128xf32>
    %10 = arith.maximumf %8, %9 : vector<256x128xf32>
    %c0_7 = arith.constant 0 : index
    %c0_8 = arith.constant 0 : index
    %11 = vector.load %arg5[%c0_7, %c0_8] : memref<256x128xf32, #tpu.memory_space<vmem>>, vector<256x128xf32>
    tpu.vector_store %arg5[%c0_7, %c0_8], %10 {strides = array<i32>} : memref<256x128xf32, #tpu.memory_space<vmem>>, vector<256x128xf32>,
    return
  }
  func.func @transform_0(%arg0: i32, %arg1: i32) -> (i32, i32) {
    %c0_i32 = arith.constant 0 : i32
    %c0_i32_0 = arith.constant 0 : i32
    return %arg0, %c0_i32 : i32, i32
  }
  func.func @transform_1(%arg0: i32, %arg1: i32) -> (i32, i32) {
    %c0_i32 = arith.constant 0 : i32
    %c0_i32_0 = arith.constant 0 : i32
    return %c0_i32, %arg1 : i32, i32
  }
  func.func @transform_2(%arg0: i32, %arg1: i32) -> (i32, i32) {
    %c0_i32 = arith.constant 0 : i32
    %c0_i32_0 = arith.constant 0 : i32
    return %c0_i32, %arg1 : i32, i32
  }
  func.func @transform_3(%arg0: i32, %arg1: i32) -> (i32, i32) {
    %c0_i32 = arith.constant 0 : i32
    return %arg0, %arg1 : i32, i32
  }
}

module attributes {stable_mosaic.version = 11 : i64} {
  func.func @_gemm_bn_act_kernel(%arg0: i32, %arg1: i32, %arg2: memref<256x80xbf16, #tpu.memory_space<vmem>>, %arg3: memref<80x128xbf16, #tpu.memory_space<vmem>>, %arg4: memref<2x128xf32, #tpu.memory_space<vmem>>, %arg5: memref<256x128xf32, #tpu.memory_space<vmem>>) attributes {dimension_semantics = [#tpu.dimension_semantics<parallel>, #tpu.dimension_semantics<parallel>], iteration_bounds = array<i64: 2, 1>, scalar_prefetch = 0 : i64, scratch_operands = 0 : i64, tpu.core_type = #tpu.core_type<tc>, window_params = [{transform_indices = @transform_0, window_bounds = array<i64: 256, 80>}, {transform_indices = @transform_1, window_bounds = array<i64: 80, 128>}, {transform_indices = @transform_2, window_bounds = array<i64: 2, 128>}, {transform_indices = @transform_3, window_bounds = array<i64: 256, 128>}]} {
    %c0 = arith.constant 0 : index
    %c0_0 = arith.constant 0 : index
    %0 = vector.load %arg2[%c0, %c0_0] : memref<256x80xbf16, #tpu.memory_space<vmem>>, vector<256x80xbf16>
    %c0_1 = arith.constant 0 : index
    %c0_2 = arith.constant 0 : index
    %1 = vector.load %arg3[%c0_1, %c0_2] : memref<80x128xbf16, #tpu.memory_space<vmem>>, vector<80x128xbf16>
    %cst = arith.constant dense<0.000000e+00> : vector<256x128xf32>
    %2 = tpu.matmul %0, %1, %cst {dimension_numbers = #tpu.dot_dimension_numbers<[1], [0], [0], [1], [0, 0, 1, 1], [], []>} : vector<256x80xbf16>, vector<80x128xbf16>, vector<256x128xf32> -> vector<256x128xf32>
    %c0_3 = arith.constant 0 : index
    %c0_4 = arith.constant 0 : index
    %3 = vector.load %arg4[%c0_3, %c0_4] : memref<2x128xf32, #tpu.memory_space<vmem>>, vector<1x128xf32>
    %4 = vector.broadcast %3 : vector<1x128xf32> to vector<256x128xf32>
    %5 = arith.mulf %2, %4 : vector<256x128xf32>
    %c1 = arith.constant 1 : index
    %c0_5 = arith.constant 0 : index
    %6 = vector.load %arg4[%c1, %c0_5] : memref<2x128xf32, #tpu.memory_space<vmem>>, vector<1x128xf32>
    %7 = vector.broadcast %6 : vector<1x128xf32> to vector<256x128xf32>
    %8 = arith.addf %5, %7 : vector<256x128xf32>
    %cst_6 = arith.constant 0.000000e+00 : f32
    %9 = vector.broadcast %cst_6 : f32 to vector<256x128xf32>
    %10 = arith.maximumf %8, %9 : vector<256x128xf32>
    %c0_7 = arith.constant 0 : index
    %c0_8 = arith.constant 0 : index
    %11 = vector.load %arg5[%c0_7, %c0_8] : memref<256x128xf32, #tpu.memory_space<vmem>>, vector<256x128xf32>
    tpu.vector_store %arg5[%c0_7, %c0_8], %10 {strides = array<i32>} : memref<256x128xf32, #tpu.memory_space<vmem>>, vector<256x128xf32>,
    return
  }
  func.func @transform_0(%arg0: i32, %arg1: i32) -> (i32, i32) {
    %c0_i32 = arith.constant 0 : i32
    %c0_i32_0 = arith.constant 0 : i32
    return %arg0, %c0_i32 : i32, i32
  }
  func.func @transform_1(%arg0: i32, %arg1: i32) -> (i32, i32) {
    %c0_i32 = arith.constant 0 : i32
    %c0_i32_0 = arith.constant 0 : i32
    return %c0_i32, %arg1 : i32, i32
  }
  func.func @transform_2(%arg0: i32, %arg1: i32) -> (i32, i32) {
    %c0_i32 = arith.constant 0 : i32
    %c0_i32_0 = arith.constant 0 : i32
    return %c0_i32, %arg1 : i32, i32
  }
  func.func @transform_3(%arg0: i32, %arg1: i32) -> (i32, i32) {
    %c0_i32 = arith.constant 0 : i32
    return %arg0, %arg1 : i32, i32
  }
}

module attributes {stable_mosaic.version = 11 : i64} {
  func.func @_gemm_bn_act_kernel(%arg0: i32, %arg1: i32, %arg2: memref<256x16xbf16, #tpu.memory_space<vmem>>, %arg3: memref<16x128xbf16, #tpu.memory_space<vmem>>, %arg4: memref<2x128xf32, #tpu.memory_space<vmem>>, %arg5: memref<256x128xf32, #tpu.memory_space<vmem>>) attributes {dimension_semantics = [#tpu.dimension_semantics<parallel>, #tpu.dimension_semantics<parallel>], iteration_bounds = array<i64: 2, 1>, scalar_prefetch = 0 : i64, scratch_operands = 0 : i64, tpu.core_type = #tpu.core_type<tc>, window_params = [{transform_indices = @transform_0, window_bounds = array<i64: 256, 16>}, {transform_indices = @transform_1, window_bounds = array<i64: 16, 128>}, {transform_indices = @transform_2, window_bounds = array<i64: 2, 128>}, {transform_indices = @transform_3, window_bounds = array<i64: 256, 128>}]} {
    %c0 = arith.constant 0 : index
    %c0_0 = arith.constant 0 : index
    %0 = vector.load %arg2[%c0, %c0_0] : memref<256x16xbf16, #tpu.memory_space<vmem>>, vector<256x16xbf16>
    %c0_1 = arith.constant 0 : index
    %c0_2 = arith.constant 0 : index
    %1 = vector.load %arg3[%c0_1, %c0_2] : memref<16x128xbf16, #tpu.memory_space<vmem>>, vector<16x128xbf16>
    %cst = arith.constant dense<0.000000e+00> : vector<256x128xf32>
    %2 = tpu.matmul %0, %1, %cst {dimension_numbers = #tpu.dot_dimension_numbers<[1], [0], [0], [1], [0, 0, 1, 1], [], []>} : vector<256x16xbf16>, vector<16x128xbf16>, vector<256x128xf32> -> vector<256x128xf32>
    %c0_3 = arith.constant 0 : index
    %c0_4 = arith.constant 0 : index
    %3 = vector.load %arg4[%c0_3, %c0_4] : memref<2x128xf32, #tpu.memory_space<vmem>>, vector<1x128xf32>
    %4 = vector.broadcast %3 : vector<1x128xf32> to vector<256x128xf32>
    %5 = arith.mulf %2, %4 : vector<256x128xf32>
    %c1 = arith.constant 1 : index
    %c0_5 = arith.constant 0 : index
    %6 = vector.load %arg4[%c1, %c0_5] : memref<2x128xf32, #tpu.memory_space<vmem>>, vector<1x128xf32>
    %7 = vector.broadcast %6 : vector<1x128xf32> to vector<256x128xf32>
    %8 = arith.addf %5, %7 : vector<256x128xf32>
    %c0_6 = arith.constant 0 : index
    %c0_7 = arith.constant 0 : index
    %9 = vector.load %arg5[%c0_6, %c0_7] : memref<256x128xf32, #tpu.memory_space<vmem>>, vector<256x128xf32>
    tpu.vector_store %arg5[%c0_6, %c0_7], %8 {strides = array<i32>} : memref<256x128xf32, #tpu.memory_space<vmem>>, vector<256x128xf32>,
    return
  }
  func.func @transform_0(%arg0: i32, %arg1: i32) -> (i32, i32) {
    %c0_i32 = arith.constant 0 : i32
    %c0_i32_0 = arith.constant 0 : i32
    return %arg0, %c0_i32 : i32, i32
  }
  func.func @transform_1(%arg0: i32, %arg1: i32) -> (i32, i32) {
    %c0_i32 = arith.constant 0 : i32
    %c0_i32_0 = arith.constant 0 : i32
    return %c0_i32, %arg1 : i32, i32
  }
  func.func @transform_2(%arg0: i32, %arg1: i32) -> (i32, i32) {
    %c0_i32 = arith.constant 0 : i32
    %c0_i32_0 = arith.constant 0 : i32
    return %c0_i32, %arg1 : i32, i32
  }
  func.func @transform_3(%arg0: i32, %arg1: i32) -> (i32, i32) {
    %c0_i32 = arith.constant 0 : i32
    return %arg0, %arg1 : i32, i32
  }
}

module attributes {stable_mosaic.version = 11 : i64} {
  func.func @_gemm_bn_res_act_kernel(%arg0: i32, %arg1: i32, %arg2: memref<256x16xbf16, #tpu.memory_space<vmem>>, %arg3: memref<16x128xbf16, #tpu.memory_space<vmem>>, %arg4: memref<2x128xf32, #tpu.memory_space<vmem>>, %arg5: memref<256x128xf32, #tpu.memory_space<vmem>>, %arg6: memref<256x128xf32, #tpu.memory_space<vmem>>) attributes {dimension_semantics = [#tpu.dimension_semantics<parallel>, #tpu.dimension_semantics<parallel>], iteration_bounds = array<i64: 2, 1>, scalar_prefetch = 0 : i64, scratch_operands = 0 : i64, tpu.core_type = #tpu.core_type<tc>, window_params = [{transform_indices = @transform_0, window_bounds = array<i64: 256, 16>}, {transform_indices = @transform_1, window_bounds = array<i64: 16, 128>}, {transform_indices = @transform_2, window_bounds = array<i64: 2, 128>}, {transform_indices = @transform_3, window_bounds = array<i64: 256, 128>}, {transform_indices = @transform_4, window_bounds = array<i64: 256, 128>}]} {
    %c0 = arith.constant 0 : index
    %c0_0 = arith.constant 0 : index
    %0 = vector.load %arg2[%c0, %c0_0] : memref<256x16xbf16, #tpu.memory_space<vmem>>, vector<256x16xbf16>
    %c0_1 = arith.constant 0 : index
    %c0_2 = arith.constant 0 : index
    %1 = vector.load %arg3[%c0_1, %c0_2] : memref<16x128xbf16, #tpu.memory_space<vmem>>, vector<16x128xbf16>
    %cst = arith.constant dense<0.000000e+00> : vector<256x128xf32>
    %2 = tpu.matmul %0, %1, %cst {dimension_numbers = #tpu.dot_dimension_numbers<[1], [0], [0], [1], [0, 0, 1, 1], [], []>} : vector<256x16xbf16>, vector<16x128xbf16>, vector<256x128xf32> -> vector<256x128xf32>
    %c0_3 = arith.constant 0 : index
    %c0_4 = arith.constant 0 : index
    %3 = vector.load %arg4[%c0_3, %c0_4] : memref<2x128xf32, #tpu.memory_space<vmem>>, vector<1x128xf32>
    %4 = vector.broadcast %3 : vector<1x128xf32> to vector<256x128xf32>
    %5 = arith.mulf %2, %4 : vector<256x128xf32>
    %c1 = arith.constant 1 : index
    %c0_5 = arith.constant 0 : index
    %6 = vector.load %arg4[%c1, %c0_5] : memref<2x128xf32, #tpu.memory_space<vmem>>, vector<1x128xf32>
    %7 = vector.broadcast %6 : vector<1x128xf32> to vector<256x128xf32>
    %8 = arith.addf %5, %7 : vector<256x128xf32>
    %c0_6 = arith.constant 0 : index
    %c0_7 = arith.constant 0 : index
    %9 = vector.load %arg5[%c0_6, %c0_7] : memref<256x128xf32, #tpu.memory_space<vmem>>, vector<256x128xf32>
    %10 = arith.addf %8, %9 : vector<256x128xf32>
    %cst_8 = arith.constant 0.000000e+00 : f32
    %11 = vector.broadcast %cst_8 : f32 to vector<256x128xf32>
    %12 = arith.maximumf %10, %11 : vector<256x128xf32>
    %c0_9 = arith.constant 0 : index
    %c0_10 = arith.constant 0 : index
    %13 = vector.load %arg6[%c0_9, %c0_10] : memref<256x128xf32, #tpu.memory_space<vmem>>, vector<256x128xf32>
    tpu.vector_store %arg6[%c0_9, %c0_10], %12 {strides = array<i32>} : memref<256x128xf32, #tpu.memory_space<vmem>>, vector<256x128xf32>,
    return
  }
  func.func @transform_0(%arg0: i32, %arg1: i32) -> (i32, i32) {
    %c0_i32 = arith.constant 0 : i32
    %c0_i32_0 = arith.constant 0 : i32
    return %arg0, %c0_i32 : i32, i32
  }
  func.func @transform_1(%arg0: i32, %arg1: i32) -> (i32, i32) {
    %c0_i32 = arith.constant 0 : i32
    %c0_i32_0 = arith.constant 0 : i32
    return %c0_i32, %arg1 : i32, i32
  }
  func.func @transform_2(%arg0: i32, %arg1: i32) -> (i32, i32) {
    %c0_i32 = arith.constant 0 : i32
    %c0_i32_0 = arith.constant 0 : i32
    return %c0_i32, %arg1 : i32, i32
  }
  func.func @transform_3(%arg0: i32, %arg1: i32) -> (i32, i32) {
    %c0_i32 = arith.constant 0 : i32
    return %arg0, %arg1 : i32, i32
  }
  func.func @transform_4(%arg0: i32, %arg1: i32) -> (i32, i32) {
    %c0_i32 = arith.constant 0 : i32
    return %arg0, %arg1 : i32, i32
  }
}

module attributes {stable_mosaic.version = 11 : i64} {
  func.func @_gemm_bn_act_kernel(%arg0: i32, %arg1: i32, %arg2: memref<256x32xbf16, #tpu.memory_space<vmem>>, %arg3: memref<32x128xbf16, #tpu.memory_space<vmem>>, %arg4: memref<2x128xf32, #tpu.memory_space<vmem>>, %arg5: memref<256x128xf32, #tpu.memory_space<vmem>>) attributes {dimension_semantics = [#tpu.dimension_semantics<parallel>, #tpu.dimension_semantics<parallel>], iteration_bounds = array<i64: 2, 1>, scalar_prefetch = 0 : i64, scratch_operands = 0 : i64, tpu.core_type = #tpu.core_type<tc>, window_params = [{transform_indices = @transform_0, window_bounds = array<i64: 256, 32>}, {transform_indices = @transform_1, window_bounds = array<i64: 32, 128>}, {transform_indices = @transform_2, window_bounds = array<i64: 2, 128>}, {transform_indices = @transform_3, window_bounds = array<i64: 256, 128>}]} {
    %c0 = arith.constant 0 : index
    %c0_0 = arith.constant 0 : index
    %0 = vector.load %arg2[%c0, %c0_0] : memref<256x32xbf16, #tpu.memory_space<vmem>>, vector<256x32xbf16>
    %c0_1 = arith.constant 0 : index
    %c0_2 = arith.constant 0 : index
    %1 = vector.load %arg3[%c0_1, %c0_2] : memref<32x128xbf16, #tpu.memory_space<vmem>>, vector<32x128xbf16>
    %cst = arith.constant dense<0.000000e+00> : vector<256x128xf32>
    %2 = tpu.matmul %0, %1, %cst {dimension_numbers = #tpu.dot_dimension_numbers<[1], [0], [0], [1], [0, 0, 1, 1], [], []>} : vector<256x32xbf16>, vector<32x128xbf16>, vector<256x128xf32> -> vector<256x128xf32>
    %c0_3 = arith.constant 0 : index
    %c0_4 = arith.constant 0 : index
    %3 = vector.load %arg4[%c0_3, %c0_4] : memref<2x128xf32, #tpu.memory_space<vmem>>, vector<1x128xf32>
    %4 = vector.broadcast %3 : vector<1x128xf32> to vector<256x128xf32>
    %5 = arith.mulf %2, %4 : vector<256x128xf32>
    %c1 = arith.constant 1 : index
    %c0_5 = arith.constant 0 : index
    %6 = vector.load %arg4[%c1, %c0_5] : memref<2x128xf32, #tpu.memory_space<vmem>>, vector<1x128xf32>
    %7 = vector.broadcast %6 : vector<1x128xf32> to vector<256x128xf32>
    %8 = arith.addf %5, %7 : vector<256x128xf32>
    %cst_6 = arith.constant 0.000000e+00 : f32
    %9 = vector.broadcast %cst_6 : f32 to vector<256x128xf32>
    %10 = arith.maximumf %8, %9 : vector<256x128xf32>
    %c0_7 = arith.constant 0 : index
    %c0_8 = arith.constant 0 : index
    %11 = vector.load %arg5[%c0_7, %c0_8] : memref<256x128xf32, #tpu.memory_space<vmem>>, vector<256x128xf32>
    tpu.vector_store %arg5[%c0_7, %c0_8], %10 {strides = array<i32>} : memref<256x128xf32, #tpu.memory_space<vmem>>, vector<256x128xf32>,
    return
  }
  func.func @transform_0(%arg0: i32, %arg1: i32) -> (i32, i32) {
    %c0_i32 = arith.constant 0 : i32
    %c0_i32_0 = arith.constant 0 : i32
    return %arg0, %c0_i32 : i32, i32
  }
  func.func @transform_1(%arg0: i32, %arg1: i32) -> (i32, i32) {
    %c0_i32 = arith.constant 0 : i32
    %c0_i32_0 = arith.constant 0 : i32
    return %c0_i32, %arg1 : i32, i32
  }
  func.func @transform_2(%arg0: i32, %arg1: i32) -> (i32, i32) {
    %c0_i32 = arith.constant 0 : i32
    %c0_i32_0 = arith.constant 0 : i32
    return %c0_i32, %arg1 : i32, i32
  }
  func.func @transform_3(%arg0: i32, %arg1: i32) -> (i32, i32) {
    %c0_i32 = arith.constant 0 : i32
    return %arg0, %arg1 : i32, i32
  }
}

module attributes {stable_mosaic.version = 11 : i64} {
  func.func @_gemm_bn_act_kernel(%arg0: i32, %arg1: i32, %arg2: memref<64x144xbf16, #tpu.memory_space<vmem>>, %arg3: memref<144x128xbf16, #tpu.memory_space<vmem>>, %arg4: memref<2x128xf32, #tpu.memory_space<vmem>>, %arg5: memref<64x128xf32, #tpu.memory_space<vmem>>) attributes {dimension_semantics = [#tpu.dimension_semantics<parallel>, #tpu.dimension_semantics<parallel>], iteration_bounds = array<i64: 2, 1>, scalar_prefetch = 0 : i64, scratch_operands = 0 : i64, tpu.core_type = #tpu.core_type<tc>, window_params = [{transform_indices = @transform_0, window_bounds = array<i64: 64, 144>}, {transform_indices = @transform_1, window_bounds = array<i64: 144, 128>}, {transform_indices = @transform_2, window_bounds = array<i64: 2, 128>}, {transform_indices = @transform_3, window_bounds = array<i64: 64, 128>}]} {
    %c0 = arith.constant 0 : index
    %c0_0 = arith.constant 0 : index
    %0 = vector.load %arg2[%c0, %c0_0] : memref<64x144xbf16, #tpu.memory_space<vmem>>, vector<64x144xbf16>
    %c0_1 = arith.constant 0 : index
    %c0_2 = arith.constant 0 : index
    %1 = vector.load %arg3[%c0_1, %c0_2] : memref<144x128xbf16, #tpu.memory_space<vmem>>, vector<144x128xbf16>
    %cst = arith.constant dense<0.000000e+00> : vector<64x128xf32>
    %2 = tpu.matmul %0, %1, %cst {dimension_numbers = #tpu.dot_dimension_numbers<[1], [0], [0], [1], [0, 0, 1, 1], [], []>} : vector<64x144xbf16>, vector<144x128xbf16>, vector<64x128xf32> -> vector<64x128xf32>
    %c0_3 = arith.constant 0 : index
    %c0_4 = arith.constant 0 : index
    %3 = vector.load %arg4[%c0_3, %c0_4] : memref<2x128xf32, #tpu.memory_space<vmem>>, vector<1x128xf32>
    %4 = vector.broadcast %3 : vector<1x128xf32> to vector<64x128xf32>
    %5 = arith.mulf %2, %4 : vector<64x128xf32>
    %c1 = arith.constant 1 : index
    %c0_5 = arith.constant 0 : index
    %6 = vector.load %arg4[%c1, %c0_5] : memref<2x128xf32, #tpu.memory_space<vmem>>, vector<1x128xf32>
    %7 = vector.broadcast %6 : vector<1x128xf32> to vector<64x128xf32>
    %8 = arith.addf %5, %7 : vector<64x128xf32>
    %cst_6 = arith.constant 0.000000e+00 : f32
    %9 = vector.broadcast %cst_6 : f32 to vector<64x128xf32>
    %10 = arith.maximumf %8, %9 : vector<64x128xf32>
    %c0_7 = arith.constant 0 : index
    %c0_8 = arith.constant 0 : index
    %11 = vector.load %arg5[%c0_7, %c0_8] : memref<64x128xf32, #tpu.memory_space<vmem>>, vector<64x128xf32>
    tpu.vector_store %arg5[%c0_7, %c0_8], %10 {strides = array<i32>} : memref<64x128xf32, #tpu.memory_space<vmem>>, vector<64x128xf32>,
    return
  }
  func.func @transform_0(%arg0: i32, %arg1: i32) -> (i32, i32) {
    %c0_i32 = arith.constant 0 : i32
    %c0_i32_0 = arith.constant 0 : i32
    return %arg0, %c0_i32 : i32, i32
  }
  func.func @transform_1(%arg0: i32, %arg1: i32) -> (i32, i32) {
    %c0_i32 = arith.constant 0 : i32
    %c0_i32_0 = arith.constant 0 : i32
    return %c0_i32, %arg1 : i32, i32
  }
  func.func @transform_2(%arg0: i32, %arg1: i32) -> (i32, i32) {
    %c0_i32 = arith.constant 0 : i32
    %c0_i32_0 = arith.constant 0 : i32
    return %c0_i32, %arg1 : i32, i32
  }
  func.func @transform_3(%arg0: i32, %arg1: i32) -> (i32, i32) {
    %c0_i32 = arith.constant 0 : i32
    return %arg0, %arg1 : i32, i32
  }
}

module attributes {stable_mosaic.version = 11 : i64} {
  func.func @_gemm_bn_act_kernel(%arg0: i32, %arg1: i32, %arg2: memref<64x32xbf16, #tpu.memory_space<vmem>>, %arg3: memref<32x128xbf16, #tpu.memory_space<vmem>>, %arg4: memref<2x128xf32, #tpu.memory_space<vmem>>, %arg5: memref<64x128xf32, #tpu.memory_space<vmem>>) attributes {dimension_semantics = [#tpu.dimension_semantics<parallel>, #tpu.dimension_semantics<parallel>], iteration_bounds = array<i64: 2, 1>, scalar_prefetch = 0 : i64, scratch_operands = 0 : i64, tpu.core_type = #tpu.core_type<tc>, window_params = [{transform_indices = @transform_0, window_bounds = array<i64: 64, 32>}, {transform_indices = @transform_1, window_bounds = array<i64: 32, 128>}, {transform_indices = @transform_2, window_bounds = array<i64: 2, 128>}, {transform_indices = @transform_3, window_bounds = array<i64: 64, 128>}]} {
    %c0 = arith.constant 0 : index
    %c0_0 = arith.constant 0 : index
    %0 = vector.load %arg2[%c0, %c0_0] : memref<64x32xbf16, #tpu.memory_space<vmem>>, vector<64x32xbf16>
    %c0_1 = arith.constant 0 : index
    %c0_2 = arith.constant 0 : index
    %1 = vector.load %arg3[%c0_1, %c0_2] : memref<32x128xbf16, #tpu.memory_space<vmem>>, vector<32x128xbf16>
    %cst = arith.constant dense<0.000000e+00> : vector<64x128xf32>
    %2 = tpu.matmul %0, %1, %cst {dimension_numbers = #tpu.dot_dimension_numbers<[1], [0], [0], [1], [0, 0, 1, 1], [], []>} : vector<64x32xbf16>, vector<32x128xbf16>, vector<64x128xf32> -> vector<64x128xf32>
    %c0_3 = arith.constant 0 : index
    %c0_4 = arith.constant 0 : index
    %3 = vector.load %arg4[%c0_3, %c0_4] : memref<2x128xf32, #tpu.memory_space<vmem>>, vector<1x128xf32>
    %4 = vector.broadcast %3 : vector<1x128xf32> to vector<64x128xf32>
    %5 = arith.mulf %2, %4 : vector<64x128xf32>
    %c1 = arith.constant 1 : index
    %c0_5 = arith.constant 0 : index
    %6 = vector.load %arg4[%c1, %c0_5] : memref<2x128xf32, #tpu.memory_space<vmem>>, vector<1x128xf32>
    %7 = vector.broadcast %6 : vector<1x128xf32> to vector<64x128xf32>
    %8 = arith.addf %5, %7 : vector<64x128xf32>
    %c0_6 = arith.constant 0 : index
    %c0_7 = arith.constant 0 : index
    %9 = vector.load %arg5[%c0_6, %c0_7] : memref<64x128xf32, #tpu.memory_space<vmem>>, vector<64x128xf32>
    tpu.vector_store %arg5[%c0_6, %c0_7], %8 {strides = array<i32>} : memref<64x128xf32, #tpu.memory_space<vmem>>, vector<64x128xf32>,
    return
  }
  func.func @transform_0(%arg0: i32, %arg1: i32) -> (i32, i32) {
    %c0_i32 = arith.constant 0 : i32
    %c0_i32_0 = arith.constant 0 : i32
    return %arg0, %c0_i32 : i32, i32
  }
  func.func @transform_1(%arg0: i32, %arg1: i32) -> (i32, i32) {
    %c0_i32 = arith.constant 0 : i32
    %c0_i32_0 = arith.constant 0 : i32
    return %c0_i32, %arg1 : i32, i32
  }
  func.func @transform_2(%arg0: i32, %arg1: i32) -> (i32, i32) {
    %c0_i32 = arith.constant 0 : i32
    %c0_i32_0 = arith.constant 0 : i32
    return %c0_i32, %arg1 : i32, i32
  }
  func.func @transform_3(%arg0: i32, %arg1: i32) -> (i32, i32) {
    %c0_i32 = arith.constant 0 : i32
    return %arg0, %arg1 : i32, i32
  }
}

module attributes {stable_mosaic.version = 11 : i64} {
  func.func @_gemm_bn_res_act_kernel(%arg0: i32, %arg1: i32, %arg2: memref<64x16xbf16, #tpu.memory_space<vmem>>, %arg3: memref<16x128xbf16, #tpu.memory_space<vmem>>, %arg4: memref<2x128xf32, #tpu.memory_space<vmem>>, %arg5: memref<64x128xf32, #tpu.memory_space<vmem>>, %arg6: memref<64x128xf32, #tpu.memory_space<vmem>>) attributes {dimension_semantics = [#tpu.dimension_semantics<parallel>, #tpu.dimension_semantics<parallel>], iteration_bounds = array<i64: 2, 1>, scalar_prefetch = 0 : i64, scratch_operands = 0 : i64, tpu.core_type = #tpu.core_type<tc>, window_params = [{transform_indices = @transform_0, window_bounds = array<i64: 64, 16>}, {transform_indices = @transform_1, window_bounds = array<i64: 16, 128>}, {transform_indices = @transform_2, window_bounds = array<i64: 2, 128>}, {transform_indices = @transform_3, window_bounds = array<i64: 64, 128>}, {transform_indices = @transform_4, window_bounds = array<i64: 64, 128>}]} {
    %c0 = arith.constant 0 : index
    %c0_0 = arith.constant 0 : index
    %0 = vector.load %arg2[%c0, %c0_0] : memref<64x16xbf16, #tpu.memory_space<vmem>>, vector<64x16xbf16>
    %c0_1 = arith.constant 0 : index
    %c0_2 = arith.constant 0 : index
    %1 = vector.load %arg3[%c0_1, %c0_2] : memref<16x128xbf16, #tpu.memory_space<vmem>>, vector<16x128xbf16>
    %cst = arith.constant dense<0.000000e+00> : vector<64x128xf32>
    %2 = tpu.matmul %0, %1, %cst {dimension_numbers = #tpu.dot_dimension_numbers<[1], [0], [0], [1], [0, 0, 1, 1], [], []>} : vector<64x16xbf16>, vector<16x128xbf16>, vector<64x128xf32> -> vector<64x128xf32>
    %c0_3 = arith.constant 0 : index
    %c0_4 = arith.constant 0 : index
    %3 = vector.load %arg4[%c0_3, %c0_4] : memref<2x128xf32, #tpu.memory_space<vmem>>, vector<1x128xf32>
    %4 = vector.broadcast %3 : vector<1x128xf32> to vector<64x128xf32>
    %5 = arith.mulf %2, %4 : vector<64x128xf32>
    %c1 = arith.constant 1 : index
    %c0_5 = arith.constant 0 : index
    %6 = vector.load %arg4[%c1, %c0_5] : memref<2x128xf32, #tpu.memory_space<vmem>>, vector<1x128xf32>
    %7 = vector.broadcast %6 : vector<1x128xf32> to vector<64x128xf32>
    %8 = arith.addf %5, %7 : vector<64x128xf32>
    %c0_6 = arith.constant 0 : index
    %c0_7 = arith.constant 0 : index
    %9 = vector.load %arg5[%c0_6, %c0_7] : memref<64x128xf32, #tpu.memory_space<vmem>>, vector<64x128xf32>
    %10 = arith.addf %8, %9 : vector<64x128xf32>
    %cst_8 = arith.constant 0.000000e+00 : f32
    %11 = vector.broadcast %cst_8 : f32 to vector<64x128xf32>
    %12 = arith.maximumf %10, %11 : vector<64x128xf32>
    %c0_9 = arith.constant 0 : index
    %c0_10 = arith.constant 0 : index
    %13 = vector.load %arg6[%c0_9, %c0_10] : memref<64x128xf32, #tpu.memory_space<vmem>>, vector<64x128xf32>
    tpu.vector_store %arg6[%c0_9, %c0_10], %12 {strides = array<i32>} : memref<64x128xf32, #tpu.memory_space<vmem>>, vector<64x128xf32>,
    return
  }
  func.func @transform_0(%arg0: i32, %arg1: i32) -> (i32, i32) {
    %c0_i32 = arith.constant 0 : i32
    %c0_i32_0 = arith.constant 0 : i32
    return %arg0, %c0_i32 : i32, i32
  }
  func.func @transform_1(%arg0: i32, %arg1: i32) -> (i32, i32) {
    %c0_i32 = arith.constant 0 : i32
    %c0_i32_0 = arith.constant 0 : i32
    return %c0_i32, %arg1 : i32, i32
  }
  func.func @transform_2(%arg0: i32, %arg1: i32) -> (i32, i32) {
    %c0_i32 = arith.constant 0 : i32
    %c0_i32_0 = arith.constant 0 : i32
    return %c0_i32, %arg1 : i32, i32
  }
  func.func @transform_3(%arg0: i32, %arg1: i32) -> (i32, i32) {
    %c0_i32 = arith.constant 0 : i32
    return %arg0, %arg1 : i32, i32
  }
  func.func @transform_4(%arg0: i32, %arg1: i32) -> (i32, i32) {
    %c0_i32 = arith.constant 0 : i32
    return %arg0, %arg1 : i32, i32
  }
}

module attributes {stable_mosaic.version = 11 : i64} {
  func.func @_gemm_bn_act_kernel(%arg0: i32, %arg1: i32, %arg2: memref<64x64xbf16, #tpu.memory_space<vmem>>, %arg3: memref<64x128xbf16, #tpu.memory_space<vmem>>, %arg4: memref<2x128xf32, #tpu.memory_space<vmem>>, %arg5: memref<64x128xf32, #tpu.memory_space<vmem>>) attributes {dimension_semantics = [#tpu.dimension_semantics<parallel>, #tpu.dimension_semantics<parallel>], iteration_bounds = array<i64: 2, 1>, scalar_prefetch = 0 : i64, scratch_operands = 0 : i64, tpu.core_type = #tpu.core_type<tc>, window_params = [{transform_indices = @transform_0, window_bounds = array<i64: 64, 64>}, {transform_indices = @transform_1, window_bounds = array<i64: 64, 128>}, {transform_indices = @transform_2, window_bounds = array<i64: 2, 128>}, {transform_indices = @transform_3, window_bounds = array<i64: 64, 128>}]} {
    %c0 = arith.constant 0 : index
    %c0_0 = arith.constant 0 : index
    %0 = vector.load %arg2[%c0, %c0_0] : memref<64x64xbf16, #tpu.memory_space<vmem>>, vector<64x64xbf16>
    %c0_1 = arith.constant 0 : index
    %c0_2 = arith.constant 0 : index
    %1 = vector.load %arg3[%c0_1, %c0_2] : memref<64x128xbf16, #tpu.memory_space<vmem>>, vector<64x128xbf16>
    %cst = arith.constant dense<0.000000e+00> : vector<64x128xf32>
    %2 = tpu.matmul %0, %1, %cst {dimension_numbers = #tpu.dot_dimension_numbers<[1], [0], [0], [1], [0, 0, 1, 1], [], []>} : vector<64x64xbf16>, vector<64x128xbf16>, vector<64x128xf32> -> vector<64x128xf32>
    %c0_3 = arith.constant 0 : index
    %c0_4 = arith.constant 0 : index
    %3 = vector.load %arg4[%c0_3, %c0_4] : memref<2x128xf32, #tpu.memory_space<vmem>>, vector<1x128xf32>
    %4 = vector.broadcast %3 : vector<1x128xf32> to vector<64x128xf32>
    %5 = arith.mulf %2, %4 : vector<64x128xf32>
    %c1 = arith.constant 1 : index
    %c0_5 = arith.constant 0 : index
    %6 = vector.load %arg4[%c1, %c0_5] : memref<2x128xf32, #tpu.memory_space<vmem>>, vector<1x128xf32>
    %7 = vector.broadcast %6 : vector<1x128xf32> to vector<64x128xf32>
    %8 = arith.addf %5, %7 : vector<64x128xf32>
    %cst_6 = arith.constant 0.000000e+00 : f32
    %9 = vector.broadcast %cst_6 : f32 to vector<64x128xf32>
    %10 = arith.maximumf %8, %9 : vector<64x128xf32>
    %c0_7 = arith.constant 0 : index
    %c0_8 = arith.constant 0 : index
    %11 = vector.load %arg5[%c0_7, %c0_8] : memref<64x128xf32, #tpu.memory_space<vmem>>, vector<64x128xf32>
    tpu.vector_store %arg5[%c0_7, %c0_8], %10 {strides = array<i32>} : memref<64x128xf32, #tpu.memory_space<vmem>>, vector<64x128xf32>,
    return
  }
  func.func @transform_0(%arg0: i32, %arg1: i32) -> (i32, i32) {
    %c0_i32 = arith.constant 0 : i32
    %c0_i32_0 = arith.constant 0 : i32
    return %arg0, %c0_i32 : i32, i32
  }
  func.func @transform_1(%arg0: i32, %arg1: i32) -> (i32, i32) {
    %c0_i32 = arith.constant 0 : i32
    %c0_i32_0 = arith.constant 0 : i32
    return %c0_i32, %arg1 : i32, i32
  }
  func.func @transform_2(%arg0: i32, %arg1: i32) -> (i32, i32) {
    %c0_i32 = arith.constant 0 : i32
    %c0_i32_0 = arith.constant 0 : i32
    return %c0_i32, %arg1 : i32, i32
  }
  func.func @transform_3(%arg0: i32, %arg1: i32) -> (i32, i32) {
    %c0_i32 = arith.constant 0 : i32
    return %arg0, %arg1 : i32, i32
  }
}

module attributes {stable_mosaic.version = 11 : i64} {
  func.func @_gemm_bn_act_kernel(%arg0: i32, %arg1: i32, %arg2: memref<16x288xbf16, #tpu.memory_space<vmem>>, %arg3: memref<288x128xbf16, #tpu.memory_space<vmem>>, %arg4: memref<2x128xf32, #tpu.memory_space<vmem>>, %arg5: memref<16x128xf32, #tpu.memory_space<vmem>>) attributes {dimension_semantics = [#tpu.dimension_semantics<parallel>, #tpu.dimension_semantics<parallel>], iteration_bounds = array<i64: 2, 1>, scalar_prefetch = 0 : i64, scratch_operands = 0 : i64, tpu.core_type = #tpu.core_type<tc>, window_params = [{transform_indices = @transform_0, window_bounds = array<i64: 16, 288>}, {transform_indices = @transform_1, window_bounds = array<i64: 288, 128>}, {transform_indices = @transform_2, window_bounds = array<i64: 2, 128>}, {transform_indices = @transform_3, window_bounds = array<i64: 16, 128>}]} {
    %c0 = arith.constant 0 : index
    %c0_0 = arith.constant 0 : index
    %0 = vector.load %arg2[%c0, %c0_0] : memref<16x288xbf16, #tpu.memory_space<vmem>>, vector<16x288xbf16>
    %c0_1 = arith.constant 0 : index
    %c0_2 = arith.constant 0 : index
    %1 = vector.load %arg3[%c0_1, %c0_2] : memref<288x128xbf16, #tpu.memory_space<vmem>>, vector<288x128xbf16>
    %cst = arith.constant dense<0.000000e+00> : vector<16x128xf32>
    %2 = tpu.matmul %0, %1, %cst {dimension_numbers = #tpu.dot_dimension_numbers<[1], [0], [0], [1], [0, 0, 1, 1], [], []>} : vector<16x288xbf16>, vector<288x128xbf16>, vector<16x128xf32> -> vector<16x128xf32>
    %c0_3 = arith.constant 0 : index
    %c0_4 = arith.constant 0 : index
    %3 = vector.load %arg4[%c0_3, %c0_4] : memref<2x128xf32, #tpu.memory_space<vmem>>, vector<1x128xf32>
    %4 = vector.broadcast %3 : vector<1x128xf32> to vector<16x128xf32>
    %5 = arith.mulf %2, %4 : vector<16x128xf32>
    %c1 = arith.constant 1 : index
    %c0_5 = arith.constant 0 : index
    %6 = vector.load %arg4[%c1, %c0_5] : memref<2x128xf32, #tpu.memory_space<vmem>>, vector<1x128xf32>
    %7 = vector.broadcast %6 : vector<1x128xf32> to vector<16x128xf32>
    %8 = arith.addf %5, %7 : vector<16x128xf32>
    %cst_6 = arith.constant 0.000000e+00 : f32
    %9 = vector.broadcast %cst_6 : f32 to vector<16x128xf32>
    %10 = arith.maximumf %8, %9 : vector<16x128xf32>
    %c0_7 = arith.constant 0 : index
    %c0_8 = arith.constant 0 : index
    %11 = vector.load %arg5[%c0_7, %c0_8] : memref<16x128xf32, #tpu.memory_space<vmem>>, vector<16x128xf32>
    tpu.vector_store %arg5[%c0_7, %c0_8], %10 {strides = array<i32>} : memref<16x128xf32, #tpu.memory_space<vmem>>, vector<16x128xf32>,
    return
  }
  func.func @transform_0(%arg0: i32, %arg1: i32) -> (i32, i32) {
    %c0_i32 = arith.constant 0 : i32
    %c0_i32_0 = arith.constant 0 : i32
    return %arg0, %c0_i32 : i32, i32
  }
  func.func @transform_1(%arg0: i32, %arg1: i32) -> (i32, i32) {
    %c0_i32 = arith.constant 0 : i32
    %c0_i32_0 = arith.constant 0 : i32
    return %c0_i32, %arg1 : i32, i32
  }
  func.func @transform_2(%arg0: i32, %arg1: i32) -> (i32, i32) {
    %c0_i32 = arith.constant 0 : i32
    %c0_i32_0 = arith.constant 0 : i32
    return %c0_i32, %arg1 : i32, i32
  }
  func.func @transform_3(%arg0: i32, %arg1: i32) -> (i32, i32) {
    %c0_i32 = arith.constant 0 : i32
    return %arg0, %arg1 : i32, i32
  }
}

module attributes {stable_mosaic.version = 11 : i64} {
  func.func @_gemm_bn_res_act_kernel(%arg0: i32, %arg1: i32, %arg2: memref<16x32xbf16, #tpu.memory_space<vmem>>, %arg3: memref<32x128xbf16, #tpu.memory_space<vmem>>, %arg4: memref<2x128xf32, #tpu.memory_space<vmem>>, %arg5: memref<16x128xf32, #tpu.memory_space<vmem>>, %arg6: memref<16x128xf32, #tpu.memory_space<vmem>>) attributes {dimension_semantics = [#tpu.dimension_semantics<parallel>, #tpu.dimension_semantics<parallel>], iteration_bounds = array<i64: 2, 1>, scalar_prefetch = 0 : i64, scratch_operands = 0 : i64, tpu.core_type = #tpu.core_type<tc>, window_params = [{transform_indices = @transform_0, window_bounds = array<i64: 16, 32>}, {transform_indices = @transform_1, window_bounds = array<i64: 32, 128>}, {transform_indices = @transform_2, window_bounds = array<i64: 2, 128>}, {transform_indices = @transform_3, window_bounds = array<i64: 16, 128>}, {transform_indices = @transform_4, window_bounds = array<i64: 16, 128>}]} {
    %c0 = arith.constant 0 : index
    %c0_0 = arith.constant 0 : index
    %0 = vector.load %arg2[%c0, %c0_0] : memref<16x32xbf16, #tpu.memory_space<vmem>>, vector<16x32xbf16>
    %c0_1 = arith.constant 0 : index
    %c0_2 = arith.constant 0 : index
    %1 = vector.load %arg3[%c0_1, %c0_2] : memref<32x128xbf16, #tpu.memory_space<vmem>>, vector<32x128xbf16>
    %cst = arith.constant dense<0.000000e+00> : vector<16x128xf32>
    %2 = tpu.matmul %0, %1, %cst {dimension_numbers = #tpu.dot_dimension_numbers<[1], [0], [0], [1], [0, 0, 1, 1], [], []>} : vector<16x32xbf16>, vector<32x128xbf16>, vector<16x128xf32> -> vector<16x128xf32>
    %c0_3 = arith.constant 0 : index
    %c0_4 = arith.constant 0 : index
    %3 = vector.load %arg4[%c0_3, %c0_4] : memref<2x128xf32, #tpu.memory_space<vmem>>, vector<1x128xf32>
    %4 = vector.broadcast %3 : vector<1x128xf32> to vector<16x128xf32>
    %5 = arith.mulf %2, %4 : vector<16x128xf32>
    %c1 = arith.constant 1 : index
    %c0_5 = arith.constant 0 : index
    %6 = vector.load %arg4[%c1, %c0_5] : memref<2x128xf32, #tpu.memory_space<vmem>>, vector<1x128xf32>
    %7 = vector.broadcast %6 : vector<1x128xf32> to vector<16x128xf32>
    %8 = arith.addf %5, %7 : vector<16x128xf32>
    %c0_6 = arith.constant 0 : index
    %c0_7 = arith.constant 0 : index
    %9 = vector.load %arg5[%c0_6, %c0_7] : memref<16x128xf32, #tpu.memory_space<vmem>>, vector<16x128xf32>
    %10 = arith.addf %8, %9 : vector<16x128xf32>
    %cst_8 = arith.constant 0.000000e+00 : f32
    %11 = vector.broadcast %cst_8 : f32 to vector<16x128xf32>
    %12 = arith.maximumf %10, %11 : vector<16x128xf32>
    %c0_9 = arith.constant 0 : index
    %c0_10 = arith.constant 0 : index
    %13 = vector.load %arg6[%c0_9, %c0_10] : memref<16x128xf32, #tpu.memory_space<vmem>>, vector<16x128xf32>
    tpu.vector_store %arg6[%c0_9, %c0_10], %12 {strides = array<i32>} : memref<16x128xf32, #tpu.memory_space<vmem>>, vector<16x128xf32>,
    return
  }
  func.func @transform_0(%arg0: i32, %arg1: i32) -> (i32, i32) {
    %c0_i32 = arith.constant 0 : i32
    %c0_i32_0 = arith.constant 0 : i32
    return %arg0, %c0_i32 : i32, i32
  }
  func.func @transform_1(%arg0: i32, %arg1: i32) -> (i32, i32) {
    %c0_i32 = arith.constant 0 : i32
    %c0_i32_0 = arith.constant 0 : i32
    return %c0_i32, %arg1 : i32, i32
  }
  func.func @transform_2(%arg0: i32, %arg1: i32) -> (i32, i32) {
    %c0_i32 = arith.constant 0 : i32
    %c0_i32_0 = arith.constant 0 : i32
    return %c0_i32, %arg1 : i32, i32
  }
  func.func @transform_3(%arg0: i32, %arg1: i32) -> (i32, i32) {
    %c0_i32 = arith.constant 0 : i32
    return %arg0, %arg1 : i32, i32
  }
  func.func @transform_4(%arg0: i32, %arg1: i32) -> (i32, i32) {
    %c0_i32 = arith.constant 0 : i32
    return %arg0, %arg1 : i32, i32
  }
}

module attributes {stable_mosaic.version = 11 : i64} {
  func.func @_gemm_bn_act_kernel(%arg0: i32, %arg1: i32, %arg2: memref<16x64xbf16, #tpu.memory_space<vmem>>, %arg3: memref<64x128xbf16, #tpu.memory_space<vmem>>, %arg4: memref<2x128xf32, #tpu.memory_space<vmem>>, %arg5: memref<16x128xf32, #tpu.memory_space<vmem>>) attributes {dimension_semantics = [#tpu.dimension_semantics<parallel>, #tpu.dimension_semantics<parallel>], iteration_bounds = array<i64: 2, 1>, scalar_prefetch = 0 : i64, scratch_operands = 0 : i64, tpu.core_type = #tpu.core_type<tc>, window_params = [{transform_indices = @transform_0, window_bounds = array<i64: 16, 64>}, {transform_indices = @transform_1, window_bounds = array<i64: 64, 128>}, {transform_indices = @transform_2, window_bounds = array<i64: 2, 128>}, {transform_indices = @transform_3, window_bounds = array<i64: 16, 128>}]} {
    %c0 = arith.constant 0 : index
    %c0_0 = arith.constant 0 : index
    %0 = vector.load %arg2[%c0, %c0_0] : memref<16x64xbf16, #tpu.memory_space<vmem>>, vector<16x64xbf16>
    %c0_1 = arith.constant 0 : index
    %c0_2 = arith.constant 0 : index
    %1 = vector.load %arg3[%c0_1, %c0_2] : memref<64x128xbf16, #tpu.memory_space<vmem>>, vector<64x128xbf16>
    %cst = arith.constant dense<0.000000e+00> : vector<16x128xf32>
    %2 = tpu.matmul %0, %1, %cst {dimension_numbers = #tpu.dot_dimension_numbers<[1], [0], [0], [1], [0, 0, 1, 1], [], []>} : vector<16x64xbf16>, vector<64x128xbf16>, vector<16x128xf32> -> vector<16x128xf32>
    %c0_3 = arith.constant 0 : index
    %c0_4 = arith.constant 0 : index
    %3 = vector.load %arg4[%c0_3, %c0_4] : memref<2x128xf32, #tpu.memory_space<vmem>>, vector<1x128xf32>
    %4 = vector.broadcast %3 : vector<1x128xf32> to vector<16x128xf32>
    %5 = arith.mulf %2, %4 : vector<16x128xf32>
    %c1 = arith.constant 1 : index
    %c0_5 = arith.constant 0 : index
    %6 = vector.load %arg4[%c1, %c0_5] : memref<2x128xf32, #tpu.memory_space<vmem>>, vector<1x128xf32>
    %7 = vector.broadcast %6 : vector<1x128xf32> to vector<16x128xf32>
    %8 = arith.addf %5, %7 : vector<16x128xf32>
    %c0_6 = arith.constant 0 : index
    %c0_7 = arith.constant 0 : index
    %9 = vector.load %arg5[%c0_6, %c0_7] : memref<16x128xf32, #tpu.memory_space<vmem>>, vector<16x128xf32>
    tpu.vector_store %arg5[%c0_6, %c0_7], %8 {strides = array<i32>} : memref<16x128xf32, #tpu.memory_space<vmem>>, vector<16x128xf32>,
    return
  }
  func.func @transform_0(%arg0: i32, %arg1: i32) -> (i32, i32) {
    %c0_i32 = arith.constant 0 : i32
    %c0_i32_0 = arith.constant 0 : i32
    return %arg0, %c0_i32 : i32, i32
  }
  func.func @transform_1(%arg0: i32, %arg1: i32) -> (i32, i32) {
    %c0_i32 = arith.constant 0 : i32
    %c0_i32_0 = arith.constant 0 : i32
    return %c0_i32, %arg1 : i32, i32
  }
  func.func @transform_2(%arg0: i32, %arg1: i32) -> (i32, i32) {
    %c0_i32 = arith.constant 0 : i32
    %c0_i32_0 = arith.constant 0 : i32
    return %c0_i32, %arg1 : i32, i32
  }
  func.func @transform_3(%arg0: i32, %arg1: i32) -> (i32, i32) {
    %c0_i32 = arith.constant 0 : i32
    return %arg0, %arg1 : i32, i32
  }
}

module attributes {stable_mosaic.version = 11 : i64} {
  func.func @_gemm_bn_act_kernel(%arg0: i32, %arg1: i32, %arg2: memref<16x128xbf16, #tpu.memory_space<vmem>>, %arg3: memref<128x128xbf16, #tpu.memory_space<vmem>>, %arg4: memref<2x128xf32, #tpu.memory_space<vmem>>, %arg5: memref<16x128xf32, #tpu.memory_space<vmem>>) attributes {dimension_semantics = [#tpu.dimension_semantics<parallel>, #tpu.dimension_semantics<parallel>], iteration_bounds = array<i64: 2, 1>, scalar_prefetch = 0 : i64, scratch_operands = 0 : i64, tpu.core_type = #tpu.core_type<tc>, window_params = [{transform_indices = @transform_0, window_bounds = array<i64: 16, 128>}, {transform_indices = @transform_1, window_bounds = array<i64: 128, 128>}, {transform_indices = @transform_2, window_bounds = array<i64: 2, 128>}, {transform_indices = @transform_3, window_bounds = array<i64: 16, 128>}]} {
    %c0 = arith.constant 0 : index
    %c0_0 = arith.constant 0 : index
    %0 = vector.load %arg2[%c0, %c0_0] : memref<16x128xbf16, #tpu.memory_space<vmem>>, vector<16x128xbf16>
    %c0_1 = arith.constant 0 : index
    %c0_2 = arith.constant 0 : index
    %1 = vector.load %arg3[%c0_1, %c0_2] : memref<128x128xbf16, #tpu.memory_space<vmem>>, vector<128x128xbf16>
    %cst = arith.constant dense<0.000000e+00> : vector<16x128xf32>
    %2 = tpu.matmul %0, %1, %cst {dimension_numbers = #tpu.dot_dimension_numbers<[1], [0], [0], [1], [0, 0, 1, 1], [], []>} : vector<16x128xbf16>, vector<128x128xbf16>, vector<16x128xf32> -> vector<16x128xf32>
    %c0_3 = arith.constant 0 : index
    %c0_4 = arith.constant 0 : index
    %3 = vector.load %arg4[%c0_3, %c0_4] : memref<2x128xf32, #tpu.memory_space<vmem>>, vector<1x128xf32>
    %4 = vector.broadcast %3 : vector<1x128xf32> to vector<16x128xf32>
    %5 = arith.mulf %2, %4 : vector<16x128xf32>
    %c1 = arith.constant 1 : index
    %c0_5 = arith.constant 0 : index
    %6 = vector.load %arg4[%c1, %c0_5] : memref<2x128xf32, #tpu.memory_space<vmem>>, vector<1x128xf32>
    %7 = vector.broadcast %6 : vector<1x128xf32> to vector<16x128xf32>
    %8 = arith.addf %5, %7 : vector<16x128xf32>
    %cst_6 = arith.constant 0.000000e+00 : f32
    %9 = vector.broadcast %cst_6 : f32 to vector<16x128xf32>
    %10 = arith.maximumf %8, %9 : vector<16x128xf32>
    %c0_7 = arith.constant 0 : index
    %c0_8 = arith.constant 0 : index
    %11 = vector.load %arg5[%c0_7, %c0_8] : memref<16x128xf32, #tpu.memory_space<vmem>>, vector<16x128xf32>
    tpu.vector_store %arg5[%c0_7, %c0_8], %10 {strides = array<i32>} : memref<16x128xf32, #tpu.memory_space<vmem>>, vector<16x128xf32>,
    return
  }
  func.func @transform_0(%arg0: i32, %arg1: i32) -> (i32, i32) {
    %c0_i32 = arith.constant 0 : i32
    %c0_i32_0 = arith.constant 0 : i32
    return %arg0, %c0_i32 : i32, i32
  }
  func.func @transform_1(%arg0: i32, %arg1: i32) -> (i32, i32) {
    %c0_i32 = arith.constant 0 : i32
    %c0_i32_0 = arith.constant 0 : i32
    return %c0_i32, %arg1 : i32, i32
  }
  func.func @transform_2(%arg0: i32, %arg1: i32) -> (i32, i32) {
    %c0_i32 = arith.constant 0 : i32
    %c0_i32_0 = arith.constant 0 : i32
    return %c0_i32, %arg1 : i32, i32
  }
  func.func @transform_3(%arg0: i32, %arg1: i32) -> (i32, i32) {
    %c0_i32 = arith.constant 0 : i32
    return %arg0, %arg1 : i32, i32
  }
}

module attributes {stable_mosaic.version = 11 : i64} {
  func.func @_gemm_bn_act_kernel(%arg0: i32, %arg1: i32, %arg2: memref<16x576xbf16, #tpu.memory_space<vmem>>, %arg3: memref<576x128xbf16, #tpu.memory_space<vmem>>, %arg4: memref<2x128xf32, #tpu.memory_space<vmem>>, %arg5: memref<16x128xf32, #tpu.memory_space<vmem>>) attributes {dimension_semantics = [#tpu.dimension_semantics<parallel>, #tpu.dimension_semantics<parallel>], iteration_bounds = array<i64: 1, 1>, scalar_prefetch = 0 : i64, scratch_operands = 0 : i64, tpu.core_type = #tpu.core_type<tc>, window_params = [{transform_indices = @transform_0, window_bounds = array<i64: 16, 576>}, {transform_indices = @transform_1, window_bounds = array<i64: 576, 128>}, {transform_indices = @transform_2, window_bounds = array<i64: 2, 128>}, {transform_indices = @transform_3, window_bounds = array<i64: 16, 128>}]} {
    %c0 = arith.constant 0 : index
    %c0_0 = arith.constant 0 : index
    %0 = vector.load %arg2[%c0, %c0_0] : memref<16x576xbf16, #tpu.memory_space<vmem>>, vector<16x576xbf16>
    %c0_1 = arith.constant 0 : index
    %c0_2 = arith.constant 0 : index
    %1 = vector.load %arg3[%c0_1, %c0_2] : memref<576x128xbf16, #tpu.memory_space<vmem>>, vector<576x128xbf16>
    %cst = arith.constant dense<0.000000e+00> : vector<16x128xf32>
    %2 = tpu.matmul %0, %1, %cst {dimension_numbers = #tpu.dot_dimension_numbers<[1], [0], [0], [1], [0, 0, 1, 1], [], []>} : vector<16x576xbf16>, vector<576x128xbf16>, vector<16x128xf32> -> vector<16x128xf32>
    %c0_3 = arith.constant 0 : index
    %c0_4 = arith.constant 0 : index
    %3 = vector.load %arg4[%c0_3, %c0_4] : memref<2x128xf32, #tpu.memory_space<vmem>>, vector<1x128xf32>
    %4 = vector.broadcast %3 : vector<1x128xf32> to vector<16x128xf32>
    %5 = arith.mulf %2, %4 : vector<16x128xf32>
    %c1 = arith.constant 1 : index
    %c0_5 = arith.constant 0 : index
    %6 = vector.load %arg4[%c1, %c0_5] : memref<2x128xf32, #tpu.memory_space<vmem>>, vector<1x128xf32>
    %7 = vector.broadcast %6 : vector<1x128xf32> to vector<16x128xf32>
    %8 = arith.addf %5, %7 : vector<16x128xf32>
    %cst_6 = arith.constant 0.000000e+00 : f32
    %9 = vector.broadcast %cst_6 : f32 to vector<16x128xf32>
    %10 = arith.maximumf %8, %9 : vector<16x128xf32>
    %c0_7 = arith.constant 0 : index
    %c0_8 = arith.constant 0 : index
    %11 = vector.load %arg5[%c0_7, %c0_8] : memref<16x128xf32, #tpu.memory_space<vmem>>, vector<16x128xf32>
    tpu.vector_store %arg5[%c0_7, %c0_8], %10 {strides = array<i32>} : memref<16x128xf32, #tpu.memory_space<vmem>>, vector<16x128xf32>,
    return
  }
  func.func @transform_0(%arg0: i32, %arg1: i32) -> (i32, i32) {
    %c0_i32 = arith.constant 0 : i32
    %c0_i32_0 = arith.constant 0 : i32
    return %arg0, %c0_i32 : i32, i32
  }
  func.func @transform_1(%arg0: i32, %arg1: i32) -> (i32, i32) {
    %c0_i32 = arith.constant 0 : i32
    %c0_i32_0 = arith.constant 0 : i32
    return %c0_i32, %arg1 : i32, i32
  }
  func.func @transform_2(%arg0: i32, %arg1: i32) -> (i32, i32) {
    %c0_i32 = arith.constant 0 : i32
    %c0_i32_0 = arith.constant 0 : i32
    return %c0_i32, %arg1 : i32, i32
  }
  func.func @transform_3(%arg0: i32, %arg1: i32) -> (i32, i32) {
    %c0_i32 = arith.constant 0 : i32
    return %arg0, %arg1 : i32, i32
  }
}

module attributes {stable_mosaic.version = 11 : i64} {
  func.func @_gemm_bn_act_kernel(%arg0: i32, %arg1: i32, %arg2: memref<16x128xbf16, #tpu.memory_space<vmem>>, %arg3: memref<128x256xbf16, #tpu.memory_space<vmem>>, %arg4: memref<2x256xf32, #tpu.memory_space<vmem>>, %arg5: memref<16x256xf32, #tpu.memory_space<vmem>>) attributes {dimension_semantics = [#tpu.dimension_semantics<parallel>, #tpu.dimension_semantics<parallel>], iteration_bounds = array<i64: 1, 1>, scalar_prefetch = 0 : i64, scratch_operands = 0 : i64, tpu.core_type = #tpu.core_type<tc>, window_params = [{transform_indices = @transform_0, window_bounds = array<i64: 16, 128>}, {transform_indices = @transform_1, window_bounds = array<i64: 128, 256>}, {transform_indices = @transform_2, window_bounds = array<i64: 2, 256>}, {transform_indices = @transform_3, window_bounds = array<i64: 16, 256>}]} {
    %c0 = arith.constant 0 : index
    %c0_0 = arith.constant 0 : index
    %0 = vector.load %arg2[%c0, %c0_0] : memref<16x128xbf16, #tpu.memory_space<vmem>>, vector<16x128xbf16>
    %c0_1 = arith.constant 0 : index
    %c0_2 = arith.constant 0 : index
    %1 = vector.load %arg3[%c0_1, %c0_2] : memref<128x256xbf16, #tpu.memory_space<vmem>>, vector<128x256xbf16>
    %cst = arith.constant dense<0.000000e+00> : vector<16x256xf32>
    %2 = tpu.matmul %0, %1, %cst {dimension_numbers = #tpu.dot_dimension_numbers<[1], [0], [0], [1], [0, 0, 1, 1], [], []>} : vector<16x128xbf16>, vector<128x256xbf16>, vector<16x256xf32> -> vector<16x256xf32>
    %c0_3 = arith.constant 0 : index
    %c0_4 = arith.constant 0 : index
    %3 = vector.load %arg4[%c0_3, %c0_4] : memref<2x256xf32, #tpu.memory_space<vmem>>, vector<1x256xf32>
    %4 = vector.broadcast %3 : vector<1x256xf32> to vector<16x256xf32>
    %5 = arith.mulf %2, %4 : vector<16x256xf32>
    %c1 = arith.constant 1 : index
    %c0_5 = arith.constant 0 : index
    %6 = vector.load %arg4[%c1, %c0_5] : memref<2x256xf32, #tpu.memory_space<vmem>>, vector<1x256xf32>
    %7 = vector.broadcast %6 : vector<1x256xf32> to vector<16x256xf32>
    %8 = arith.addf %5, %7 : vector<16x256xf32>
    %c0_6 = arith.constant 0 : index
    %c0_7 = arith.constant 0 : index
    %9 = vector.load %arg5[%c0_6, %c0_7] : memref<16x256xf32, #tpu.memory_space<vmem>>, vector<16x256xf32>
    tpu.vector_store %arg5[%c0_6, %c0_7], %8 {strides = array<i32>} : memref<16x256xf32, #tpu.memory_space<vmem>>, vector<16x256xf32>,
    return
  }
  func.func @transform_0(%arg0: i32, %arg1: i32) -> (i32, i32) {
    %c0_i32 = arith.constant 0 : i32
    %c0_i32_0 = arith.constant 0 : i32
    return %arg0, %c0_i32 : i32, i32
  }
  func.func @transform_1(%arg0: i32, %arg1: i32) -> (i32, i32) {
    %c0_i32 = arith.constant 0 : i32
    %c0_i32_0 = arith.constant 0 : i32
    return %c0_i32, %arg1 : i32, i32
  }
  func.func @transform_2(%arg0: i32, %arg1: i32) -> (i32, i32) {
    %c0_i32 = arith.constant 0 : i32
    %c0_i32_0 = arith.constant 0 : i32
    return %c0_i32, %arg1 : i32, i32
  }
  func.func @transform_3(%arg0: i32, %arg1: i32) -> (i32, i32) {
    %c0_i32 = arith.constant 0 : i32
    return %arg0, %arg1 : i32, i32
  }
}

module attributes {stable_mosaic.version = 11 : i64} {
  func.func @_gemm_bn_res_act_kernel(%arg0: i32, %arg1: i32, %arg2: memref<16x64xbf16, #tpu.memory_space<vmem>>, %arg3: memref<64x256xbf16, #tpu.memory_space<vmem>>, %arg4: memref<2x256xf32, #tpu.memory_space<vmem>>, %arg5: memref<16x256xf32, #tpu.memory_space<vmem>>, %arg6: memref<16x256xf32, #tpu.memory_space<vmem>>) attributes {dimension_semantics = [#tpu.dimension_semantics<parallel>, #tpu.dimension_semantics<parallel>], iteration_bounds = array<i64: 1, 1>, scalar_prefetch = 0 : i64, scratch_operands = 0 : i64, tpu.core_type = #tpu.core_type<tc>, window_params = [{transform_indices = @transform_0, window_bounds = array<i64: 16, 64>}, {transform_indices = @transform_1, window_bounds = array<i64: 64, 256>}, {transform_indices = @transform_2, window_bounds = array<i64: 2, 256>}, {transform_indices = @transform_3, window_bounds = array<i64: 16, 256>}, {transform_indices = @transform_4, window_bounds = array<i64: 16, 256>}]} {
    %c0 = arith.constant 0 : index
    %c0_0 = arith.constant 0 : index
    %0 = vector.load %arg2[%c0, %c0_0] : memref<16x64xbf16, #tpu.memory_space<vmem>>, vector<16x64xbf16>
    %c0_1 = arith.constant 0 : index
    %c0_2 = arith.constant 0 : index
    %1 = vector.load %arg3[%c0_1, %c0_2] : memref<64x256xbf16, #tpu.memory_space<vmem>>, vector<64x256xbf16>
    %cst = arith.constant dense<0.000000e+00> : vector<16x256xf32>
    %2 = tpu.matmul %0, %1, %cst {dimension_numbers = #tpu.dot_dimension_numbers<[1], [0], [0], [1], [0, 0, 1, 1], [], []>} : vector<16x64xbf16>, vector<64x256xbf16>, vector<16x256xf32> -> vector<16x256xf32>
    %c0_3 = arith.constant 0 : index
    %c0_4 = arith.constant 0 : index
    %3 = vector.load %arg4[%c0_3, %c0_4] : memref<2x256xf32, #tpu.memory_space<vmem>>, vector<1x256xf32>
    %4 = vector.broadcast %3 : vector<1x256xf32> to vector<16x256xf32>
    %5 = arith.mulf %2, %4 : vector<16x256xf32>
    %c1 = arith.constant 1 : index
    %c0_5 = arith.constant 0 : index
    %6 = vector.load %arg4[%c1, %c0_5] : memref<2x256xf32, #tpu.memory_space<vmem>>, vector<1x256xf32>
    %7 = vector.broadcast %6 : vector<1x256xf32> to vector<16x256xf32>
    %8 = arith.addf %5, %7 : vector<16x256xf32>
    %c0_6 = arith.constant 0 : index
    %c0_7 = arith.constant 0 : index
    %9 = vector.load %arg5[%c0_6, %c0_7] : memref<16x256xf32, #tpu.memory_space<vmem>>, vector<16x256xf32>
    %10 = arith.addf %8, %9 : vector<16x256xf32>
    %cst_8 = arith.constant 0.000000e+00 : f32
    %11 = vector.broadcast %cst_8 : f32 to vector<16x256xf32>
    %12 = arith.maximumf %10, %11 : vector<16x256xf32>
    %c0_9 = arith.constant 0 : index
    %c0_10 = arith.constant 0 : index
    %13 = vector.load %arg6[%c0_9, %c0_10] : memref<16x256xf32, #tpu.memory_space<vmem>>, vector<16x256xf32>
    tpu.vector_store %arg6[%c0_9, %c0_10], %12 {strides = array<i32>} : memref<16x256xf32, #tpu.memory_space<vmem>>, vector<16x256xf32>,
    return
  }
  func.func @transform_0(%arg0: i32, %arg1: i32) -> (i32, i32) {
    %c0_i32 = arith.constant 0 : i32
    %c0_i32_0 = arith.constant 0 : i32
    return %arg0, %c0_i32 : i32, i32
  }
  func.func @transform_1(%arg0: i32, %arg1: i32) -> (i32, i32) {
    %c0_i32 = arith.constant 0 : i32
    %c0_i32_0 = arith.constant 0 : i32
    return %c0_i32, %arg1 : i32, i32
  }
  func.func @transform_2(%arg0: i32, %arg1: i32) -> (i32, i32) {
    %c0_i32 = arith.constant 0 : i32
    %c0_i32_0 = arith.constant 0 : i32
    return %c0_i32, %arg1 : i32, i32
  }
  func.func @transform_3(%arg0: i32, %arg1: i32) -> (i32, i32) {
    %c0_i32 = arith.constant 0 : i32
    return %arg0, %arg1 : i32, i32
  }
  func.func @transform_4(%arg0: i32, %arg1: i32) -> (i32, i32) {
    %c0_i32 = arith.constant 0 : i32
    return %arg0, %arg1 : i32, i32
  }
}

module attributes {stable_mosaic.version = 11 : i64} {
  func.func @_global_maxpool_kernel(%arg0: memref<2x4x256xf32, #tpu.memory_space<vmem>>, %arg1: memref<2x1x256xf32, #tpu.memory_space<vmem>>) attributes {dimension_semantics = [], scalar_prefetch = 0 : i64, scratch_operands = 0 : i64, tpu.core_type = #tpu.core_type<tc>} {
    %c0 = arith.constant 0 : index
    %c0_0 = arith.constant 0 : index
    %c0_1 = arith.constant 0 : index
    %0 = vector.load %arg0[%c0, %c0_0, %c0_1] : memref<2x4x256xf32, #tpu.memory_space<vmem>>, vector<2x1x256xf32>
    %c0_2 = arith.constant 0 : index
    %c1 = arith.constant 1 : index
    %c0_3 = arith.constant 0 : index
    %1 = vector.load %arg0[%c0_2, %c1, %c0_3] : memref<2x4x256xf32, #tpu.memory_space<vmem>>, vector<2x1x256xf32>
    %2 = arith.maximumf %0, %1 : vector<2x1x256xf32>
    %c0_4 = arith.constant 0 : index
    %c2 = arith.constant 2 : index
    %c0_5 = arith.constant 0 : index
    %3 = vector.load %arg0[%c0_4, %c2, %c0_5] : memref<2x4x256xf32, #tpu.memory_space<vmem>>, vector<2x1x256xf32>
    %4 = arith.maximumf %2, %3 : vector<2x1x256xf32>
    %c0_6 = arith.constant 0 : index
    %c3 = arith.constant 3 : index
    %c0_7 = arith.constant 0 : index
    %5 = vector.load %arg0[%c0_6, %c3, %c0_7] : memref<2x4x256xf32, #tpu.memory_space<vmem>>, vector<2x1x256xf32>
    %6 = arith.maximumf %4, %5 : vector<2x1x256xf32>
    %c0_8 = arith.constant 0 : index
    %c0_9 = arith.constant 0 : index
    %c0_10 = arith.constant 0 : index
    %7 = vector.load %arg1[%c0_8, %c0_9, %c0_10] : memref<2x1x256xf32, #tpu.memory_space<vmem>>, vector<2x1x256xf32>
    tpu.vector_store %arg1[%c0_8, %c0_9, %c0_10], %6 {strides = array<i32>} : memref<2x1x256xf32, #tpu.memory_space<vmem>>, vector<2x1x256xf32>,
    return
  }
}

</mosaic_0001>

<bundles_post_ra>
// kernel: image_encoder_forward.19
= control target key start
LH: loop header
LB: loop body
LE: loop exit
PB: predicated region body
PF: predicated region fallthrough
CT: control target
= control target key end

     0   :  { %s1740_s12 = smov 0   ;;  %s1742_s13 = smov 0   ;;  %s2112_s0 = inlined_call_operand.vmem [shape: bf16[2048,160], index: 0, kind: input, shape index: {}]   ;;  %s2113_s1 = inlined_call_operand.vmem [shape: bf16[160,128], index: 1, kind: input, shape index: {}]   ;;  %s2114_s2 = inlined_call_operand.vmem [shape: f32[2,128], index: 2, kind: input, shape index: {}]   ;;  %s2115_s3 = inlined_call_operand.vmem [shape: f32[2048,128], index: 3, kind: output, shape index: {}]  }
   0x1   :  { %s1744_s14 = smov 0  }
   0x2 LB: > { %s25_s15 = sadd.s32 1, %s1713_s13  ;;  %p1427_p0 = scmp.ge.s32.totalorder %s1717_s14, 1  ;;  %s1717_s14 = sphi %s1744_s14, %s13_s14   ;;  %s1713_s13 = sphi %s1742_s13, %s2117_s13   ;;  %s1709_s12 = sphi %s1740_s12, %s2116_s12  }
   0x3   : > { %p27_p1 = scmp.ge.s32.totalorder %s25_s15, 4  ;;  %p171_p2 = scmp.lt.s32.totalorder %s1717_s14, 5 }
   0x5   : > { %s2119_s15 = smov (%p27_p1, %s25_s15), 0  ;;  %p172_p3 = pnand %p1427_p0, %p171_p2 }
   0x6   : > { %v1589_v0 = vld [vmem:[%s2113_s1] sm:$0xff] (!%p172_p3)   ;;  %v1719_v1 = vmov (!%p172_p3), 0   ;;  %s1428_s18 = sshll.u32 (!%p172_p3), %s1709_s12, 6  ;;  %v1590_v2 = vld [vmem:[%s2113_s1 + $0x8] sm:$0xff] (!%p172_p3)   ;;  %v1591_v3 = vld [vmem:[%s2113_s1 + $0x10] sm:$0xff] (!%p172_p3)   ;;  %vm664_vm0 = vcmask (!%p172_p3), 261120  }
   0x7   : > { %175 = sbr.rel (%p172_p3) target bundleno = 388 (0x184), region = 32  ;;  %761 = vmatprep.subr.bf16.mxu0 (!%p172_p3), %v1719_v1  ;;  %1544 = vmatprep.subr.bf16.mxu1 (!%p172_p3), %v1719_v1  ;;  %p208_p4 = scmp.lt.s32.totalorder (!%p172_p3), %s1428_s18, 255  ;;  %v1592_v4 = vld [vmem:[%s2113_s1 + $0x18] sm:$0xff] (!%p172_p3)   ;;  %v1593_v7 = vld [vmem:[%s2113_s1 + $0x20] sm:$0xff] (!%p172_p3)   ;;  %v1594_v8 = vld [vmem:[%s2113_s1 + $0x28] sm:$0xff] (!%p172_p3)  }
   0x8   : > { %762 = vmatpush1.bf16.msra.mxu0 (!%p172_p3), %v1589_v0  ;;  %1554 = vmatpush1.bf16.msra.mxu1 (!%p172_p3), %v1589_v0  ;;  %v1595_v9 = vld [vmem:[%s2113_s1 + $0x30] sm:$0xff] (!%p172_p3)   ;;  %v1596_v10 = vld [vmem:[%s2113_s1 + $0x38] sm:$0xff] (!%p172_p3)   ;;  %v1597_v11 = vld [vmem:[%s2113_s1 + $0x40] sm:$0xff] (!%p172_p3)  }
   0x9   : > { %763 = vmatprep.subr.bf16.mxu0 (!%p172_p3), %v1719_v1  ;;  %1545 = vmatprep.subr.bf16.mxu1 (!%p172_p3), %v1719_v1  ;;  %v1598_v12 = vld [vmem:[%s2113_s1 + $0x48] sm:$0xff] (!%p172_p3)  }
   0xc   : > { %764 = vmatpush1.bf16.msra.mxu0 (!%p172_p3), %v1590_v2  ;;  %1555 = vmatpush1.bf16.msra.mxu1 (!%p172_p3), %v1590_v2 }
   0xd   : > { %765 = vmatprep.subr.bf16.mxu0 (!%p172_p3), %v1719_v1  ;;  %1546 = vmatprep.subr.bf16.mxu1 (!%p172_p3), %v1719_v1 }
   0xe   : > { %s2121_s18 = smov (!%p208_p4, %s1428_s18), 255 }
   0xf   : > { %s1543_s23 = sshll.u32 %s2121_s18, 3 }
  0x10   : > { %s1775_s26 = scalar_lea.vmem %s2112_s0, %s1543_s23  ;;  %766 = vmatpush1.bf16.msra.mxu0 %v1591_v3  ;;  %1556 = vmatpush1.bf16.msra.mxu1 %v1591_v3  ;;  %s1915_s25 = scalar_lea.vmem %s2115_s3, %s1543_s23 }
  0x11   : > { %767 = vmatprep.subr.bf16.mxu0 %v1719_v1  ;;  %1547 = vmatprep.subr.bf16.mxu1 %v1719_v1  ;;  %v1601_v5 = vld [vmem:[%s1775_s26 + $0x4] ss:$8 sps:$4 sm:$0xff]   ;;  %v1599_v13 = vld [vmem:[%s1775_s26] ss:$8 sps:$4 sm:$0xff]   ;;  %v1605_v15 = vld [vmem:[%s1775_s26 + $0x14] ss:$8 sps:$4 sm:$0xff]  }
  0x12   : > { %v1604_v6 = vld [vmem:[%s1775_s26 + $0x104] ss:$8 sps:$4 sm:$0xff]   ;;  %1507 = vmatprep.mubr.msk.bf16.mxu0 %vm664_vm0, %v1601_v5  ;;  %v1602_v14 = vld [vmem:[%s1775_s26 + $0x100] ss:$8 sps:$4 sm:$0xff]   ;;  %v1607_v16 = vld [vmem:[%s1775_s26 + $0x114] ss:$8 sps:$4 sm:$0xff]  }
  0x13   : > { %1523 = vmatprep.mubr.msk.bf16.mxu1 %vm664_vm0, %v1604_v6  ;;  %v1609_v17 = vld [vmem:[%s1775_s26 + $0x10] ss:$8 sps:$4 sm:$0xff]   ;;  %v1611_v19 = vld [vmem:[%s1775_s26 + $0x24] ss:$8 sps:$4 sm:$0xff]   ;;  %v1615_v21 = vld [vmem:[%s1775_s26 + $0x20] ss:$8 sps:$4 sm:$0xff]  }
  0x14   : > { %768 = vmatpush1.bf16.msra.mxu0 %v1592_v4  ;;  %1557 = vmatpush1.bf16.msra.mxu1 %v1592_v4  ;;  %v1610_v18 = vld [vmem:[%s1775_s26 + $0x110] ss:$8 sps:$4 sm:$0xff]   ;;  %v1613_v20 = vld [vmem:[%s1775_s26 + $0x124] ss:$8 sps:$4 sm:$0xff]   ;;  %v1616_v22 = vld [vmem:[%s1775_s26 + $0x120] ss:$8 sps:$4 sm:$0xff]  }
  0x15   : > { %769 = vmatprep.subr.bf16.mxu0 %v1719_v1  ;;  %1548 = vmatprep.subr.bf16.mxu1 %v1719_v1  ;;  %v1617_v23 = vld [vmem:[%s1775_s26 + $0x34] ss:$8 sps:$4 sm:$0xff]   ;;  %v1621_v25 = vld [vmem:[%s1775_s26 + $0x30] ss:$8 sps:$4 sm:$0xff]   ;;  %v1623_v27 = vld [vmem:[%s1775_s26 + $0x44] ss:$8 sps:$4 sm:$0xff]  }
  0x16   : > { %v1619_v24 = vld [vmem:[%s1775_s26 + $0x134] ss:$8 sps:$4 sm:$0xff]   ;;  %v1622_v26 = vld [vmem:[%s1775_s26 + $0x130] ss:$8 sps:$4 sm:$0xff]   ;;  %v1625_v28 = vld [vmem:[%s1775_s26 + $0x144] ss:$8 sps:$4 sm:$0xff]  }
  0x17   : > { %v1627_v29 = vld [vmem:[%s1775_s26 + $0x40] ss:$8 sps:$4 sm:$0xff]   ;;  %v1629_v31 = vld [vmem:[%s1775_s26 + $0x54] ss:$8 sps:$4 sm:$0xff]   ;;  %v1633_v33 = vld [vmem:[%s1775_s26 + $0x50] ss:$8 sps:$4 sm:$0xff]  }
  0x18   : > { %770 = vmatpush1.bf16.msra.mxu0 %v1593_v7  ;;  %1558 = vmatpush1.bf16.msra.mxu1 %v1593_v7  ;;  %v1628_v30 = vld [vmem:[%s1775_s26 + $0x140] ss:$8 sps:$4 sm:$0xff]   ;;  %v1631_v32 = vld [vmem:[%s1775_s26 + $0x154] ss:$8 sps:$4 sm:$0xff]   ;;  %v1634_v34 = vld [vmem:[%s1775_s26 + $0x150] ss:$8 sps:$4 sm:$0xff]  }
  0x19   : > { %771 = vmatprep.subr.bf16.mxu0 %v1719_v1  ;;  %1549 = vmatprep.subr.bf16.mxu1 %v1719_v1  ;;  %v1635_v35 = vld [vmem:[%s1775_s26 + $0x64] ss:$8 sps:$4 sm:$0xff]   ;;  %v1639_v37 = vld [vmem:[%s1775_s26 + $0x60] ss:$8 sps:$4 sm:$0xff]   ;;  %v1641_v39 = vld [vmem:[%s1775_s26 + $0x74] ss:$8 sps:$4 sm:$0xff]  }
  0x1a   : > { %v1637_v36 = vld [vmem:[%s1775_s26 + $0x164] ss:$8 sps:$4 sm:$0xff]   ;;  %v1640_v38 = vld [vmem:[%s1775_s26 + $0x160] ss:$8 sps:$4 sm:$0xff]   ;;  %v1643_v40 = vld [vmem:[%s1775_s26 + $0x174] ss:$8 sps:$4 sm:$0xff]  }
  0x1b   : > { %v1645_v41 = vld [vmem:[%s1775_s26 + $0x70] ss:$8 sps:$4 sm:$0xff]   ;;  %v1647_v43 = vld [vmem:[%s1775_s26 + $0x84] ss:$8 sps:$4 sm:$0xff]   ;;  %v1651_v45 = vld [vmem:[%s1775_s26 + $0x80] ss:$8 sps:$4 sm:$0xff]  }
  0x1c   : > { %772 = vmatpush1.bf16.msra.mxu0 %v1594_v8  ;;  %1559 = vmatpush1.bf16.msra.mxu1 %v1594_v8  ;;  %v1646_v42 = vld [vmem:[%s1775_s26 + $0x170] ss:$8 sps:$4 sm:$0xff]   ;;  %v1649_v44 = vld [vmem:[%s1775_s26 + $0x184] ss:$8 sps:$4 sm:$0xff]   ;;  %v1652_v46 = vld [vmem:[%s1775_s26 + $0x180] ss:$8 sps:$4 sm:$0xff]  }
  0x1d   : > { %773 = vmatprep.subr.bf16.mxu0 %v1719_v1  ;;  %1550 = vmatprep.subr.bf16.mxu1 %v1719_v1  ;;  %v1653_v47 = vld [vmem:[%s1775_s26 + $0x94] ss:$8 sps:$4 sm:$0xff]   ;;  %v1657_v49 = vld [vmem:[%s1775_s26 + $0x90] ss:$8 sps:$4 sm:$0xff]   ;;  %v1659_v51 = vld [vmem:[%s1775_s26 + $0xa4] ss:$8 sps:$4 sm:$0xff]  }
  0x1e   : > { %v1655_v48 = vld [vmem:[%s1775_s26 + $0x194] ss:$8 sps:$4 sm:$0xff]   ;;  %v1658_v50 = vld [vmem:[%s1775_s26 + $0x190] ss:$8 sps:$4 sm:$0xff]   ;;  %v1661_v52 = vld [vmem:[%s1775_s26 + $0x1a4] ss:$8 sps:$4 sm:$0xff]  }
  0x1f   : > { %v1663_v53 = vld [vmem:[%s1775_s26 + $0xa0] ss:$8 sps:$4 sm:$0xff]   ;;  %v1665_v55 = vld [vmem:[%s1775_s26 + $0xb4] ss:$8 sps:$4 sm:$0xff]   ;;  %v1669_v57 = vld [vmem:[%s1775_s26 + $0xb0] ss:$8 sps:$4 sm:$0xff]  }
  0x20   : > { %774 = vmatpush1.bf16.msra.mxu0 %v1595_v9  ;;  %1560 = vmatpush1.bf16.msra.mxu1 %v1595_v9  ;;  %v1664_v54 = vld [vmem:[%s1775_s26 + $0x1a0] ss:$8 sps:$4 sm:$0xff]   ;;  %v1667_v56 = vld [vmem:[%s1775_s26 + $0x1b4] ss:$8 sps:$4 sm:$0xff]   ;;  %v1670_v58 = vld [vmem:[%s1775_s26 + $0x1b0] ss:$8 sps:$4 sm:$0xff]  }
  0x21   : > { %775 = vmatprep.subr.bf16.mxu0 %v1719_v1  ;;  %1551 = vmatprep.subr.bf16.mxu1 %v1719_v1  ;;  %v1671_v59 = vld [vmem:[%s1775_s26 + $0xc4] ss:$8 sps:$4 sm:$0xff]   ;;  %v1675_v61 = vld [vmem:[%s1775_s26 + $0xc0] ss:$8 sps:$4 sm:$0xff]   ;;  %v1677_v63 = vld [vmem:[%s1775_s26 + $0xd4] ss:$8 sps:$4 sm:$0xff]  }
  0x22   : > { %v1673_v60 = vld [vmem:[%s1775_s26 + $0x1c4] ss:$8 sps:$4 sm:$0xff]   ;;  %v1676_v62 = vld [vmem:[%s1775_s26 + $0x1c0] ss:$8 sps:$4 sm:$0xff]   ;;  %v1679_v0 = vld [vmem:[%s1775_s26 + $0x1d4] ss:$8 sps:$4 sm:$0xff]  }
  0x23   : > { %v1682_v2 = vld [vmem:[%s1775_s26 + $0x1d0] ss:$8 sps:$4 sm:$0xff]   ;;  %v1683_v3 = vld [vmem:[%s1775_s26 + $0xe4] ss:$8 sps:$4 sm:$0xff]   ;;  %v1687_v5 = vld [vmem:[%s1775_s26 + $0xe0] ss:$8 sps:$4 sm:$0xff]  }
  0x24   : > { %776 = vmatpush1.bf16.msra.mxu0 %v1596_v10  ;;  %1561 = vmatpush1.bf16.msra.mxu1 %v1596_v10  ;;  %v1685_v4 = vld [vmem:[%s1775_s26 + $0x1e4] ss:$8 sps:$4 sm:$0xff]   ;;  %v1688_v6 = vld [vmem:[%s1775_s26 + $0x1e0] ss:$8 sps:$4 sm:$0xff]   ;;  %v1689_v7 = vld [vmem:[%s1775_s26 + $0xf4] ss:$8 sps:$4 sm:$0xff]  }
  0x25   : > { %777 = vmatprep.subr.bf16.mxu0 %v1719_v1  ;;  %1552 = vmatprep.subr.bf16.mxu1 %v1719_v1  ;;  %v1691_v8 = vld [vmem:[%s1775_s26 + $0x1f4] ss:$8 sps:$4 sm:$0xff]   ;;  %v1693_v9 = vld [vmem:[%s1775_s26 + $0xf0] ss:$8 sps:$4 sm:$0xff]  }
  0x26   : > { %v1694_v10 = vld [vmem:[%s1775_s26 + $0x1f0] ss:$8 sps:$4 sm:$0xff]  }
  0x28   : > { %778 = vmatpush1.bf16.msra.mxu0 %v1597_v11  ;;  %1562 = vmatpush1.bf16.msra.mxu1 %v1597_v11  ;;  %v1897_v11 = vld [vmem:[%s2114_s2] ss:$0 sm:$0xff] }
  0x29   : > { %779 = vmatprep.subr.bf16.mxu0 %v1719_v1  ;;  %1553 = vmatprep.subr.bf16.mxu1 %v1719_v1  ;;  %v1681_v1 = vld [vmem:[%s1775_s26 + $0xd0] ss:$8 sps:$4 sm:$0xff]  }
  0x2c   : > { %780 = vmatpush1.bf16.msra.mxu0 %v1598_v12  ;;  %1563 = vmatpush1.bf16.msra.mxu1 %v1598_v12 }
  0x2f   : > { %794 = vmatmul.mubr.bf16.vlgmr.msra.gmra.mrb[0].mxu0 %v1599_v13  ;;  %922 = vmatmul.mubr.bf16.vlgmr.msra.gmra.mrb[0].mxu1 %v1602_v14  ;;  %v1902_v13 = vld [vmem:[%s2114_s2 + $0x1] ss:$0 sm:$0xff] }
  0x30   : > { %1508 = vmatprep.mubr.msk.bf16.mxu0 %vm664_vm0, %v1605_v15  ;;  %1524 = vmatprep.mubr.msk.bf16.mxu1 %vm664_vm0, %v1607_v16 }
  0x37   : > { %802 = vmatmul.mubr.bf16.gmra.mrb[4].mxu0 %v1609_v17  ;;  %930 = vmatmul.mubr.bf16.gmra.mrb[4].mxu1 %v1610_v18 }
  0x38   : > { %1509 = vmatprep.mubr.msk.bf16.mxu0 %vm664_vm0, %v1611_v19  ;;  %1525 = vmatprep.mubr.msk.bf16.mxu1 %vm664_vm0, %v1613_v20 }
  0x3f   : > { %810 = vmatmul.mubr.bf16.gmra.mrb[8].mxu0 %v1615_v21  ;;  %938 = vmatmul.mubr.bf16.gmra.mrb[8].mxu1 %v1616_v22 }
  0x40   : > { %1510 = vmatprep.mubr.msk.bf16.mxu0 %vm664_vm0, %v1617_v23  ;;  %1526 = vmatprep.mubr.msk.bf16.mxu1 %vm664_vm0, %v1619_v24 }
  0x47   : > { %818 = vmatmul.mubr.bf16.gmra.mrb[12].mxu0 %v1621_v25  ;;  %946 = vmatmul.mubr.bf16.gmra.mrb[12].mxu1 %v1622_v26 }
  0x48   : > { %1511 = vmatprep.mubr.msk.bf16.mxu0 %vm664_vm0, %v1623_v27  ;;  %1527 = vmatprep.mubr.msk.bf16.mxu1 %vm664_vm0, %v1625_v28 }
  0x4f   : > { %826 = vmatmul.mubr.bf16.gmra.mrb[16].mxu0 %v1627_v29  ;;  %954 = vmatmul.mubr.bf16.gmra.mrb[16].mxu1 %v1628_v30 }
  0x50   : > { %1512 = vmatprep.mubr.msk.bf16.mxu0 %vm664_vm0, %v1629_v31  ;;  %1528 = vmatprep.mubr.msk.bf16.mxu1 %vm664_vm0, %v1631_v32 }
  0x57   : > { %834 = vmatmul.mubr.bf16.gmra.mrb[20].mxu0 %v1633_v33  ;;  %962 = vmatmul.mubr.bf16.gmra.mrb[20].mxu1 %v1634_v34 }
  0x58   : > { %1513 = vmatprep.mubr.msk.bf16.mxu0 %vm664_vm0, %v1635_v35  ;;  %1529 = vmatprep.mubr.msk.bf16.mxu1 %vm664_vm0, %v1637_v36 }
  0x5f   : > { %842 = vmatmul.mubr.bf16.gmra.mrb[24].mxu0 %v1639_v37  ;;  %970 = vmatmul.mubr.bf16.gmra.mrb[24].mxu1 %v1640_v38 }
  0x60   : > { %1514 = vmatprep.mubr.msk.bf16.mxu0 %vm664_vm0, %v1641_v39  ;;  %1530 = vmatprep.mubr.msk.bf16.mxu1 %vm664_vm0, %v1643_v40 }
  0x67   : > { %850 = vmatmul.mubr.bf16.gmra.mrb[28].mxu0 %v1645_v41  ;;  %978 = vmatmul.mubr.bf16.gmra.mrb[28].mxu1 %v1646_v42 }
  0x68   : > { %1515 = vmatprep.mubr.msk.bf16.mxu0 %vm664_vm0, %v1647_v43  ;;  %1531 = vmatprep.mubr.msk.bf16.mxu1 %vm664_vm0, %v1649_v44 }
  0x6f   : > { %858 = vmatmul.mubr.bf16.gmra.mrb[32].mxu0 %v1651_v45  ;;  %986 = vmatmul.mubr.bf16.gmra.mrb[32].mxu1 %v1652_v46 }
  0x70   : > { %1516 = vmatprep.mubr.msk.bf16.mxu0 %vm664_vm0, %v1653_v47  ;;  %1532 = vmatprep.mubr.msk.bf16.mxu1 %vm664_vm0, %v1655_v48 }
  0x77   : > { %866 = vmatmul.mubr.bf16.gmra.mrb[36].mxu0 %v1657_v49  ;;  %994 = vmatmul.mubr.bf16.gmra.mrb[36].mxu1 %v1658_v50 }
  0x78   : > { %1517 = vmatprep.mubr.msk.bf16.mxu0 %vm664_vm0, %v1659_v51  ;;  %1533 = vmatprep.mubr.msk.bf16.mxu1 %vm664_vm0, %v1661_v52 }
  0x7f   : > { %874 = vmatmul.mubr.bf16.gmra.mrb[40].mxu0 %v1663_v53  ;;  %1002 = vmatmul.mubr.bf16.gmra.mrb[40].mxu1 %v1664_v54 }
  0x80   : > { %1518 = vmatprep.mubr.msk.bf16.mxu0 %vm664_vm0, %v1665_v55  ;;  %1534 = vmatprep.mubr.msk.bf16.mxu1 %vm664_vm0, %v1667_v56 }
  0x87   : > { %882 = vmatmul.mubr.bf16.gmra.mrb[44].mxu0 %v1669_v57  ;;  %1010 = vmatmul.mubr.bf16.gmra.mrb[44].mxu1 %v1670_v58 }
  0x88   : > { %1519 = vmatprep.mubr.msk.bf16.mxu0 %vm664_vm0, %v1671_v59  ;;  %1535 = vmatprep.mubr.msk.bf16.mxu1 %vm664_vm0, %v1673_v60 }
  0x8f   : > { %890 = vmatmul.mubr.bf16.gmra.mrb[48].mxu0 %v1675_v61  ;;  %1018 = vmatmul.mubr.bf16.gmra.mrb[48].mxu1 %v1676_v62 }
  0x90   : > { %1520 = vmatprep.mubr.msk.bf16.mxu0 %vm664_vm0, %v1677_v63  ;;  %1536 = vmatprep.mubr.msk.bf16.mxu1 %vm664_vm0, %v1679_v0 }
  0x97   : > { %898 = vmatmul.mubr.bf16.gmra.mrb[52].mxu0 %v1681_v1  ;;  %1026 = vmatmul.mubr.bf16.gmra.mrb[52].mxu1 %v1682_v2 }
  0x98   : > { %1521 = vmatprep.mubr.msk.bf16.mxu0 %vm664_vm0, %v1683_v3  ;;  %1537 = vmatprep.mubr.msk.bf16.mxu1 %vm664_vm0, %v1685_v4 }
  0x9f   : > { %906 = vmatmul.mubr.bf16.gmra.mrb[56].mxu0 %v1687_v5  ;;  %1034 = vmatmul.mubr.bf16.gmra.mrb[56].mxu1 %v1688_v6 }
  0xa0   : > { %1522 = vmatprep.mubr.msk.bf16.mxu0 %vm664_vm0, %v1689_v7  ;;  %1538 = vmatprep.mubr.msk.bf16.mxu1 %vm664_vm0, %v1691_v8 }
  0xa7   : > { %914 = vmatmul.mubr.bf16.gmra.mrb[60].mxu0 %v1693_v9  ;;  %1042 = vmatmul.mubr.bf16.gmra.mrb[60].mxu1 %v1694_v10 }
 0x102   : > { %v795_v12 = vpop.f32.mrb[0].mxu0  ;;  %v923_v14 = vpop.f32.mrb[0].mxu1 }
 0x103   : > { %v1055_v15 = vmul.f32 %v1897_v11, %v795_v12  ;;  %v1087_v16 = vmul.f32 %v1897_v11, %v923_v14  ;;  %v797_v17 = vpop.f32.mrb[1].mxu0  ;;  %v925_v18 = vpop.f32.mrb[1].mxu1 }
 0x104   : > { %v798_v19 = vpop.f32.mrb[2].mxu0  ;;  %v926_v20 = vpop.f32.mrb[2].mxu1 }
 0x105   : > { %v1124_v21 = vadd.f32 %v1902_v13, %v1055_v15  ;;  %v1156_v22 = vadd.f32 %v1902_v13, %v1087_v16  ;;  %v1056_v23 = vmul.f32 %v1897_v11, %v798_v19  ;;  %v1088_v24 = vmul.f32 %v1897_v11, %v926_v20  ;;  %v800_v25 = vpop.f32.mrb[3].mxu0  ;;  %v928_v26 = vpop.f32.mrb[3].mxu1 }
 0x107   : > { %v1188_v27 = vmax.f32 %v1124_v21, 0.0  ;;  %v1220_v28 = vmax.f32 %v1156_v22, 0.0  ;;  %v1125_v29 = vadd.f32 %v1902_v13, %v1056_v23  ;;  %v1157_v30 = vadd.f32 %v1902_v13, %v1088_v24 }
 0x109   : > { %1252 = vst [vmem:[%s1915_s25] sm:$0xff] %v1188_v27  ;;  %1284 = vst [vmem:[%s1915_s25 + $0x100] sm:$0xff] %v1220_v28  ;;  %v1189_v31 = vmax.f32 %v1125_v29, 0.0  ;;  %v1221_v32 = vmax.f32 %v1157_v30, 0.0 }
 0x10a   : > { %v803_v33 = vpop.f32.mrb[4].mxu0  ;;  %v931_v34 = vpop.f32.mrb[4].mxu1 }
 0x10b   : > { %1253 = vst [vmem:[%s1915_s25 + $0x8] sm:$0xff] %v1189_v31  ;;  %1285 = vst [vmem:[%s1915_s25 + $0x108] sm:$0xff] %v1221_v32  ;;  %v1057_v35 = vmul.f32 %v1897_v11, %v803_v33  ;;  %v1089_v36 = vmul.f32 %v1897_v11, %v931_v34  ;;  %v805_v37 = vpop.f32.mrb[5].mxu0  ;;  %v933_v38 = vpop.f32.mrb[5].mxu1 }
 0x10c   : > { %v806_v39 = vpop.f32.mrb[6].mxu0  ;;  %v934_v40 = vpop.f32.mrb[6].mxu1 }
 0x10d   : > { %v1126_v41 = vadd.f32 %v1902_v13, %v1057_v35  ;;  %v1158_v42 = vadd.f32 %v1902_v13, %v1089_v36  ;;  %v1058_v43 = vmul.f32 %v1897_v11, %v806_v39  ;;  %v1090_v44 = vmul.f32 %v1897_v11, %v934_v40  ;;  %v808_v45 = vpop.f32.mrb[7].mxu0  ;;  %v936_v46 = vpop.f32.mrb[7].mxu1 }
 0x10f   : > { %v1190_v47 = vmax.f32 %v1126_v41, 0.0  ;;  %v1222_v48 = vmax.f32 %v1158_v42, 0.0  ;;  %v1127_v49 = vadd.f32 %v1902_v13, %v1058_v43  ;;  %v1159_v50 = vadd.f32 %v1902_v13, %v1090_v44 }
 0x111   : > { %1254 = vst [vmem:[%s1915_s25 + $0x10] sm:$0xff] %v1190_v47  ;;  %1286 = vst [vmem:[%s1915_s25 + $0x110] sm:$0xff] %v1222_v48  ;;  %v1191_v51 = vmax.f32 %v1127_v49, 0.0  ;;  %v1223_v52 = vmax.f32 %v1159_v50, 0.0 }
 0x112   : > { %v811_v53 = vpop.f32.mrb[8].mxu0  ;;  %v939_v54 = vpop.f32.mrb[8].mxu1 }
 0x113   : > { %1255 = vst [vmem:[%s1915_s25 + $0x18] sm:$0xff] %v1191_v51  ;;  %1287 = vst [vmem:[%s1915_s25 + $0x118] sm:$0xff] %v1223_v52  ;;  %v1059_v55 = vmul.f32 %v1897_v11, %v811_v53  ;;  %v1091_v56 = vmul.f32 %v1897_v11, %v939_v54  ;;  %v813_v57 = vpop.f32.mrb[9].mxu0  ;;  %v941_v58 = vpop.f32.mrb[9].mxu1 }
 0x114   : > { %v814_v59 = vpop.f32.mrb[10].mxu0  ;;  %v942_v60 = vpop.f32.mrb[10].mxu1 }
 0x115   : > { %v1128_v61 = vadd.f32 %v1902_v13, %v1059_v55  ;;  %v1160_v62 = vadd.f32 %v1902_v13, %v1091_v56  ;;  %v1060_v63 = vmul.f32 %v1897_v11, %v814_v59  ;;  %v1092_v0 = vmul.f32 %v1897_v11, %v942_v60  ;;  %v816_v1 = vpop.f32.mrb[11].mxu0  ;;  %v944_v2 = vpop.f32.mrb[11].mxu1 }
 0x117   : > { %v1192_v3 = vmax.f32 %v1128_v61, 0.0  ;;  %v1224_v4 = vmax.f32 %v1160_v62, 0.0  ;;  %v1129_v5 = vadd.f32 %v1902_v13, %v1060_v63  ;;  %v1161_v6 = vadd.f32 %v1902_v13, %v1092_v0 }
 0x119   : > { %1256 = vst [vmem:[%s1915_s25 + $0x20] sm:$0xff] %v1192_v3  ;;  %1288 = vst [vmem:[%s1915_s25 + $0x120] sm:$0xff] %v1224_v4  ;;  %v1193_v7 = vmax.f32 %v1129_v5, 0.0  ;;  %v1225_v8 = vmax.f32 %v1161_v6, 0.0 }
 0x11a   : > { %v819_v9 = vpop.f32.mrb[12].mxu0  ;;  %v947_v10 = vpop.f32.mrb[12].mxu1 }
 0x11b   : > { %1257 = vst [vmem:[%s1915_s25 + $0x28] sm:$0xff] %v1193_v7  ;;  %1289 = vst [vmem:[%s1915_s25 + $0x128] sm:$0xff] %v1225_v8  ;;  %v1061_v12 = vmul.f32 %v1897_v11, %v819_v9  ;;  %v1093_v14 = vmul.f32 %v1897_v11, %v947_v10  ;;  %v821_v15 = vpop.f32.mrb[13].mxu0  ;;  %v949_v16 = vpop.f32.mrb[13].mxu1 }
 0x11c   : > { %v822_v17 = vpop.f32.mrb[14].mxu0  ;;  %v950_v18 = vpop.f32.mrb[14].mxu1 }
 0x11d   : > { %v1130_v19 = vadd.f32 %v1902_v13, %v1061_v12  ;;  %v1162_v20 = vadd.f32 %v1902_v13, %v1093_v14  ;;  %v1062_v21 = vmul.f32 %v1897_v11, %v822_v17  ;;  %v1094_v22 = vmul.f32 %v1897_v11, %v950_v18  ;;  %v824_v23 = vpop.f32.mrb[15].mxu0  ;;  %v952_v24 = vpop.f32.mrb[15].mxu1 }
 0x11f   : > { %v1194_v25 = vmax.f32 %v1130_v19, 0.0  ;;  %v1226_v26 = vmax.f32 %v1162_v20, 0.0  ;;  %v1131_v27 = vadd.f32 %v1902_v13, %v1062_v21  ;;  %v1163_v28 = vadd.f32 %v1902_v13, %v1094_v22 }
 0x121   : > { %1258 = vst [vmem:[%s1915_s25 + $0x30] sm:$0xff] %v1194_v25  ;;  %1290 = vst [vmem:[%s1915_s25 + $0x130] sm:$0xff] %v1226_v26  ;;  %v1195_v29 = vmax.f32 %v1131_v27, 0.0  ;;  %v1227_v30 = vmax.f32 %v1163_v28, 0.0 }
 0x122   : > { %v827_v31 = vpop.f32.mrb[16].mxu0  ;;  %v955_v32 = vpop.f32.mrb[16].mxu1 }
 0x123   : > { %1259 = vst [vmem:[%s1915_s25 + $0x38] sm:$0xff] %v1195_v29  ;;  %1291 = vst [vmem:[%s1915_s25 + $0x138] sm:$0xff] %v1227_v30  ;;  %v1063_v33 = vmul.f32 %v1897_v11, %v827_v31  ;;  %v1095_v34 = vmul.f32 %v1897_v11, %v955_v32  ;;  %v829_v35 = vpop.f32.mrb[17].mxu0  ;;  %v957_v36 = vpop.f32.mrb[17].mxu1 }
 0x124   : > { %v830_v37 = vpop.f32.mrb[18].mxu0  ;;  %v958_v38 = vpop.f32.mrb[18].mxu1 }
 0x125   : > { %v1132_v39 = vadd.f32 %v1902_v13, %v1063_v33  ;;  %v1164_v40 = vadd.f32 %v1902_v13, %v1095_v34  ;;  %v1064_v41 = vmul.f32 %v1897_v11, %v830_v37  ;;  %v1096_v42 = vmul.f32 %v1897_v11, %v958_v38  ;;  %v832_v43 = vpop.f32.mrb[19].mxu0  ;;  %v960_v44 = vpop.f32.mrb[19].mxu1 }
 0x127   : > { %v1196_v45 = vmax.f32 %v1132_v39, 0.0  ;;  %v1228_v46 = vmax.f32 %v1164_v40, 0.0  ;;  %v1133_v47 = vadd.f32 %v1902_v13, %v1064_v41  ;;  %v1165_v48 = vadd.f32 %v1902_v13, %v1096_v42 }
 0x129   : > { %1260 = vst [vmem:[%s1915_s25 + $0x40] sm:$0xff] %v1196_v45  ;;  %1292 = vst [vmem:[%s1915_s25 + $0x140] sm:$0xff] %v1228_v46  ;;  %v1197_v49 = vmax.f32 %v1133_v47, 0.0  ;;  %v1229_v50 = vmax.f32 %v1165_v48, 0.0 }
 0x12a   : > { %v835_v51 = vpop.f32.mrb[20].mxu0  ;;  %v963_v52 = vpop.f32.mrb[20].mxu1 }
 0x12b   : > { %1261 = vst [vmem:[%s1915_s25 + $0x48] sm:$0xff] %v1197_v49  ;;  %1293 = vst [vmem:[%s1915_s25 + $0x148] sm:$0xff] %v1229_v50  ;;  %v1065_v53 = vmul.f32 %v1897_v11, %v835_v51  ;;  %v1097_v54 = vmul.f32 %v1897_v11, %v963_v52  ;;  %v837_v55 = vpop.f32.mrb[21].mxu0  ;;  %v965_v56 = vpop.f32.mrb[21].mxu1 }
 0x12c   : > { %v838_v57 = vpop.f32.mrb[22].mxu0  ;;  %v966_v58 = vpop.f32.mrb[22].mxu1 }
 0x12d   : > { %v1134_v59 = vadd.f32 %v1902_v13, %v1065_v53  ;;  %v1166_v60 = vadd.f32 %v1902_v13, %v1097_v54  ;;  %v1066_v61 = vmul.f32 %v1897_v11, %v838_v57  ;;  %v1098_v62 = vmul.f32 %v1897_v11, %v966_v58  ;;  %v840_v63 = vpop.f32.mrb[23].mxu0  ;;  %v968_v0 = vpop.f32.mrb[23].mxu1 }
 0x12f   : > { %v1198_v1 = vmax.f32 %v1134_v59, 0.0  ;;  %v1230_v2 = vmax.f32 %v1166_v60, 0.0  ;;  %v1135_v3 = vadd.f32 %v1902_v13, %v1066_v61  ;;  %v1167_v4 = vadd.f32 %v1902_v13, %v1098_v62 }
 0x131   : > { %1262 = vst [vmem:[%s1915_s25 + $0x50] sm:$0xff] %v1198_v1  ;;  %1294 = vst [vmem:[%s1915_s25 + $0x150] sm:$0xff] %v1230_v2  ;;  %v1199_v5 = vmax.f32 %v1135_v3, 0.0  ;;  %v1231_v6 = vmax.f32 %v1167_v4, 0.0 }
 0x132   : > { %v843_v7 = vpop.f32.mrb[24].mxu0  ;;  %v971_v8 = vpop.f32.mrb[24].mxu1 }
 0x133   : > { %1263 = vst [vmem:[%s1915_s25 + $0x58] sm:$0xff] %v1199_v5  ;;  %1295 = vst [vmem:[%s1915_s25 + $0x158] sm:$0xff] %v1231_v6  ;;  %v1067_v9 = vmul.f32 %v1897_v11, %v843_v7  ;;  %v1099_v10 = vmul.f32 %v1897_v11, %v971_v8  ;;  %v845_v12 = vpop.f32.mrb[25].mxu0  ;;  %v973_v14 = vpop.f32.mrb[25].mxu1 }
 0x134   : > { %v846_v15 = vpop.f32.mrb[26].mxu0  ;;  %v974_v16 = vpop.f32.mrb[26].mxu1 }
 0x135   : > { %v1136_v17 = vadd.f32 %v1902_v13, %v1067_v9  ;;  %v1168_v18 = vadd.f32 %v1902_v13, %v1099_v10  ;;  %v1068_v19 = vmul.f32 %v1897_v11, %v846_v15  ;;  %v1100_v20 = vmul.f32 %v1897_v11, %v974_v16  ;;  %v848_v21 = vpop.f32.mrb[27].mxu0  ;;  %v976_v22 = vpop.f32.mrb[27].mxu1 }
 0x137   : > { %v1200_v23 = vmax.f32 %v1136_v17, 0.0  ;;  %v1232_v24 = vmax.f32 %v1168_v18, 0.0  ;;  %v1137_v25 = vadd.f32 %v1902_v13, %v1068_v19  ;;  %v1169_v26 = vadd.f32 %v1902_v13, %v1100_v20 }
 0x139   : > { %1264 = vst [vmem:[%s1915_s25 + $0x60] sm:$0xff] %v1200_v23  ;;  %1296 = vst [vmem:[%s1915_s25 + $0x160] sm:$0xff] %v1232_v24  ;;  %v1201_v27 = vmax.f32 %v1137_v25, 0.0  ;;  %v1233_v28 = vmax.f32 %v1169_v26, 0.0 }
 0x13a   : > { %v851_v29 = vpop.f32.mrb[28].mxu0  ;;  %v979_v30 = vpop.f32.mrb[28].mxu1 }
 0x13b   : > { %1265 = vst [vmem:[%s1915_s25 + $0x68] sm:$0xff] %v1201_v27  ;;  %1297 = vst [vmem:[%s1915_s25 + $0x168] sm:$0xff] %v1233_v28  ;;  %v1069_v31 = vmul.f32 %v1897_v11, %v851_v29  ;;  %v1101_v32 = vmul.f32 %v1897_v11, %v979_v30  ;;  %v853_v33 = vpop.f32.mrb[29].mxu0  ;;  %v981_v34 = vpop.f32.mrb[29].mxu1 }
 0x13c   : > { %v854_v35 = vpop.f32.mrb[30].mxu0  ;;  %v982_v36 = vpop.f32.mrb[30].mxu1 }
 0x13d   : > { %v1138_v37 = vadd.f32 %v1902_v13, %v1069_v31  ;;  %v1170_v38 = vadd.f32 %v1902_v13, %v1101_v32  ;;  %v1070_v39 = vmul.f32 %v1897_v11, %v854_v35  ;;  %v1102_v40 = vmul.f32 %v1897_v11, %v982_v36  ;;  %v856_v41 = vpop.f32.mrb[31].mxu0  ;;  %v984_v42 = vpop.f32.mrb[31].mxu1 }
 0x13f   : > { %v1202_v43 = vmax.f32 %v1138_v37, 0.0  ;;  %v1234_v44 = vmax.f32 %v1170_v38, 0.0  ;;  %v1139_v45 = vadd.f32 %v1902_v13, %v1070_v39  ;;  %v1171_v46 = vadd.f32 %v1902_v13, %v1102_v40 }
 0x141   : > { %1266 = vst [vmem:[%s1915_s25 + $0x70] sm:$0xff] %v1202_v43  ;;  %1298 = vst [vmem:[%s1915_s25 + $0x170] sm:$0xff] %v1234_v44  ;;  %v1203_v47 = vmax.f32 %v1139_v45, 0.0  ;;  %v1235_v48 = vmax.f32 %v1171_v46, 0.0 }
 0x142   : > { %v859_v49 = vpop.f32.mrb[32].mxu0  ;;  %v987_v50 = vpop.f32.mrb[32].mxu1 }
 0x143   : > { %1267 = vst [vmem:[%s1915_s25 + $0x78] sm:$0xff] %v1203_v47  ;;  %1299 = vst [vmem:[%s1915_s25 + $0x178] sm:$0xff] %v1235_v48  ;;  %v1071_v51 = vmul.f32 %v1897_v11, %v859_v49  ;;  %v1103_v52 = vmul.f32 %v1897_v11, %v987_v50  ;;  %v861_v53 = vpop.f32.mrb[33].mxu0  ;;  %v989_v54 = vpop.f32.mrb[33].mxu1 }
 0x144   : > { %v862_v55 = vpop.f32.mrb[34].mxu0  ;;  %v990_v56 = vpop.f32.mrb[34].mxu1 }
 0x145   : > { %v1140_v57 = vadd.f32 %v1902_v13, %v1071_v51  ;;  %v1172_v58 = vadd.f32 %v1902_v13, %v1103_v52  ;;  %v1072_v59 = vmul.f32 %v1897_v11, %v862_v55  ;;  %v1104_v60 = vmul.f32 %v1897_v11, %v990_v56  ;;  %v864_v61 = vpop.f32.mrb[35].mxu0  ;;  %v992_v62 = vpop.f32.mrb[35].mxu1 }
 0x147   : > { %v1204_v63 = vmax.f32 %v1140_v57, 0.0  ;;  %v1236_v0 = vmax.f32 %v1172_v58, 0.0  ;;  %v1141_v1 = vadd.f32 %v1902_v13, %v1072_v59  ;;  %v1173_v2 = vadd.f32 %v1902_v13, %v1104_v60 }
 0x149   : > { %1268 = vst [vmem:[%s1915_s25 + $0x80] sm:$0xff] %v1204_v63  ;;  %1300 = vst [vmem:[%s1915_s25 + $0x180] sm:$0xff] %v1236_v0  ;;  %v1205_v3 = vmax.f32 %v1141_v1, 0.0  ;;  %v1237_v4 = vmax.f32 %v1173_v2, 0.0 }
 0x14a   : > { %v867_v5 = vpop.f32.mrb[36].mxu0  ;;  %v995_v6 = vpop.f32.mrb[36].mxu1 }
 0x14b   : > { %1269 = vst [vmem:[%s1915_s25 + $0x88] sm:$0xff] %v1205_v3  ;;  %1301 = vst [vmem:[%s1915_s25 + $0x188] sm:$0xff] %v1237_v4  ;;  %v1073_v7 = vmul.f32 %v1897_v11, %v867_v5  ;;  %v1105_v8 = vmul.f32 %v1897_v11, %v995_v6  ;;  %v869_v9 = vpop.f32.mrb[37].mxu0  ;;  %v997_v10 = vpop.f32.mrb[37].mxu1 }
 0x14c   : > { %v870_v12 = vpop.f32.mrb[38].mxu0  ;;  %v998_v14 = vpop.f32.mrb[38].mxu1 }
 0x14d   : > { %v1142_v15 = vadd.f32 %v1902_v13, %v1073_v7  ;;  %v1174_v16 = vadd.f32 %v1902_v13, %v1105_v8  ;;  %v1074_v17 = vmul.f32 %v1897_v11, %v870_v12  ;;  %v1106_v18 = vmul.f32 %v1897_v11, %v998_v14  ;;  %v872_v19 = vpop.f32.mrb[39].mxu0  ;;  %v1000_v20 = vpop.f32.mrb[39].mxu1 }
 0x14f   : > { %v1206_v21 = vmax.f32 %v1142_v15, 0.0  ;;  %v1238_v22 = vmax.f32 %v1174_v16, 0.0  ;;  %v1143_v23 = vadd.f32 %v1902_v13, %v1074_v17  ;;  %v1175_v24 = vadd.f32 %v1902_v13, %v1106_v18 }
 0x151   : > { %1270 = vst [vmem:[%s1915_s25 + $0x90] sm:$0xff] %v1206_v21  ;;  %1302 = vst [vmem:[%s1915_s25 + $0x190] sm:$0xff] %v1238_v22  ;;  %v1207_v25 = vmax.f32 %v1143_v23, 0.0  ;;  %v1239_v26 = vmax.f32 %v1175_v24, 0.0 }
 0x152   : > { %v875_v27 = vpop.f32.mrb[40].mxu0  ;;  %v1003_v28 = vpop.f32.mrb[40].mxu1 }
 0x153   : > { %1271 = vst [vmem:[%s1915_s25 + $0x98] sm:$0xff] %v1207_v25  ;;  %1303 = vst [vmem:[%s1915_s25 + $0x198] sm:$0xff] %v1239_v26  ;;  %v1075_v29 = vmul.f32 %v1897_v11, %v875_v27  ;;  %v1107_v30 = vmul.f32 %v1897_v11, %v1003_v28  ;;  %v877_v31 = vpop.f32.mrb[41].mxu0  ;;  %v1005_v32 = vpop.f32.mrb[41].mxu1 }
 0x154   : > { %v878_v33 = vpop.f32.mrb[42].mxu0  ;;  %v1006_v34 = vpop.f32.mrb[42].mxu1 }
 0x155   : > { %v1144_v35 = vadd.f32 %v1902_v13, %v1075_v29  ;;  %v1176_v36 = vadd.f32 %v1902_v13, %v1107_v30  ;;  %v1076_v37 = vmul.f32 %v1897_v11, %v878_v33  ;;  %v1108_v38 = vmul.f32 %v1897_v11, %v1006_v34  ;;  %v880_v39 = vpop.f32.mrb[43].mxu0  ;;  %v1008_v40 = vpop.f32.mrb[43].mxu1 }
 0x157   : > { %v1208_v41 = vmax.f32 %v1144_v35, 0.0  ;;  %v1240_v42 = vmax.f32 %v1176_v36, 0.0  ;;  %v1145_v43 = vadd.f32 %v1902_v13, %v1076_v37  ;;  %v1177_v44 = vadd.f32 %v1902_v13, %v1108_v38 }
 0x159   : > { %1272 = vst [vmem:[%s1915_s25 + $0xa0] sm:$0xff] %v1208_v41  ;;  %1304 = vst [vmem:[%s1915_s25 + $0x1a0] sm:$0xff] %v1240_v42  ;;  %v1209_v45 = vmax.f32 %v1145_v43, 0.0  ;;  %v1241_v46 = vmax.f32 %v1177_v44, 0.0 }
 0x15a   : > { %v883_v47 = vpop.f32.mrb[44].mxu0  ;;  %v1011_v48 = vpop.f32.mrb[44].mxu1 }
 0x15b   : > { %1273 = vst [vmem:[%s1915_s25 + $0xa8] sm:$0xff] %v1209_v45  ;;  %1305 = vst [vmem:[%s1915_s25 + $0x1a8] sm:$0xff] %v1241_v46  ;;  %v1077_v49 = vmul.f32 %v1897_v11, %v883_v47  ;;  %v1109_v50 = vmul.f32 %v1897_v11, %v1011_v48  ;;  %v885_v51 = vpop.f32.mrb[45].mxu0  ;;  %v1013_v52 = vpop.f32.mrb[45].mxu1 }
 0x15c   : > { %v886_v53 = vpop.f32.mrb[46].mxu0  ;;  %v1014_v54 = vpop.f32.mrb[46].mxu1 }
 0x15d   : > { %v1146_v55 = vadd.f32 %v1902_v13, %v1077_v49  ;;  %v1178_v56 = vadd.f32 %v1902_v13, %v1109_v50  ;;  %v1078_v57 = vmul.f32 %v1897_v11, %v886_v53  ;;  %v1110_v58 = vmul.f32 %v1897_v11, %v1014_v54  ;;  %v888_v59 = vpop.f32.mrb[47].mxu0  ;;  %v1016_v60 = vpop.f32.mrb[47].mxu1 }
 0x15f   : > { %v1210_v61 = vmax.f32 %v1146_v55, 0.0  ;;  %v1242_v62 = vmax.f32 %v1178_v56, 0.0  ;;  %v1147_v63 = vadd.f32 %v1902_v13, %v1078_v57  ;;  %v1179_v0 = vadd.f32 %v1902_v13, %v1110_v58 }
 0x161   : > { %1274 = vst [vmem:[%s1915_s25 + $0xb0] sm:$0xff] %v1210_v61  ;;  %1306 = vst [vmem:[%s1915_s25 + $0x1b0] sm:$0xff] %v1242_v62  ;;  %v1211_v1 = vmax.f32 %v1147_v63, 0.0  ;;  %v1243_v2 = vmax.f32 %v1179_v0, 0.0 }
 0x162   : > { %v891_v3 = vpop.f32.mrb[48].mxu0  ;;  %v1019_v4 = vpop.f32.mrb[48].mxu1 }
 0x163   : > { %1275 = vst [vmem:[%s1915_s25 + $0xb8] sm:$0xff] %v1211_v1  ;;  %1307 = vst [vmem:[%s1915_s25 + $0x1b8] sm:$0xff] %v1243_v2  ;;  %v1079_v5 = vmul.f32 %v1897_v11, %v891_v3  ;;  %v1111_v6 = vmul.f32 %v1897_v11, %v1019_v4  ;;  %v893_v7 = vpop.f32.mrb[49].mxu0  ;;  %v1021_v8 = vpop.f32.mrb[49].mxu1 }
 0x164   : > { %v894_v9 = vpop.f32.mrb[50].mxu0  ;;  %v1022_v10 = vpop.f32.mrb[50].mxu1 }
 0x165   : > { %v1148_v12 = vadd.f32 %v1902_v13, %v1079_v5  ;;  %v1180_v14 = vadd.f32 %v1902_v13, %v1111_v6  ;;  %v1080_v15 = vmul.f32 %v1897_v11, %v894_v9  ;;  %v1112_v16 = vmul.f32 %v1897_v11, %v1022_v10  ;;  %v896_v17 = vpop.f32.mrb[51].mxu0  ;;  %v1024_v18 = vpop.f32.mrb[51].mxu1 }
 0x167   : > { %v1212_v19 = vmax.f32 %v1148_v12, 0.0  ;;  %v1244_v20 = vmax.f32 %v1180_v14, 0.0  ;;  %v1149_v21 = vadd.f32 %v1902_v13, %v1080_v15  ;;  %v1181_v22 = vadd.f32 %v1902_v13, %v1112_v16 }
 0x169   : > { %1276 = vst [vmem:[%s1915_s25 + $0xc0] sm:$0xff] %v1212_v19  ;;  %1308 = vst [vmem:[%s1915_s25 + $0x1c0] sm:$0xff] %v1244_v20  ;;  %v1213_v23 = vmax.f32 %v1149_v21, 0.0  ;;  %v1245_v24 = vmax.f32 %v1181_v22, 0.0 }
 0x16a   : > { %v899_v25 = vpop.f32.mrb[52].mxu0  ;;  %v1027_v26 = vpop.f32.mrb[52].mxu1 }
 0x16b   : > { %1277 = vst [vmem:[%s1915_s25 + $0xc8] sm:$0xff] %v1213_v23  ;;  %1309 = vst [vmem:[%s1915_s25 + $0x1c8] sm:$0xff] %v1245_v24  ;;  %v1081_v27 = vmul.f32 %v1897_v11, %v899_v25  ;;  %v1113_v28 = vmul.f32 %v1897_v11, %v1027_v26  ;;  %v901_v29 = vpop.f32.mrb[53].mxu0  ;;  %v1029_v30 = vpop.f32.mrb[53].mxu1 }
 0x16c   : > { %v902_v31 = vpop.f32.mrb[54].mxu0  ;;  %v1030_v32 = vpop.f32.mrb[54].mxu1 }
 0x16d   : > { %v1150_v33 = vadd.f32 %v1902_v13, %v1081_v27  ;;  %v1182_v34 = vadd.f32 %v1902_v13, %v1113_v28  ;;  %v1082_v35 = vmul.f32 %v1897_v11, %v902_v31  ;;  %v1114_v36 = vmul.f32 %v1897_v11, %v1030_v32  ;;  %v904_v37 = vpop.f32.mrb[55].mxu0  ;;  %v1032_v38 = vpop.f32.mrb[55].mxu1 }
 0x16f   : > { %v1214_v39 = vmax.f32 %v1150_v33, 0.0  ;;  %v1246_v40 = vmax.f32 %v1182_v34, 0.0  ;;  %v1151_v41 = vadd.f32 %v1902_v13, %v1082_v35  ;;  %v1183_v42 = vadd.f32 %v1902_v13, %v1114_v36 }
 0x171   : > { %1278 = vst [vmem:[%s1915_s25 + $0xd0] sm:$0xff] %v1214_v39  ;;  %1310 = vst [vmem:[%s1915_s25 + $0x1d0] sm:$0xff] %v1246_v40  ;;  %v1215_v43 = vmax.f32 %v1151_v41, 0.0  ;;  %v1247_v44 = vmax.f32 %v1183_v42, 0.0 }
 0x172   : > { %v907_v45 = vpop.f32.mrb[56].mxu0  ;;  %v1035_v46 = vpop.f32.mrb[56].mxu1 }
 0x173   : > { %1279 = vst [vmem:[%s1915_s25 + $0xd8] sm:$0xff] %v1215_v43  ;;  %1311 = vst [vmem:[%s1915_s25 + $0x1d8] sm:$0xff] %v1247_v44  ;;  %v1083_v47 = vmul.f32 %v1897_v11, %v907_v45  ;;  %v1115_v48 = vmul.f32 %v1897_v11, %v1035_v46  ;;  %v909_v49 = vpop.f32.mrb[57].mxu0  ;;  %v1037_v50 = vpop.f32.mrb[57].mxu1 }
 0x174   : > { %v910_v51 = vpop.f32.mrb[58].mxu0  ;;  %v1038_v52 = vpop.f32.mrb[58].mxu1 }
 0x175   : > { %v1152_v53 = vadd.f32 %v1902_v13, %v1083_v47  ;;  %v1184_v54 = vadd.f32 %v1902_v13, %v1115_v48  ;;  %v1084_v55 = vmul.f32 %v1897_v11, %v910_v51  ;;  %v1116_v56 = vmul.f32 %v1897_v11, %v1038_v52  ;;  %v912_v57 = vpop.f32.mrb[59].mxu0  ;;  %v1040_v58 = vpop.f32.mrb[59].mxu1 }
 0x177   : > { %v1216_v59 = vmax.f32 %v1152_v53, 0.0  ;;  %v1248_v60 = vmax.f32 %v1184_v54, 0.0  ;;  %v1153_v61 = vadd.f32 %v1902_v13, %v1084_v55  ;;  %v1185_v62 = vadd.f32 %v1902_v13, %v1116_v56 }
 0x179   : > { %1280 = vst [vmem:[%s1915_s25 + $0xe0] sm:$0xff] %v1216_v59  ;;  %1312 = vst [vmem:[%s1915_s25 + $0x1e0] sm:$0xff] %v1248_v60  ;;  %v1217_v63 = vmax.f32 %v1153_v61, 0.0  ;;  %v1249_v0 = vmax.f32 %v1185_v62, 0.0 }
 0x17a   : > { %v915_v1 = vpop.f32.mrb[60].mxu0  ;;  %v1043_v2 = vpop.f32.mrb[60].mxu1 }
 0x17b   : > { %1281 = vst [vmem:[%s1915_s25 + $0xe8] sm:$0xff] %v1217_v63  ;;  %1313 = vst [vmem:[%s1915_s25 + $0x1e8] sm:$0xff] %v1249_v0  ;;  %v1085_v3 = vmul.f32 %v1897_v11, %v915_v1  ;;  %v1117_v4 = vmul.f32 %v1897_v11, %v1043_v2  ;;  %v917_v5 = vpop.f32.mrb[61].mxu0  ;;  %v1045_v6 = vpop.f32.mrb[61].mxu1 }
 0x17c   : > { %v918_v7 = vpop.f32.mrb[62].mxu0  ;;  %v1046_v8 = vpop.f32.mrb[62].mxu1 }
 0x17d   : > { %v1154_v9 = vadd.f32 %v1902_v13, %v1085_v3  ;;  %v1186_v10 = vadd.f32 %v1902_v13, %v1117_v4  ;;  %v1086_v12 = vmul.f32 %v1897_v11, %v918_v7  ;;  %v1118_v14 = vmul.f32 %v1897_v11, %v1046_v8  ;;  %v920_v15 = vpop.f32.mrb[63].mxu0  ;;  %v1048_v16 = vpop.f32.mrb[63].mxu1 }
 0x17f   : > { %v1218_v17 = vmax.f32 %v1154_v9, 0.0  ;;  %v1250_v18 = vmax.f32 %v1186_v10, 0.0  ;;  %v1155_v19 = vadd.f32 %v1902_v13, %v1086_v12  ;;  %v1187_v20 = vadd.f32 %v1902_v13, %v1118_v14 }
 0x181   : > { %1282 = vst [vmem:[%s1915_s25 + $0xf0] sm:$0xff] %v1218_v17  ;;  %1314 = vst [vmem:[%s1915_s25 + $0x1f0] sm:$0xff] %v1250_v18  ;;  %v1219_v21 = vmax.f32 %v1155_v19, 0.0  ;;  %v1251_v22 = vmax.f32 %v1187_v20, 0.0 }
 0x183   : > { %1283 = vst [vmem:[%s1915_s25 + $0xf8] sm:$0xff] %v1219_v21  ;;  %1315 = vst [vmem:[%s1915_s25 + $0x1f8] sm:$0xff] %v1251_v22 }
 0x184 PF: > { %s13_s14 = sadd.s32 1, %s1717_s14   ;;  %s2116_s12 = smov %s1713_s13 }
 0x185   : > { %p10_p5 = scmp.ge.s32.totalorder %s13_s14, 6   ;;  %s2117_s13 = smov %s2119_s15 }
 0x187   :  { %12 = sbr.rel (!%p10_p5) target bundleno = 2 (0x2), region = 68 }

// kernel: image_encoder_forward.20
= control target key start
LH: loop header
LB: loop body
LE: loop exit
PB: predicated region body
PF: predicated region fallthrough
CT: control target
= control target key end

     0   :  { %s499_s0 = inlined_call_operand.vmem [shape: f32[9,4096], index: 0, kind: input, shape index: {}]   ;;  %s500_s1 = inlined_call_operand.vmem [shape: f32[1,4096], index: 1, kind: output, shape index: {}]  }
   0x1   :  { %v8_v0 = vld [vmem:[%s499_s0] ss:$8 sm:$0xf]  ;;  %v197_v3 = vld [vmem:[%s499_s0 + $0x1] ss:$8 sm:$0xf] }
   0x2   :  { %v9_v1 = vld [vmem:[%s499_s0] ss:$8 sm:$0xf0]  ;;  %v198_v4 = vld [vmem:[%s499_s0 + $0x1] ss:$8 sm:$0xf0] }
   0x3   :  { %v10_v2 = vor.u32 %v9_v1, %v8_v0  ;;  %v26_v5 = vor.u32 %v198_v4, %v197_v3  ;;  %v205_v6 = vld [vmem:[%s499_s0 + $0x2] ss:$8 sm:$0xf]  ;;  %v213_v9 = vld [vmem:[%s499_s0 + $0x3] ss:$8 sm:$0xf] }
   0x4   :  { %v206_v7 = vld [vmem:[%s499_s0 + $0x2] ss:$8 sm:$0xf0]  ;;  %v214_v10 = vld [vmem:[%s499_s0 + $0x3] ss:$8 sm:$0xf0] }
   0x5   :  { %v46_v8 = vor.u32 %v206_v7, %v205_v6  ;;  %v39_v11 = vmax.f32 %v10_v2, %v26_v5  ;;  %v66_v12 = vor.u32 %v214_v10, %v213_v9  ;;  %v221_v13 = vld [vmem:[%s499_s0 + $0x4] ss:$8 sm:$0xf]  ;;  %v229_v15 = vld [vmem:[%s499_s0 + $0x5] ss:$8 sm:$0xf] }
   0x6   :  { %v222_v14 = vld [vmem:[%s499_s0 + $0x4] ss:$8 sm:$0xf0]  ;;  %v230_v16 = vld [vmem:[%s499_s0 + $0x5] ss:$8 sm:$0xf0] }
   0x7   :  { %v59_v17 = vmax.f32 %v39_v11, %v46_v8  ;;  %v86_v18 = vor.u32 %v222_v14, %v221_v13  ;;  %v237_v19 = vld [vmem:[%s499_s0 + $0x6] ss:$8 sm:$0xf]  ;;  %v106_v22 = vor.u32 %v230_v16, %v229_v15  ;;  %v245_v23 = vld [vmem:[%s499_s0 + $0x7] ss:$8 sm:$0xf] }
   0x8   :  { %v238_v20 = vld [vmem:[%s499_s0 + $0x6] ss:$8 sm:$0xf0]  ;;  %v246_v24 = vld [vmem:[%s499_s0 + $0x7] ss:$8 sm:$0xf0] }
   0x9   :  { %v79_v21 = vmax.f32 %v59_v17, %v66_v12  ;;  %v253_v25 = vld [vmem:[%s499_s0 + $0x100] ss:$8 sm:$0xf]  ;;  %v126_v30 = vor.u32 %v238_v20, %v237_v19  ;;  %v199_v32 = vld [vmem:[%s499_s0 + $0x41] ss:$8 sm:$0xf]  ;;  %v146_v38 = vor.u32 %v246_v24, %v245_v23 }
   0xa   :  { %v254_v26 = vld [vmem:[%s499_s0 + $0x100] ss:$8 sm:$0xf0]  ;;  %v200_v33 = vld [vmem:[%s499_s0 + $0x41] ss:$8 sm:$0xf0] }
   0xb   :  { %v191_v27 = vld [vmem:[%s499_s0 + $0x40] ss:$8 sm:$0xf]  ;;  %v99_v29 = vmax.f32 %v79_v21, %v86_v18  ;;  %v30_v34 = vor.u32 %v200_v33, %v199_v32  ;;  %v207_v35 = vld [vmem:[%s499_s0 + $0x42] ss:$8 sm:$0xf]  ;;  %v166_v47 = vor.u32 %v254_v26, %v253_v25 }
   0xc   :  { %v192_v28 = vld [vmem:[%s499_s0 + $0x40] ss:$8 sm:$0xf0]  ;;  %v208_v36 = vld [vmem:[%s499_s0 + $0x42] ss:$8 sm:$0xf0] }
   0xd   :  { %v14_v31 = vor.u32 %v192_v28, %v191_v27  ;;  %v119_v37 = vmax.f32 %v99_v29, %v106_v22  ;;  %v50_v39 = vor.u32 %v208_v36, %v207_v35  ;;  %v215_v40 = vld [vmem:[%s499_s0 + $0x43] ss:$8 sm:$0xf]  ;;  %v223_v44 = vld [vmem:[%s499_s0 + $0x44] ss:$8 sm:$0xf] }
   0xe   :  { %v216_v41 = vld [vmem:[%s499_s0 + $0x43] ss:$8 sm:$0xf0]  ;;  %v224_v45 = vld [vmem:[%s499_s0 + $0x44] ss:$8 sm:$0xf0] }
   0xf   :  { %v40_v42 = vmax.f32 %v14_v31, %v30_v34  ;;  %v70_v43 = vor.u32 %v216_v41, %v215_v40  ;;  %v139_v46 = vmax.f32 %v119_v37, %v126_v30  ;;  %v231_v48 = vld [vmem:[%s499_s0 + $0x45] ss:$8 sm:$0xf]  ;;  %v90_v51 = vor.u32 %v224_v45, %v223_v44  ;;  %v239_v53 = vld [vmem:[%s499_s0 + $0x46] ss:$8 sm:$0xf] }
  0x10   :  { %v232_v49 = vld [vmem:[%s499_s0 + $0x45] ss:$8 sm:$0xf0]  ;;  %v240_v54 = vld [vmem:[%s499_s0 + $0x46] ss:$8 sm:$0xf0] }
  0x11   :  { %v60_v50 = vmax.f32 %v40_v42, %v50_v39  ;;  %v159_v52 = vmax.f32 %v139_v46, %v146_v38  ;;  %v110_v56 = vor.u32 %v232_v49, %v231_v48  ;;  %v247_v57 = vld [vmem:[%s499_s0 + $0x47] ss:$8 sm:$0xf]  ;;  %v255_v60 = vld [vmem:[%s499_s0 + $0x140] ss:$8 sm:$0xf]  ;;  %v130_v1 = vor.u32 %v240_v54, %v239_v53 }
  0x12   :  { %v248_v58 = vld [vmem:[%s499_s0 + $0x47] ss:$8 sm:$0xf0]  ;;  %v256_v61 = vld [vmem:[%s499_s0 + $0x140] ss:$8 sm:$0xf0] }
  0x13   :  { %v80_v55 = vmax.f32 %v60_v50, %v70_v43  ;;  %v179_v59 = vmax.f32 %v159_v52, %v166_v47  ;;  %v193_v62 = vld [vmem:[%s499_s0 + $0x80] ss:$8 sm:$0xf]  ;;  %v201_v3 = vld [vmem:[%s499_s0 + $0x81] ss:$8 sm:$0xf]  ;;  %v150_v9 = vor.u32 %v248_v58, %v247_v57  ;;  %v170_v18 = vor.u32 %v256_v61, %v255_v60 }
  0x14   :  { %v194_v63 = vld [vmem:[%s499_s0 + $0x80] ss:$8 sm:$0xf0]  ;;  %v202_v4 = vld [vmem:[%s499_s0 + $0x81] ss:$8 sm:$0xf0] }
  0x15   :  { %v100_v0 = vmax.f32 %v80_v55, %v90_v51  ;;  %v18_v2 = vor.u32 %v194_v63, %v193_v62  ;;  %183 = vst [vmem:[%s500_s1] sm:$0xff] %v179_v59  ;;  %v34_v5 = vor.u32 %v202_v4, %v201_v3  ;;  %v209_v6 = vld [vmem:[%s499_s0 + $0x82] ss:$8 sm:$0xf]  ;;  %v217_v11 = vld [vmem:[%s499_s0 + $0x83] ss:$8 sm:$0xf] }
  0x16   :  { %v210_v7 = vld [vmem:[%s499_s0 + $0x82] ss:$8 sm:$0xf0]  ;;  %v218_v12 = vld [vmem:[%s499_s0 + $0x83] ss:$8 sm:$0xf0] }
  0x17   :  { %v120_v8 = vmax.f32 %v100_v0, %v110_v56  ;;  %v54_v10 = vor.u32 %v210_v7, %v209_v6  ;;  %v41_v13 = vmax.f32 %v18_v2, %v34_v5  ;;  %v74_v14 = vor.u32 %v218_v12, %v217_v11  ;;  %v225_v15 = vld [vmem:[%s499_s0 + $0x84] ss:$8 sm:$0xf]  ;;  %v233_v19 = vld [vmem:[%s499_s0 + $0x85] ss:$8 sm:$0xf] }
  0x18   :  { %v226_v16 = vld [vmem:[%s499_s0 + $0x84] ss:$8 sm:$0xf0]  ;;  %v234_v20 = vld [vmem:[%s499_s0 + $0x85] ss:$8 sm:$0xf0] }
  0x19   :  { %v140_v17 = vmax.f32 %v120_v8, %v130_v1  ;;  %v61_v21 = vmax.f32 %v41_v13, %v54_v10  ;;  %v94_v22 = vor.u32 %v226_v16, %v225_v15  ;;  %v241_v24 = vld [vmem:[%s499_s0 + $0x86] ss:$8 sm:$0xf]  ;;  %v114_v27 = vor.u32 %v234_v20, %v233_v19  ;;  %v249_v28 = vld [vmem:[%s499_s0 + $0x87] ss:$8 sm:$0xf] }
  0x1a   :  { %v242_v25 = vld [vmem:[%s499_s0 + $0x86] ss:$8 sm:$0xf0]  ;;  %v250_v29 = vld [vmem:[%s499_s0 + $0x87] ss:$8 sm:$0xf0] }
  0x1b   :  { %v160_v23 = vmax.f32 %v140_v17, %v150_v9  ;;  %v81_v26 = vmax.f32 %v61_v21, %v74_v14  ;;  %v257_v31 = vld [vmem:[%s499_s0 + $0x180] ss:$8 sm:$0xf]  ;;  %v134_v36 = vor.u32 %v242_v25, %v241_v24  ;;  %v203_v38 = vld [vmem:[%s499_s0 + $0xc1] ss:$8 sm:$0xf]  ;;  %v154_v44 = vor.u32 %v250_v29, %v249_v28 }
  0x1c   :  { %v258_v32 = vld [vmem:[%s499_s0 + $0x180] ss:$8 sm:$0xf0]  ;;  %v204_v39 = vld [vmem:[%s499_s0 + $0xc1] ss:$8 sm:$0xf0] }
  0x1d   :  { %v180_v30 = vmax.f32 %v160_v23, %v170_v18  ;;  %v195_v33 = vld [vmem:[%s499_s0 + $0xc0] ss:$8 sm:$0xf]  ;;  %v101_v35 = vmax.f32 %v81_v26, %v94_v22  ;;  %v38_v40 = vor.u32 %v204_v39, %v203_v38  ;;  %v211_v41 = vld [vmem:[%s499_s0 + $0xc2] ss:$8 sm:$0xf]  ;;  %v174_v53 = vor.u32 %v258_v32, %v257_v31 }
  0x1e   :  { %v196_v34 = vld [vmem:[%s499_s0 + $0xc0] ss:$8 sm:$0xf0]  ;;  %v212_v42 = vld [vmem:[%s499_s0 + $0xc2] ss:$8 sm:$0xf0] }
  0x1f   :  { %v22_v37 = vor.u32 %v196_v34, %v195_v33  ;;  %184 = vst [vmem:[%s500_s1 + $0x8] sm:$0xff] %v180_v30  ;;  %v121_v43 = vmax.f32 %v101_v35, %v114_v27  ;;  %v58_v45 = vor.u32 %v212_v42, %v211_v41  ;;  %v219_v46 = vld [vmem:[%s499_s0 + $0xc3] ss:$8 sm:$0xf] }
  0x20   :  { %v220_v47 = vld [vmem:[%s499_s0 + $0xc3] ss:$8 sm:$0xf0]  ;;  %v227_v50 = vld [vmem:[%s499_s0 + $0xc4] ss:$8 sm:$0xf] }
  0x21   :  { %v42_v48 = vmax.f32 %v22_v37, %v38_v40  ;;  %v78_v49 = vor.u32 %v220_v47, %v219_v46  ;;  %v228_v51 = vld [vmem:[%s499_s0 + $0xc4] ss:$8 sm:$0xf0]  ;;  %v141_v52 = vmax.f32 %v121_v43, %v134_v36  ;;  %v235_v54 = vld [vmem:[%s499_s0 + $0xc5] ss:$8 sm:$0xf] }
  0x22   :  { %v236_v55 = vld [vmem:[%s499_s0 + $0xc5] ss:$8 sm:$0xf0]  ;;  %v98_v57 = vor.u32 %v228_v51, %v227_v50  ;;  %v243_v59 = vld [vmem:[%s499_s0 + $0xc6] ss:$8 sm:$0xf] }
  0x23   :  { %v62_v56 = vmax.f32 %v42_v48, %v58_v45  ;;  %v161_v58 = vmax.f32 %v141_v52, %v154_v44  ;;  %v244_v60 = vld [vmem:[%s499_s0 + $0xc6] ss:$8 sm:$0xf0]  ;;  %v118_v62 = vor.u32 %v236_v55, %v235_v54  ;;  %v251_v0 = vld [vmem:[%s499_s0 + $0xc7] ss:$8 sm:$0xf] }
  0x24   :  { %v252_v1 = vld [vmem:[%s499_s0 + $0xc7] ss:$8 sm:$0xf0]  ;;  %v138_v3 = vor.u32 %v244_v60, %v243_v59  ;;  %v259_v4 = vld [vmem:[%s499_s0 + $0x1c0] ss:$8 sm:$0xf] }
  0x25   :  { %v82_v61 = vmax.f32 %v62_v56, %v78_v49  ;;  %v181_v63 = vmax.f32 %v161_v58, %v174_v53  ;;  %v260_v5 = vld [vmem:[%s499_s0 + $0x1c0] ss:$8 sm:$0xf0]  ;;  %v158_v7 = vor.u32 %v252_v1, %v251_v0 }
  0x26   :  { %v178_v9 = vor.u32 %v260_v5, %v259_v4 }
  0x27   :  { %v102_v2 = vmax.f32 %v82_v61, %v98_v57  ;;  %185 = vst [vmem:[%s500_s1 + $0x10] sm:$0xff] %v181_v63 }
  0x29   :  { %v122_v6 = vmax.f32 %v102_v2, %v118_v62 }
  0x2b   :  { %v142_v8 = vmax.f32 %v122_v6, %v138_v3 }
  0x2d   :  { %v162_v10 = vmax.f32 %v142_v8, %v158_v7 }
  0x2f   :  { %v182_v11 = vmax.f32 %v162_v10, %v178_v9 }
  0x31   :  { %186 = vst [vmem:[%s500_s1 + $0x18] sm:$0xff] %v182_v11 }

// kernel: squeeze.0
= control target key start
LH: loop header
LB: loop body
LE: loop exit
PB: predicated region body
PF: predicated region fallthrough
CT: control target
= control target key end

     0   :  { %vm66_vm0 = vcmask 64512   ;;  %s1813_s10 = smov 120   ;;  %s1814_s11 = smov 104   ;;  %s2195_s0 = inlined_call_operand.vmem [shape: bf16[4096], index: 0, kind: input, shape index: {}]   ;;  %s2196_s1 = inlined_call_operand.vmem [shape: bf16[512,8], index: 1, kind: output, shape index: {}]  }
   0x1   :  { %v1452_v0 = vld [vmem:[%s2195_s0] sm:$0xff]   ;;  %v1615_v1 = vld [vmem:[%s2195_s0 + $0x8] sm:$0xff]   ;;  %s1812_s0 = smov 112   ;;  %s1815_s12 = smov 96  }
   0x2   :  { %v1453_v2 = vunpack.c.l.bf16 %v1452_v0  ;;  %v1454_v3 = vunpack.c.h.bf16 %v1452_v0  ;;  %v1449_v4 = vunpack.c.l.bf16 %v1615_v1  ;;  %v1450_v5 = vunpack.c.h.bf16 %v1615_v1  ;;  %s1816_s13 = smov 88   ;;  %s1817_s14 = smov 80  }
   0x3   :  { %s1818_s15 = smov 72   ;;  %s1819_s16 = smov 64  }
   0x4   :  { %v1672_v6 = vpack.i.bf16 %v1454_v3, %v1453_v2  ;;  %77 = vst.msk [vmem:[#allocation0 + $0x80] ss:$16 sm:$0xc] %vm66_vm0, %v1454_v3   ;;  %67 = vst.msk [vmem:[#allocation0] ss:$16 sm:$0x3] %vm66_vm0, %v1453_v2   ;;  %v1677_v7 = vpack.i.bf16 %v1450_v5, %v1449_v4 }
   0x5   :  { %68 = vst.msk [vmem:[#allocation0] ss:$16 sm:$0xc] %vm66_vm0, %v1453_v2   ;;  %69 = vst.msk [vmem:[#allocation0] ss:$16 sm:$0x30] %vm66_vm0, %v1453_v2  }
   0x6   :  { %70 = vst.msk [vmem:[#allocation0] ss:$16 sm:$0xc0] %vm66_vm0, %v1453_v2   ;;  %75 = vst.msk [vmem:[#allocation0 + $0x80] ss:$16 sm:$0x3] %vm66_vm0, %v1454_v3   ;;  %1673 = vrot.lane.b32.xlu1 %v1672_v6, %s1812_s0  ;;  %1663 = vrot.lane.b32.xlu0 %v1672_v6, %s1813_s10 }
   0x7   :  { %79 = vst.msk [vmem:[#allocation0 + $0x80] ss:$16 sm:$0x30] %vm66_vm0, %v1454_v3   ;;  %81 = vst.msk [vmem:[#allocation0 + $0x80] ss:$16 sm:$0xc0] %vm66_vm0, %v1454_v3  }
   0x8   :  { %86 = vst.msk [vmem:[#allocation0 + $0x100] ss:$16 sm:$0x3] %vm66_vm0, %v1449_v4   ;;  %88 = vst.msk [vmem:[#allocation0 + $0x100] ss:$16 sm:$0xc] %vm66_vm0, %v1449_v4  }
   0x9   :  { %90 = vst.msk [vmem:[#allocation0 + $0x100] ss:$16 sm:$0x30] %vm66_vm0, %v1449_v4   ;;  %92 = vst.msk [vmem:[#allocation0 + $0x100] ss:$16 sm:$0xc0] %vm66_vm0, %v1449_v4  }
   0xa   :  { %97 = vst.msk [vmem:[#allocation0 + $0x180] ss:$16 sm:$0x3] %vm66_vm0, %v1450_v5   ;;  %99 = vst.msk [vmem:[#allocation0 + $0x180] ss:$16 sm:$0xc] %vm66_vm0, %v1450_v5   ;;  %1678 = vrot.lane.b32.xlu1 %v1677_v7, %s1812_s0  ;;  %1668 = vrot.lane.b32.xlu0 %v1677_v7, %s1813_s10 }
   0xb   :  { %101 = vst.msk [vmem:[#allocation0 + $0x180] ss:$16 sm:$0x30] %vm66_vm0, %v1450_v5   ;;  %103 = vst.msk [vmem:[#allocation0 + $0x180] ss:$16 sm:$0xc0] %vm66_vm0, %v1450_v5  }
   0xc   :  { %s1820_s17 = smov 56   ;;  %s1821_s18 = smov 48  }
   0xd   :  { %s1822_s19 = smov 40   ;;  %s1823_s20 = smov 32  }
   0xe   :  { %1688 = vrot.lane.b32.xlu1 %v1677_v7, %s1814_s11  ;;  %1683 = vrot.lane.b32.xlu0 %v1672_v6, %s1814_s11  ;;  %s1824_s21 = smov 24   ;;  %s1825_s22 = smov 16  }
   0xf   :  { %s1826_s23 = smov 8  }
  0x12   :  { %1698 = vrot.lane.b32.xlu1 %v1677_v7, %s1815_s12  ;;  %1693 = vrot.lane.b32.xlu0 %v1672_v6, %s1815_s12 }
  0x16   :  { %1708 = vrot.lane.b32.xlu1 %v1677_v7, %s1816_s13  ;;  %1703 = vrot.lane.b32.xlu0 %v1672_v6, %s1816_s13 }
  0x1a   :  { %1718 = vrot.lane.b32.xlu1 %v1677_v7, %s1817_s14  ;;  %1713 = vrot.lane.b32.xlu0 %v1672_v6, %s1817_s14 }
  0x1e   :  { %1728 = vrot.lane.b32.xlu1 %v1677_v7, %s1818_s15  ;;  %1723 = vrot.lane.b32.xlu0 %v1672_v6, %s1818_s15 }
  0x22   :  { %1738 = vrot.lane.b32.xlu1 %v1677_v7, %s1819_s16  ;;  %1733 = vrot.lane.b32.xlu0 %v1672_v6, %s1819_s16 }
  0x26   :  { %1748 = vrot.lane.b32.xlu1 %v1677_v7, %s1820_s17  ;;  %1743 = vrot.lane.b32.xlu0 %v1672_v6, %s1820_s17 }
  0x2a   :  { %1758 = vrot.lane.b32.xlu1 %v1677_v7, %s1821_s18  ;;  %1753 = vrot.lane.b32.xlu0 %v1672_v6, %s1821_s18 }
  0x2e   :  { %1768 = vrot.lane.b32.xlu1 %v1677_v7, %s1822_s19  ;;  %1763 = vrot.lane.b32.xlu0 %v1672_v6, %s1822_s19 }
  0x32   :  { %1778 = vrot.lane.b32.xlu1 %v1677_v7, %s1823_s20  ;;  %1773 = vrot.lane.b32.xlu0 %v1672_v6, %s1823_s20 }
  0x36   :  { %1788 = vrot.lane.b32.xlu1 %v1677_v7, %s1824_s21  ;;  %1783 = vrot.lane.b32.xlu0 %v1672_v6, %s1824_s21 }
  0x3a   :  { %1798 = vrot.lane.b32.xlu1 %v1677_v7, %s1825_s22  ;;  %1793 = vrot.lane.b32.xlu0 %v1672_v6, %s1825_s22 }
  0x3e   :  { %1808 = vrot.lane.b32.xlu1 %v1677_v7, %s1826_s23  ;;  %1803 = vrot.lane.b32.xlu0 %v1672_v6, %s1826_s23 }
  0x78   :  { %v1674_v8 = vpop.permute.xlu1 %1673  ;;  %v1664_v9 = vpop.permute.xlu0 %1663 }
  0x79   :  { %v1676_v10 = vunpack.i.h.bf16 %v1674_v8  ;;  %v1675_v11 = vunpack.i.l.bf16 %v1674_v8  ;;  %v1666_v12 = vunpack.i.h.bf16 %v1664_v9  ;;  %v1665_v13 = vunpack.i.l.bf16 %v1664_v9 }
  0x7b   :  { %173 = vst.msk [vmem:[#allocation0 + $0x82] ss:$16 sm:$0x3] %vm66_vm0, %v1676_v10   ;;  %175 = vst.msk [vmem:[#allocation0 + $0x82] ss:$16 sm:$0xc] %vm66_vm0, %v1676_v10  }
  0x7c   :  { %177 = vst.msk [vmem:[#allocation0 + $0x82] ss:$16 sm:$0x30] %vm66_vm0, %v1676_v10   ;;  %179 = vst.msk [vmem:[#allocation0 + $0x82] ss:$16 sm:$0xc0] %vm66_vm0, %v1676_v10   ;;  %v1679_v14 = vpop.permute.xlu1 %1678  ;;  %v1669_v15 = vpop.permute.xlu0 %1668 }
  0x7d   :  { %160 = vst.msk [vmem:[#allocation0 + $0x2] ss:$16 sm:$0x3] %vm66_vm0, %v1675_v11   ;;  %162 = vst.msk [vmem:[#allocation0 + $0x2] ss:$16 sm:$0xc] %vm66_vm0, %v1675_v11   ;;  %v1681_v16 = vunpack.i.h.bf16 %v1679_v14  ;;  %v1680_v17 = vunpack.i.l.bf16 %v1679_v14  ;;  %v1671_v18 = vunpack.i.h.bf16 %v1669_v15  ;;  %v1670_v19 = vunpack.i.l.bf16 %v1669_v15 }
  0x7e   :  { %164 = vst.msk [vmem:[#allocation0 + $0x2] ss:$16 sm:$0x30] %vm66_vm0, %v1675_v11   ;;  %166 = vst.msk [vmem:[#allocation0 + $0x2] ss:$16 sm:$0xc0] %vm66_vm0, %v1675_v11  }
  0x7f   :  { %122 = vst.msk [vmem:[#allocation0 + $0x81] ss:$16 sm:$0x3] %vm66_vm0, %v1666_v12   ;;  %124 = vst.msk [vmem:[#allocation0 + $0x81] ss:$16 sm:$0xc] %vm66_vm0, %v1666_v12  }
  0x80   :  { %126 = vst.msk [vmem:[#allocation0 + $0x81] ss:$16 sm:$0x30] %vm66_vm0, %v1666_v12   ;;  %128 = vst.msk [vmem:[#allocation0 + $0x81] ss:$16 sm:$0xc0] %vm66_vm0, %v1666_v12   ;;  %v1689_v20 = vpop.permute.xlu1 %1688  ;;  %v1684_v21 = vpop.permute.xlu0 %1683 }
  0x81   :  { %109 = vst.msk [vmem:[#allocation0 + $0x1] ss:$16 sm:$0x3] %vm66_vm0, %v1665_v13   ;;  %111 = vst.msk [vmem:[#allocation0 + $0x1] ss:$16 sm:$0xc] %vm66_vm0, %v1665_v13   ;;  %v1691_v22 = vunpack.i.h.bf16 %v1689_v20  ;;  %v1690_v23 = vunpack.i.l.bf16 %v1689_v20  ;;  %v1686_v24 = vunpack.i.h.bf16 %v1684_v21  ;;  %v1685_v25 = vunpack.i.l.bf16 %v1684_v21 }
  0x82   :  { %113 = vst.msk [vmem:[#allocation0 + $0x1] ss:$16 sm:$0x30] %vm66_vm0, %v1665_v13   ;;  %115 = vst.msk [vmem:[#allocation0 + $0x1] ss:$16 sm:$0xc0] %vm66_vm0, %v1665_v13  }
  0x83   :  { %199 = vst.msk [vmem:[#allocation0 + $0x182] ss:$16 sm:$0x3] %vm66_vm0, %v1681_v16   ;;  %201 = vst.msk [vmem:[#allocation0 + $0x182] ss:$16 sm:$0xc] %vm66_vm0, %v1681_v16  }
  0x84   :  { %203 = vst.msk [vmem:[#allocation0 + $0x182] ss:$16 sm:$0x30] %vm66_vm0, %v1681_v16   ;;  %205 = vst.msk [vmem:[#allocation0 + $0x182] ss:$16 sm:$0xc0] %vm66_vm0, %v1681_v16   ;;  %v1699_v26 = vpop.permute.xlu1 %1698  ;;  %v1694_v27 = vpop.permute.xlu0 %1693 }
  0x85   :  { %186 = vst.msk [vmem:[#allocation0 + $0x102] ss:$16 sm:$0x3] %vm66_vm0, %v1680_v17   ;;  %188 = vst.msk [vmem:[#allocation0 + $0x102] ss:$16 sm:$0xc] %vm66_vm0, %v1680_v17   ;;  %v1701_v28 = vunpack.i.h.bf16 %v1699_v26  ;;  %v1700_v29 = vunpack.i.l.bf16 %v1699_v26  ;;  %v1696_v30 = vunpack.i.h.bf16 %v1694_v27  ;;  %v1695_v31 = vunpack.i.l.bf16 %v1694_v27 }
  0x86   :  { %190 = vst.msk [vmem:[#allocation0 + $0x102] ss:$16 sm:$0x30] %vm66_vm0, %v1680_v17   ;;  %192 = vst.msk [vmem:[#allocation0 + $0x102] ss:$16 sm:$0xc0] %vm66_vm0, %v1680_v17  }
  0x87   :  { %148 = vst.msk [vmem:[#allocation0 + $0x181] ss:$16 sm:$0x3] %vm66_vm0, %v1671_v18   ;;  %150 = vst.msk [vmem:[#allocation0 + $0x181] ss:$16 sm:$0xc] %vm66_vm0, %v1671_v18  }
  0x88   :  { %152 = vst.msk [vmem:[#allocation0 + $0x181] ss:$16 sm:$0x30] %vm66_vm0, %v1671_v18   ;;  %154 = vst.msk [vmem:[#allocation0 + $0x181] ss:$16 sm:$0xc0] %vm66_vm0, %v1671_v18   ;;  %v1709_v32 = vpop.permute.xlu1 %1708  ;;  %v1704_v33 = vpop.permute.xlu0 %1703 }
  0x89   :  { %135 = vst.msk [vmem:[#allocation0 + $0x101] ss:$16 sm:$0x3] %vm66_vm0, %v1670_v19   ;;  %137 = vst.msk [vmem:[#allocation0 + $0x101] ss:$16 sm:$0xc] %vm66_vm0, %v1670_v19   ;;  %v1711_v34 = vunpack.i.h.bf16 %v1709_v32  ;;  %v1710_v35 = vunpack.i.l.bf16 %v1709_v32  ;;  %v1706_v36 = vunpack.i.h.bf16 %v1704_v33  ;;  %v1705_v37 = vunpack.i.l.bf16 %v1704_v33 }
  0x8a   :  { %139 = vst.msk [vmem:[#allocation0 + $0x101] ss:$16 sm:$0x30] %vm66_vm0, %v1670_v19   ;;  %141 = vst.msk [vmem:[#allocation0 + $0x101] ss:$16 sm:$0xc0] %vm66_vm0, %v1670_v19  }
  0x8b   :  { %250 = vst.msk [vmem:[#allocation0 + $0x183] ss:$16 sm:$0x3] %vm66_vm0, %v1691_v22   ;;  %252 = vst.msk [vmem:[#allocation0 + $0x183] ss:$16 sm:$0xc] %vm66_vm0, %v1691_v22  }
  0x8c   :  { %254 = vst.msk [vmem:[#allocation0 + $0x183] ss:$16 sm:$0x30] %vm66_vm0, %v1691_v22   ;;  %256 = vst.msk [vmem:[#allocation0 + $0x183] ss:$16 sm:$0xc0] %vm66_vm0, %v1691_v22   ;;  %v1719_v38 = vpop.permute.xlu1 %1718  ;;  %v1714_v39 = vpop.permute.xlu0 %1713 }
  0x8d   :  { %237 = vst.msk [vmem:[#allocation0 + $0x103] ss:$16 sm:$0x3] %vm66_vm0, %v1690_v23   ;;  %239 = vst.msk [vmem:[#allocation0 + $0x103] ss:$16 sm:$0xc] %vm66_vm0, %v1690_v23   ;;  %v1721_v40 = vunpack.i.h.bf16 %v1719_v38  ;;  %v1720_v41 = vunpack.i.l.bf16 %v1719_v38  ;;  %v1716_v42 = vunpack.i.h.bf16 %v1714_v39  ;;  %v1715_v43 = vunpack.i.l.bf16 %v1714_v39 }
  0x8e   :  { %241 = vst.msk [vmem:[#allocation0 + $0x103] ss:$16 sm:$0x30] %vm66_vm0, %v1690_v23   ;;  %243 = vst.msk [vmem:[#allocation0 + $0x103] ss:$16 sm:$0xc0] %vm66_vm0, %v1690_v23  }
  0x8f   :  { %224 = vst.msk [vmem:[#allocation0 + $0x83] ss:$16 sm:$0x3] %vm66_vm0, %v1686_v24   ;;  %226 = vst.msk [vmem:[#allocation0 + $0x83] ss:$16 sm:$0xc] %vm66_vm0, %v1686_v24  }
  0x90   :  { %228 = vst.msk [vmem:[#allocation0 + $0x83] ss:$16 sm:$0x30] %vm66_vm0, %v1686_v24   ;;  %230 = vst.msk [vmem:[#allocation0 + $0x83] ss:$16 sm:$0xc0] %vm66_vm0, %v1686_v24   ;;  %v1729_v44 = vpop.permute.xlu1 %1728  ;;  %v1724_v45 = vpop.permute.xlu0 %1723 }
  0x91   :  { %211 = vst.msk [vmem:[#allocation0 + $0x3] ss:$16 sm:$0x3] %vm66_vm0, %v1685_v25   ;;  %213 = vst.msk [vmem:[#allocation0 + $0x3] ss:$16 sm:$0xc] %vm66_vm0, %v1685_v25   ;;  %v1731_v46 = vunpack.i.h.bf16 %v1729_v44  ;;  %v1730_v47 = vunpack.i.l.bf16 %v1729_v44  ;;  %v1726_v48 = vunpack.i.h.bf16 %v1724_v45  ;;  %v1725_v49 = vunpack.i.l.bf16 %v1724_v45 }
  0x92   :  { %215 = vst.msk [vmem:[#allocation0 + $0x3] ss:$16 sm:$0x30] %vm66_vm0, %v1685_v25   ;;  %217 = vst.msk [vmem:[#allocation0 + $0x3] ss:$16 sm:$0xc0] %vm66_vm0, %v1685_v25  }
  0x93   :  { %301 = vst.msk [vmem:[#allocation0 + $0x184] ss:$16 sm:$0x3] %vm66_vm0, %v1701_v28   ;;  %303 = vst.msk [vmem:[#allocation0 + $0x184] ss:$16 sm:$0xc] %vm66_vm0, %v1701_v28  }
  0x94   :  { %305 = vst.msk [vmem:[#allocation0 + $0x184] ss:$16 sm:$0x30] %vm66_vm0, %v1701_v28   ;;  %307 = vst.msk [vmem:[#allocation0 + $0x184] ss:$16 sm:$0xc0] %vm66_vm0, %v1701_v28   ;;  %v1739_v50 = vpop.permute.xlu1 %1738  ;;  %v1734_v51 = vpop.permute.xlu0 %1733 }
  0x95   :  { %288 = vst.msk [vmem:[#allocation0 + $0x104] ss:$16 sm:$0x3] %vm66_vm0, %v1700_v29   ;;  %290 = vst.msk [vmem:[#allocation0 + $0x104] ss:$16 sm:$0xc] %vm66_vm0, %v1700_v29   ;;  %v1741_v52 = vunpack.i.h.bf16 %v1739_v50  ;;  %v1740_v53 = vunpack.i.l.bf16 %v1739_v50  ;;  %v1736_v54 = vunpack.i.h.bf16 %v1734_v51  ;;  %v1735_v55 = vunpack.i.l.bf16 %v1734_v51 }
  0x96   :  { %292 = vst.msk [vmem:[#allocation0 + $0x104] ss:$16 sm:$0x30] %vm66_vm0, %v1700_v29   ;;  %294 = vst.msk [vmem:[#allocation0 + $0x104] ss:$16 sm:$0xc0] %vm66_vm0, %v1700_v29  }
  0x97   :  { %275 = vst.msk [vmem:[#allocation0 + $0x84] ss:$16 sm:$0x3] %vm66_vm0, %v1696_v30   ;;  %277 = vst.msk [vmem:[#allocation0 + $0x84] ss:$16 sm:$0xc] %vm66_vm0, %v1696_v30  }
  0x98   :  { %279 = vst.msk [vmem:[#allocation0 + $0x84] ss:$16 sm:$0x30] %vm66_vm0, %v1696_v30   ;;  %281 = vst.msk [vmem:[#allocation0 + $0x84] ss:$16 sm:$0xc0] %vm66_vm0, %v1696_v30   ;;  %v1749_v56 = vpop.permute.xlu1 %1748  ;;  %v1744_v57 = vpop.permute.xlu0 %1743 }
  0x99   :  { %262 = vst.msk [vmem:[#allocation0 + $0x4] ss:$16 sm:$0x3] %vm66_vm0, %v1695_v31   ;;  %264 = vst.msk [vmem:[#allocation0 + $0x4] ss:$16 sm:$0xc] %vm66_vm0, %v1695_v31   ;;  %v1751_v58 = vunpack.i.h.bf16 %v1749_v56  ;;  %v1750_v59 = vunpack.i.l.bf16 %v1749_v56  ;;  %v1746_v60 = vunpack.i.h.bf16 %v1744_v57  ;;  %v1745_v61 = vunpack.i.l.bf16 %v1744_v57 }
  0x9a   :  { %266 = vst.msk [vmem:[#allocation0 + $0x4] ss:$16 sm:$0x30] %vm66_vm0, %v1695_v31   ;;  %268 = vst.msk [vmem:[#allocation0 + $0x4] ss:$16 sm:$0xc0] %vm66_vm0, %v1695_v31  }
  0x9b   :  { %352 = vst.msk [vmem:[#allocation0 + $0x185] ss:$16 sm:$0x3] %vm66_vm0, %v1711_v34   ;;  %354 = vst.msk [vmem:[#allocation0 + $0x185] ss:$16 sm:$0xc] %vm66_vm0, %v1711_v34  }
  0x9c   :  { %356 = vst.msk [vmem:[#allocation0 + $0x185] ss:$16 sm:$0x30] %vm66_vm0, %v1711_v34   ;;  %358 = vst.msk [vmem:[#allocation0 + $0x185] ss:$16 sm:$0xc0] %vm66_vm0, %v1711_v34   ;;  %v1759_v62 = vpop.permute.xlu1 %1758  ;;  %v1754_v63 = vpop.permute.xlu0 %1753 }
  0x9d   :  { %339 = vst.msk [vmem:[#allocation0 + $0x105] ss:$16 sm:$0x3] %vm66_vm0, %v1710_v35   ;;  %341 = vst.msk [vmem:[#allocation0 + $0x105] ss:$16 sm:$0xc] %vm66_vm0, %v1710_v35   ;;  %v1761_v0 = vunpack.i.h.bf16 %v1759_v62  ;;  %v1760_v1 = vunpack.i.l.bf16 %v1759_v62  ;;  %v1756_v2 = vunpack.i.h.bf16 %v1754_v63  ;;  %v1755_v3 = vunpack.i.l.bf16 %v1754_v63 }
  0x9e   :  { %343 = vst.msk [vmem:[#allocation0 + $0x105] ss:$16 sm:$0x30] %vm66_vm0, %v1710_v35   ;;  %345 = vst.msk [vmem:[#allocation0 + $0x105] ss:$16 sm:$0xc0] %vm66_vm0, %v1710_v35  }
  0x9f   :  { %326 = vst.msk [vmem:[#allocation0 + $0x85] ss:$16 sm:$0x3] %vm66_vm0, %v1706_v36   ;;  %328 = vst.msk [vmem:[#allocation0 + $0x85] ss:$16 sm:$0xc] %vm66_vm0, %v1706_v36  }
  0xa0   :  { %330 = vst.msk [vmem:[#allocation0 + $0x85] ss:$16 sm:$0x30] %vm66_vm0, %v1706_v36   ;;  %332 = vst.msk [vmem:[#allocation0 + $0x85] ss:$16 sm:$0xc0] %vm66_vm0, %v1706_v36   ;;  %v1769_v4 = vpop.permute.xlu1 %1768  ;;  %v1764_v5 = vpop.permute.xlu0 %1763 }
  0xa1   :  { %313 = vst.msk [vmem:[#allocation0 + $0x5] ss:$16 sm:$0x3] %vm66_vm0, %v1705_v37   ;;  %315 = vst.msk [vmem:[#allocation0 + $0x5] ss:$16 sm:$0xc] %vm66_vm0, %v1705_v37   ;;  %v1771_v6 = vunpack.i.h.bf16 %v1769_v4  ;;  %v1770_v7 = vunpack.i.l.bf16 %v1769_v4  ;;  %v1766_v8 = vunpack.i.h.bf16 %v1764_v5  ;;  %v1765_v9 = vunpack.i.l.bf16 %v1764_v5 }
  0xa2   :  { %317 = vst.msk [vmem:[#allocation0 + $0x5] ss:$16 sm:$0x30] %vm66_vm0, %v1705_v37   ;;  %319 = vst.msk [vmem:[#allocation0 + $0x5] ss:$16 sm:$0xc0] %vm66_vm0, %v1705_v37  }
  0xa3   :  { %403 = vst.msk [vmem:[#allocation0 + $0x186] ss:$16 sm:$0x3] %vm66_vm0, %v1721_v40   ;;  %405 = vst.msk [vmem:[#allocation0 + $0x186] ss:$16 sm:$0xc] %vm66_vm0, %v1721_v40  }
  0xa4   :  { %407 = vst.msk [vmem:[#allocation0 + $0x186] ss:$16 sm:$0x30] %vm66_vm0, %v1721_v40   ;;  %409 = vst.msk [vmem:[#allocation0 + $0x186] ss:$16 sm:$0xc0] %vm66_vm0, %v1721_v40   ;;  %v1779_v10 = vpop.permute.xlu1 %1778  ;;  %v1774_v11 = vpop.permute.xlu0 %1773 }
  0xa5   :  { %390 = vst.msk [vmem:[#allocation0 + $0x106] ss:$16 sm:$0x3] %vm66_vm0, %v1720_v41   ;;  %392 = vst.msk [vmem:[#allocation0 + $0x106] ss:$16 sm:$0xc] %vm66_vm0, %v1720_v41   ;;  %v1781_v12 = vunpack.i.h.bf16 %v1779_v10  ;;  %v1780_v13 = vunpack.i.l.bf16 %v1779_v10  ;;  %v1776_v14 = vunpack.i.h.bf16 %v1774_v11  ;;  %v1775_v15 = vunpack.i.l.bf16 %v1774_v11 }
  0xa6   :  { %394 = vst.msk [vmem:[#allocation0 + $0x106] ss:$16 sm:$0x30] %vm66_vm0, %v1720_v41   ;;  %396 = vst.msk [vmem:[#allocation0 + $0x106] ss:$16 sm:$0xc0] %vm66_vm0, %v1720_v41  }
  0xa7   :  { %377 = vst.msk [vmem:[#allocation0 + $0x86] ss:$16 sm:$0x3] %vm66_vm0, %v1716_v42   ;;  %379 = vst.msk [vmem:[#allocation0 + $0x86] ss:$16 sm:$0xc] %vm66_vm0, %v1716_v42  }
  0xa8   :  { %381 = vst.msk [vmem:[#allocation0 + $0x86] ss:$16 sm:$0x30] %vm66_vm0, %v1716_v42   ;;  %383 = vst.msk [vmem:[#allocation0 + $0x86] ss:$16 sm:$0xc0] %vm66_vm0, %v1716_v42   ;;  %v1789_v16 = vpop.permute.xlu1 %1788  ;;  %v1784_v17 = vpop.permute.xlu0 %1783 }
  0xa9   :  { %364 = vst.msk [vmem:[#allocation0 + $0x6] ss:$16 sm:$0x3] %vm66_vm0, %v1715_v43   ;;  %366 = vst.msk [vmem:[#allocation0 + $0x6] ss:$16 sm:$0xc] %vm66_vm0, %v1715_v43   ;;  %v1791_v18 = vunpack.i.h.bf16 %v1789_v16  ;;  %v1790_v19 = vunpack.i.l.bf16 %v1789_v16  ;;  %v1786_v20 = vunpack.i.h.bf16 %v1784_v17  ;;  %v1785_v21 = vunpack.i.l.bf16 %v1784_v17 }
  0xaa   :  { %368 = vst.msk [vmem:[#allocation0 + $0x6] ss:$16 sm:$0x30] %vm66_vm0, %v1715_v43   ;;  %370 = vst.msk [vmem:[#allocation0 + $0x6] ss:$16 sm:$0xc0] %vm66_vm0, %v1715_v43  }
  0xab   :  { %454 = vst.msk [vmem:[#allocation0 + $0x187] ss:$16 sm:$0x3] %vm66_vm0, %v1731_v46   ;;  %456 = vst.msk [vmem:[#allocation0 + $0x187] ss:$16 sm:$0xc] %vm66_vm0, %v1731_v46  }
  0xac   :  { %458 = vst.msk [vmem:[#allocation0 + $0x187] ss:$16 sm:$0x30] %vm66_vm0, %v1731_v46   ;;  %460 = vst.msk [vmem:[#allocation0 + $0x187] ss:$16 sm:$0xc0] %vm66_vm0, %v1731_v46   ;;  %v1799_v22 = vpop.permute.xlu1 %1798  ;;  %v1794_v23 = vpop.permute.xlu0 %1793 }
  0xad   :  { %441 = vst.msk [vmem:[#allocation0 + $0x107] ss:$16 sm:$0x3] %vm66_vm0, %v1730_v47   ;;  %443 = vst.msk [vmem:[#allocation0 + $0x107] ss:$16 sm:$0xc] %vm66_vm0, %v1730_v47   ;;  %v1801_v24 = vunpack.i.h.bf16 %v1799_v22  ;;  %v1800_v25 = vunpack.i.l.bf16 %v1799_v22  ;;  %v1796_v26 = vunpack.i.h.bf16 %v1794_v23  ;;  %v1795_v27 = vunpack.i.l.bf16 %v1794_v23 }
  0xae   :  { %445 = vst.msk [vmem:[#allocation0 + $0x107] ss:$16 sm:$0x30] %vm66_vm0, %v1730_v47   ;;  %447 = vst.msk [vmem:[#allocation0 + $0x107] ss:$16 sm:$0xc0] %vm66_vm0, %v1730_v47  }
  0xaf   :  { %428 = vst.msk [vmem:[#allocation0 + $0x87] ss:$16 sm:$0x3] %vm66_vm0, %v1726_v48   ;;  %430 = vst.msk [vmem:[#allocation0 + $0x87] ss:$16 sm:$0xc] %vm66_vm0, %v1726_v48  }
  0xb0   :  { %432 = vst.msk [vmem:[#allocation0 + $0x87] ss:$16 sm:$0x30] %vm66_vm0, %v1726_v48   ;;  %434 = vst.msk [vmem:[#allocation0 + $0x87] ss:$16 sm:$0xc0] %vm66_vm0, %v1726_v48   ;;  %v1809_v28 = vpop.permute.xlu1 %1808  ;;  %v1804_v29 = vpop.permute.xlu0 %1803 }
  0xb1   :  { %415 = vst.msk [vmem:[#allocation0 + $0x7] ss:$16 sm:$0x3] %vm66_vm0, %v1725_v49   ;;  %417 = vst.msk [vmem:[#allocation0 + $0x7] ss:$16 sm:$0xc] %vm66_vm0, %v1725_v49   ;;  %v1811_v30 = vunpack.i.h.bf16 %v1809_v28  ;;  %v1810_v31 = vunpack.i.l.bf16 %v1809_v28  ;;  %v1806_v32 = vunpack.i.h.bf16 %v1804_v29  ;;  %v1805_v33 = vunpack.i.l.bf16 %v1804_v29 }
  0xb2   :  { %419 = vst.msk [vmem:[#allocation0 + $0x7] ss:$16 sm:$0x30] %vm66_vm0, %v1725_v49   ;;  %421 = vst.msk [vmem:[#allocation0 + $0x7] ss:$16 sm:$0xc0] %vm66_vm0, %v1725_v49  }
  0xb3   :  { %505 = vst.msk [vmem:[#allocation0 + $0x188] ss:$16 sm:$0x3] %vm66_vm0, %v1741_v52   ;;  %507 = vst.msk [vmem:[#allocation0 + $0x188] ss:$16 sm:$0xc] %vm66_vm0, %v1741_v52  }
  0xb4   :  { %509 = vst.msk [vmem:[#allocation0 + $0x188] ss:$16 sm:$0x30] %vm66_vm0, %v1741_v52   ;;  %511 = vst.msk [vmem:[#allocation0 + $0x188] ss:$16 sm:$0xc0] %vm66_vm0, %v1741_v52  }
  0xb5   :  { %492 = vst.msk [vmem:[#allocation0 + $0x108] ss:$16 sm:$0x3] %vm66_vm0, %v1740_v53   ;;  %494 = vst.msk [vmem:[#allocation0 + $0x108] ss:$16 sm:$0xc] %vm66_vm0, %v1740_v53  }
  0xb6   :  { %496 = vst.msk [vmem:[#allocation0 + $0x108] ss:$16 sm:$0x30] %vm66_vm0, %v1740_v53   ;;  %498 = vst.msk [vmem:[#allocation0 + $0x108] ss:$16 sm:$0xc0] %vm66_vm0, %v1740_v53  }
  0xb7   :  { %479 = vst.msk [vmem:[#allocation0 + $0x88] ss:$16 sm:$0x3] %vm66_vm0, %v1736_v54   ;;  %481 = vst.msk [vmem:[#allocation0 + $0x88] ss:$16 sm:$0xc] %vm66_vm0, %v1736_v54  }
  0xb8   :  { %483 = vst.msk [vmem:[#allocation0 + $0x88] ss:$16 sm:$0x30] %vm66_vm0, %v1736_v54   ;;  %485 = vst.msk [vmem:[#allocation0 + $0x88] ss:$16 sm:$0xc0] %vm66_vm0, %v1736_v54  }
  0xb9   :  { %466 = vst.msk [vmem:[#allocation0 + $0x8] ss:$16 sm:$0x3] %vm66_vm0, %v1735_v55   ;;  %468 = vst.msk [vmem:[#allocation0 + $0x8] ss:$16 sm:$0xc] %vm66_vm0, %v1735_v55  }
  0xba   :  { %470 = vst.msk [vmem:[#allocation0 + $0x8] ss:$16 sm:$0x30] %vm66_vm0, %v1735_v55   ;;  %472 = vst.msk [vmem:[#allocation0 + $0x8] ss:$16 sm:$0xc0] %vm66_vm0, %v1735_v55  }
  0xbb   :  { %556 = vst.msk [vmem:[#allocation0 + $0x189] ss:$16 sm:$0x3] %vm66_vm0, %v1751_v58   ;;  %558 = vst.msk [vmem:[#allocation0 + $0x189] ss:$16 sm:$0xc] %vm66_vm0, %v1751_v58  }
  0xbc   :  { %560 = vst.msk [vmem:[#allocation0 + $0x189] ss:$16 sm:$0x30] %vm66_vm0, %v1751_v58   ;;  %562 = vst.msk [vmem:[#allocation0 + $0x189] ss:$16 sm:$0xc0] %vm66_vm0, %v1751_v58  }
  0xbd   :  { %543 = vst.msk [vmem:[#allocation0 + $0x109] ss:$16 sm:$0x3] %vm66_vm0, %v1750_v59   ;;  %545 = vst.msk [vmem:[#allocation0 + $0x109] ss:$16 sm:$0xc] %vm66_vm0, %v1750_v59  }
  0xbe   :  { %547 = vst.msk [vmem:[#allocation0 + $0x109] ss:$16 sm:$0x30] %vm66_vm0, %v1750_v59   ;;  %549 = vst.msk [vmem:[#allocation0 + $0x109] ss:$16 sm:$0xc0] %vm66_vm0, %v1750_v59  }
  0xbf   :  { %530 = vst.msk [vmem:[#allocation0 + $0x89] ss:$16 sm:$0x3] %vm66_vm0, %v1746_v60   ;;  %532 = vst.msk [vmem:[#allocation0 + $0x89] ss:$16 sm:$0xc] %vm66_vm0, %v1746_v60  }
  0xc0   :  { %534 = vst.msk [vmem:[#allocation0 + $0x89] ss:$16 sm:$0x30] %vm66_vm0, %v1746_v60   ;;  %536 = vst.msk [vmem:[#allocation0 + $0x89] ss:$16 sm:$0xc0] %vm66_vm0, %v1746_v60  }
  0xc1   :  { %517 = vst.msk [vmem:[#allocation0 + $0x9] ss:$16 sm:$0x3] %vm66_vm0, %v1745_v61   ;;  %519 = vst.msk [vmem:[#allocation0 + $0x9] ss:$16 sm:$0xc] %vm66_vm0, %v1745_v61  }
  0xc2   :  { %521 = vst.msk [vmem:[#allocation0 + $0x9] ss:$16 sm:$0x30] %vm66_vm0, %v1745_v61   ;;  %523 = vst.msk [vmem:[#allocation0 + $0x9] ss:$16 sm:$0xc0] %vm66_vm0, %v1745_v61  }
  0xc3   :  { %607 = vst.msk [vmem:[#allocation0 + $0x18a] ss:$16 sm:$0x3] %vm66_vm0, %v1761_v0   ;;  %609 = vst.msk [vmem:[#allocation0 + $0x18a] ss:$16 sm:$0xc] %vm66_vm0, %v1761_v0  }
  0xc4   :  { %611 = vst.msk [vmem:[#allocation0 + $0x18a] ss:$16 sm:$0x30] %vm66_vm0, %v1761_v0   ;;  %613 = vst.msk [vmem:[#allocation0 + $0x18a] ss:$16 sm:$0xc0] %vm66_vm0, %v1761_v0  }
  0xc5   :  { %594 = vst.msk [vmem:[#allocation0 + $0x10a] ss:$16 sm:$0x3] %vm66_vm0, %v1760_v1   ;;  %596 = vst.msk [vmem:[#allocation0 + $0x10a] ss:$16 sm:$0xc] %vm66_vm0, %v1760_v1  }
  0xc6   :  { %598 = vst.msk [vmem:[#allocation0 + $0x10a] ss:$16 sm:$0x30] %vm66_vm0, %v1760_v1   ;;  %600 = vst.msk [vmem:[#allocation0 + $0x10a] ss:$16 sm:$0xc0] %vm66_vm0, %v1760_v1  }
  0xc7   :  { %581 = vst.msk [vmem:[#allocation0 + $0x8a] ss:$16 sm:$0x3] %vm66_vm0, %v1756_v2   ;;  %583 = vst.msk [vmem:[#allocation0 + $0x8a] ss:$16 sm:$0xc] %vm66_vm0, %v1756_v2  }
  0xc8   :  { %585 = vst.msk [vmem:[#allocation0 + $0x8a] ss:$16 sm:$0x30] %vm66_vm0, %v1756_v2   ;;  %587 = vst.msk [vmem:[#allocation0 + $0x8a] ss:$16 sm:$0xc0] %vm66_vm0, %v1756_v2  }
  0xc9   :  { %568 = vst.msk [vmem:[#allocation0 + $0xa] ss:$16 sm:$0x3] %vm66_vm0, %v1755_v3   ;;  %570 = vst.msk [vmem:[#allocation0 + $0xa] ss:$16 sm:$0xc] %vm66_vm0, %v1755_v3  }
  0xca   :  { %572 = vst.msk [vmem:[#allocation0 + $0xa] ss:$16 sm:$0x30] %vm66_vm0, %v1755_v3   ;;  %574 = vst.msk [vmem:[#allocation0 + $0xa] ss:$16 sm:$0xc0] %vm66_vm0, %v1755_v3  }
  0xcb   :  { %658 = vst.msk [vmem:[#allocation0 + $0x18b] ss:$16 sm:$0x3] %vm66_vm0, %v1771_v6   ;;  %660 = vst.msk [vmem:[#allocation0 + $0x18b] ss:$16 sm:$0xc] %vm66_vm0, %v1771_v6  }
  0xcc   :  { %662 = vst.msk [vmem:[#allocation0 + $0x18b] ss:$16 sm:$0x30] %vm66_vm0, %v1771_v6   ;;  %664 = vst.msk [vmem:[#allocation0 + $0x18b] ss:$16 sm:$0xc0] %vm66_vm0, %v1771_v6  }
  0xcd   :  { %645 = vst.msk [vmem:[#allocation0 + $0x10b] ss:$16 sm:$0x3] %vm66_vm0, %v1770_v7   ;;  %647 = vst.msk [vmem:[#allocation0 + $0x10b] ss:$16 sm:$0xc] %vm66_vm0, %v1770_v7  }
  0xce   :  { %649 = vst.msk [vmem:[#allocation0 + $0x10b] ss:$16 sm:$0x30] %vm66_vm0, %v1770_v7   ;;  %651 = vst.msk [vmem:[#allocation0 + $0x10b] ss:$16 sm:$0xc0] %vm66_vm0, %v1770_v7  }
  0xcf   :  { %632 = vst.msk [vmem:[#allocation0 + $0x8b] ss:$16 sm:$0x3] %vm66_vm0, %v1766_v8   ;;  %634 = vst.msk [vmem:[#allocation0 + $0x8b] ss:$16 sm:$0xc] %vm66_vm0, %v1766_v8  }
  0xd0   :  { %636 = vst.msk [vmem:[#allocation0 + $0x8b] ss:$16 sm:$0x30] %vm66_vm0, %v1766_v8   ;;  %638 = vst.msk [vmem:[#allocation0 + $0x8b] ss:$16 sm:$0xc0] %vm66_vm0, %v1766_v8  }
  0xd1   :  { %619 = vst.msk [vmem:[#allocation0 + $0xb] ss:$16 sm:$0x3] %vm66_vm0, %v1765_v9   ;;  %621 = vst.msk [vmem:[#allocation0 + $0xb] ss:$16 sm:$0xc] %vm66_vm0, %v1765_v9  }
  0xd2   :  { %623 = vst.msk [vmem:[#allocation0 + $0xb] ss:$16 sm:$0x30] %vm66_vm0, %v1765_v9   ;;  %625 = vst.msk [vmem:[#allocation0 + $0xb] ss:$16 sm:$0xc0] %vm66_vm0, %v1765_v9  }
  0xd3   :  { %709 = vst.msk [vmem:[#allocation0 + $0x18c] ss:$16 sm:$0x3] %vm66_vm0, %v1781_v12   ;;  %711 = vst.msk [vmem:[#allocation0 + $0x18c] ss:$16 sm:$0xc] %vm66_vm0, %v1781_v12  }
  0xd4   :  { %713 = vst.msk [vmem:[#allocation0 + $0x18c] ss:$16 sm:$0x30] %vm66_vm0, %v1781_v12   ;;  %715 = vst.msk [vmem:[#allocation0 + $0x18c] ss:$16 sm:$0xc0] %vm66_vm0, %v1781_v12  }
  0xd5   :  { %696 = vst.msk [vmem:[#allocation0 + $0x10c] ss:$16 sm:$0x3] %vm66_vm0, %v1780_v13   ;;  %698 = vst.msk [vmem:[#allocation0 + $0x10c] ss:$16 sm:$0xc] %vm66_vm0, %v1780_v13  }
  0xd6   :  { %700 = vst.msk [vmem:[#allocation0 + $0x10c] ss:$16 sm:$0x30] %vm66_vm0, %v1780_v13   ;;  %702 = vst.msk [vmem:[#allocation0 + $0x10c] ss:$16 sm:$0xc0] %vm66_vm0, %v1780_v13  }
  0xd7   :  { %683 = vst.msk [vmem:[#allocation0 + $0x8c] ss:$16 sm:$0x3] %vm66_vm0, %v1776_v14   ;;  %685 = vst.msk [vmem:[#allocation0 + $0x8c] ss:$16 sm:$0xc] %vm66_vm0, %v1776_v14  }
  0xd8   :  { %687 = vst.msk [vmem:[#allocation0 + $0x8c] ss:$16 sm:$0x30] %vm66_vm0, %v1776_v14   ;;  %689 = vst.msk [vmem:[#allocation0 + $0x8c] ss:$16 sm:$0xc0] %vm66_vm0, %v1776_v14  }
  0xd9   :  { %670 = vst.msk [vmem:[#allocation0 + $0xc] ss:$16 sm:$0x3] %vm66_vm0, %v1775_v15   ;;  %672 = vst.msk [vmem:[#allocation0 + $0xc] ss:$16 sm:$0xc] %vm66_vm0, %v1775_v15  }
  0xda   :  { %674 = vst.msk [vmem:[#allocation0 + $0xc] ss:$16 sm:$0x30] %vm66_vm0, %v1775_v15   ;;  %676 = vst.msk [vmem:[#allocation0 + $0xc] ss:$16 sm:$0xc0] %vm66_vm0, %v1775_v15  }
  0xdb   :  { %760 = vst.msk [vmem:[#allocation0 + $0x18d] ss:$16 sm:$0x3] %vm66_vm0, %v1791_v18   ;;  %762 = vst.msk [vmem:[#allocation0 + $0x18d] ss:$16 sm:$0xc] %vm66_vm0, %v1791_v18  }
  0xdc   :  { %764 = vst.msk [vmem:[#allocation0 + $0x18d] ss:$16 sm:$0x30] %vm66_vm0, %v1791_v18   ;;  %766 = vst.msk [vmem:[#allocation0 + $0x18d] ss:$16 sm:$0xc0] %vm66_vm0, %v1791_v18  }
  0xdd   :  { %747 = vst.msk [vmem:[#allocation0 + $0x10d] ss:$16 sm:$0x3] %vm66_vm0, %v1790_v19   ;;  %749 = vst.msk [vmem:[#allocation0 + $0x10d] ss:$16 sm:$0xc] %vm66_vm0, %v1790_v19  }
  0xde   :  { %751 = vst.msk [vmem:[#allocation0 + $0x10d] ss:$16 sm:$0x30] %vm66_vm0, %v1790_v19   ;;  %753 = vst.msk [vmem:[#allocation0 + $0x10d] ss:$16 sm:$0xc0] %vm66_vm0, %v1790_v19  }
  0xdf   :  { %734 = vst.msk [vmem:[#allocation0 + $0x8d] ss:$16 sm:$0x3] %vm66_vm0, %v1786_v20   ;;  %736 = vst.msk [vmem:[#allocation0 + $0x8d] ss:$16 sm:$0xc] %vm66_vm0, %v1786_v20  }
  0xe0   :  { %738 = vst.msk [vmem:[#allocation0 + $0x8d] ss:$16 sm:$0x30] %vm66_vm0, %v1786_v20   ;;  %740 = vst.msk [vmem:[#allocation0 + $0x8d] ss:$16 sm:$0xc0] %vm66_vm0, %v1786_v20  }
  0xe1   :  { %721 = vst.msk [vmem:[#allocation0 + $0xd] ss:$16 sm:$0x3] %vm66_vm0, %v1785_v21   ;;  %723 = vst.msk [vmem:[#allocation0 + $0xd] ss:$16 sm:$0xc] %vm66_vm0, %v1785_v21  }
  0xe2   :  { %725 = vst.msk [vmem:[#allocation0 + $0xd] ss:$16 sm:$0x30] %vm66_vm0, %v1785_v21   ;;  %727 = vst.msk [vmem:[#allocation0 + $0xd] ss:$16 sm:$0xc0] %vm66_vm0, %v1785_v21  }
  0xe3   :  { %811 = vst.msk [vmem:[#allocation0 + $0x18e] ss:$16 sm:$0x3] %vm66_vm0, %v1801_v24   ;;  %813 = vst.msk [vmem:[#allocation0 + $0x18e] ss:$16 sm:$0xc] %vm66_vm0, %v1801_v24  }
  0xe4   :  { %815 = vst.msk [vmem:[#allocation0 + $0x18e] ss:$16 sm:$0x30] %vm66_vm0, %v1801_v24   ;;  %817 = vst.msk [vmem:[#allocation0 + $0x18e] ss:$16 sm:$0xc0] %vm66_vm0, %v1801_v24  }
  0xe5   :  { %798 = vst.msk [vmem:[#allocation0 + $0x10e] ss:$16 sm:$0x3] %vm66_vm0, %v1800_v25   ;;  %800 = vst.msk [vmem:[#allocation0 + $0x10e] ss:$16 sm:$0xc] %vm66_vm0, %v1800_v25  }
  0xe6   :  { %802 = vst.msk [vmem:[#allocation0 + $0x10e] ss:$16 sm:$0x30] %vm66_vm0, %v1800_v25   ;;  %804 = vst.msk [vmem:[#allocation0 + $0x10e] ss:$16 sm:$0xc0] %vm66_vm0, %v1800_v25  }
  0xe7   :  { %785 = vst.msk [vmem:[#allocation0 + $0x8e] ss:$16 sm:$0x3] %vm66_vm0, %v1796_v26   ;;  %787 = vst.msk [vmem:[#allocation0 + $0x8e] ss:$16 sm:$0xc] %vm66_vm0, %v1796_v26  }
  0xe8   :  { %789 = vst.msk [vmem:[#allocation0 + $0x8e] ss:$16 sm:$0x30] %vm66_vm0, %v1796_v26   ;;  %791 = vst.msk [vmem:[#allocation0 + $0x8e] ss:$16 sm:$0xc0] %vm66_vm0, %v1796_v26  }
  0xe9   :  { %772 = vst.msk [vmem:[#allocation0 + $0xe] ss:$16 sm:$0x3] %vm66_vm0, %v1795_v27   ;;  %774 = vst.msk [vmem:[#allocation0 + $0xe] ss:$16 sm:$0xc] %vm66_vm0, %v1795_v27  }
  0xea   :  { %776 = vst.msk [vmem:[#allocation0 + $0xe] ss:$16 sm:$0x30] %vm66_vm0, %v1795_v27   ;;  %778 = vst.msk [vmem:[#allocation0 + $0xe] ss:$16 sm:$0xc0] %vm66_vm0, %v1795_v27  }
  0xeb   :  { %862 = vst.msk [vmem:[#allocation0 + $0x18f] ss:$16 sm:$0x3] %vm66_vm0, %v1811_v30   ;;  %864 = vst.msk [vmem:[#allocation0 + $0x18f] ss:$16 sm:$0xc] %vm66_vm0, %v1811_v30  }
  0xec   :  { %866 = vst.msk [vmem:[#allocation0 + $0x18f] ss:$16 sm:$0x30] %vm66_vm0, %v1811_v30   ;;  %868 = vst.msk [vmem:[#allocation0 + $0x18f] ss:$16 sm:$0xc0] %vm66_vm0, %v1811_v30  }
  0xed   :  { %849 = vst.msk [vmem:[#allocation0 + $0x10f] ss:$16 sm:$0x3] %vm66_vm0, %v1810_v31   ;;  %851 = vst.msk [vmem:[#allocation0 + $0x10f] ss:$16 sm:$0xc] %vm66_vm0, %v1810_v31  }
  0xee   :  { %853 = vst.msk [vmem:[#allocation0 + $0x10f] ss:$16 sm:$0x30] %vm66_vm0, %v1810_v31   ;;  %855 = vst.msk [vmem:[#allocation0 + $0x10f] ss:$16 sm:$0xc0] %vm66_vm0, %v1810_v31  }
  0xef   :  { %836 = vst.msk [vmem:[#allocation0 + $0x8f] ss:$16 sm:$0x3] %vm66_vm0, %v1806_v32   ;;  %838 = vst.msk [vmem:[#allocation0 + $0x8f] ss:$16 sm:$0xc] %vm66_vm0, %v1806_v32  }
  0xf0   :  { %840 = vst.msk [vmem:[#allocation0 + $0x8f] ss:$16 sm:$0x30] %vm66_vm0, %v1806_v32   ;;  %842 = vst.msk [vmem:[#allocation0 + $0x8f] ss:$16 sm:$0xc0] %vm66_vm0, %v1806_v32  }
  0xf1   :  { %823 = vst.msk [vmem:[#allocation0 + $0xf] ss:$16 sm:$0x3] %vm66_vm0, %v1805_v33   ;;  %825 = vst.msk [vmem:[#allocation0 + $0xf] ss:$16 sm:$0xc] %vm66_vm0, %v1805_v33  }
  0xf2   :  { %827 = vst.msk [vmem:[#allocation0 + $0xf] ss:$16 sm:$0x30] %vm66_vm0, %v1805_v33   ;;  %829 = vst.msk [vmem:[#allocation0 + $0xf] ss:$16 sm:$0xc0] %vm66_vm0, %v1805_v33  }
  0xf3   :  { %v1094_v34 = vld [vmem:[#allocation0 + $0x100] sm:$0xff]  ;;  %v1108_v35 = vld [vmem:[#allocation0 + $0x110] sm:$0xff]  ;;  %v1213_v63 = vld [vmem:[#allocation0 + $0x188] sm:$0xff] }
  0xf4   :  { %v1122_v36 = vld [vmem:[#allocation0 + $0x120] sm:$0xff]  ;;  %v1136_v37 = vld [vmem:[#allocation0 + $0x130] sm:$0xff]  ;;  %v1101_v43 = vld [vmem:[#allocation0 + $0x108] sm:$0xff] }
  0xf5   :  { %v1150_v38 = vld [vmem:[#allocation0 + $0x140] sm:$0xff]  ;;  %v1164_v39 = vld [vmem:[#allocation0 + $0x150] sm:$0xff]  ;;  %v1115_v44 = vld [vmem:[#allocation0 + $0x118] sm:$0xff]  ;;  %v1538_v49 = vpack.c.bf16 %v1101_v43, %v1094_v34 }
  0xf6   :  { %v1178_v40 = vld [vmem:[#allocation0 + $0x160] sm:$0xff]  ;;  %v1192_v41 = vld [vmem:[#allocation0 + $0x170] sm:$0xff]  ;;  %v1129_v45 = vld [vmem:[#allocation0 + $0x128] sm:$0xff]  ;;  %v1543_v50 = vpack.c.bf16 %v1115_v44, %v1108_v35 }
  0xf7   :  { %v1206_v42 = vld [vmem:[#allocation0 + $0x180] sm:$0xff]  ;;  %v1220_v46 = vld [vmem:[#allocation0 + $0x190] sm:$0xff]  ;;  %v1548_v51 = vpack.c.bf16 %v1129_v45, %v1122_v36  ;;  %v1143_v52 = vld [vmem:[#allocation0 + $0x138] sm:$0xff]  ;;  %1631 = vst [vmem:[%s2196_s1 + $0x80] sm:$0xff] %v1538_v49  }
  0xf8   :  { %v1234_v47 = vld [vmem:[#allocation0 + $0x1a0] sm:$0xff]  ;;  %v1248_v48 = vld [vmem:[#allocation0 + $0x1b0] sm:$0xff]  ;;  %v1157_v53 = vld [vmem:[#allocation0 + $0x148] sm:$0xff]  ;;  %v1553_v58 = vpack.c.bf16 %v1143_v52, %v1136_v37  ;;  %1632 = vst [vmem:[%s2196_s1 + $0x88] sm:$0xff] %v1543_v50   ;;  %v1578_v5 = vpack.c.bf16 %v1213_v63, %v1206_v42 }
  0xf9   :  { %v1171_v54 = vld [vmem:[#allocation0 + $0x158] sm:$0xff]  ;;  %v1262_v55 = vld [vmem:[#allocation0 + $0x1c0] sm:$0xff]  ;;  %v1276_v56 = vld [vmem:[#allocation0 + $0x1d0] sm:$0xff]  ;;  %v1558_v59 = vpack.c.bf16 %v1157_v53, %v1150_v38  ;;  %1633 = vst [vmem:[%s2196_s1 + $0x90] sm:$0xff] %v1548_v51  }
  0xfa   :  { %v1290_v57 = vld [vmem:[#allocation0 + $0x1e0] sm:$0xff]  ;;  %v1563_v60 = vpack.c.bf16 %v1171_v54, %v1164_v39  ;;  %v1185_v61 = vld [vmem:[#allocation0 + $0x168] sm:$0xff]  ;;  %v1199_v62 = vld [vmem:[#allocation0 + $0x178] sm:$0xff]  ;;  %1634 = vst [vmem:[%s2196_s1 + $0x98] sm:$0xff] %v1553_v58  }
  0xfb   :  { %v1304_v0 = vld [vmem:[#allocation0 + $0x1f0] sm:$0xff]  ;;  %v873_v1 = vld [vmem:[#allocation0] sm:$0xff]  ;;  %v1568_v3 = vpack.c.bf16 %v1185_v61, %v1178_v40  ;;  %v1573_v4 = vpack.c.bf16 %v1199_v62, %v1192_v41  ;;  %v1227_v6 = vld [vmem:[#allocation0 + $0x198] sm:$0xff]  ;;  %1635 = vst [vmem:[%s2196_s1 + $0xa0] sm:$0xff] %v1558_v59  }
  0xfc   :  { %v884_v2 = vld [vmem:[#allocation0 + $0x10] sm:$0xff]  ;;  %v1241_v7 = vld [vmem:[#allocation0 + $0x1a8] sm:$0xff]  ;;  %v1255_v8 = vld [vmem:[#allocation0 + $0x1b8] sm:$0xff]  ;;  %1636 = vst [vmem:[%s2196_s1 + $0xa8] sm:$0xff] %v1563_v60   ;;  %v1583_v12 = vpack.c.bf16 %v1227_v6, %v1220_v46 }
  0xfd   :  { %v898_v9 = vld [vmem:[#allocation0 + $0x20] sm:$0xff]  ;;  %v912_v10 = vld [vmem:[#allocation0 + $0x30] sm:$0xff]  ;;  %v1588_v13 = vpack.c.bf16 %v1241_v7, %v1234_v47  ;;  %v1593_v14 = vpack.c.bf16 %v1255_v8, %v1248_v48  ;;  %v1269_v15 = vld [vmem:[#allocation0 + $0x1c8] sm:$0xff]  ;;  %1637 = vst [vmem:[%s2196_s1 + $0xb0] sm:$0xff] %v1568_v3  }
  0xfe   :  { %v926_v11 = vld [vmem:[#allocation0 + $0x40] sm:$0xff]  ;;  %v1283_v16 = vld [vmem:[#allocation0 + $0x1d8] sm:$0xff]  ;;  %v1297_v17 = vld [vmem:[#allocation0 + $0x1e8] sm:$0xff]  ;;  %1638 = vst [vmem:[%s2196_s1 + $0xb8] sm:$0xff] %v1573_v4   ;;  %v1598_v21 = vpack.c.bf16 %v1269_v15, %v1262_v55 }
  0xff   :  { %v940_v18 = vld [vmem:[#allocation0 + $0x50] sm:$0xff]  ;;  %v954_v19 = vld [vmem:[#allocation0 + $0x60] sm:$0xff]  ;;  %1639 = vst [vmem:[%s2196_s1 + $0xc0] sm:$0xff] %v1578_v5   ;;  %v1603_v22 = vpack.c.bf16 %v1283_v16, %v1276_v56  ;;  %v1608_v23 = vpack.c.bf16 %v1297_v17, %v1290_v57  ;;  %v1311_v24 = vld [vmem:[#allocation0 + $0x1f8] sm:$0xff] }
 0x100   :  { %v968_v20 = vld [vmem:[#allocation0 + $0x70] sm:$0xff]  ;;  %v878_v25 = vld [vmem:[#allocation0 + $0x8] sm:$0xff]  ;;  %v891_v26 = vld [vmem:[#allocation0 + $0x18] sm:$0xff]  ;;  %1640 = vst [vmem:[%s2196_s1 + $0xc8] sm:$0xff] %v1583_v12   ;;  %v1613_v30 = vpack.c.bf16 %v1311_v24, %v1304_v0 }
 0x101   :  { %v982_v27 = vld [vmem:[#allocation0 + $0x80] sm:$0xff]  ;;  %v996_v28 = vld [vmem:[#allocation0 + $0x90] sm:$0xff]  ;;  %1641 = vst [vmem:[%s2196_s1 + $0xd0] sm:$0xff] %v1588_v13   ;;  %1642 = vst [vmem:[%s2196_s1 + $0xd8] sm:$0xff] %v1593_v14   ;;  %v1458_v31 = vpack.c.bf16 %v878_v25, %v873_v1  ;;  %v1463_v32 = vpack.c.bf16 %v891_v26, %v884_v2 }
 0x102   :  { %v1010_v29 = vld [vmem:[#allocation0 + $0xa0] sm:$0xff]  ;;  %v905_v33 = vld [vmem:[#allocation0 + $0x28] sm:$0xff]  ;;  %v919_v34 = vld [vmem:[#allocation0 + $0x38] sm:$0xff]  ;;  %1643 = vst [vmem:[%s2196_s1 + $0xe0] sm:$0xff] %v1598_v21  }
 0x103   :  { %v933_v35 = vld [vmem:[#allocation0 + $0x48] sm:$0xff]  ;;  %v1024_v36 = vld [vmem:[#allocation0 + $0xb0] sm:$0xff]  ;;  %v1038_v37 = vld [vmem:[#allocation0 + $0xc0] sm:$0xff]  ;;  %1644 = vst [vmem:[%s2196_s1 + $0xe8] sm:$0xff] %v1603_v22   ;;  %v1468_v39 = vpack.c.bf16 %v905_v33, %v898_v9  ;;  %v1473_v40 = vpack.c.bf16 %v919_v34, %v912_v10 }
 0x104   :  { %v1052_v38 = vld [vmem:[#allocation0 + $0xd0] sm:$0xff]  ;;  %1645 = vst [vmem:[%s2196_s1 + $0xf0] sm:$0xff] %v1608_v23   ;;  %v1478_v41 = vpack.c.bf16 %v933_v35, %v926_v11  ;;  %v947_v42 = vld [vmem:[#allocation0 + $0x58] sm:$0xff]  ;;  %v961_v43 = vld [vmem:[#allocation0 + $0x68] sm:$0xff] }
 0x105   :  { %v975_v44 = vld [vmem:[#allocation0 + $0x78] sm:$0xff]  ;;  %v1066_v45 = vld [vmem:[#allocation0 + $0xe0] sm:$0xff]  ;;  %1646 = vst [vmem:[%s2196_s1 + $0xf8] sm:$0xff] %v1613_v30   ;;  %1459 = vst [vmem:[%s2196_s1] sm:$0xff] %v1458_v31   ;;  %v1483_v46 = vpack.c.bf16 %v947_v42, %v940_v18  ;;  %v1488_v47 = vpack.c.bf16 %v961_v43, %v954_v19 }
 0x106   :  { %1616 = vst [vmem:[%s2196_s1 + $0x8] sm:$0xff] %v1463_v32   ;;  %v1493_v48 = vpack.c.bf16 %v975_v44, %v968_v20  ;;  %v989_v49 = vld [vmem:[#allocation0 + $0x88] sm:$0xff]  ;;  %v1003_v50 = vld [vmem:[#allocation0 + $0x98] sm:$0xff]  ;;  %1617 = vst [vmem:[%s2196_s1 + $0x10] sm:$0xff] %v1468_v39  }
 0x107   :  { %v1017_v51 = vld [vmem:[#allocation0 + $0xa8] sm:$0xff]  ;;  %1618 = vst [vmem:[%s2196_s1 + $0x18] sm:$0xff] %v1473_v40   ;;  %1619 = vst [vmem:[%s2196_s1 + $0x20] sm:$0xff] %v1478_v41   ;;  %v1498_v52 = vpack.c.bf16 %v989_v49, %v982_v27  ;;  %v1503_v53 = vpack.c.bf16 %v1003_v50, %v996_v28  ;;  %v1031_v55 = vld [vmem:[#allocation0 + $0xb8] sm:$0xff] }
 0x108   :  { %v1508_v54 = vpack.c.bf16 %v1017_v51, %v1010_v29  ;;  %v1045_v56 = vld [vmem:[#allocation0 + $0xc8] sm:$0xff]  ;;  %v1059_v57 = vld [vmem:[#allocation0 + $0xd8] sm:$0xff]  ;;  %v1080_v58 = vld [vmem:[#allocation0 + $0xf0] sm:$0xff]  ;;  %1620 = vst [vmem:[%s2196_s1 + $0x28] sm:$0xff] %v1483_v46   ;;  %v1513_v59 = vpack.c.bf16 %v1031_v55, %v1024_v36 }
 0x109   :  { %1621 = vst [vmem:[%s2196_s1 + $0x30] sm:$0xff] %v1488_v47   ;;  %1622 = vst [vmem:[%s2196_s1 + $0x38] sm:$0xff] %v1493_v48   ;;  %v1518_v60 = vpack.c.bf16 %v1045_v56, %v1038_v37  ;;  %v1523_v61 = vpack.c.bf16 %v1059_v57, %v1052_v38  ;;  %v1073_v62 = vld [vmem:[#allocation0 + $0xe8] sm:$0xff]  ;;  %v1087_v63 = vld [vmem:[#allocation0 + $0xf8] sm:$0xff] }
 0x10a   :  { %1623 = vst [vmem:[%s2196_s1 + $0x40] sm:$0xff] %v1498_v52   ;;  %1624 = vst [vmem:[%s2196_s1 + $0x48] sm:$0xff] %v1503_v53   ;;  %v1528_v0 = vpack.c.bf16 %v1073_v62, %v1066_v45  ;;  %v1533_v1 = vpack.c.bf16 %v1087_v63, %v1080_v58 }
 0x10b   :  { %1625 = vst [vmem:[%s2196_s1 + $0x50] sm:$0xff] %v1508_v54   ;;  %1626 = vst [vmem:[%s2196_s1 + $0x58] sm:$0xff] %v1513_v59  }
 0x10c   :  { %1627 = vst [vmem:[%s2196_s1 + $0x60] sm:$0xff] %v1518_v60   ;;  %1628 = vst [vmem:[%s2196_s1 + $0x68] sm:$0xff] %v1523_v61  }
 0x10d   :  { %1629 = vst [vmem:[%s2196_s1 + $0x70] sm:$0xff] %v1528_v0   ;;  %1630 = vst [vmem:[%s2196_s1 + $0x78] sm:$0xff] %v1533_v1  }

// kernel: image_encoder_forward.21
= control target key start
LH: loop header
LB: loop body
LE: loop exit
PB: predicated region body
PF: predicated region fallthrough
CT: control target
= control target key end

     0   :  { %s988_s12 = smov 0   ;;  %s990_s13 = smov 0   ;;  %s1170_s0 = inlined_call_operand.vmem [shape: bf16[512,16], index: 0, kind: input, shape index: {}]   ;;  %s1171_s1 = inlined_call_operand.vmem [shape: bf16[16,128], index: 1, kind: input, shape index: {}]   ;;  %s1172_s2 = inlined_call_operand.vmem [shape: f32[2,128], index: 2, kind: input, shape index: {}]   ;;  %s1173_s3 = inlined_call_operand.vmem [shape: f32[512,128], index: 3, kind: output, shape index: {}]  }
   0x1   :  { %s992_s14 = smov 0  }
   0x2 LB: > { %s25_s15 = sadd.s32 1, %s962_s13  ;;  %p808_p0 = scmp.ge.s32.totalorder %s966_s14, 1  ;;  %s966_s14 = sphi %s992_s14, %s13_s14   ;;  %s962_s13 = sphi %s990_s13, %s1175_s13   ;;  %s958_s12 = sphi %s988_s12, %s1174_s12  }
   0x3   : > { %p27_p1 = scmp.ge.s32.totalorder %s25_s15, 2  ;;  %p170_p2 = scmp.lt.s32.totalorder %s966_s14, 3 }
   0x5   : > { %s1177_s15 = smov (%p27_p1, %s25_s15), 0  ;;  %p171_p3 = pnand %p808_p0, %p170_p2 }
   0x6   : > { %v927_v0 = vld [vmem:[%s1171_s1] sm:$0xff] (!%p171_p3)   ;;  %s809_s18 = sshll.u32 (!%p171_p3), %s958_s12, 5  ;;  %vm349_vm0 = vcmask (!%p171_p3), 130048  }
   0x7   : > { %174 = sbr.rel (%p171_p3) target bundleno = 266 (0x10a), region = 32  ;;  %p206_p4 = scmp.lt.s32.totalorder (!%p171_p3), %s809_s18, 63  ;;  %867 = vmatprep.subr.bf16.mxu0 (!%p171_p3), %v927_v0  ;;  %901 = vmatprep.subr.bf16.mxu1 (!%p171_p3), %v927_v0  ;;  %v1052_v17 = vld [vmem:[%s1172_s2] ss:$0 sm:$0xff] (!%p171_p3)  ;;  %v1057_v19 = vld [vmem:[%s1172_s2 + $0x1] ss:$0 sm:$0xff] (!%p171_p3) }
   0x8   : > { %868 = vmatpush3.bf16.msra.mxu0 (!%p171_p3), %v927_v0  ;;  %902 = vmatpush3.bf16.msra.mxu1 (!%p171_p3), %v927_v0 }
   0xe   : > { %s1179_s18 = smov (!%p206_p4, %s809_s18), 63 }
   0xf   : > { %s810_s19 = sshll.u32 %s1179_s18, 2  ;;  %s812_s27 = sshll.u32 %s1179_s18, 3 }
  0x10   : > { %s1015_s22 = scalar_lea.vmem %s1170_s0, %s810_s19  ;;  %s1069_s30 = scalar_lea.vmem %s1173_s3, %s812_s27 }
  0x11   : > { %v928_v1 = vld [vmem:[%s1015_s22] sm:$0xff]   ;;  %v930_v3 = vld [vmem:[%s1015_s22 + $0x8] sm:$0xff]   ;;  %v932_v5 = vld [vmem:[%s1015_s22 + $0x10] sm:$0xff]  }
  0x12   : > { %v929_v2 = vld [vmem:[%s1015_s22 + $0x40] sm:$0xff]   ;;  %869 = vmatprep.mubr.msk.bf16.mxu0 %vm349_vm0, %v928_v1  ;;  %v931_v4 = vld [vmem:[%s1015_s22 + $0x48] sm:$0xff]   ;;  %v933_v6 = vld [vmem:[%s1015_s22 + $0x50] sm:$0xff]  }
  0x13   : > { %885 = vmatprep.mubr.msk.bf16.mxu1 %vm349_vm0, %v929_v2  ;;  %870 = vmatmul.mubr.msk.bf16.vlgmr.msra.gmra.mrb[0].mxu0 %vm349_vm0, %v930_v3  ;;  %v934_v7 = vld [vmem:[%s1015_s22 + $0x18] sm:$0xff]   ;;  %v936_v9 = vld [vmem:[%s1015_s22 + $0x20] sm:$0xff]   ;;  %v938_v11 = vld [vmem:[%s1015_s22 + $0x28] sm:$0xff]  }
  0x14   : > { %886 = vmatmul.mubr.msk.bf16.vlgmr.msra.gmra.mrb[0].mxu1 %vm349_vm0, %v931_v4  ;;  %873 = vmatprep.mubr.msk.bf16.mxu0 %vm349_vm0, %v932_v5  ;;  %v935_v8 = vld [vmem:[%s1015_s22 + $0x58] sm:$0xff]   ;;  %v937_v10 = vld [vmem:[%s1015_s22 + $0x60] sm:$0xff]   ;;  %v939_v12 = vld [vmem:[%s1015_s22 + $0x68] sm:$0xff]  }
  0x15   : > { %889 = vmatprep.mubr.msk.bf16.mxu1 %vm349_vm0, %v933_v6  ;;  %v940_v13 = vld [vmem:[%s1015_s22 + $0x30] sm:$0xff]   ;;  %v942_v15 = vld [vmem:[%s1015_s22 + $0x38] sm:$0xff]  }
  0x16   : > { %v941_v14 = vld [vmem:[%s1015_s22 + $0x70] sm:$0xff]   ;;  %v943_v16 = vld [vmem:[%s1015_s22 + $0x78] sm:$0xff]  }
  0x1b   : > { %874 = vmatmul.mubr.msk.bf16.gmra.mrb[4].mxu0 %vm349_vm0, %v934_v7 }
  0x1c   : > { %890 = vmatmul.mubr.msk.bf16.gmra.mrb[4].mxu1 %vm349_vm0, %v935_v8  ;;  %877 = vmatprep.mubr.msk.bf16.mxu0 %vm349_vm0, %v936_v9 }
  0x1d   : > { %893 = vmatprep.mubr.msk.bf16.mxu1 %vm349_vm0, %v937_v10 }
  0x23   : > { %878 = vmatmul.mubr.msk.bf16.gmra.mrb[8].mxu0 %vm349_vm0, %v938_v11 }
  0x24   : > { %894 = vmatmul.mubr.msk.bf16.gmra.mrb[8].mxu1 %vm349_vm0, %v939_v12  ;;  %881 = vmatprep.mubr.msk.bf16.mxu0 %vm349_vm0, %v940_v13 }
  0x25   : > { %897 = vmatprep.mubr.msk.bf16.mxu1 %vm349_vm0, %v941_v14 }
  0x2b   : > { %882 = vmatmul.mubr.msk.bf16.gmra.mrb[12].mxu0 %vm349_vm0, %v942_v15 }
  0x2c   : > { %898 = vmatmul.mubr.msk.bf16.gmra.mrb[12].mxu1 %vm349_vm0, %v943_v16 }
  0xe6   : > { %v871_v18 = vpop.f32.mrb[0].mxu0 }
  0xe7   : > { %v566_v20 = vmul.f32 %v871_v18, %v1052_v17  ;;  %v887_v21 = vpop.f32.mrb[0].mxu1  ;;  %v432_v22 = vpop.f32.mrb[1].mxu0 }
  0xe8   : > { %v582_v23 = vmul.f32 %v887_v21, %v1052_v17  ;;  %v564_v24 = vmul.f32 %v1052_v17, %v432_v22  ;;  %v496_v25 = vpop.f32.mrb[1].mxu1  ;;  %v872_v26 = vpop.f32.mrb[2].mxu0 }
  0xe9   : > { %v603_v27 = vadd.f32 %v1057_v19, %v566_v20  ;;  %v580_v28 = vmul.f32 %v1052_v17, %v496_v25  ;;  %v567_v29 = vmul.f32 %v872_v26, %v1052_v17  ;;  %v888_v30 = vpop.f32.mrb[2].mxu1  ;;  %v435_v31 = vpop.f32.mrb[3].mxu0 }
  0xea   : > { %v619_v32 = vadd.f32 %v1057_v19, %v582_v23  ;;  %v601_v33 = vadd.f32 %v1057_v19, %v564_v24  ;;  %v583_v34 = vmul.f32 %v888_v30, %v1052_v17  ;;  %v565_v35 = vmul.f32 %v1052_v17, %v435_v31  ;;  %v499_v36 = vpop.f32.mrb[3].mxu1 }
  0xeb   : > { %v635_v37 = vmax.f32 %v603_v27, 0.0  ;;  %v617_v38 = vadd.f32 %v1057_v19, %v580_v28  ;;  %v604_v39 = vadd.f32 %v1057_v19, %v567_v29  ;;  %v581_v40 = vmul.f32 %v1052_v17, %v499_v36 }
  0xec   : > { %v651_v41 = vmax.f32 %v619_v32, 0.0  ;;  %v633_v42 = vmax.f32 %v601_v33, 0.0  ;;  %v620_v43 = vadd.f32 %v1057_v19, %v583_v34  ;;  %v602_v44 = vadd.f32 %v1057_v19, %v565_v35 }
  0xed   : > { %667 = vst [vmem:[%s1069_s30 + $0x10] sm:$0xff] %v635_v37  ;;  %v649_v45 = vmax.f32 %v617_v38, 0.0  ;;  %v636_v46 = vmax.f32 %v604_v39, 0.0  ;;  %v618_v47 = vadd.f32 %v1057_v19, %v581_v40 }
  0xee   : > { %683 = vst [vmem:[%s1069_s30 + $0x90] sm:$0xff] %v651_v41  ;;  %665 = vst [vmem:[%s1069_s30] sm:$0xff] %v633_v42  ;;  %v652_v48 = vmax.f32 %v620_v43, 0.0  ;;  %v634_v49 = vmax.f32 %v602_v44, 0.0  ;;  %v875_v50 = vpop.f32.mrb[4].mxu0 }
  0xef   : > { %681 = vst [vmem:[%s1069_s30 + $0x80] sm:$0xff] %v649_v45  ;;  %668 = vst [vmem:[%s1069_s30 + $0x18] sm:$0xff] %v636_v46  ;;  %v650_v51 = vmax.f32 %v618_v47, 0.0  ;;  %v570_v52 = vmul.f32 %v875_v50, %v1052_v17  ;;  %v891_v53 = vpop.f32.mrb[4].mxu1  ;;  %v448_v54 = vpop.f32.mrb[5].mxu0 }
  0xf0   : > { %684 = vst [vmem:[%s1069_s30 + $0x98] sm:$0xff] %v652_v48  ;;  %666 = vst [vmem:[%s1069_s30 + $0x8] sm:$0xff] %v634_v49  ;;  %v586_v55 = vmul.f32 %v891_v53, %v1052_v17  ;;  %v568_v56 = vmul.f32 %v1052_v17, %v448_v54  ;;  %v512_v57 = vpop.f32.mrb[5].mxu1  ;;  %v876_v58 = vpop.f32.mrb[6].mxu0 }
  0xf1   : > { %682 = vst [vmem:[%s1069_s30 + $0x88] sm:$0xff] %v650_v51  ;;  %v607_v59 = vadd.f32 %v1057_v19, %v570_v52  ;;  %v584_v60 = vmul.f32 %v1052_v17, %v512_v57  ;;  %v571_v61 = vmul.f32 %v876_v58, %v1052_v17  ;;  %v892_v62 = vpop.f32.mrb[6].mxu1  ;;  %v451_v63 = vpop.f32.mrb[7].mxu0 }
  0xf2   : > { %v623_v0 = vadd.f32 %v1057_v19, %v586_v55  ;;  %v605_v1 = vadd.f32 %v1057_v19, %v568_v56  ;;  %v587_v2 = vmul.f32 %v892_v62, %v1052_v17  ;;  %v569_v3 = vmul.f32 %v1052_v17, %v451_v63  ;;  %v515_v4 = vpop.f32.mrb[7].mxu1 }
  0xf3   : > { %v639_v5 = vmax.f32 %v607_v59, 0.0  ;;  %v621_v6 = vadd.f32 %v1057_v19, %v584_v60  ;;  %v608_v7 = vadd.f32 %v1057_v19, %v571_v61  ;;  %v585_v8 = vmul.f32 %v1052_v17, %v515_v4 }
  0xf4   : > { %v655_v9 = vmax.f32 %v623_v0, 0.0  ;;  %v637_v10 = vmax.f32 %v605_v1, 0.0  ;;  %v624_v11 = vadd.f32 %v1057_v19, %v587_v2  ;;  %v606_v12 = vadd.f32 %v1057_v19, %v569_v3 }
  0xf5   : > { %671 = vst [vmem:[%s1069_s30 + $0x30] sm:$0xff] %v639_v5  ;;  %v653_v13 = vmax.f32 %v621_v6, 0.0  ;;  %v640_v14 = vmax.f32 %v608_v7, 0.0  ;;  %v622_v15 = vadd.f32 %v1057_v19, %v585_v8 }
  0xf6   : > { %687 = vst [vmem:[%s1069_s30 + $0xb0] sm:$0xff] %v655_v9  ;;  %669 = vst [vmem:[%s1069_s30 + $0x20] sm:$0xff] %v637_v10  ;;  %v656_v16 = vmax.f32 %v624_v11, 0.0  ;;  %v638_v18 = vmax.f32 %v606_v12, 0.0  ;;  %v879_v20 = vpop.f32.mrb[8].mxu0 }
  0xf7   : > { %685 = vst [vmem:[%s1069_s30 + $0xa0] sm:$0xff] %v653_v13  ;;  %672 = vst [vmem:[%s1069_s30 + $0x38] sm:$0xff] %v640_v14  ;;  %v654_v21 = vmax.f32 %v622_v15, 0.0  ;;  %v574_v22 = vmul.f32 %v879_v20, %v1052_v17  ;;  %v895_v23 = vpop.f32.mrb[8].mxu1  ;;  %v464_v24 = vpop.f32.mrb[9].mxu0 }
  0xf8   : > { %688 = vst [vmem:[%s1069_s30 + $0xb8] sm:$0xff] %v656_v16  ;;  %670 = vst [vmem:[%s1069_s30 + $0x28] sm:$0xff] %v638_v18  ;;  %v590_v25 = vmul.f32 %v895_v23, %v1052_v17  ;;  %v572_v26 = vmul.f32 %v1052_v17, %v464_v24  ;;  %v528_v27 = vpop.f32.mrb[9].mxu1  ;;  %v880_v28 = vpop.f32.mrb[10].mxu0 }
  0xf9   : > { %686 = vst [vmem:[%s1069_s30 + $0xa8] sm:$0xff] %v654_v21  ;;  %v611_v29 = vadd.f32 %v1057_v19, %v574_v22  ;;  %v588_v30 = vmul.f32 %v1052_v17, %v528_v27  ;;  %v575_v31 = vmul.f32 %v880_v28, %v1052_v17  ;;  %v896_v32 = vpop.f32.mrb[10].mxu1  ;;  %v467_v33 = vpop.f32.mrb[11].mxu0 }
  0xfa   : > { %v627_v34 = vadd.f32 %v1057_v19, %v590_v25  ;;  %v609_v35 = vadd.f32 %v1057_v19, %v572_v26  ;;  %v591_v36 = vmul.f32 %v896_v32, %v1052_v17  ;;  %v573_v37 = vmul.f32 %v1052_v17, %v467_v33  ;;  %v531_v38 = vpop.f32.mrb[11].mxu1 }
  0xfb   : > { %v643_v39 = vmax.f32 %v611_v29, 0.0  ;;  %v625_v40 = vadd.f32 %v1057_v19, %v588_v30  ;;  %v612_v41 = vadd.f32 %v1057_v19, %v575_v31  ;;  %v589_v42 = vmul.f32 %v1052_v17, %v531_v38 }
  0xfc   : > { %v659_v43 = vmax.f32 %v627_v34, 0.0  ;;  %v641_v44 = vmax.f32 %v609_v35, 0.0  ;;  %v628_v45 = vadd.f32 %v1057_v19, %v591_v36  ;;  %v610_v46 = vadd.f32 %v1057_v19, %v573_v37 }
  0xfd   : > { %675 = vst [vmem:[%s1069_s30 + $0x50] sm:$0xff] %v643_v39  ;;  %v657_v47 = vmax.f32 %v625_v40, 0.0  ;;  %v644_v48 = vmax.f32 %v612_v41, 0.0  ;;  %v626_v49 = vadd.f32 %v1057_v19, %v589_v42 }
  0xfe   : > { %691 = vst [vmem:[%s1069_s30 + $0xd0] sm:$0xff] %v659_v43  ;;  %673 = vst [vmem:[%s1069_s30 + $0x40] sm:$0xff] %v641_v44  ;;  %v660_v50 = vmax.f32 %v628_v45, 0.0  ;;  %v642_v51 = vmax.f32 %v610_v46, 0.0  ;;  %v883_v52 = vpop.f32.mrb[12].mxu0 }
  0xff   : > { %689 = vst [vmem:[%s1069_s30 + $0xc0] sm:$0xff] %v657_v47  ;;  %676 = vst [vmem:[%s1069_s30 + $0x58] sm:$0xff] %v644_v48  ;;  %v658_v53 = vmax.f32 %v626_v49, 0.0  ;;  %v578_v54 = vmul.f32 %v883_v52, %v1052_v17  ;;  %v899_v55 = vpop.f32.mrb[12].mxu1  ;;  %v480_v56 = vpop.f32.mrb[13].mxu0 }
 0x100   : > { %692 = vst [vmem:[%s1069_s30 + $0xd8] sm:$0xff] %v660_v50  ;;  %674 = vst [vmem:[%s1069_s30 + $0x48] sm:$0xff] %v642_v51  ;;  %v594_v57 = vmul.f32 %v899_v55, %v1052_v17  ;;  %v576_v58 = vmul.f32 %v1052_v17, %v480_v56  ;;  %v544_v59 = vpop.f32.mrb[13].mxu1  ;;  %v884_v60 = vpop.f32.mrb[14].mxu0 }
 0x101   : > { %690 = vst [vmem:[%s1069_s30 + $0xc8] sm:$0xff] %v658_v53  ;;  %v615_v61 = vadd.f32 %v1057_v19, %v578_v54  ;;  %v592_v62 = vmul.f32 %v1052_v17, %v544_v59  ;;  %v579_v63 = vmul.f32 %v884_v60, %v1052_v17  ;;  %v900_v0 = vpop.f32.mrb[14].mxu1  ;;  %v483_v1 = vpop.f32.mrb[15].mxu0 }
 0x102   : > { %v631_v2 = vadd.f32 %v1057_v19, %v594_v57  ;;  %v613_v3 = vadd.f32 %v1057_v19, %v576_v58  ;;  %v595_v4 = vmul.f32 %v900_v0, %v1052_v17  ;;  %v577_v5 = vmul.f32 %v1052_v17, %v483_v1  ;;  %v547_v6 = vpop.f32.mrb[15].mxu1 }
 0x103   : > { %v647_v7 = vmax.f32 %v615_v61, 0.0  ;;  %v629_v8 = vadd.f32 %v1057_v19, %v592_v62  ;;  %v616_v9 = vadd.f32 %v1057_v19, %v579_v63  ;;  %v593_v10 = vmul.f32 %v1052_v17, %v547_v6 }
 0x104   : > { %v663_v11 = vmax.f32 %v631_v2, 0.0  ;;  %v645_v12 = vmax.f32 %v613_v3, 0.0  ;;  %v632_v13 = vadd.f32 %v1057_v19, %v595_v4  ;;  %v614_v14 = vadd.f32 %v1057_v19, %v577_v5 }
 0x105   : > { %679 = vst [vmem:[%s1069_s30 + $0x70] sm:$0xff] %v647_v7  ;;  %v661_v15 = vmax.f32 %v629_v8, 0.0  ;;  %v648_v16 = vmax.f32 %v616_v9, 0.0  ;;  %v630_v18 = vadd.f32 %v1057_v19, %v593_v10 }
 0x106   : > { %695 = vst [vmem:[%s1069_s30 + $0xf0] sm:$0xff] %v663_v11  ;;  %677 = vst [vmem:[%s1069_s30 + $0x60] sm:$0xff] %v645_v12  ;;  %v664_v20 = vmax.f32 %v632_v13, 0.0  ;;  %v646_v21 = vmax.f32 %v614_v14, 0.0 }
 0x107   : > { %693 = vst [vmem:[%s1069_s30 + $0xe0] sm:$0xff] %v661_v15  ;;  %680 = vst [vmem:[%s1069_s30 + $0x78] sm:$0xff] %v648_v16  ;;  %v662_v17 = vmax.f32 %v630_v18, 0.0 }
 0x108   : > { %696 = vst [vmem:[%s1069_s30 + $0xf8] sm:$0xff] %v664_v20  ;;  %678 = vst [vmem:[%s1069_s30 + $0x68] sm:$0xff] %v646_v21 }
 0x109   : > { %694 = vst [vmem:[%s1069_s30 + $0xe8] sm:$0xff] %v662_v17 }
 0x10a PF: > { %s13_s14 = sadd.s32 1, %s966_s14   ;;  %s1174_s12 = smov %s962_s13 }
 0x10b   : > { %p10_p5 = scmp.ge.s32.totalorder %s13_s14, 4   ;;  %s1175_s13 = smov %s1177_s15 }
 0x10d   :  { %12 = sbr.rel (!%p10_p5) target bundleno = 2 (0x2), region = 68 }

// kernel: image_encoder_forward.22
= control target key start
LH: loop header
LB: loop body
LE: loop exit
PB: predicated region body
PF: predicated region fallthrough
CT: control target
= control target key end

     0   :  { %s1048_s12 = smov 0   ;;  %s1050_s13 = smov 0   ;;  %s1242_s0 = inlined_call_operand.vmem [shape: bf16[512,80], index: 0, kind: input, shape index: {}]   ;;  %s1243_s1 = inlined_call_operand.vmem [shape: bf16[80,128], index: 1, kind: input, shape index: {}]   ;;  %s1244_s2 = inlined_call_operand.vmem [shape: f32[2,128], index: 2, kind: input, shape index: {}]   ;;  %s1245_s3 = inlined_call_operand.vmem [shape: f32[512,128], index: 3, kind: output, shape index: {}]  }
   0x1   :  { %s1052_s14 = smov 0  }
   0x2 LB: > { %s25_s15 = sadd.s32 1, %s1022_s13  ;;  %p840_p0 = scmp.ge.s32.totalorder %s1026_s14, 1  ;;  %s1026_s14 = sphi %s1052_s14, %s13_s14   ;;  %s1022_s13 = sphi %s1050_s13, %s1247_s13   ;;  %s1018_s12 = sphi %s1048_s12, %s1246_s12  }
   0x3   : > { %p27_p1 = scmp.ge.s32.totalorder %s25_s15, 2  ;;  %p170_p2 = scmp.lt.s32.totalorder %s1026_s14, 3 }
   0x5   : > { %s1249_s15 = smov (%p27_p1, %s25_s15), 0  ;;  %p171_p3 = pnand %p840_p0, %p170_p2 }
   0x6   : > { %v983_v0 = vld [vmem:[%s1243_s1] sm:$0xff] (!%p171_p3)   ;;  %s841_s18 = sshll.u32 (!%p171_p3), %s1018_s12, 5  ;;  %v984_v1 = vld [vmem:[%s1243_s1 + $0x8] sm:$0xff] (!%p171_p3)   ;;  %v985_v2 = vld [vmem:[%s1243_s1 + $0x10] sm:$0xff] (!%p171_p3)   ;;  %vm381_vm0 = vcmask (!%p171_p3), 654336  }
   0x7   : > { %174 = sbr.rel (%p171_p3) target bundleno = 273 (0x111), region = 32  ;;  %p206_p4 = scmp.lt.s32.totalorder (!%p171_p3), %s841_s18, 63  ;;  %907 = vmatprep.subr.bf16.mxu0 (!%p171_p3), %v983_v0  ;;  %949 = vmatprep.subr.bf16.mxu1 (!%p171_p3), %v983_v0  ;;  %v986_v3 = vld [vmem:[%s1243_s1 + $0x18] sm:$0xff] (!%p171_p3)   ;;  %v987_v6 = vld [vmem:[%s1243_s1 + $0x20] sm:$0xff] (!%p171_p3)  }
   0x8   : > { %908 = vmatpush3.bf16.msra.mxu0 (!%p171_p3), %v983_v0  ;;  %954 = vmatpush3.bf16.msra.mxu1 (!%p171_p3), %v983_v0  ;;  %v1124_v21 = vld [vmem:[%s1244_s2] ss:$0 sm:$0xff] (!%p171_p3)  ;;  %v1129_v23 = vld [vmem:[%s1244_s2 + $0x1] ss:$0 sm:$0xff] (!%p171_p3) }
   0x9   : > { %909 = vmatprep.subr.bf16.mxu0 (!%p171_p3), %v984_v1  ;;  %950 = vmatprep.subr.bf16.mxu1 (!%p171_p3), %v984_v1 }
   0xc   : > { %910 = vmatpush3.bf16.msra.mxu0 (!%p171_p3), %v984_v1  ;;  %955 = vmatpush3.bf16.msra.mxu1 (!%p171_p3), %v984_v1 }
   0xd   : > { %911 = vmatprep.subr.bf16.mxu0 (!%p171_p3), %v985_v2  ;;  %951 = vmatprep.subr.bf16.mxu1 (!%p171_p3), %v985_v2 }
   0xe   : > { %s1251_s18 = smov (!%p206_p4, %s841_s18), 63 }
   0xf   : > { %s842_s23 = sshll.u32 %s1251_s18, 2  ;;  %s844_s8 = sshll.u32 %s1251_s18, 3 }
  0x10   : > { %s1084_s28 = scalar_lea.vmem %s1242_s0, %s842_s23  ;;  %912 = vmatpush3.bf16.msra.mxu0 %v985_v2  ;;  %956 = vmatpush3.bf16.msra.mxu1 %v985_v2  ;;  %s1143_s11 = scalar_lea.vmem %s1245_s3, %s844_s8 }
  0x11   : > { %v988_v4 = vld [vmem:[%s1084_s28] sm:$0xff]   ;;  %913 = vmatprep.subr.bf16.mxu0 %v986_v3  ;;  %952 = vmatprep.subr.bf16.mxu1 %v986_v3  ;;  %v990_v7 = vld [vmem:[%s1084_s28 + $0x8] sm:$0xff]   ;;  %v992_v9 = vld [vmem:[%s1084_s28 + $0x10] sm:$0xff]  }
  0x12   : > { %v989_v5 = vld [vmem:[%s1084_s28 + $0x40] sm:$0xff]   ;;  %917 = vmatprep.mubr.msk.bf16.mxu0 %vm381_vm0, %v988_v4  ;;  %v991_v8 = vld [vmem:[%s1084_s28 + $0x48] sm:$0xff]   ;;  %v993_v10 = vld [vmem:[%s1084_s28 + $0x50] sm:$0xff]  }
  0x13   : > { %933 = vmatprep.mubr.msk.bf16.mxu1 %vm381_vm0, %v989_v5  ;;  %v994_v11 = vld [vmem:[%s1084_s28 + $0x18] sm:$0xff]   ;;  %v996_v13 = vld [vmem:[%s1084_s28 + $0x20] sm:$0xff]   ;;  %v998_v15 = vld [vmem:[%s1084_s28 + $0x28] sm:$0xff]  }
  0x14   : > { %914 = vmatpush3.bf16.msra.mxu0 %v986_v3  ;;  %957 = vmatpush3.bf16.msra.mxu1 %v986_v3  ;;  %v995_v12 = vld [vmem:[%s1084_s28 + $0x58] sm:$0xff]   ;;  %v997_v14 = vld [vmem:[%s1084_s28 + $0x60] sm:$0xff]   ;;  %v999_v16 = vld [vmem:[%s1084_s28 + $0x68] sm:$0xff]  }
  0x15   : > { %915 = vmatprep.subr.bf16.mxu0 %v987_v6  ;;  %953 = vmatprep.subr.bf16.mxu1 %v987_v6  ;;  %v1000_v17 = vld [vmem:[%s1084_s28 + $0x30] sm:$0xff]   ;;  %v1002_v19 = vld [vmem:[%s1084_s28 + $0x38] sm:$0xff]  }
  0x16   : > { %v1001_v18 = vld [vmem:[%s1084_s28 + $0x70] sm:$0xff]   ;;  %v1003_v20 = vld [vmem:[%s1084_s28 + $0x78] sm:$0xff]  }
  0x18   : > { %916 = vmatpush3.bf16.msra.mxu0 %v987_v6  ;;  %958 = vmatpush3.bf16.msra.mxu1 %v987_v6 }
  0x1b   : > { %918 = vmatmul.mubr.msk.bf16.vlgmr.msra.gmra.mrb[0].mxu0 %vm381_vm0, %v990_v7  ;;  %934 = vmatmul.mubr.msk.bf16.vlgmr.msra.gmra.mrb[0].mxu1 %vm381_vm0, %v991_v8 }
  0x1c   : > { %921 = vmatprep.mubr.msk.bf16.mxu0 %vm381_vm0, %v992_v9  ;;  %937 = vmatprep.mubr.msk.bf16.mxu1 %vm381_vm0, %v993_v10 }
  0x23   : > { %922 = vmatmul.mubr.msk.bf16.gmra.mrb[4].mxu0 %vm381_vm0, %v994_v11  ;;  %938 = vmatmul.mubr.msk.bf16.gmra.mrb[4].mxu1 %vm381_vm0, %v995_v12 }
  0x24   : > { %925 = vmatprep.mubr.msk.bf16.mxu0 %vm381_vm0, %v996_v13  ;;  %941 = vmatprep.mubr.msk.bf16.mxu1 %vm381_vm0, %v997_v14 }
  0x2b   : > { %926 = vmatmul.mubr.msk.bf16.gmra.mrb[8].mxu0 %vm381_vm0, %v998_v15  ;;  %942 = vmatmul.mubr.msk.bf16.gmra.mrb[8].mxu1 %vm381_vm0, %v999_v16 }
  0x2c   : > { %929 = vmatprep.mubr.msk.bf16.mxu0 %vm381_vm0, %v1000_v17  ;;  %945 = vmatprep.mubr.msk.bf16.mxu1 %vm381_vm0, %v1001_v18 }
  0x33   : > { %930 = vmatmul.mubr.msk.bf16.gmra.mrb[12].mxu0 %vm381_vm0, %v1002_v19  ;;  %946 = vmatmul.mubr.msk.bf16.gmra.mrb[12].mxu1 %vm381_vm0, %v1003_v20 }
  0xee   : > { %v919_v22 = vpop.f32.mrb[0].mxu0  ;;  %v935_v24 = vpop.f32.mrb[0].mxu1 }
  0xef   : > { %v598_v25 = vmul.f32 %v919_v22, %v1124_v21  ;;  %v614_v26 = vmul.f32 %v935_v24, %v1124_v21  ;;  %v464_v27 = vpop.f32.mrb[1].mxu0  ;;  %v528_v28 = vpop.f32.mrb[1].mxu1 }
  0xf0   : > { %v596_v29 = vmul.f32 %v1124_v21, %v464_v27  ;;  %v612_v30 = vmul.f32 %v1124_v21, %v528_v28  ;;  %v920_v31 = vpop.f32.mrb[2].mxu0  ;;  %v936_v32 = vpop.f32.mrb[2].mxu1 }
  0xf1   : > { %v635_v33 = vadd.f32 %v1129_v23, %v598_v25  ;;  %v651_v34 = vadd.f32 %v1129_v23, %v614_v26  ;;  %v599_v35 = vmul.f32 %v920_v31, %v1124_v21  ;;  %v615_v36 = vmul.f32 %v936_v32, %v1124_v21  ;;  %v467_v37 = vpop.f32.mrb[3].mxu0  ;;  %v531_v38 = vpop.f32.mrb[3].mxu1 }
  0xf2   : > { %v633_v39 = vadd.f32 %v1129_v23, %v596_v29  ;;  %v649_v40 = vadd.f32 %v1129_v23, %v612_v30  ;;  %v597_v41 = vmul.f32 %v1124_v21, %v467_v37  ;;  %v613_v42 = vmul.f32 %v1124_v21, %v531_v38 }
  0xf3   : > { %v667_v43 = vmax.f32 %v635_v33, 0.0  ;;  %v683_v44 = vmax.f32 %v651_v34, 0.0  ;;  %v636_v45 = vadd.f32 %v1129_v23, %v599_v35  ;;  %v652_v46 = vadd.f32 %v1129_v23, %v615_v36 }
  0xf4   : > { %v665_v47 = vmax.f32 %v633_v39, 0.0  ;;  %v681_v48 = vmax.f32 %v649_v40, 0.0  ;;  %v634_v49 = vadd.f32 %v1129_v23, %v597_v41  ;;  %v650_v50 = vadd.f32 %v1129_v23, %v613_v42 }
  0xf5   : > { %699 = vst [vmem:[%s1143_s11 + $0x10] sm:$0xff] %v667_v43  ;;  %715 = vst [vmem:[%s1143_s11 + $0x90] sm:$0xff] %v683_v44  ;;  %v668_v51 = vmax.f32 %v636_v45, 0.0  ;;  %v684_v52 = vmax.f32 %v652_v46, 0.0 }
  0xf6   : > { %697 = vst [vmem:[%s1143_s11] sm:$0xff] %v665_v47  ;;  %713 = vst [vmem:[%s1143_s11 + $0x80] sm:$0xff] %v681_v48  ;;  %v666_v53 = vmax.f32 %v634_v49, 0.0  ;;  %v682_v54 = vmax.f32 %v650_v50, 0.0  ;;  %v923_v55 = vpop.f32.mrb[4].mxu0  ;;  %v939_v56 = vpop.f32.mrb[4].mxu1 }
  0xf7   : > { %700 = vst [vmem:[%s1143_s11 + $0x18] sm:$0xff] %v668_v51  ;;  %716 = vst [vmem:[%s1143_s11 + $0x98] sm:$0xff] %v684_v52  ;;  %v602_v57 = vmul.f32 %v923_v55, %v1124_v21  ;;  %v618_v58 = vmul.f32 %v939_v56, %v1124_v21  ;;  %v480_v59 = vpop.f32.mrb[5].mxu0  ;;  %v544_v60 = vpop.f32.mrb[5].mxu1 }
  0xf8   : > { %698 = vst [vmem:[%s1143_s11 + $0x8] sm:$0xff] %v666_v53  ;;  %714 = vst [vmem:[%s1143_s11 + $0x88] sm:$0xff] %v682_v54  ;;  %v600_v61 = vmul.f32 %v1124_v21, %v480_v59  ;;  %v616_v62 = vmul.f32 %v1124_v21, %v544_v60  ;;  %v924_v63 = vpop.f32.mrb[6].mxu0  ;;  %v940_v0 = vpop.f32.mrb[6].mxu1 }
  0xf9   : > { %v639_v1 = vadd.f32 %v1129_v23, %v602_v57  ;;  %v655_v2 = vadd.f32 %v1129_v23, %v618_v58  ;;  %v603_v3 = vmul.f32 %v924_v63, %v1124_v21  ;;  %v619_v4 = vmul.f32 %v940_v0, %v1124_v21  ;;  %v483_v5 = vpop.f32.mrb[7].mxu0  ;;  %v547_v6 = vpop.f32.mrb[7].mxu1 }
  0xfa   : > { %v637_v7 = vadd.f32 %v1129_v23, %v600_v61  ;;  %v653_v8 = vadd.f32 %v1129_v23, %v616_v62  ;;  %v601_v9 = vmul.f32 %v1124_v21, %v483_v5  ;;  %v617_v10 = vmul.f32 %v1124_v21, %v547_v6 }
  0xfb   : > { %v671_v11 = vmax.f32 %v639_v1, 0.0  ;;  %v687_v12 = vmax.f32 %v655_v2, 0.0  ;;  %v640_v13 = vadd.f32 %v1129_v23, %v603_v3  ;;  %v656_v14 = vadd.f32 %v1129_v23, %v619_v4 }
  0xfc   : > { %v669_v15 = vmax.f32 %v637_v7, 0.0  ;;  %v685_v16 = vmax.f32 %v653_v8, 0.0  ;;  %v638_v17 = vadd.f32 %v1129_v23, %v601_v9  ;;  %v654_v18 = vadd.f32 %v1129_v23, %v617_v10 }
  0xfd   : > { %703 = vst [vmem:[%s1143_s11 + $0x30] sm:$0xff] %v671_v11  ;;  %719 = vst [vmem:[%s1143_s11 + $0xb0] sm:$0xff] %v687_v12  ;;  %v672_v19 = vmax.f32 %v640_v13, 0.0  ;;  %v688_v20 = vmax.f32 %v656_v14, 0.0 }
  0xfe   : > { %701 = vst [vmem:[%s1143_s11 + $0x20] sm:$0xff] %v669_v15  ;;  %717 = vst [vmem:[%s1143_s11 + $0xa0] sm:$0xff] %v685_v16  ;;  %v670_v22 = vmax.f32 %v638_v17, 0.0  ;;  %v686_v24 = vmax.f32 %v654_v18, 0.0  ;;  %v927_v25 = vpop.f32.mrb[8].mxu0  ;;  %v943_v26 = vpop.f32.mrb[8].mxu1 }
  0xff   : > { %704 = vst [vmem:[%s1143_s11 + $0x38] sm:$0xff] %v672_v19  ;;  %720 = vst [vmem:[%s1143_s11 + $0xb8] sm:$0xff] %v688_v20  ;;  %v606_v27 = vmul.f32 %v927_v25, %v1124_v21  ;;  %v622_v28 = vmul.f32 %v943_v26, %v1124_v21  ;;  %v496_v29 = vpop.f32.mrb[9].mxu0  ;;  %v560_v30 = vpop.f32.mrb[9].mxu1 }
 0x100   : > { %702 = vst [vmem:[%s1143_s11 + $0x28] sm:$0xff] %v670_v22  ;;  %718 = vst [vmem:[%s1143_s11 + $0xa8] sm:$0xff] %v686_v24  ;;  %v604_v31 = vmul.f32 %v1124_v21, %v496_v29  ;;  %v620_v32 = vmul.f32 %v1124_v21, %v560_v30  ;;  %v928_v33 = vpop.f32.mrb[10].mxu0  ;;  %v944_v34 = vpop.f32.mrb[10].mxu1 }
 0x101   : > { %v643_v35 = vadd.f32 %v1129_v23, %v606_v27  ;;  %v659_v36 = vadd.f32 %v1129_v23, %v622_v28  ;;  %v607_v37 = vmul.f32 %v928_v33, %v1124_v21  ;;  %v623_v38 = vmul.f32 %v944_v34, %v1124_v21  ;;  %v499_v39 = vpop.f32.mrb[11].mxu0  ;;  %v563_v40 = vpop.f32.mrb[11].mxu1 }
 0x102   : > { %v641_v41 = vadd.f32 %v1129_v23, %v604_v31  ;;  %v657_v42 = vadd.f32 %v1129_v23, %v620_v32  ;;  %v605_v43 = vmul.f32 %v1124_v21, %v499_v39  ;;  %v621_v44 = vmul.f32 %v1124_v21, %v563_v40 }
 0x103   : > { %v675_v45 = vmax.f32 %v643_v35, 0.0  ;;  %v691_v46 = vmax.f32 %v659_v36, 0.0  ;;  %v644_v47 = vadd.f32 %v1129_v23, %v607_v37  ;;  %v660_v48 = vadd.f32 %v1129_v23, %v623_v38 }
 0x104   : > { %v673_v49 = vmax.f32 %v641_v41, 0.0  ;;  %v689_v50 = vmax.f32 %v657_v42, 0.0  ;;  %v642_v51 = vadd.f32 %v1129_v23, %v605_v43  ;;  %v658_v52 = vadd.f32 %v1129_v23, %v621_v44 }
 0x105   : > { %707 = vst [vmem:[%s1143_s11 + $0x50] sm:$0xff] %v675_v45  ;;  %723 = vst [vmem:[%s1143_s11 + $0xd0] sm:$0xff] %v691_v46  ;;  %v676_v53 = vmax.f32 %v644_v47, 0.0  ;;  %v692_v54 = vmax.f32 %v660_v48, 0.0 }
 0x106   : > { %705 = vst [vmem:[%s1143_s11 + $0x40] sm:$0xff] %v673_v49  ;;  %721 = vst [vmem:[%s1143_s11 + $0xc0] sm:$0xff] %v689_v50  ;;  %v674_v55 = vmax.f32 %v642_v51, 0.0  ;;  %v690_v56 = vmax.f32 %v658_v52, 0.0  ;;  %v931_v57 = vpop.f32.mrb[12].mxu0  ;;  %v947_v58 = vpop.f32.mrb[12].mxu1 }
 0x107   : > { %708 = vst [vmem:[%s1143_s11 + $0x58] sm:$0xff] %v676_v53  ;;  %724 = vst [vmem:[%s1143_s11 + $0xd8] sm:$0xff] %v692_v54  ;;  %v610_v59 = vmul.f32 %v931_v57, %v1124_v21  ;;  %v626_v60 = vmul.f32 %v947_v58, %v1124_v21  ;;  %v512_v61 = vpop.f32.mrb[13].mxu0  ;;  %v576_v62 = vpop.f32.mrb[13].mxu1 }
 0x108   : > { %706 = vst [vmem:[%s1143_s11 + $0x48] sm:$0xff] %v674_v55  ;;  %722 = vst [vmem:[%s1143_s11 + $0xc8] sm:$0xff] %v690_v56  ;;  %v608_v63 = vmul.f32 %v1124_v21, %v512_v61  ;;  %v624_v0 = vmul.f32 %v1124_v21, %v576_v62  ;;  %v932_v1 = vpop.f32.mrb[14].mxu0  ;;  %v948_v2 = vpop.f32.mrb[14].mxu1 }
 0x109   : > { %v647_v3 = vadd.f32 %v1129_v23, %v610_v59  ;;  %v663_v4 = vadd.f32 %v1129_v23, %v626_v60  ;;  %v611_v5 = vmul.f32 %v932_v1, %v1124_v21  ;;  %v627_v6 = vmul.f32 %v948_v2, %v1124_v21  ;;  %v515_v7 = vpop.f32.mrb[15].mxu0  ;;  %v579_v8 = vpop.f32.mrb[15].mxu1 }
 0x10a   : > { %v645_v9 = vadd.f32 %v1129_v23, %v608_v63  ;;  %v661_v10 = vadd.f32 %v1129_v23, %v624_v0  ;;  %v609_v11 = vmul.f32 %v1124_v21, %v515_v7  ;;  %v625_v12 = vmul.f32 %v1124_v21, %v579_v8 }
 0x10b   : > { %v679_v13 = vmax.f32 %v647_v3, 0.0  ;;  %v695_v14 = vmax.f32 %v663_v4, 0.0  ;;  %v648_v15 = vadd.f32 %v1129_v23, %v611_v5  ;;  %v664_v16 = vadd.f32 %v1129_v23, %v627_v6 }
 0x10c   : > { %v677_v17 = vmax.f32 %v645_v9, 0.0  ;;  %v693_v18 = vmax.f32 %v661_v10, 0.0  ;;  %v646_v19 = vadd.f32 %v1129_v23, %v609_v11  ;;  %v662_v20 = vadd.f32 %v1129_v23, %v625_v12 }
 0x10d   : > { %711 = vst [vmem:[%s1143_s11 + $0x70] sm:$0xff] %v679_v13  ;;  %727 = vst [vmem:[%s1143_s11 + $0xf0] sm:$0xff] %v695_v14  ;;  %v680_v22 = vmax.f32 %v648_v15, 0.0  ;;  %v696_v21 = vmax.f32 %v664_v16, 0.0 }
 0x10e   : > { %709 = vst [vmem:[%s1143_s11 + $0x60] sm:$0xff] %v677_v17  ;;  %725 = vst [vmem:[%s1143_s11 + $0xe0] sm:$0xff] %v693_v18  ;;  %v678_v24 = vmax.f32 %v646_v19, 0.0  ;;  %v694_v25 = vmax.f32 %v662_v20, 0.0 }
 0x10f   : > { %712 = vst [vmem:[%s1143_s11 + $0x78] sm:$0xff] %v680_v22  ;;  %728 = vst [vmem:[%s1143_s11 + $0xf8] sm:$0xff] %v696_v21 }
 0x110   : > { %710 = vst [vmem:[%s1143_s11 + $0x68] sm:$0xff] %v678_v24  ;;  %726 = vst [vmem:[%s1143_s11 + $0xe8] sm:$0xff] %v694_v25 }
 0x111 PF: > { %s13_s14 = sadd.s32 1, %s1026_s14   ;;  %s1246_s12 = smov %s1022_s13 }
 0x112   : > { %p10_p5 = scmp.ge.s32.totalorder %s13_s14, 4   ;;  %s1247_s13 = smov %s1249_s15 }
 0x114   :  { %12 = sbr.rel (!%p10_p5) target bundleno = 2 (0x2), region = 68 }

// kernel: image_encoder_forward.23
= control target key start
LH: loop header
LB: loop body
LE: loop exit
PB: predicated region body
PF: predicated region fallthrough
CT: control target
= control target key end

     0   :  { %s956_s12 = smov 0   ;;  %s958_s13 = smov 0   ;;  %s1138_s0 = inlined_call_operand.vmem [shape: bf16[512,16], index: 0, kind: input, shape index: {}]   ;;  %s1139_s1 = inlined_call_operand.vmem [shape: bf16[16,128], index: 1, kind: input, shape index: {}]   ;;  %s1140_s2 = inlined_call_operand.vmem [shape: f32[2,128], index: 2, kind: input, shape index: {}]   ;;  %s1141_s3 = inlined_call_operand.vmem [shape: f32[512,128], index: 3, kind: output, shape index: {}]  }
   0x1   :  { %s960_s14 = smov 0  }
   0x2 LB: > { %s25_s15 = sadd.s32 1, %s930_s13  ;;  %p776_p0 = scmp.ge.s32.totalorder %s934_s14, 1  ;;  %s934_s14 = sphi %s960_s14, %s13_s14   ;;  %s930_s13 = sphi %s958_s13, %s1143_s13   ;;  %s926_s12 = sphi %s956_s12, %s1142_s12  }
   0x3   : > { %p27_p1 = scmp.ge.s32.totalorder %s25_s15, 2  ;;  %p170_p2 = scmp.lt.s32.totalorder %s934_s14, 3 }
   0x5   : > { %s1145_s15 = smov (%p27_p1, %s25_s15), 0  ;;  %p171_p3 = pnand %p776_p0, %p170_p2 }
   0x6   : > { %v895_v0 = vld [vmem:[%s1139_s1] sm:$0xff] (!%p171_p3)   ;;  %s777_s18 = sshll.u32 (!%p171_p3), %s926_s12, 5  ;;  %vm349_vm0 = vcmask (!%p171_p3), 130048  }
   0x7   : > { %174 = sbr.rel (%p171_p3) target bundleno = 264 (0x108), region = 32  ;;  %p206_p4 = scmp.lt.s32.totalorder (!%p171_p3), %s777_s18, 63  ;;  %835 = vmatprep.subr.bf16.mxu0 (!%p171_p3), %v895_v0  ;;  %869 = vmatprep.subr.bf16.mxu1 (!%p171_p3), %v895_v0  ;;  %v1020_v17 = vld [vmem:[%s1140_s2] ss:$0 sm:$0xff] (!%p171_p3)  ;;  %v1026_v19 = vld [vmem:[%s1140_s2 + $0x1] ss:$0 sm:$0xff] (!%p171_p3) }
   0x8   : > { %836 = vmatpush3.bf16.msra.mxu0 (!%p171_p3), %v895_v0  ;;  %870 = vmatpush3.bf16.msra.mxu1 (!%p171_p3), %v895_v0 }
   0xe   : > { %s1147_s18 = smov (!%p206_p4, %s777_s18), 63 }
   0xf   : > { %s778_s19 = sshll.u32 %s1147_s18, 2  ;;  %s780_s25 = sshll.u32 %s1147_s18, 3 }
  0x10   : > { %s983_s22 = scalar_lea.vmem %s1138_s0, %s778_s19  ;;  %s1032_s30 = scalar_lea.vmem %s1141_s3, %s780_s25 }
  0x11   : > { %v896_v1 = vld [vmem:[%s983_s22] sm:$0xff]   ;;  %v898_v3 = vld [vmem:[%s983_s22 + $0x8] sm:$0xff]   ;;  %v900_v5 = vld [vmem:[%s983_s22 + $0x10] sm:$0xff]  }
  0x12   : > { %v897_v2 = vld [vmem:[%s983_s22 + $0x40] sm:$0xff]   ;;  %837 = vmatprep.mubr.msk.bf16.mxu0 %vm349_vm0, %v896_v1  ;;  %v899_v4 = vld [vmem:[%s983_s22 + $0x48] sm:$0xff]   ;;  %v901_v6 = vld [vmem:[%s983_s22 + $0x50] sm:$0xff]  }
  0x13   : > { %853 = vmatprep.mubr.msk.bf16.mxu1 %vm349_vm0, %v897_v2  ;;  %838 = vmatmul.mubr.msk.bf16.vlgmr.msra.gmra.mrb[0].mxu0 %vm349_vm0, %v898_v3  ;;  %v902_v7 = vld [vmem:[%s983_s22 + $0x18] sm:$0xff]   ;;  %v904_v9 = vld [vmem:[%s983_s22 + $0x20] sm:$0xff]   ;;  %v906_v11 = vld [vmem:[%s983_s22 + $0x28] sm:$0xff]  }
  0x14   : > { %854 = vmatmul.mubr.msk.bf16.vlgmr.msra.gmra.mrb[0].mxu1 %vm349_vm0, %v899_v4  ;;  %841 = vmatprep.mubr.msk.bf16.mxu0 %vm349_vm0, %v900_v5  ;;  %v903_v8 = vld [vmem:[%s983_s22 + $0x58] sm:$0xff]   ;;  %v905_v10 = vld [vmem:[%s983_s22 + $0x60] sm:$0xff]   ;;  %v907_v12 = vld [vmem:[%s983_s22 + $0x68] sm:$0xff]  }
  0x15   : > { %857 = vmatprep.mubr.msk.bf16.mxu1 %vm349_vm0, %v901_v6  ;;  %v908_v13 = vld [vmem:[%s983_s22 + $0x30] sm:$0xff]   ;;  %v910_v15 = vld [vmem:[%s983_s22 + $0x38] sm:$0xff]  }
  0x16   : > { %v909_v14 = vld [vmem:[%s983_s22 + $0x70] sm:$0xff]   ;;  %v911_v16 = vld [vmem:[%s983_s22 + $0x78] sm:$0xff]  }
  0x1b   : > { %842 = vmatmul.mubr.msk.bf16.gmra.mrb[4].mxu0 %vm349_vm0, %v902_v7 }
  0x1c   : > { %858 = vmatmul.mubr.msk.bf16.gmra.mrb[4].mxu1 %vm349_vm0, %v903_v8  ;;  %845 = vmatprep.mubr.msk.bf16.mxu0 %vm349_vm0, %v904_v9 }
  0x1d   : > { %861 = vmatprep.mubr.msk.bf16.mxu1 %vm349_vm0, %v905_v10 }
  0x23   : > { %846 = vmatmul.mubr.msk.bf16.gmra.mrb[8].mxu0 %vm349_vm0, %v906_v11 }
  0x24   : > { %862 = vmatmul.mubr.msk.bf16.gmra.mrb[8].mxu1 %vm349_vm0, %v907_v12  ;;  %849 = vmatprep.mubr.msk.bf16.mxu0 %vm349_vm0, %v908_v13 }
  0x25   : > { %865 = vmatprep.mubr.msk.bf16.mxu1 %vm349_vm0, %v909_v14 }
  0x2b   : > { %850 = vmatmul.mubr.msk.bf16.gmra.mrb[12].mxu0 %vm349_vm0, %v910_v15 }
  0x2c   : > { %866 = vmatmul.mubr.msk.bf16.gmra.mrb[12].mxu1 %vm349_vm0, %v911_v16 }
  0xe6   : > { %v839_v18 = vpop.f32.mrb[0].mxu0 }
  0xe7   : > { %v566_v20 = vmul.f32 %v839_v18, %v1020_v17  ;;  %v855_v21 = vpop.f32.mrb[0].mxu1  ;;  %v432_v22 = vpop.f32.mrb[1].mxu0 }
  0xe8   : > { %v582_v23 = vmul.f32 %v855_v21, %v1020_v17  ;;  %v564_v24 = vmul.f32 %v1020_v17, %v432_v22  ;;  %v496_v25 = vpop.f32.mrb[1].mxu1  ;;  %v840_v26 = vpop.f32.mrb[2].mxu0 }
  0xe9   : > { %v603_v27 = vadd.f32 %v1026_v19, %v566_v20  ;;  %v580_v28 = vmul.f32 %v1020_v17, %v496_v25  ;;  %v567_v29 = vmul.f32 %v840_v26, %v1020_v17  ;;  %v856_v30 = vpop.f32.mrb[2].mxu1  ;;  %v435_v31 = vpop.f32.mrb[3].mxu0 }
  0xea   : > { %v619_v32 = vadd.f32 %v1026_v19, %v582_v23  ;;  %v601_v33 = vadd.f32 %v1026_v19, %v564_v24  ;;  %v583_v34 = vmul.f32 %v856_v30, %v1020_v17  ;;  %v565_v35 = vmul.f32 %v1020_v17, %v435_v31  ;;  %v499_v36 = vpop.f32.mrb[3].mxu1 }
  0xeb   : > { %635 = vst [vmem:[%s1032_s30 + $0x10] sm:$0xff] %v603_v27  ;;  %v617_v37 = vadd.f32 %v1026_v19, %v580_v28  ;;  %v604_v38 = vadd.f32 %v1026_v19, %v567_v29  ;;  %v581_v39 = vmul.f32 %v1020_v17, %v499_v36 }
  0xec   : > { %651 = vst [vmem:[%s1032_s30 + $0x90] sm:$0xff] %v619_v32  ;;  %633 = vst [vmem:[%s1032_s30] sm:$0xff] %v601_v33  ;;  %v620_v40 = vadd.f32 %v1026_v19, %v583_v34  ;;  %v602_v41 = vadd.f32 %v1026_v19, %v565_v35 }
  0xed   : > { %649 = vst [vmem:[%s1032_s30 + $0x80] sm:$0xff] %v617_v37  ;;  %636 = vst [vmem:[%s1032_s30 + $0x18] sm:$0xff] %v604_v38  ;;  %v618_v42 = vadd.f32 %v1026_v19, %v581_v39 }
  0xee   : > { %652 = vst [vmem:[%s1032_s30 + $0x98] sm:$0xff] %v620_v40  ;;  %634 = vst [vmem:[%s1032_s30 + $0x8] sm:$0xff] %v602_v41  ;;  %v843_v43 = vpop.f32.mrb[4].mxu0 }
  0xef   : > { %650 = vst [vmem:[%s1032_s30 + $0x88] sm:$0xff] %v618_v42  ;;  %v570_v44 = vmul.f32 %v843_v43, %v1020_v17  ;;  %v859_v45 = vpop.f32.mrb[4].mxu1  ;;  %v448_v46 = vpop.f32.mrb[5].mxu0 }
  0xf0   : > { %v586_v47 = vmul.f32 %v859_v45, %v1020_v17  ;;  %v568_v48 = vmul.f32 %v1020_v17, %v448_v46  ;;  %v512_v49 = vpop.f32.mrb[5].mxu1  ;;  %v844_v50 = vpop.f32.mrb[6].mxu0 }
  0xf1   : > { %v607_v51 = vadd.f32 %v1026_v19, %v570_v44  ;;  %v584_v52 = vmul.f32 %v1020_v17, %v512_v49  ;;  %v571_v53 = vmul.f32 %v844_v50, %v1020_v17  ;;  %v860_v54 = vpop.f32.mrb[6].mxu1  ;;  %v451_v55 = vpop.f32.mrb[7].mxu0 }
  0xf2   : > { %v623_v56 = vadd.f32 %v1026_v19, %v586_v47  ;;  %v605_v57 = vadd.f32 %v1026_v19, %v568_v48  ;;  %v587_v58 = vmul.f32 %v860_v54, %v1020_v17  ;;  %v569_v59 = vmul.f32 %v1020_v17, %v451_v55  ;;  %v515_v60 = vpop.f32.mrb[7].mxu1 }
  0xf3   : > { %639 = vst [vmem:[%s1032_s30 + $0x30] sm:$0xff] %v607_v51  ;;  %v621_v61 = vadd.f32 %v1026_v19, %v584_v52  ;;  %v608_v62 = vadd.f32 %v1026_v19, %v571_v53  ;;  %v585_v63 = vmul.f32 %v1020_v17, %v515_v60 }
  0xf4   : > { %655 = vst [vmem:[%s1032_s30 + $0xb0] sm:$0xff] %v623_v56  ;;  %637 = vst [vmem:[%s1032_s30 + $0x20] sm:$0xff] %v605_v57  ;;  %v624_v0 = vadd.f32 %v1026_v19, %v587_v58  ;;  %v606_v1 = vadd.f32 %v1026_v19, %v569_v59 }
  0xf5   : > { %653 = vst [vmem:[%s1032_s30 + $0xa0] sm:$0xff] %v621_v61  ;;  %640 = vst [vmem:[%s1032_s30 + $0x38] sm:$0xff] %v608_v62  ;;  %v622_v2 = vadd.f32 %v1026_v19, %v585_v63 }
  0xf6   : > { %656 = vst [vmem:[%s1032_s30 + $0xb8] sm:$0xff] %v624_v0  ;;  %638 = vst [vmem:[%s1032_s30 + $0x28] sm:$0xff] %v606_v1  ;;  %v847_v3 = vpop.f32.mrb[8].mxu0 }
  0xf7   : > { %654 = vst [vmem:[%s1032_s30 + $0xa8] sm:$0xff] %v622_v2  ;;  %v574_v4 = vmul.f32 %v847_v3, %v1020_v17  ;;  %v863_v5 = vpop.f32.mrb[8].mxu1  ;;  %v464_v6 = vpop.f32.mrb[9].mxu0 }
  0xf8   : > { %v590_v7 = vmul.f32 %v863_v5, %v1020_v17  ;;  %v572_v8 = vmul.f32 %v1020_v17, %v464_v6  ;;  %v528_v9 = vpop.f32.mrb[9].mxu1  ;;  %v848_v10 = vpop.f32.mrb[10].mxu0 }
  0xf9   : > { %v611_v11 = vadd.f32 %v1026_v19, %v574_v4  ;;  %v588_v12 = vmul.f32 %v1020_v17, %v528_v9  ;;  %v575_v13 = vmul.f32 %v848_v10, %v1020_v17  ;;  %v864_v14 = vpop.f32.mrb[10].mxu1  ;;  %v467_v15 = vpop.f32.mrb[11].mxu0 }
  0xfa   : > { %v627_v16 = vadd.f32 %v1026_v19, %v590_v7  ;;  %v609_v18 = vadd.f32 %v1026_v19, %v572_v8  ;;  %v591_v20 = vmul.f32 %v864_v14, %v1020_v17  ;;  %v573_v21 = vmul.f32 %v1020_v17, %v467_v15  ;;  %v531_v22 = vpop.f32.mrb[11].mxu1 }
  0xfb   : > { %643 = vst [vmem:[%s1032_s30 + $0x50] sm:$0xff] %v611_v11  ;;  %v625_v23 = vadd.f32 %v1026_v19, %v588_v12  ;;  %v612_v24 = vadd.f32 %v1026_v19, %v575_v13  ;;  %v589_v25 = vmul.f32 %v1020_v17, %v531_v22 }
  0xfc   : > { %659 = vst [vmem:[%s1032_s30 + $0xd0] sm:$0xff] %v627_v16  ;;  %641 = vst [vmem:[%s1032_s30 + $0x40] sm:$0xff] %v609_v18  ;;  %v628_v26 = vadd.f32 %v1026_v19, %v591_v20  ;;  %v610_v27 = vadd.f32 %v1026_v19, %v573_v21 }
  0xfd   : > { %657 = vst [vmem:[%s1032_s30 + $0xc0] sm:$0xff] %v625_v23  ;;  %644 = vst [vmem:[%s1032_s30 + $0x58] sm:$0xff] %v612_v24  ;;  %v626_v28 = vadd.f32 %v1026_v19, %v589_v25 }
  0xfe   : > { %660 = vst [vmem:[%s1032_s30 + $0xd8] sm:$0xff] %v628_v26  ;;  %642 = vst [vmem:[%s1032_s30 + $0x48] sm:$0xff] %v610_v27  ;;  %v851_v29 = vpop.f32.mrb[12].mxu0 }
  0xff   : > { %658 = vst [vmem:[%s1032_s30 + $0xc8] sm:$0xff] %v626_v28  ;;  %v578_v30 = vmul.f32 %v851_v29, %v1020_v17  ;;  %v867_v31 = vpop.f32.mrb[12].mxu1  ;;  %v480_v32 = vpop.f32.mrb[13].mxu0 }
 0x100   : > { %v594_v33 = vmul.f32 %v867_v31, %v1020_v17  ;;  %v576_v34 = vmul.f32 %v1020_v17, %v480_v32  ;;  %v544_v35 = vpop.f32.mrb[13].mxu1  ;;  %v852_v36 = vpop.f32.mrb[14].mxu0 }
 0x101   : > { %v615_v37 = vadd.f32 %v1026_v19, %v578_v30  ;;  %v592_v38 = vmul.f32 %v1020_v17, %v544_v35  ;;  %v579_v39 = vmul.f32 %v852_v36, %v1020_v17  ;;  %v868_v40 = vpop.f32.mrb[14].mxu1  ;;  %v483_v41 = vpop.f32.mrb[15].mxu0 }
 0x102   : > { %v631_v42 = vadd.f32 %v1026_v19, %v594_v33  ;;  %v613_v43 = vadd.f32 %v1026_v19, %v576_v34  ;;  %v595_v44 = vmul.f32 %v868_v40, %v1020_v17  ;;  %v577_v45 = vmul.f32 %v1020_v17, %v483_v41  ;;  %v547_v46 = vpop.f32.mrb[15].mxu1 }
 0x103   : > { %647 = vst [vmem:[%s1032_s30 + $0x70] sm:$0xff] %v615_v37  ;;  %v629_v47 = vadd.f32 %v1026_v19, %v592_v38  ;;  %v616_v48 = vadd.f32 %v1026_v19, %v579_v39  ;;  %v593_v49 = vmul.f32 %v1020_v17, %v547_v46 }
 0x104   : > { %663 = vst [vmem:[%s1032_s30 + $0xf0] sm:$0xff] %v631_v42  ;;  %645 = vst [vmem:[%s1032_s30 + $0x60] sm:$0xff] %v613_v43  ;;  %v632_v50 = vadd.f32 %v1026_v19, %v595_v44  ;;  %v614_v51 = vadd.f32 %v1026_v19, %v577_v45 }
 0x105   : > { %661 = vst [vmem:[%s1032_s30 + $0xe0] sm:$0xff] %v629_v47  ;;  %648 = vst [vmem:[%s1032_s30 + $0x78] sm:$0xff] %v616_v48  ;;  %v630_v52 = vadd.f32 %v1026_v19, %v593_v49 }
 0x106   : > { %664 = vst [vmem:[%s1032_s30 + $0xf8] sm:$0xff] %v632_v50  ;;  %646 = vst [vmem:[%s1032_s30 + $0x68] sm:$0xff] %v614_v51 }
 0x107   : > { %662 = vst [vmem:[%s1032_s30 + $0xe8] sm:$0xff] %v630_v52 }
 0x108 PF: > { %s13_s14 = sadd.s32 1, %s934_s14   ;;  %s1142_s12 = smov %s930_s13 }
 0x109   : > { %p10_p5 = scmp.ge.s32.totalorder %s13_s14, 4   ;;  %s1143_s13 = smov %s1145_s15 }
 0x10b   :  { %12 = sbr.rel (!%p10_p5) target bundleno = 2 (0x2), region = 68 }

// kernel: image_encoder_forward.24
= control target key start
LH: loop header
LB: loop body
LE: loop exit
PB: predicated region body
PF: predicated region fallthrough
CT: control target
= control target key end

     0   :  { %s1134_s15 = smov 0   ;;  %s1136_s16 = smov 0   ;;  %s1357_s0 = inlined_call_operand.vmem [shape: bf16[512,16], index: 0, kind: input, shape index: {}]   ;;  %s1358_s1 = inlined_call_operand.vmem [shape: bf16[16,128], index: 1, kind: input, shape index: {}]   ;;  %s1359_s2 = inlined_call_operand.vmem [shape: f32[2,128], index: 2, kind: input, shape index: {}]   ;;  %s1360_s3 = inlined_call_operand.vmem [shape: f32[512,128], index: 3, kind: input, shape index: {}]   ;;  %s1361_s4 = inlined_call_operand.vmem [shape: f32[512,128], index: 4, kind: output, shape index: {}]  }
   0x1   :  { %s1138_s17 = smov 0  }
   0x2 LB: > { %s26_s18 = sadd.s32 1, %s1103_s16  ;;  %p947_p0 = scmp.ge.s32.totalorder %s1107_s17, 1  ;;  %s1107_s17 = sphi %s1138_s17, %s14_s17   ;;  %s1103_s16 = sphi %s1136_s16, %s1363_s16   ;;  %s1099_s15 = sphi %s1134_s15, %s1362_s15  }
   0x3   : > { %p28_p1 = scmp.ge.s32.totalorder %s26_s18, 2  ;;  %p211_p2 = scmp.lt.s32.totalorder %s1107_s17, 3 }
   0x5   : > { %s1365_s18 = smov (%p28_p1, %s26_s18), 0  ;;  %p212_p3 = pnand %p947_p0, %p211_p2 }
   0x6   : > { %v1068_v0 = vld [vmem:[%s1358_s1] sm:$0xff] (!%p212_p3)   ;;  %s948_s21 = sshll.u32 (!%p212_p3), %s1099_s15, 5  ;;  %vm409_vm0 = vcmask (!%p212_p3), 130048  }
   0x7   : > { %215 = sbr.rel (%p212_p3) target bundleno = 269 (0x10d), region = 36  ;;  %p257_p4 = scmp.lt.s32.totalorder (!%p212_p3), %s948_s21, 63  ;;  %1008 = vmatprep.subr.bf16.mxu0 (!%p212_p3), %v1068_v0  ;;  %1042 = vmatprep.subr.bf16.mxu1 (!%p212_p3), %v1068_v0  ;;  %v1199_v17 = vld [vmem:[%s1359_s2] ss:$0 sm:$0xff] (!%p212_p3)  ;;  %v1211_v19 = vld [vmem:[%s1359_s2 + $0x1] ss:$0 sm:$0xff] (!%p212_p3) }
   0x8   : > { %1009 = vmatpush3.bf16.msra.mxu0 (!%p212_p3), %v1068_v0  ;;  %1043 = vmatpush3.bf16.msra.mxu1 (!%p212_p3), %v1068_v0 }
   0xe   : > { %s1367_s21 = smov (!%p257_p4, %s948_s21), 63 }
   0xf   : > { %s949_s22 = sshll.u32 %s1367_s21, 2  ;;  %s951_s26 = sshll.u32 %s1367_s21, 3 }
  0x10   : > { %s1161_s25 = scalar_lea.vmem %s1357_s0, %s949_s22  ;;  %s1206_s5 = scalar_lea.vmem %s1360_s3, %s951_s26 }
  0x11   : > { %v1069_v1 = vld [vmem:[%s1161_s25] sm:$0xff]   ;;  %v1071_v3 = vld [vmem:[%s1161_s25 + $0x8] sm:$0xff]   ;;  %v1073_v5 = vld [vmem:[%s1161_s25 + $0x10] sm:$0xff]   ;;  %s1238_s10 = scalar_lea.vmem %s1361_s4, %s951_s26 }
  0x12   : > { %v1070_v2 = vld [vmem:[%s1161_s25 + $0x40] sm:$0xff]   ;;  %1010 = vmatprep.mubr.msk.bf16.mxu0 %vm409_vm0, %v1069_v1  ;;  %v1072_v4 = vld [vmem:[%s1161_s25 + $0x48] sm:$0xff]   ;;  %v1074_v6 = vld [vmem:[%s1161_s25 + $0x50] sm:$0xff]  }
  0x13   : > { %1026 = vmatprep.mubr.msk.bf16.mxu1 %vm409_vm0, %v1070_v2  ;;  %1011 = vmatmul.mubr.msk.bf16.vlgmr.msra.gmra.mrb[0].mxu0 %vm409_vm0, %v1071_v3  ;;  %v1075_v7 = vld [vmem:[%s1161_s25 + $0x18] sm:$0xff]   ;;  %v1077_v9 = vld [vmem:[%s1161_s25 + $0x20] sm:$0xff]   ;;  %v1079_v11 = vld [vmem:[%s1161_s25 + $0x28] sm:$0xff]  }
  0x14   : > { %1027 = vmatmul.mubr.msk.bf16.vlgmr.msra.gmra.mrb[0].mxu1 %vm409_vm0, %v1072_v4  ;;  %1014 = vmatprep.mubr.msk.bf16.mxu0 %vm409_vm0, %v1073_v5  ;;  %v1076_v8 = vld [vmem:[%s1161_s25 + $0x58] sm:$0xff]   ;;  %v1078_v10 = vld [vmem:[%s1161_s25 + $0x60] sm:$0xff]   ;;  %v1080_v12 = vld [vmem:[%s1161_s25 + $0x68] sm:$0xff]  }
  0x15   : > { %1030 = vmatprep.mubr.msk.bf16.mxu1 %vm409_vm0, %v1074_v6  ;;  %v1081_v13 = vld [vmem:[%s1161_s25 + $0x30] sm:$0xff]   ;;  %v1083_v15 = vld [vmem:[%s1161_s25 + $0x38] sm:$0xff]   ;;  %v693_v30 = vld [vmem:[%s1206_s5] sm:$0xff] }
  0x16   : > { %v1082_v14 = vld [vmem:[%s1161_s25 + $0x70] sm:$0xff]   ;;  %v1084_v16 = vld [vmem:[%s1161_s25 + $0x78] sm:$0xff]   ;;  %v709_v37 = vld [vmem:[%s1206_s5 + $0x80] sm:$0xff] }
  0x17   : > { %v695_v23 = vld [vmem:[%s1206_s5 + $0x10] sm:$0xff]  ;;  %v696_v38 = vld [vmem:[%s1206_s5 + $0x18] sm:$0xff]  ;;  %v694_v46 = vld [vmem:[%s1206_s5 + $0x8] sm:$0xff] }
  0x18   : > { %v711_v29 = vld [vmem:[%s1206_s5 + $0x90] sm:$0xff]  ;;  %v712_v45 = vld [vmem:[%s1206_s5 + $0x98] sm:$0xff]  ;;  %v710_v52 = vld [vmem:[%s1206_s5 + $0x88] sm:$0xff] }
  0x19   : > { %v699_v6 = vld [vmem:[%s1206_s5 + $0x30] sm:$0xff] }
  0x1b   : > { %1015 = vmatmul.mubr.msk.bf16.gmra.mrb[4].mxu0 %vm409_vm0, %v1075_v7 }
  0x1c   : > { %1031 = vmatmul.mubr.msk.bf16.gmra.mrb[4].mxu1 %vm409_vm0, %v1076_v8  ;;  %1018 = vmatprep.mubr.msk.bf16.mxu0 %vm409_vm0, %v1077_v9 }
  0x1d   : > { %1034 = vmatprep.mubr.msk.bf16.mxu1 %vm409_vm0, %v1078_v10 }
  0x23   : > { %1019 = vmatmul.mubr.msk.bf16.gmra.mrb[8].mxu0 %vm409_vm0, %v1079_v11 }
  0x24   : > { %1035 = vmatmul.mubr.msk.bf16.gmra.mrb[8].mxu1 %vm409_vm0, %v1080_v12  ;;  %1022 = vmatprep.mubr.msk.bf16.mxu0 %vm409_vm0, %v1081_v13  ;;  %v715_v13 = vld [vmem:[%s1206_s5 + $0xb0] sm:$0xff] }
  0x25   : > { %1038 = vmatprep.mubr.msk.bf16.mxu1 %vm409_vm0, %v1082_v14  ;;  %v697_v14 = vld [vmem:[%s1206_s5 + $0x20] sm:$0xff] }
  0x2b   : > { %1023 = vmatmul.mubr.msk.bf16.gmra.mrb[12].mxu0 %vm409_vm0, %v1083_v15 }
  0x2c   : > { %1039 = vmatmul.mubr.msk.bf16.gmra.mrb[12].mxu1 %vm409_vm0, %v1084_v16 }
  0xe6   : > { %v1012_v18 = vpop.f32.mrb[0].mxu0 }
  0xe7   : > { %v626_v20 = vmul.f32 %v1012_v18, %v1199_v17  ;;  %v1028_v21 = vpop.f32.mrb[0].mxu1  ;;  %v492_v22 = vpop.f32.mrb[1].mxu0 }
  0xe8   : > { %v642_v24 = vmul.f32 %v1028_v21, %v1199_v17  ;;  %v624_v25 = vmul.f32 %v1199_v17, %v492_v22  ;;  %v556_v26 = vpop.f32.mrb[1].mxu1  ;;  %v1013_v27 = vpop.f32.mrb[2].mxu0 }
  0xe9   : > { %v663_v28 = vadd.f32 %v1211_v19, %v626_v20  ;;  %v640_v31 = vmul.f32 %v1199_v17, %v556_v26  ;;  %v627_v32 = vmul.f32 %v1013_v27, %v1199_v17  ;;  %v1029_v33 = vpop.f32.mrb[2].mxu1  ;;  %v495_v34 = vpop.f32.mrb[3].mxu0 }
  0xea   : > { %v679_v35 = vadd.f32 %v1211_v19, %v642_v24  ;;  %v661_v36 = vadd.f32 %v1211_v19, %v624_v25  ;;  %v643_v39 = vmul.f32 %v1029_v33, %v1199_v17  ;;  %v625_v40 = vmul.f32 %v1199_v17, %v495_v34  ;;  %v559_v41 = vpop.f32.mrb[3].mxu1  ;;  %v700_v24 = vld [vmem:[%s1206_s5 + $0x38] sm:$0xff] }
  0xeb   : > { %v727_v42 = vadd.f32 %v695_v23, %v663_v28  ;;  %v677_v43 = vadd.f32 %v1211_v19, %v640_v31  ;;  %v664_v44 = vadd.f32 %v1211_v19, %v627_v32  ;;  %v641_v47 = vmul.f32 %v1199_v17, %v559_v41  ;;  %v713_v23 = vld [vmem:[%s1206_s5 + $0xa0] sm:$0xff]  ;;  %v716_v31 = vld [vmem:[%s1206_s5 + $0xb8] sm:$0xff]  ;;  %v698_v32 = vld [vmem:[%s1206_s5 + $0x28] sm:$0xff] }
  0xec   : > { %v743_v48 = vadd.f32 %v711_v29, %v679_v35  ;;  %v725_v49 = vadd.f32 %v693_v30, %v661_v36  ;;  %v680_v50 = vadd.f32 %v1211_v19, %v643_v39  ;;  %v662_v51 = vadd.f32 %v1211_v19, %v625_v40 }
  0xed   : > { %v759_v53 = vmax.f32 %v727_v42, 0.0  ;;  %v741_v54 = vadd.f32 %v709_v37, %v677_v43  ;;  %v728_v55 = vadd.f32 %v696_v38, %v664_v44  ;;  %v678_v56 = vadd.f32 %v1211_v19, %v641_v47  ;;  %v714_v38 = vld [vmem:[%s1206_s5 + $0xa8] sm:$0xff] }
  0xee   : > { %v775_v57 = vmax.f32 %v743_v48, 0.0  ;;  %v757_v58 = vmax.f32 %v725_v49, 0.0  ;;  %v744_v59 = vadd.f32 %v712_v45, %v680_v50  ;;  %v726_v60 = vadd.f32 %v694_v46, %v662_v51  ;;  %v1016_v61 = vpop.f32.mrb[4].mxu0 }
  0xef   : > { %791 = vst [vmem:[%s1238_s10 + $0x10] sm:$0xff] %v759_v53  ;;  %v773_v62 = vmax.f32 %v741_v54, 0.0  ;;  %v760_v63 = vmax.f32 %v728_v55, 0.0  ;;  %v742_v0 = vadd.f32 %v710_v52, %v678_v56  ;;  %v630_v1 = vmul.f32 %v1016_v61, %v1199_v17  ;;  %v1032_v2 = vpop.f32.mrb[4].mxu1  ;;  %v508_v3 = vpop.f32.mrb[5].mxu0  ;;  %v703_v56 = vld [vmem:[%s1206_s5 + $0x50] sm:$0xff] }
  0xf0   : > { %807 = vst [vmem:[%s1238_s10 + $0x90] sm:$0xff] %v775_v57  ;;  %789 = vst [vmem:[%s1238_s10] sm:$0xff] %v757_v58  ;;  %v776_v4 = vmax.f32 %v744_v59, 0.0  ;;  %v758_v5 = vmax.f32 %v726_v60, 0.0  ;;  %v646_v7 = vmul.f32 %v1032_v2, %v1199_v17  ;;  %v628_v8 = vmul.f32 %v1199_v17, %v508_v3  ;;  %v572_v9 = vpop.f32.mrb[5].mxu1  ;;  %v1017_v10 = vpop.f32.mrb[6].mxu0 }
  0xf1   : > { %805 = vst [vmem:[%s1238_s10 + $0x80] sm:$0xff] %v773_v62  ;;  %792 = vst [vmem:[%s1238_s10 + $0x18] sm:$0xff] %v760_v63  ;;  %v774_v11 = vmax.f32 %v742_v0, 0.0  ;;  %v667_v12 = vadd.f32 %v1211_v19, %v630_v1  ;;  %v644_v15 = vmul.f32 %v1199_v17, %v572_v9  ;;  %v631_v16 = vmul.f32 %v1017_v10, %v1199_v17  ;;  %v1033_v18 = vpop.f32.mrb[6].mxu1  ;;  %v511_v20 = vpop.f32.mrb[7].mxu0  ;;  %v719_v63 = vld [vmem:[%s1206_s5 + $0xd0] sm:$0xff] }
  0xf2   : > { %808 = vst [vmem:[%s1238_s10 + $0x98] sm:$0xff] %v776_v4  ;;  %790 = vst [vmem:[%s1238_s10 + $0x8] sm:$0xff] %v758_v5  ;;  %v683_v21 = vadd.f32 %v1211_v19, %v646_v7  ;;  %v665_v22 = vadd.f32 %v1211_v19, %v628_v8  ;;  %v647_v25 = vmul.f32 %v1033_v18, %v1199_v17  ;;  %v575_v27 = vpop.f32.mrb[7].mxu1  ;;  %v701_v0 = vld [vmem:[%s1206_s5 + $0x40] sm:$0xff]  ;;  %v704_v8 = vld [vmem:[%s1206_s5 + $0x58] sm:$0xff] }
  0xf3   : > { %v629_v26 = vmul.f32 %v1199_v17, %v511_v20  ;;  %806 = vst [vmem:[%s1238_s10 + $0x88] sm:$0xff] %v774_v11  ;;  %v731_v28 = vadd.f32 %v699_v6, %v667_v12  ;;  %v681_v29 = vadd.f32 %v1211_v19, %v644_v15  ;;  %v668_v30 = vadd.f32 %v1211_v19, %v631_v16  ;;  %v717_v7 = vld [vmem:[%s1206_s5 + $0xc0] sm:$0xff]  ;;  %v720_v15 = vld [vmem:[%s1206_s5 + $0xd8] sm:$0xff]  ;;  %v702_v16 = vld [vmem:[%s1206_s5 + $0x48] sm:$0xff] }
  0xf4   : > { %v645_v33 = vmul.f32 %v1199_v17, %v575_v27  ;;  %v747_v34 = vadd.f32 %v715_v13, %v683_v21  ;;  %v729_v35 = vadd.f32 %v697_v14, %v665_v22  ;;  %v684_v36 = vadd.f32 %v1211_v19, %v647_v25 }
  0xf5   : > { %v666_v37 = vadd.f32 %v1211_v19, %v629_v26  ;;  %v763_v39 = vmax.f32 %v731_v28, 0.0  ;;  %v745_v40 = vadd.f32 %v713_v23, %v681_v29  ;;  %v732_v41 = vadd.f32 %v700_v24, %v668_v30  ;;  %v718_v24 = vld [vmem:[%s1206_s5 + $0xc8] sm:$0xff] }
  0xf6   : > { %v682_v42 = vadd.f32 %v1211_v19, %v645_v33  ;;  %v779_v43 = vmax.f32 %v747_v34, 0.0  ;;  %v761_v44 = vmax.f32 %v729_v35, 0.0  ;;  %v748_v45 = vadd.f32 %v716_v31, %v684_v36  ;;  %v1020_v47 = vpop.f32.mrb[8].mxu0 }
  0xf7   : > { %v730_v46 = vadd.f32 %v698_v32, %v666_v37  ;;  %795 = vst [vmem:[%s1238_s10 + $0x30] sm:$0xff] %v763_v39  ;;  %v777_v48 = vmax.f32 %v745_v40, 0.0  ;;  %v764_v49 = vmax.f32 %v732_v41, 0.0  ;;  %v634_v51 = vmul.f32 %v1020_v47, %v1199_v17  ;;  %v1036_v52 = vpop.f32.mrb[8].mxu1  ;;  %v524_v53 = vpop.f32.mrb[9].mxu0 }
  0xf8   : > { %v746_v50 = vadd.f32 %v714_v38, %v682_v42  ;;  %811 = vst [vmem:[%s1238_s10 + $0xb0] sm:$0xff] %v779_v43  ;;  %793 = vst [vmem:[%s1238_s10 + $0x20] sm:$0xff] %v761_v44  ;;  %v780_v54 = vmax.f32 %v748_v45, 0.0  ;;  %v650_v57 = vmul.f32 %v1036_v52, %v1199_v17  ;;  %v632_v58 = vmul.f32 %v1199_v17, %v524_v53  ;;  %v588_v59 = vpop.f32.mrb[9].mxu1  ;;  %v1021_v60 = vpop.f32.mrb[10].mxu0  ;;  %v707_v42 = vld [vmem:[%s1206_s5 + $0x70] sm:$0xff] }
  0xf9   : > { %v762_v55 = vmax.f32 %v730_v46, 0.0  ;;  %809 = vst [vmem:[%s1238_s10 + $0xa0] sm:$0xff] %v777_v48  ;;  %796 = vst [vmem:[%s1238_s10 + $0x38] sm:$0xff] %v764_v49  ;;  %v671_v62 = vadd.f32 %v1211_v19, %v634_v51  ;;  %v648_v1 = vmul.f32 %v1199_v17, %v588_v59  ;;  %v635_v2 = vmul.f32 %v1021_v60, %v1199_v17  ;;  %v1037_v3 = vpop.f32.mrb[10].mxu1  ;;  %v527_v4 = vpop.f32.mrb[11].mxu0  ;;  %v723_v49 = vld [vmem:[%s1206_s5 + $0xf0] sm:$0xff] }
  0xfa   : > { %v778_v61 = vmax.f32 %v746_v50, 0.0  ;;  %812 = vst [vmem:[%s1238_s10 + $0xb8] sm:$0xff] %v780_v54  ;;  %v687_v5 = vadd.f32 %v1211_v19, %v650_v57  ;;  %v669_v6 = vadd.f32 %v1211_v19, %v632_v58  ;;  %v651_v9 = vmul.f32 %v1037_v3, %v1199_v17  ;;  %v591_v11 = vpop.f32.mrb[11].mxu1  ;;  %v705_v50 = vld [vmem:[%s1206_s5 + $0x60] sm:$0xff]  ;;  %v708_v58 = vld [vmem:[%s1206_s5 + $0x78] sm:$0xff] }
  0xfb   : > { %794 = vst [vmem:[%s1238_s10 + $0x28] sm:$0xff] %v762_v55  ;;  %v633_v10 = vmul.f32 %v1199_v17, %v527_v4  ;;  %v735_v12 = vadd.f32 %v703_v56, %v671_v62  ;;  %v685_v13 = vadd.f32 %v1211_v19, %v648_v1  ;;  %v672_v14 = vadd.f32 %v1211_v19, %v635_v2  ;;  %v721_v57 = vld [vmem:[%s1206_s5 + $0xe0] sm:$0xff]  ;;  %v724_v1 = vld [vmem:[%s1206_s5 + $0xf8] sm:$0xff]  ;;  %v706_v2 = vld [vmem:[%s1206_s5 + $0x68] sm:$0xff] }
  0xfc   : > { %810 = vst [vmem:[%s1238_s10 + $0xa8] sm:$0xff] %v778_v61  ;;  %v649_v18 = vmul.f32 %v1199_v17, %v591_v11  ;;  %v751_v20 = vadd.f32 %v719_v63, %v687_v5  ;;  %v733_v21 = vadd.f32 %v701_v0, %v669_v6  ;;  %v688_v22 = vadd.f32 %v1211_v19, %v651_v9 }
  0xfd   : > { %v670_v23 = vadd.f32 %v1211_v19, %v633_v10  ;;  %v767_v25 = vmax.f32 %v735_v12, 0.0  ;;  %v749_v26 = vadd.f32 %v717_v7, %v685_v13  ;;  %v736_v27 = vadd.f32 %v704_v8, %v672_v14  ;;  %v722_v8 = vld [vmem:[%s1206_s5 + $0xe8] sm:$0xff] }
  0xfe   : > { %v686_v28 = vadd.f32 %v1211_v19, %v649_v18  ;;  %v783_v29 = vmax.f32 %v751_v20, 0.0  ;;  %v765_v30 = vmax.f32 %v733_v21, 0.0  ;;  %v752_v31 = vadd.f32 %v720_v15, %v688_v22  ;;  %v1024_v33 = vpop.f32.mrb[12].mxu0 }
  0xff   : > { %v734_v32 = vadd.f32 %v702_v16, %v670_v23  ;;  %799 = vst [vmem:[%s1238_s10 + $0x50] sm:$0xff] %v767_v25  ;;  %v781_v34 = vmax.f32 %v749_v26, 0.0  ;;  %v768_v35 = vmax.f32 %v736_v27, 0.0  ;;  %v638_v37 = vmul.f32 %v1024_v33, %v1199_v17  ;;  %v1040_v38 = vpop.f32.mrb[12].mxu1  ;;  %v540_v39 = vpop.f32.mrb[13].mxu0 }
 0x100   : > { %v750_v36 = vadd.f32 %v718_v24, %v686_v28  ;;  %815 = vst [vmem:[%s1238_s10 + $0xd0] sm:$0xff] %v783_v29  ;;  %797 = vst [vmem:[%s1238_s10 + $0x40] sm:$0xff] %v765_v30  ;;  %v784_v40 = vmax.f32 %v752_v31, 0.0  ;;  %v654_v43 = vmul.f32 %v1040_v38, %v1199_v17  ;;  %v636_v44 = vmul.f32 %v1199_v17, %v540_v39  ;;  %v604_v45 = vpop.f32.mrb[13].mxu1  ;;  %v1025_v46 = vpop.f32.mrb[14].mxu0 }
 0x101   : > { %v766_v41 = vmax.f32 %v734_v32, 0.0  ;;  %813 = vst [vmem:[%s1238_s10 + $0xc0] sm:$0xff] %v781_v34  ;;  %800 = vst [vmem:[%s1238_s10 + $0x58] sm:$0xff] %v768_v35  ;;  %v675_v48 = vadd.f32 %v1211_v19, %v638_v37  ;;  %v652_v51 = vmul.f32 %v1199_v17, %v604_v45  ;;  %v639_v52 = vmul.f32 %v1025_v46, %v1199_v17  ;;  %v1041_v53 = vpop.f32.mrb[14].mxu1  ;;  %v543_v54 = vpop.f32.mrb[15].mxu0 }
 0x102   : > { %v782_v47 = vmax.f32 %v750_v36, 0.0  ;;  %816 = vst [vmem:[%s1238_s10 + $0xd8] sm:$0xff] %v784_v40  ;;  %v691_v55 = vadd.f32 %v1211_v19, %v654_v43  ;;  %v673_v56 = vadd.f32 %v1211_v19, %v636_v44  ;;  %v655_v59 = vmul.f32 %v1041_v53, %v1199_v17  ;;  %v607_v61 = vpop.f32.mrb[15].mxu1 }
 0x103   : > { %798 = vst [vmem:[%s1238_s10 + $0x48] sm:$0xff] %v766_v41  ;;  %v637_v60 = vmul.f32 %v1199_v17, %v543_v54  ;;  %v739_v62 = vadd.f32 %v707_v42, %v675_v48  ;;  %v689_v63 = vadd.f32 %v1211_v19, %v652_v51  ;;  %v676_v0 = vadd.f32 %v1211_v19, %v639_v52 }
 0x104   : > { %814 = vst [vmem:[%s1238_s10 + $0xc8] sm:$0xff] %v782_v47  ;;  %v653_v3 = vmul.f32 %v1199_v17, %v607_v61  ;;  %v755_v4 = vadd.f32 %v723_v49, %v691_v55  ;;  %v737_v5 = vadd.f32 %v705_v50, %v673_v56  ;;  %v692_v6 = vadd.f32 %v1211_v19, %v655_v59 }
 0x105   : > { %v674_v7 = vadd.f32 %v1211_v19, %v637_v60  ;;  %v771_v9 = vmax.f32 %v739_v62, 0.0  ;;  %v753_v10 = vadd.f32 %v721_v57, %v689_v63  ;;  %v740_v11 = vadd.f32 %v708_v58, %v676_v0 }
 0x106   : > { %v690_v12 = vadd.f32 %v1211_v19, %v653_v3  ;;  %v787_v13 = vmax.f32 %v755_v4, 0.0  ;;  %v769_v17 = vmax.f32 %v737_v5, 0.0  ;;  %v756_v14 = vadd.f32 %v724_v1, %v692_v6 }
 0x107   : > { %v738_v15 = vadd.f32 %v706_v2, %v674_v7  ;;  %803 = vst [vmem:[%s1238_s10 + $0x70] sm:$0xff] %v771_v9  ;;  %v785_v16 = vmax.f32 %v753_v10, 0.0  ;;  %v772_v18 = vmax.f32 %v740_v11, 0.0 }
 0x108   : > { %v754_v20 = vadd.f32 %v722_v8, %v690_v12  ;;  %819 = vst [vmem:[%s1238_s10 + $0xf0] sm:$0xff] %v787_v13  ;;  %801 = vst [vmem:[%s1238_s10 + $0x60] sm:$0xff] %v769_v17  ;;  %v788_v21 = vmax.f32 %v756_v14, 0.0 }
 0x109   : > { %v770_v22 = vmax.f32 %v738_v15, 0.0  ;;  %817 = vst [vmem:[%s1238_s10 + $0xe0] sm:$0xff] %v785_v16  ;;  %804 = vst [vmem:[%s1238_s10 + $0x78] sm:$0xff] %v772_v18 }
 0x10a   : > { %v786_v23 = vmax.f32 %v754_v20, 0.0  ;;  %820 = vst [vmem:[%s1238_s10 + $0xf8] sm:$0xff] %v788_v21 }
 0x10b   : > { %802 = vst [vmem:[%s1238_s10 + $0x68] sm:$0xff] %v770_v22 }
 0x10c   : > { %818 = vst [vmem:[%s1238_s10 + $0xe8] sm:$0xff] %v786_v23 }
 0x10d PF: > { %s14_s17 = sadd.s32 1, %s1107_s17   ;;  %s1362_s15 = smov %s1103_s16 }
 0x10e   : > { %p11_p5 = scmp.ge.s32.totalorder %s14_s17, 4   ;;  %s1363_s16 = smov %s1365_s18 }
 0x110   :  { %13 = sbr.rel (!%p11_p5) target bundleno = 2 (0x2), region = 75 }

// kernel: image_encoder_forward.25
= control target key start
LH: loop header
LB: loop body
LE: loop exit
PB: predicated region body
PF: predicated region fallthrough
CT: control target
= control target key end

     0   :  { %s1003_s12 = smov 0   ;;  %s1005_s13 = smov 0   ;;  %s1188_s0 = inlined_call_operand.vmem [shape: bf16[512,32], index: 0, kind: input, shape index: {}]   ;;  %s1189_s1 = inlined_call_operand.vmem [shape: bf16[32,128], index: 1, kind: input, shape index: {}]   ;;  %s1190_s2 = inlined_call_operand.vmem [shape: f32[2,128], index: 2, kind: input, shape index: {}]   ;;  %s1191_s3 = inlined_call_operand.vmem [shape: f32[512,128], index: 3, kind: output, shape index: {}]  }
   0x1   :  { %s1007_s14 = smov 0  }
   0x2 LB: > { %s25_s15 = sadd.s32 1, %s977_s13  ;;  %p816_p0 = scmp.ge.s32.totalorder %s981_s14, 1  ;;  %s981_s14 = sphi %s1007_s14, %s13_s14   ;;  %s977_s13 = sphi %s1005_s13, %s1193_s13   ;;  %s973_s12 = sphi %s1003_s12, %s1192_s12  }
   0x3   : > { %p27_p1 = scmp.ge.s32.totalorder %s25_s15, 2  ;;  %p170_p2 = scmp.lt.s32.totalorder %s981_s14, 3 }
   0x5   : > { %s1195_s15 = smov (%p27_p1, %s25_s15), 0  ;;  %p171_p3 = pnand %p816_p0, %p170_p2 }
   0x6   : > { %v941_v0 = vld [vmem:[%s1189_s1] sm:$0xff] (!%p171_p3)   ;;  %s817_s18 = sshll.u32 (!%p171_p3), %s973_s12, 5  ;;  %v942_v1 = vld [vmem:[%s1189_s1 + $0x8] sm:$0xff] (!%p171_p3)   ;;  %vm357_vm0 = vcmask (!%p171_p3), 261120  }
   0x7   : > { %174 = sbr.rel (%p171_p3) target bundleno = 266 (0x10a), region = 32  ;;  %p206_p4 = scmp.lt.s32.totalorder (!%p171_p3), %s817_s18, 63  ;;  %877 = vmatprep.subr.bf16.mxu0 (!%p171_p3), %v941_v0  ;;  %913 = vmatprep.subr.bf16.mxu1 (!%p171_p3), %v941_v0  ;;  %v1070_v18 = vld [vmem:[%s1190_s2] ss:$0 sm:$0xff] (!%p171_p3)  ;;  %v1075_v20 = vld [vmem:[%s1190_s2 + $0x1] ss:$0 sm:$0xff] (!%p171_p3) }
   0x8   : > { %878 = vmatpush3.bf16.msra.mxu0 (!%p171_p3), %v941_v0  ;;  %915 = vmatpush3.bf16.msra.mxu1 (!%p171_p3), %v941_v0 }
   0x9   : > { %879 = vmatprep.subr.bf16.mxu0 (!%p171_p3), %v942_v1  ;;  %914 = vmatprep.subr.bf16.mxu1 (!%p171_p3), %v942_v1 }
   0xc   : > { %880 = vmatpush3.bf16.msra.mxu0 (!%p171_p3), %v942_v1  ;;  %916 = vmatpush3.bf16.msra.mxu1 (!%p171_p3), %v942_v1 }
   0xe   : > { %s1197_s18 = smov (!%p206_p4, %s817_s18), 63 }
   0xf   : > { %s818_s21 = sshll.u32 %s1197_s18, 2  ;;  %s820_s29 = sshll.u32 %s1197_s18, 3 }
  0x10   : > { %s1033_s24 = scalar_lea.vmem %s1188_s0, %s818_s21  ;;  %s1087_s5 = scalar_lea.vmem %s1191_s3, %s820_s29 }
  0x11   : > { %v943_v2 = vld [vmem:[%s1033_s24] sm:$0xff]   ;;  %v945_v4 = vld [vmem:[%s1033_s24 + $0x8] sm:$0xff]   ;;  %v947_v6 = vld [vmem:[%s1033_s24 + $0x10] sm:$0xff]  }
  0x12   : > { %v944_v3 = vld [vmem:[%s1033_s24 + $0x40] sm:$0xff]   ;;  %881 = vmatprep.mubr.msk.bf16.mxu0 %vm357_vm0, %v943_v2  ;;  %v946_v5 = vld [vmem:[%s1033_s24 + $0x48] sm:$0xff]   ;;  %v948_v7 = vld [vmem:[%s1033_s24 + $0x50] sm:$0xff]  }
  0x13   : > { %897 = vmatprep.mubr.msk.bf16.mxu1 %vm357_vm0, %v944_v3  ;;  %882 = vmatmul.mubr.msk.bf16.vlgmr.msra.gmra.mrb[0].mxu0 %vm357_vm0, %v945_v4  ;;  %v949_v8 = vld [vmem:[%s1033_s24 + $0x18] sm:$0xff]   ;;  %v951_v10 = vld [vmem:[%s1033_s24 + $0x20] sm:$0xff]   ;;  %v953_v12 = vld [vmem:[%s1033_s24 + $0x28] sm:$0xff]  }
  0x14   : > { %898 = vmatmul.mubr.msk.bf16.vlgmr.msra.gmra.mrb[0].mxu1 %vm357_vm0, %v946_v5  ;;  %885 = vmatprep.mubr.msk.bf16.mxu0 %vm357_vm0, %v947_v6  ;;  %v950_v9 = vld [vmem:[%s1033_s24 + $0x58] sm:$0xff]   ;;  %v952_v11 = vld [vmem:[%s1033_s24 + $0x60] sm:$0xff]   ;;  %v954_v13 = vld [vmem:[%s1033_s24 + $0x68] sm:$0xff]  }
  0x15   : > { %901 = vmatprep.mubr.msk.bf16.mxu1 %vm357_vm0, %v948_v7  ;;  %v955_v14 = vld [vmem:[%s1033_s24 + $0x30] sm:$0xff]   ;;  %v957_v16 = vld [vmem:[%s1033_s24 + $0x38] sm:$0xff]  }
  0x16   : > { %v956_v15 = vld [vmem:[%s1033_s24 + $0x70] sm:$0xff]   ;;  %v958_v17 = vld [vmem:[%s1033_s24 + $0x78] sm:$0xff]  }
  0x1b   : > { %886 = vmatmul.mubr.msk.bf16.gmra.mrb[4].mxu0 %vm357_vm0, %v949_v8 }
  0x1c   : > { %902 = vmatmul.mubr.msk.bf16.gmra.mrb[4].mxu1 %vm357_vm0, %v950_v9  ;;  %889 = vmatprep.mubr.msk.bf16.mxu0 %vm357_vm0, %v951_v10 }
  0x1d   : > { %905 = vmatprep.mubr.msk.bf16.mxu1 %vm357_vm0, %v952_v11 }
  0x23   : > { %890 = vmatmul.mubr.msk.bf16.gmra.mrb[8].mxu0 %vm357_vm0, %v953_v12 }
  0x24   : > { %906 = vmatmul.mubr.msk.bf16.gmra.mrb[8].mxu1 %vm357_vm0, %v954_v13  ;;  %893 = vmatprep.mubr.msk.bf16.mxu0 %vm357_vm0, %v955_v14 }
  0x25   : > { %909 = vmatprep.mubr.msk.bf16.mxu1 %vm357_vm0, %v956_v15 }
  0x2b   : > { %894 = vmatmul.mubr.msk.bf16.gmra.mrb[12].mxu0 %vm357_vm0, %v957_v16 }
  0x2c   : > { %910 = vmatmul.mubr.msk.bf16.gmra.mrb[12].mxu1 %vm357_vm0, %v958_v17 }
  0xe6   : > { %v883_v19 = vpop.f32.mrb[0].mxu0 }
  0xe7   : > { %v574_v21 = vmul.f32 %v883_v19, %v1070_v18  ;;  %v899_v22 = vpop.f32.mrb[0].mxu1  ;;  %v440_v23 = vpop.f32.mrb[1].mxu0 }
  0xe8   : > { %v590_v24 = vmul.f32 %v899_v22, %v1070_v18  ;;  %v572_v25 = vmul.f32 %v1070_v18, %v440_v23  ;;  %v504_v26 = vpop.f32.mrb[1].mxu1  ;;  %v884_v27 = vpop.f32.mrb[2].mxu0 }
  0xe9   : > { %v611_v28 = vadd.f32 %v1075_v20, %v574_v21  ;;  %v588_v29 = vmul.f32 %v1070_v18, %v504_v26  ;;  %v575_v30 = vmul.f32 %v884_v27, %v1070_v18  ;;  %v900_v31 = vpop.f32.mrb[2].mxu1  ;;  %v443_v32 = vpop.f32.mrb[3].mxu0 }
  0xea   : > { %v627_v33 = vadd.f32 %v1075_v20, %v590_v24  ;;  %v609_v34 = vadd.f32 %v1075_v20, %v572_v25  ;;  %v591_v35 = vmul.f32 %v900_v31, %v1070_v18  ;;  %v573_v36 = vmul.f32 %v1070_v18, %v443_v32  ;;  %v507_v37 = vpop.f32.mrb[3].mxu1 }
  0xeb   : > { %v643_v38 = vmax.f32 %v611_v28, 0.0  ;;  %v625_v39 = vadd.f32 %v1075_v20, %v588_v29  ;;  %v612_v40 = vadd.f32 %v1075_v20, %v575_v30  ;;  %v589_v41 = vmul.f32 %v1070_v18, %v507_v37 }
  0xec   : > { %v659_v42 = vmax.f32 %v627_v33, 0.0  ;;  %v641_v43 = vmax.f32 %v609_v34, 0.0  ;;  %v628_v44 = vadd.f32 %v1075_v20, %v591_v35  ;;  %v610_v45 = vadd.f32 %v1075_v20, %v573_v36 }
  0xed   : > { %675 = vst [vmem:[%s1087_s5 + $0x10] sm:$0xff] %v643_v38  ;;  %v657_v46 = vmax.f32 %v625_v39, 0.0  ;;  %v644_v47 = vmax.f32 %v612_v40, 0.0  ;;  %v626_v48 = vadd.f32 %v1075_v20, %v589_v41 }
  0xee   : > { %691 = vst [vmem:[%s1087_s5 + $0x90] sm:$0xff] %v659_v42  ;;  %673 = vst [vmem:[%s1087_s5] sm:$0xff] %v641_v43  ;;  %v660_v49 = vmax.f32 %v628_v44, 0.0  ;;  %v642_v50 = vmax.f32 %v610_v45, 0.0  ;;  %v887_v51 = vpop.f32.mrb[4].mxu0 }
  0xef   : > { %689 = vst [vmem:[%s1087_s5 + $0x80] sm:$0xff] %v657_v46  ;;  %676 = vst [vmem:[%s1087_s5 + $0x18] sm:$0xff] %v644_v47  ;;  %v658_v52 = vmax.f32 %v626_v48, 0.0  ;;  %v578_v53 = vmul.f32 %v887_v51, %v1070_v18  ;;  %v903_v54 = vpop.f32.mrb[4].mxu1  ;;  %v456_v55 = vpop.f32.mrb[5].mxu0 }
  0xf0   : > { %692 = vst [vmem:[%s1087_s5 + $0x98] sm:$0xff] %v660_v49  ;;  %674 = vst [vmem:[%s1087_s5 + $0x8] sm:$0xff] %v642_v50  ;;  %v594_v56 = vmul.f32 %v903_v54, %v1070_v18  ;;  %v576_v57 = vmul.f32 %v1070_v18, %v456_v55  ;;  %v520_v58 = vpop.f32.mrb[5].mxu1  ;;  %v888_v59 = vpop.f32.mrb[6].mxu0 }
  0xf1   : > { %690 = vst [vmem:[%s1087_s5 + $0x88] sm:$0xff] %v658_v52  ;;  %v615_v60 = vadd.f32 %v1075_v20, %v578_v53  ;;  %v592_v61 = vmul.f32 %v1070_v18, %v520_v58  ;;  %v579_v62 = vmul.f32 %v888_v59, %v1070_v18  ;;  %v904_v63 = vpop.f32.mrb[6].mxu1  ;;  %v459_v0 = vpop.f32.mrb[7].mxu0 }
  0xf2   : > { %v631_v1 = vadd.f32 %v1075_v20, %v594_v56  ;;  %v613_v2 = vadd.f32 %v1075_v20, %v576_v57  ;;  %v595_v3 = vmul.f32 %v904_v63, %v1070_v18  ;;  %v577_v4 = vmul.f32 %v1070_v18, %v459_v0  ;;  %v523_v5 = vpop.f32.mrb[7].mxu1 }
  0xf3   : > { %v647_v6 = vmax.f32 %v615_v60, 0.0  ;;  %v629_v7 = vadd.f32 %v1075_v20, %v592_v61  ;;  %v616_v8 = vadd.f32 %v1075_v20, %v579_v62  ;;  %v593_v9 = vmul.f32 %v1070_v18, %v523_v5 }
  0xf4   : > { %v663_v10 = vmax.f32 %v631_v1, 0.0  ;;  %v645_v11 = vmax.f32 %v613_v2, 0.0  ;;  %v632_v12 = vadd.f32 %v1075_v20, %v595_v3  ;;  %v614_v13 = vadd.f32 %v1075_v20, %v577_v4 }
  0xf5   : > { %679 = vst [vmem:[%s1087_s5 + $0x30] sm:$0xff] %v647_v6  ;;  %v661_v14 = vmax.f32 %v629_v7, 0.0  ;;  %v648_v15 = vmax.f32 %v616_v8, 0.0  ;;  %v630_v16 = vadd.f32 %v1075_v20, %v593_v9 }
  0xf6   : > { %695 = vst [vmem:[%s1087_s5 + $0xb0] sm:$0xff] %v663_v10  ;;  %677 = vst [vmem:[%s1087_s5 + $0x20] sm:$0xff] %v645_v11  ;;  %v664_v17 = vmax.f32 %v632_v12, 0.0  ;;  %v646_v19 = vmax.f32 %v614_v13, 0.0  ;;  %v891_v21 = vpop.f32.mrb[8].mxu0 }
  0xf7   : > { %693 = vst [vmem:[%s1087_s5 + $0xa0] sm:$0xff] %v661_v14  ;;  %680 = vst [vmem:[%s1087_s5 + $0x38] sm:$0xff] %v648_v15  ;;  %v662_v22 = vmax.f32 %v630_v16, 0.0  ;;  %v582_v23 = vmul.f32 %v891_v21, %v1070_v18  ;;  %v907_v24 = vpop.f32.mrb[8].mxu1  ;;  %v472_v25 = vpop.f32.mrb[9].mxu0 }
  0xf8   : > { %696 = vst [vmem:[%s1087_s5 + $0xb8] sm:$0xff] %v664_v17  ;;  %678 = vst [vmem:[%s1087_s5 + $0x28] sm:$0xff] %v646_v19  ;;  %v598_v26 = vmul.f32 %v907_v24, %v1070_v18  ;;  %v580_v27 = vmul.f32 %v1070_v18, %v472_v25  ;;  %v536_v28 = vpop.f32.mrb[9].mxu1  ;;  %v892_v29 = vpop.f32.mrb[10].mxu0 }
  0xf9   : > { %694 = vst [vmem:[%s1087_s5 + $0xa8] sm:$0xff] %v662_v22  ;;  %v619_v30 = vadd.f32 %v1075_v20, %v582_v23  ;;  %v596_v31 = vmul.f32 %v1070_v18, %v536_v28  ;;  %v583_v32 = vmul.f32 %v892_v29, %v1070_v18  ;;  %v908_v33 = vpop.f32.mrb[10].mxu1  ;;  %v475_v34 = vpop.f32.mrb[11].mxu0 }
  0xfa   : > { %v635_v35 = vadd.f32 %v1075_v20, %v598_v26  ;;  %v617_v36 = vadd.f32 %v1075_v20, %v580_v27  ;;  %v599_v37 = vmul.f32 %v908_v33, %v1070_v18  ;;  %v581_v38 = vmul.f32 %v1070_v18, %v475_v34  ;;  %v539_v39 = vpop.f32.mrb[11].mxu1 }
  0xfb   : > { %v651_v40 = vmax.f32 %v619_v30, 0.0  ;;  %v633_v41 = vadd.f32 %v1075_v20, %v596_v31  ;;  %v620_v42 = vadd.f32 %v1075_v20, %v583_v32  ;;  %v597_v43 = vmul.f32 %v1070_v18, %v539_v39 }
  0xfc   : > { %v667_v44 = vmax.f32 %v635_v35, 0.0  ;;  %v649_v45 = vmax.f32 %v617_v36, 0.0  ;;  %v636_v46 = vadd.f32 %v1075_v20, %v599_v37  ;;  %v618_v47 = vadd.f32 %v1075_v20, %v581_v38 }
  0xfd   : > { %683 = vst [vmem:[%s1087_s5 + $0x50] sm:$0xff] %v651_v40  ;;  %v665_v48 = vmax.f32 %v633_v41, 0.0  ;;  %v652_v49 = vmax.f32 %v620_v42, 0.0  ;;  %v634_v50 = vadd.f32 %v1075_v20, %v597_v43 }
  0xfe   : > { %699 = vst [vmem:[%s1087_s5 + $0xd0] sm:$0xff] %v667_v44  ;;  %681 = vst [vmem:[%s1087_s5 + $0x40] sm:$0xff] %v649_v45  ;;  %v668_v51 = vmax.f32 %v636_v46, 0.0  ;;  %v650_v52 = vmax.f32 %v618_v47, 0.0  ;;  %v895_v53 = vpop.f32.mrb[12].mxu0 }
  0xff   : > { %697 = vst [vmem:[%s1087_s5 + $0xc0] sm:$0xff] %v665_v48  ;;  %684 = vst [vmem:[%s1087_s5 + $0x58] sm:$0xff] %v652_v49  ;;  %v666_v54 = vmax.f32 %v634_v50, 0.0  ;;  %v586_v55 = vmul.f32 %v895_v53, %v1070_v18  ;;  %v911_v56 = vpop.f32.mrb[12].mxu1  ;;  %v488_v57 = vpop.f32.mrb[13].mxu0 }
 0x100   : > { %700 = vst [vmem:[%s1087_s5 + $0xd8] sm:$0xff] %v668_v51  ;;  %682 = vst [vmem:[%s1087_s5 + $0x48] sm:$0xff] %v650_v52  ;;  %v602_v58 = vmul.f32 %v911_v56, %v1070_v18  ;;  %v584_v59 = vmul.f32 %v1070_v18, %v488_v57  ;;  %v552_v60 = vpop.f32.mrb[13].mxu1  ;;  %v896_v61 = vpop.f32.mrb[14].mxu0 }
 0x101   : > { %698 = vst [vmem:[%s1087_s5 + $0xc8] sm:$0xff] %v666_v54  ;;  %v623_v62 = vadd.f32 %v1075_v20, %v586_v55  ;;  %v600_v63 = vmul.f32 %v1070_v18, %v552_v60  ;;  %v587_v0 = vmul.f32 %v896_v61, %v1070_v18  ;;  %v912_v1 = vpop.f32.mrb[14].mxu1  ;;  %v491_v2 = vpop.f32.mrb[15].mxu0 }
 0x102   : > { %v639_v3 = vadd.f32 %v1075_v20, %v602_v58  ;;  %v621_v4 = vadd.f32 %v1075_v20, %v584_v59  ;;  %v603_v5 = vmul.f32 %v912_v1, %v1070_v18  ;;  %v585_v6 = vmul.f32 %v1070_v18, %v491_v2  ;;  %v555_v7 = vpop.f32.mrb[15].mxu1 }
 0x103   : > { %v655_v8 = vmax.f32 %v623_v62, 0.0  ;;  %v637_v9 = vadd.f32 %v1075_v20, %v600_v63  ;;  %v624_v10 = vadd.f32 %v1075_v20, %v587_v0  ;;  %v601_v11 = vmul.f32 %v1070_v18, %v555_v7 }
 0x104   : > { %v671_v12 = vmax.f32 %v639_v3, 0.0  ;;  %v653_v13 = vmax.f32 %v621_v4, 0.0  ;;  %v640_v14 = vadd.f32 %v1075_v20, %v603_v5  ;;  %v622_v15 = vadd.f32 %v1075_v20, %v585_v6 }
 0x105   : > { %687 = vst [vmem:[%s1087_s5 + $0x70] sm:$0xff] %v655_v8  ;;  %v669_v16 = vmax.f32 %v637_v9, 0.0  ;;  %v656_v17 = vmax.f32 %v624_v10, 0.0  ;;  %v638_v19 = vadd.f32 %v1075_v20, %v601_v11 }
 0x106   : > { %703 = vst [vmem:[%s1087_s5 + $0xf0] sm:$0xff] %v671_v12  ;;  %685 = vst [vmem:[%s1087_s5 + $0x60] sm:$0xff] %v653_v13  ;;  %v672_v21 = vmax.f32 %v640_v14, 0.0  ;;  %v654_v22 = vmax.f32 %v622_v15, 0.0 }
 0x107   : > { %701 = vst [vmem:[%s1087_s5 + $0xe0] sm:$0xff] %v669_v16  ;;  %688 = vst [vmem:[%s1087_s5 + $0x78] sm:$0xff] %v656_v17  ;;  %v670_v18 = vmax.f32 %v638_v19, 0.0 }
 0x108   : > { %704 = vst [vmem:[%s1087_s5 + $0xf8] sm:$0xff] %v672_v21  ;;  %686 = vst [vmem:[%s1087_s5 + $0x68] sm:$0xff] %v654_v22 }
 0x109   : > { %702 = vst [vmem:[%s1087_s5 + $0xe8] sm:$0xff] %v670_v18 }
 0x10a PF: > { %s13_s14 = sadd.s32 1, %s981_s14   ;;  %s1192_s12 = smov %s977_s13 }
 0x10b   : > { %p10_p5 = scmp.ge.s32.totalorder %s13_s14, 4   ;;  %s1193_s13 = smov %s1195_s15 }
 0x10d   :  { %12 = sbr.rel (!%p10_p5) target bundleno = 2 (0x2), region = 68 }

// kernel: image_encoder_forward.26
= control target key start
LH: loop header
LB: loop body
LE: loop exit
PB: predicated region body
PF: predicated region fallthrough
CT: control target
= control target key end

     0   :  { %s720_s12 = smov 0   ;;  %s722_s13 = smov 0   ;;  %s817_s0 = inlined_call_operand.vmem [shape: bf16[128,144], index: 0, kind: input, shape index: {}]   ;;  %s818_s1 = inlined_call_operand.vmem [shape: bf16[144,128], index: 1, kind: input, shape index: {}]   ;;  %s819_s2 = inlined_call_operand.vmem [shape: f32[2,128], index: 2, kind: input, shape index: {}]   ;;  %s820_s3 = inlined_call_operand.vmem [shape: f32[128,128], index: 3, kind: output, shape index: {}]  }
   0x1   :  { %s724_s14 = smov 0  }
   0x2 LB: > { %s25_s15 = sadd.s32 1, %s693_s13  ;;  %p579_p0 = scmp.ge.s32.totalorder %s697_s14, 1  ;;  %s697_s14 = sphi %s724_s14, %s13_s14   ;;  %s693_s13 = sphi %s722_s13, %s822_s13   ;;  %s689_s12 = sphi %s720_s12, %s821_s12  }
   0x3   : > { %p27_p1 = scmp.ge.s32.totalorder %s25_s15, 2  ;;  %p171_p2 = scmp.lt.s32.totalorder %s697_s14, 3 }
   0x5   : > { %s824_s15 = smov (%p27_p1, %s25_s15), 0  ;;  %p172_p3 = pnand %p579_p0, %p171_p2 }
   0x6   : > { %v654_v0 = vld [vmem:[%s818_s1] sm:$0xff] (!%p172_p3)   ;;  %v699_v1 = vmov (!%p172_p3), 0   ;;  %s580_s18 = sshll.u32 (!%p172_p3), %s689_s12, 3  ;;  %v655_v2 = vld [vmem:[%s818_s1 + $0x8] sm:$0xff] (!%p172_p3)   ;;  %v656_v3 = vld [vmem:[%s818_s1 + $0x10] sm:$0xff] (!%p172_p3)   ;;  %vm348_vm0 = vcmask (!%p172_p3), 130048  }
   0x7   : > { %175 = sbr.rel (%p172_p3) target bundleno = 272 (0x110), region = 32  ;;  %361 = vmatprep.subr.bf16.mxu0 (!%p172_p3), %v699_v1  ;;  %611 = vmatprep.subr.bf16.mxu1 (!%p172_p3), %v699_v1  ;;  %p208_p4 = scmp.lt.s32.totalorder (!%p172_p3), %s580_s18, 15  ;;  %v657_v4 = vld [vmem:[%s818_s1 + $0x18] sm:$0xff] (!%p172_p3)   ;;  %v658_v7 = vld [vmem:[%s818_s1 + $0x20] sm:$0xff] (!%p172_p3)   ;;  %v659_v8 = vld [vmem:[%s818_s1 + $0x28] sm:$0xff] (!%p172_p3)  }
   0x8   : > { %362 = vmatpush1.bf16.msra.mxu0 (!%p172_p3), %v654_v0  ;;  %620 = vmatpush1.bf16.msra.mxu1 (!%p172_p3), %v654_v0  ;;  %v660_v9 = vld [vmem:[%s818_s1 + $0x30] sm:$0xff] (!%p172_p3)   ;;  %v661_v10 = vld [vmem:[%s818_s1 + $0x38] sm:$0xff] (!%p172_p3)   ;;  %v662_v11 = vld [vmem:[%s818_s1 + $0x40] sm:$0xff] (!%p172_p3)  }
   0x9   : > { %363 = vmatprep.subr.bf16.mxu0 (!%p172_p3), %v699_v1  ;;  %612 = vmatprep.subr.bf16.mxu1 (!%p172_p3), %v699_v1  ;;  %v606_v18 = vld [vmem:[%s819_s2] ss:$0 sm:$0xff] (!%p172_p3)  ;;  %v607_v20 = vld [vmem:[%s819_s2 + $0x1] ss:$0 sm:$0xff] (!%p172_p3) }
   0xc   : > { %364 = vmatpush1.bf16.msra.mxu0 (!%p172_p3), %v655_v2  ;;  %621 = vmatpush1.bf16.msra.mxu1 (!%p172_p3), %v655_v2 }
   0xd   : > { %365 = vmatprep.subr.bf16.mxu0 (!%p172_p3), %v699_v1  ;;  %613 = vmatprep.subr.bf16.mxu1 (!%p172_p3), %v699_v1 }
   0xe   : > { %s826_s18 = smov (!%p208_p4, %s580_s18), 15 }
   0xf   : > { %s610_s23 = sshll.u32 %s826_s18, 3 }
  0x10   : > { %s755_s26 = scalar_lea.vmem %s817_s0, %s610_s23  ;;  %366 = vmatpush1.bf16.msra.mxu0 %v656_v3  ;;  %622 = vmatpush1.bf16.msra.mxu1 %v656_v3  ;;  %s798_s22 = scalar_lea.vmem %s820_s3, %s610_s23 }
  0x11   : > { %v665_v5 = vld [vmem:[%s755_s26 + $0x4] ss:$8 sps:$4 sm:$0xff]   ;;  %367 = vmatprep.subr.bf16.mxu0 %v699_v1  ;;  %614 = vmatprep.subr.bf16.mxu1 %v699_v1  ;;  %v663_v12 = vld [vmem:[%s755_s26] ss:$8 sps:$4 sm:$0xff]   ;;  %v669_v14 = vld [vmem:[%s755_s26 + $0x14] ss:$8 sps:$4 sm:$0xff]  }
  0x12   : > { %v668_v6 = vld [vmem:[%s755_s26 + $0x24] ss:$8 sps:$4 sm:$0xff]   ;;  %602 = vmatprep.mubr.msk.bf16.mxu0 %vm348_vm0, %v665_v5  ;;  %v666_v13 = vld [vmem:[%s755_s26 + $0x20] ss:$8 sps:$4 sm:$0xff]   ;;  %v671_v15 = vld [vmem:[%s755_s26 + $0x34] ss:$8 sps:$4 sm:$0xff]  }
  0x13   : > { %604 = vmatprep.mubr.msk.bf16.mxu1 %vm348_vm0, %v668_v6  ;;  %v673_v16 = vld [vmem:[%s755_s26 + $0x10] ss:$8 sps:$4 sm:$0xff]  }
  0x14   : > { %368 = vmatpush1.bf16.msra.mxu0 %v657_v4  ;;  %623 = vmatpush1.bf16.msra.mxu1 %v657_v4  ;;  %v674_v17 = vld [vmem:[%s755_s26 + $0x30] ss:$8 sps:$4 sm:$0xff]  }
  0x15   : > { %369 = vmatprep.subr.bf16.mxu0 %v699_v1  ;;  %615 = vmatprep.subr.bf16.mxu1 %v699_v1 }
  0x18   : > { %370 = vmatpush1.bf16.msra.mxu0 %v658_v7  ;;  %624 = vmatpush1.bf16.msra.mxu1 %v658_v7 }
  0x19   : > { %371 = vmatprep.subr.bf16.mxu0 %v699_v1  ;;  %616 = vmatprep.subr.bf16.mxu1 %v699_v1 }
  0x1c   : > { %372 = vmatpush1.bf16.msra.mxu0 %v659_v8  ;;  %625 = vmatpush1.bf16.msra.mxu1 %v659_v8 }
  0x1d   : > { %373 = vmatprep.subr.bf16.mxu0 %v699_v1  ;;  %617 = vmatprep.subr.bf16.mxu1 %v699_v1 }
  0x20   : > { %374 = vmatpush1.bf16.msra.mxu0 %v660_v9  ;;  %626 = vmatpush1.bf16.msra.mxu1 %v660_v9 }
  0x21   : > { %375 = vmatprep.subr.bf16.mxu0 %v699_v1  ;;  %618 = vmatprep.subr.bf16.mxu1 %v699_v1 }
  0x24   : > { %376 = vmatpush1.bf16.msra.mxu0 %v661_v10  ;;  %627 = vmatpush1.bf16.msra.mxu1 %v661_v10 }
  0x25   : > { %377 = vmatprep.subr.bf16.mxu0 %v699_v1  ;;  %619 = vmatprep.subr.bf16.mxu1 %v699_v1 }
  0x28   : > { %378 = vmatpush1.bf16.msra.mxu0 %v662_v11  ;;  %628 = vmatpush1.bf16.msra.mxu1 %v662_v11 }
  0x2b   : > { %394 = vmatmul.mubr.bf16.vlgmr.msra.gmra.mrb[0].mxu0 %v663_v12  ;;  %410 = vmatmul.mubr.bf16.vlgmr.msra.gmra.mrb[0].mxu1 %v666_v13 }
  0x2c   : > { %603 = vmatprep.mubr.msk.bf16.mxu0 %vm348_vm0, %v669_v14  ;;  %605 = vmatprep.mubr.msk.bf16.mxu1 %vm348_vm0, %v671_v15 }
  0x33   : > { %402 = vmatmul.mubr.bf16.gmra.mrb[4].mxu0 %v673_v16  ;;  %418 = vmatmul.mubr.bf16.gmra.mrb[4].mxu1 %v674_v17 }
  0xfe   : > { %v395_v19 = vpop.f32.mrb[0].mxu0  ;;  %v411_v21 = vpop.f32.mrb[0].mxu1 }
  0xff   : > { %v431_v22 = vmul.f32 %v606_v18, %v395_v19  ;;  %v435_v23 = vmul.f32 %v606_v18, %v411_v21  ;;  %v397_v24 = vpop.f32.mrb[1].mxu0  ;;  %v413_v25 = vpop.f32.mrb[1].mxu1 }
 0x100   : > { %v398_v26 = vpop.f32.mrb[2].mxu0  ;;  %v414_v27 = vpop.f32.mrb[2].mxu1 }
 0x101   : > { %v444_v28 = vadd.f32 %v607_v20, %v431_v22  ;;  %v448_v29 = vadd.f32 %v607_v20, %v435_v23  ;;  %v432_v30 = vmul.f32 %v606_v18, %v398_v26  ;;  %v436_v31 = vmul.f32 %v606_v18, %v414_v27  ;;  %v400_v32 = vpop.f32.mrb[3].mxu0  ;;  %v416_v33 = vpop.f32.mrb[3].mxu1 }
 0x103   : > { %v452_v34 = vmax.f32 %v444_v28, 0.0  ;;  %v456_v35 = vmax.f32 %v448_v29, 0.0  ;;  %v445_v36 = vadd.f32 %v607_v20, %v432_v30  ;;  %v449_v37 = vadd.f32 %v607_v20, %v436_v31 }
 0x105   : > { %460 = vst [vmem:[%s798_s22] sm:$0xff] %v452_v34  ;;  %464 = vst [vmem:[%s798_s22 + $0x20] sm:$0xff] %v456_v35  ;;  %v453_v38 = vmax.f32 %v445_v36, 0.0  ;;  %v457_v39 = vmax.f32 %v449_v37, 0.0 }
 0x106   : > { %v403_v40 = vpop.f32.mrb[4].mxu0  ;;  %v419_v41 = vpop.f32.mrb[4].mxu1 }
 0x107   : > { %461 = vst [vmem:[%s798_s22 + $0x8] sm:$0xff] %v453_v38  ;;  %465 = vst [vmem:[%s798_s22 + $0x28] sm:$0xff] %v457_v39  ;;  %v433_v42 = vmul.f32 %v606_v18, %v403_v40  ;;  %v437_v43 = vmul.f32 %v606_v18, %v419_v41  ;;  %v405_v44 = vpop.f32.mrb[5].mxu0  ;;  %v421_v45 = vpop.f32.mrb[5].mxu1 }
 0x108   : > { %v406_v46 = vpop.f32.mrb[6].mxu0  ;;  %v422_v47 = vpop.f32.mrb[6].mxu1 }
 0x109   : > { %v446_v48 = vadd.f32 %v607_v20, %v433_v42  ;;  %v450_v49 = vadd.f32 %v607_v20, %v437_v43  ;;  %v434_v50 = vmul.f32 %v606_v18, %v406_v46  ;;  %v438_v51 = vmul.f32 %v606_v18, %v422_v47  ;;  %v408_v52 = vpop.f32.mrb[7].mxu0  ;;  %v424_v53 = vpop.f32.mrb[7].mxu1 }
 0x10b   : > { %v454_v54 = vmax.f32 %v446_v48, 0.0  ;;  %v458_v55 = vmax.f32 %v450_v49, 0.0  ;;  %v447_v56 = vadd.f32 %v607_v20, %v434_v50  ;;  %v451_v57 = vadd.f32 %v607_v20, %v438_v51 }
 0x10d   : > { %462 = vst [vmem:[%s798_s22 + $0x10] sm:$0xff] %v454_v54  ;;  %466 = vst [vmem:[%s798_s22 + $0x30] sm:$0xff] %v458_v55  ;;  %v455_v58 = vmax.f32 %v447_v56, 0.0  ;;  %v459_v59 = vmax.f32 %v451_v57, 0.0 }
 0x10f   : > { %463 = vst [vmem:[%s798_s22 + $0x18] sm:$0xff] %v455_v58  ;;  %467 = vst [vmem:[%s798_s22 + $0x38] sm:$0xff] %v459_v59 }
 0x110 PF: > { %s13_s14 = sadd.s32 1, %s697_s14   ;;  %s821_s12 = smov %s693_s13 }
 0x111   : > { %p10_p5 = scmp.ge.s32.totalorder %s13_s14, 4   ;;  %s822_s13 = smov %s824_s15 }
 0x113   :  { %12 = sbr.rel (!%p10_p5) target bundleno = 2 (0x2), region = 68 }

// kernel: image_encoder_forward.27
= control target key start
LH: loop header
LB: loop body
LE: loop exit
PB: predicated region body
PF: predicated region fallthrough
CT: control target
= control target key end

     0   :  { %s611_s12 = smov 0   ;;  %s613_s13 = smov 0   ;;  %s656_s0 = inlined_call_operand.vmem [shape: bf16[128,32], index: 0, kind: input, shape index: {}]   ;;  %s657_s1 = inlined_call_operand.vmem [shape: bf16[32,128], index: 1, kind: input, shape index: {}]   ;;  %s658_s2 = inlined_call_operand.vmem [shape: f32[2,128], index: 2, kind: input, shape index: {}]   ;;  %s659_s3 = inlined_call_operand.vmem [shape: f32[128,128], index: 3, kind: output, shape index: {}]  }
   0x1   :  { %s615_s14 = smov 0  }
   0x2 LB: > { %s25_s15 = sadd.s32 1, %s585_s13  ;;  %p496_p0 = scmp.ge.s32.totalorder %s589_s14, 1  ;;  %s589_s14 = sphi %s615_s14, %s13_s14   ;;  %s585_s13 = sphi %s613_s13, %s661_s13   ;;  %s581_s12 = sphi %s611_s12, %s660_s12  }
   0x3   : > { %p27_p1 = scmp.ge.s32.totalorder %s25_s15, 2  ;;  %p170_p2 = scmp.lt.s32.totalorder %s589_s14, 3 }
   0x5   : > { %s663_s15 = smov (%p27_p1, %s25_s15), 0  ;;  %p171_p3 = pnand %p496_p0, %p170_p2 }
   0x6   : > { %v561_v0 = vld [vmem:[%s657_s1] sm:$0xff] (!%p171_p3)   ;;  %s497_s18 = sshll.u32 (!%p171_p3), %s581_s12, 3  ;;  %v562_v1 = vld [vmem:[%s657_s1 + $0x8] sm:$0xff] (!%p171_p3)   ;;  %vm273_vm0 = vcmask (!%p171_p3), 261120  }
   0x7   : > { %174 = sbr.rel (%p171_p3) target bundleno = 239 (0xef), region = 32  ;;  %p206_p4 = scmp.lt.s32.totalorder (!%p171_p3), %s497_s18, 15  ;;  %521 = vmatprep.subr.bf16.mxu0 (!%p171_p3), %v561_v0  ;;  %533 = vmatprep.subr.bf16.mxu1 (!%p171_p3), %v561_v0  ;;  %v511_v6 = vld [vmem:[%s658_s2] ss:$0 sm:$0xff] (!%p171_p3)  ;;  %v512_v8 = vld [vmem:[%s658_s2 + $0x1] ss:$0 sm:$0xff] (!%p171_p3) }
   0x8   : > { %522 = vmatpush3.bf16.msra.mxu0 (!%p171_p3), %v561_v0  ;;  %535 = vmatpush3.bf16.msra.mxu1 (!%p171_p3), %v561_v0 }
   0x9   : > { %523 = vmatprep.subr.bf16.mxu0 (!%p171_p3), %v562_v1  ;;  %534 = vmatprep.subr.bf16.mxu1 (!%p171_p3), %v562_v1 }
   0xc   : > { %524 = vmatpush3.bf16.msra.mxu0 (!%p171_p3), %v562_v1  ;;  %536 = vmatpush3.bf16.msra.mxu1 (!%p171_p3), %v562_v1 }
   0xe   : > { %s665_s18 = smov (!%p206_p4, %s497_s18), 15 }
   0xf   : > { %s498_s21 = sshll.u32 %s665_s18, 2  ;;  %s500_s27 = sshll.u32 %s665_s18, 3 }
  0x10   : > { %s209_s24 = scalar_lea.vmem %s656_s0, %s498_s21  ;;  %s226_s5 = scalar_lea.vmem %s659_s3, %s500_s27 }
  0x11   : > { %v563_v2 = vld [vmem:[%s209_s24] sm:$0xff]   ;;  %v564_v3 = vld [vmem:[%s209_s24 + $0x10] sm:$0xff]   ;;  %v565_v4 = vld [vmem:[%s209_s24 + $0x8] sm:$0xff]  }
  0x12   : > { %525 = vmatprep.mubr.msk.bf16.mxu0 %vm273_vm0, %v563_v2  ;;  %529 = vmatprep.mubr.msk.bf16.mxu1 %vm273_vm0, %v564_v3  ;;  %v566_v5 = vld [vmem:[%s209_s24 + $0x18] sm:$0xff]  }
  0x13   : > { %526 = vmatmul.mubr.msk.bf16.vlgmr.msra.gmra.mrb[0].mxu0 %vm273_vm0, %v565_v4  ;;  %530 = vmatmul.mubr.msk.bf16.vlgmr.msra.gmra.mrb[0].mxu1 %vm273_vm0, %v566_v5 }
  0xe6   : > { %v527_v7 = vpop.f32.mrb[0].mxu0  ;;  %v531_v10 = vpop.f32.mrb[0].mxu1 }
  0xe7   : > { %v358_v9 = vmul.f32 %v527_v7, %v511_v6  ;;  %v320_v11 = vpop.f32.mrb[1].mxu0  ;;  %v362_v12 = vmul.f32 %v531_v10, %v511_v6  ;;  %v336_v14 = vpop.f32.mrb[1].mxu1 }
  0xe8   : > { %v356_v13 = vmul.f32 %v511_v6, %v320_v11  ;;  %v528_v15 = vpop.f32.mrb[2].mxu0  ;;  %v360_v17 = vmul.f32 %v511_v6, %v336_v14  ;;  %v532_v19 = vpop.f32.mrb[2].mxu1 }
  0xe9   : > { %v371_v16 = vadd.f32 %v512_v8, %v358_v9  ;;  %v359_v18 = vmul.f32 %v528_v15, %v511_v6  ;;  %v323_v20 = vpop.f32.mrb[3].mxu0  ;;  %v375_v21 = vadd.f32 %v512_v8, %v362_v12  ;;  %v363_v23 = vmul.f32 %v532_v19, %v511_v6  ;;  %v339_v25 = vpop.f32.mrb[3].mxu1 }
  0xea   : > { %v369_v22 = vadd.f32 %v512_v8, %v356_v13  ;;  %v357_v24 = vmul.f32 %v511_v6, %v323_v20  ;;  %v373_v26 = vadd.f32 %v512_v8, %v360_v17  ;;  %v361_v28 = vmul.f32 %v511_v6, %v339_v25 }
  0xeb   : > { %379 = vst [vmem:[%s226_s5 + $0x10] sm:$0xff] %v371_v16  ;;  %v372_v27 = vadd.f32 %v512_v8, %v359_v18  ;;  %383 = vst [vmem:[%s226_s5 + $0x30] sm:$0xff] %v375_v21  ;;  %v376_v29 = vadd.f32 %v512_v8, %v363_v23 }
  0xec   : > { %377 = vst [vmem:[%s226_s5] sm:$0xff] %v369_v22  ;;  %v370_v30 = vadd.f32 %v512_v8, %v357_v24  ;;  %381 = vst [vmem:[%s226_s5 + $0x20] sm:$0xff] %v373_v26  ;;  %v374_v31 = vadd.f32 %v512_v8, %v361_v28 }
  0xed   : > { %380 = vst [vmem:[%s226_s5 + $0x18] sm:$0xff] %v372_v27  ;;  %384 = vst [vmem:[%s226_s5 + $0x38] sm:$0xff] %v376_v29 }
  0xee   : > { %378 = vst [vmem:[%s226_s5 + $0x8] sm:$0xff] %v370_v30  ;;  %382 = vst [vmem:[%s226_s5 + $0x28] sm:$0xff] %v374_v31 }
  0xef PF: > { %s13_s14 = sadd.s32 1, %s589_s14   ;;  %s660_s12 = smov %s585_s13 }
  0xf0   : > { %p10_p5 = scmp.ge.s32.totalorder %s13_s14, 4   ;;  %s661_s13 = smov %s663_s15 }
  0xf2   :  { %12 = sbr.rel (!%p10_p5) target bundleno = 2 (0x2), region = 68 }

// kernel: image_encoder_forward.28
= control target key start
LH: loop header
LB: loop body
LE: loop exit
PB: predicated region body
PF: predicated region fallthrough
CT: control target
= control target key end

     0   :  { %s702_s15 = smov 0   ;;  %s704_s16 = smov 0   ;;  %s765_s0 = inlined_call_operand.vmem [shape: bf16[128,16], index: 0, kind: input, shape index: {}]   ;;  %s766_s1 = inlined_call_operand.vmem [shape: bf16[16,128], index: 1, kind: input, shape index: {}]   ;;  %s767_s2 = inlined_call_operand.vmem [shape: f32[2,128], index: 2, kind: input, shape index: {}]   ;;  %s768_s3 = inlined_call_operand.vmem [shape: f32[128,128], index: 3, kind: input, shape index: {}]   ;;  %s769_s4 = inlined_call_operand.vmem [shape: f32[128,128], index: 4, kind: output, shape index: {}]  }
   0x1   :  { %s706_s17 = smov 0  }
   0x2 LB: > { %s26_s18 = sadd.s32 1, %s671_s16  ;;  %p587_p0 = scmp.ge.s32.totalorder %s675_s17, 1  ;;  %s675_s17 = sphi %s706_s17, %s14_s17   ;;  %s671_s16 = sphi %s704_s16, %s771_s16   ;;  %s667_s15 = sphi %s702_s15, %s770_s15  }
   0x3   : > { %p28_p1 = scmp.ge.s32.totalorder %s26_s18, 2  ;;  %p211_p2 = scmp.lt.s32.totalorder %s675_s17, 3 }
   0x5   : > { %s773_s18 = smov (%p28_p1, %s26_s18), 0  ;;  %p212_p3 = pnand %p587_p0, %p211_p2 }
   0x6   : > { %v648_v0 = vld [vmem:[%s766_s1] sm:$0xff] (!%p212_p3)   ;;  %s588_s21 = sshll.u32 (!%p212_p3), %s667_s15, 3  ;;  %vm325_vm0 = vcmask (!%p212_p3), 130048  }
   0x7   : > { %215 = sbr.rel (%p212_p3) target bundleno = 243 (0xf3), region = 36  ;;  %p257_p4 = scmp.lt.s32.totalorder (!%p212_p3), %s588_s21, 15  ;;  %612 = vmatprep.subr.bf16.mxu0 (!%p212_p3), %v648_v0  ;;  %622 = vmatprep.subr.bf16.mxu1 (!%p212_p3), %v648_v0  ;;  %v603_v5 = vld [vmem:[%s767_s2] ss:$0 sm:$0xff] (!%p212_p3)  ;;  %v604_v7 = vld [vmem:[%s767_s2 + $0x1] ss:$0 sm:$0xff] (!%p212_p3) }
   0x8   : > { %613 = vmatpush3.bf16.msra.mxu0 (!%p212_p3), %v648_v0  ;;  %623 = vmatpush3.bf16.msra.mxu1 (!%p212_p3), %v648_v0 }
   0xe   : > { %s775_s21 = smov (!%p257_p4, %s588_s21), 15 }
   0xf   : > { %s589_s22 = sshll.u32 %s775_s21, 2  ;;  %s591_s26 = sshll.u32 %s775_s21, 3 }
  0x10   : > { %s260_s25 = scalar_lea.vmem %s765_s0, %s589_s22  ;;  %s738_s5 = scalar_lea.vmem %s768_s3, %s591_s26 }
  0x11   : > { %v649_v1 = vld [vmem:[%s260_s25] sm:$0xff]   ;;  %v650_v2 = vld [vmem:[%s260_s25 + $0x10] sm:$0xff]   ;;  %v651_v3 = vld [vmem:[%s260_s25 + $0x8] sm:$0xff]   ;;  %s286_s10 = scalar_lea.vmem %s769_s4, %s591_s26 }
  0x12   : > { %614 = vmatprep.mubr.msk.bf16.mxu0 %vm325_vm0, %v649_v1  ;;  %618 = vmatprep.mubr.msk.bf16.mxu1 %vm325_vm0, %v650_v2  ;;  %v652_v4 = vld [vmem:[%s260_s25 + $0x18] sm:$0xff]   ;;  %v431_v11 = vld [vmem:[%s738_s5 + $0x10] sm:$0xff]  ;;  %v429_v18 = vld [vmem:[%s738_s5] sm:$0xff] }
  0x13   : > { %615 = vmatmul.mubr.msk.bf16.vlgmr.msra.gmra.mrb[0].mxu0 %vm325_vm0, %v651_v3  ;;  %619 = vmatmul.mubr.msk.bf16.vlgmr.msra.gmra.mrb[0].mxu1 %vm325_vm0, %v652_v4  ;;  %v435_v17 = vld [vmem:[%s738_s5 + $0x30] sm:$0xff]  ;;  %v433_v25 = vld [vmem:[%s738_s5 + $0x20] sm:$0xff]  ;;  %v432_v26 = vld [vmem:[%s738_s5 + $0x18] sm:$0xff] }
  0x14   : > { %v436_v33 = vld [vmem:[%s738_s5 + $0x38] sm:$0xff]  ;;  %v430_v34 = vld [vmem:[%s738_s5 + $0x8] sm:$0xff] }
  0x15   : > { %v434_v40 = vld [vmem:[%s738_s5 + $0x28] sm:$0xff] }
  0xe6   : > { %v616_v6 = vpop.f32.mrb[0].mxu0  ;;  %v620_v9 = vpop.f32.mrb[0].mxu1 }
  0xe7   : > { %v410_v8 = vmul.f32 %v616_v6, %v603_v5  ;;  %v372_v10 = vpop.f32.mrb[1].mxu0  ;;  %v414_v12 = vmul.f32 %v620_v9, %v603_v5  ;;  %v388_v14 = vpop.f32.mrb[1].mxu1 }
  0xe8   : > { %v408_v13 = vmul.f32 %v603_v5, %v372_v10  ;;  %v617_v15 = vpop.f32.mrb[2].mxu0  ;;  %v412_v19 = vmul.f32 %v603_v5, %v388_v14  ;;  %v621_v21 = vpop.f32.mrb[2].mxu1 }
  0xe9   : > { %v423_v16 = vadd.f32 %v604_v7, %v410_v8  ;;  %v411_v20 = vmul.f32 %v617_v15, %v603_v5  ;;  %v375_v22 = vpop.f32.mrb[3].mxu0  ;;  %v427_v23 = vadd.f32 %v604_v7, %v414_v12  ;;  %v415_v27 = vmul.f32 %v621_v21, %v603_v5  ;;  %v391_v29 = vpop.f32.mrb[3].mxu1 }
  0xea   : > { %v421_v24 = vadd.f32 %v604_v7, %v408_v13  ;;  %v409_v28 = vmul.f32 %v603_v5, %v375_v22  ;;  %v425_v31 = vadd.f32 %v604_v7, %v412_v19  ;;  %v413_v35 = vmul.f32 %v603_v5, %v391_v29 }
  0xeb   : > { %v439_v30 = vadd.f32 %v431_v11, %v423_v16  ;;  %v424_v32 = vadd.f32 %v604_v7, %v411_v20  ;;  %v443_v36 = vadd.f32 %v435_v17, %v427_v23  ;;  %v428_v38 = vadd.f32 %v604_v7, %v415_v27 }
  0xec   : > { %v437_v37 = vadd.f32 %v429_v18, %v421_v24  ;;  %v422_v39 = vadd.f32 %v604_v7, %v409_v28  ;;  %v441_v42 = vadd.f32 %v433_v25, %v425_v31  ;;  %v426_v44 = vadd.f32 %v604_v7, %v413_v35 }
  0xed   : > { %v447_v41 = vmax.f32 %v439_v30, 0.0  ;;  %v440_v43 = vadd.f32 %v432_v26, %v424_v32  ;;  %v451_v45 = vmax.f32 %v443_v36, 0.0  ;;  %v444_v47 = vadd.f32 %v436_v33, %v428_v38 }
  0xee   : > { %v445_v46 = vmax.f32 %v437_v37, 0.0  ;;  %v438_v48 = vadd.f32 %v430_v34, %v422_v39  ;;  %v449_v49 = vmax.f32 %v441_v42, 0.0  ;;  %v442_v51 = vadd.f32 %v434_v40, %v426_v44 }
  0xef   : > { %455 = vst [vmem:[%s286_s10 + $0x10] sm:$0xff] %v447_v41  ;;  %v448_v50 = vmax.f32 %v440_v43, 0.0  ;;  %459 = vst [vmem:[%s286_s10 + $0x30] sm:$0xff] %v451_v45  ;;  %v452_v52 = vmax.f32 %v444_v47, 0.0 }
  0xf0   : > { %453 = vst [vmem:[%s286_s10] sm:$0xff] %v445_v46  ;;  %v446_v53 = vmax.f32 %v438_v48, 0.0  ;;  %457 = vst [vmem:[%s286_s10 + $0x20] sm:$0xff] %v449_v49  ;;  %v450_v54 = vmax.f32 %v442_v51, 0.0 }
  0xf1   : > { %456 = vst [vmem:[%s286_s10 + $0x18] sm:$0xff] %v448_v50  ;;  %460 = vst [vmem:[%s286_s10 + $0x38] sm:$0xff] %v452_v52 }
  0xf2   : > { %454 = vst [vmem:[%s286_s10 + $0x8] sm:$0xff] %v446_v53  ;;  %458 = vst [vmem:[%s286_s10 + $0x28] sm:$0xff] %v450_v54 }
  0xf3 PF: > { %s14_s17 = sadd.s32 1, %s675_s17   ;;  %s770_s15 = smov %s671_s16 }
  0xf4   : > { %p11_p5 = scmp.ge.s32.totalorder %s14_s17, 4   ;;  %s771_s16 = smov %s773_s18 }
  0xf6   :  { %13 = sbr.rel (!%p11_p5) target bundleno = 2 (0x2), region = 75 }

// kernel: image_encoder_forward.29
= control target key start
LH: loop header
LB: loop body
LE: loop exit
PB: predicated region body
PF: predicated region fallthrough
CT: control target
= control target key end

     0   :  { %s649_s12 = smov 0   ;;  %s651_s13 = smov 0   ;;  %s708_s0 = inlined_call_operand.vmem [shape: bf16[128,64], index: 0, kind: input, shape index: {}]   ;;  %s709_s1 = inlined_call_operand.vmem [shape: bf16[64,128], index: 1, kind: input, shape index: {}]   ;;  %s710_s2 = inlined_call_operand.vmem [shape: f32[2,128], index: 2, kind: input, shape index: {}]   ;;  %s711_s3 = inlined_call_operand.vmem [shape: f32[128,128], index: 3, kind: output, shape index: {}]  }
   0x1   :  { %s653_s14 = smov 0  }
   0x2 LB: > { %s25_s15 = sadd.s32 1, %s623_s13  ;;  %p520_p0 = scmp.ge.s32.totalorder %s627_s14, 1  ;;  %s627_s14 = sphi %s653_s14, %s13_s14   ;;  %s623_s13 = sphi %s651_s13, %s713_s13   ;;  %s619_s12 = sphi %s649_s12, %s712_s12  }
   0x3   : > { %p27_p1 = scmp.ge.s32.totalorder %s25_s15, 2  ;;  %p170_p2 = scmp.lt.s32.totalorder %s627_s14, 3 }
   0x5   : > { %s715_s15 = smov (%p27_p1, %s25_s15), 0  ;;  %p171_p3 = pnand %p520_p0, %p170_p2 }
   0x6   : > { %v597_v0 = vld [vmem:[%s709_s1] sm:$0xff] (!%p171_p3)   ;;  %s521_s18 = sshll.u32 (!%p171_p3), %s619_s12, 3  ;;  %v598_v1 = vld [vmem:[%s709_s1 + $0x8] sm:$0xff] (!%p171_p3)   ;;  %v599_v2 = vld [vmem:[%s709_s1 + $0x10] sm:$0xff] (!%p171_p3)   ;;  %vm289_vm0 = vcmask (!%p171_p3), 523264  }
   0x7   : > { %174 = sbr.rel (%p171_p3) target bundleno = 245 (0xf5), region = 32  ;;  %p206_p4 = scmp.lt.s32.totalorder (!%p171_p3), %s521_s18, 15  ;;  %549 = vmatprep.subr.bf16.mxu0 (!%p171_p3), %v597_v0  ;;  %565 = vmatprep.subr.bf16.mxu1 (!%p171_p3), %v597_v0  ;;  %v600_v3 = vld [vmem:[%s709_s1 + $0x18] sm:$0xff] (!%p171_p3)   ;;  %v537_v8 = vld [vmem:[%s710_s2] ss:$0 sm:$0xff] (!%p171_p3) }
   0x8   : > { %550 = vmatpush3.bf16.msra.mxu0 (!%p171_p3), %v597_v0  ;;  %569 = vmatpush3.bf16.msra.mxu1 (!%p171_p3), %v597_v0  ;;  %v538_v10 = vld [vmem:[%s710_s2 + $0x1] ss:$0 sm:$0xff] (!%p171_p3) }
   0x9   : > { %551 = vmatprep.subr.bf16.mxu0 (!%p171_p3), %v598_v1  ;;  %566 = vmatprep.subr.bf16.mxu1 (!%p171_p3), %v598_v1 }
   0xc   : > { %552 = vmatpush3.bf16.msra.mxu0 (!%p171_p3), %v598_v1  ;;  %570 = vmatpush3.bf16.msra.mxu1 (!%p171_p3), %v598_v1 }
   0xd   : > { %553 = vmatprep.subr.bf16.mxu0 (!%p171_p3), %v599_v2  ;;  %567 = vmatprep.subr.bf16.mxu1 (!%p171_p3), %v599_v2 }
   0xe   : > { %s717_s18 = smov (!%p206_p4, %s521_s18), 15 }
   0xf   : > { %s522_s23 = sshll.u32 %s717_s18, 2  ;;  %s524_s6 = sshll.u32 %s717_s18, 3 }
  0x10   : > { %s209_s28 = scalar_lea.vmem %s708_s0, %s522_s23  ;;  %554 = vmatpush3.bf16.msra.mxu0 %v599_v2  ;;  %571 = vmatpush3.bf16.msra.mxu1 %v599_v2  ;;  %s226_s9 = scalar_lea.vmem %s711_s3, %s524_s6 }
  0x11   : > { %v601_v4 = vld [vmem:[%s209_s28] sm:$0xff]   ;;  %v602_v5 = vld [vmem:[%s209_s28 + $0x10] sm:$0xff]   ;;  %555 = vmatprep.subr.bf16.mxu0 %v600_v3  ;;  %568 = vmatprep.subr.bf16.mxu1 %v600_v3  ;;  %v603_v6 = vld [vmem:[%s209_s28 + $0x8] sm:$0xff]  }
  0x12   : > { %557 = vmatprep.mubr.msk.bf16.mxu0 %vm289_vm0, %v601_v4  ;;  %561 = vmatprep.mubr.msk.bf16.mxu1 %vm289_vm0, %v602_v5  ;;  %v604_v7 = vld [vmem:[%s209_s28 + $0x18] sm:$0xff]  }
  0x14   : > { %556 = vmatpush3.bf16.msra.mxu0 %v600_v3  ;;  %572 = vmatpush3.bf16.msra.mxu1 %v600_v3 }
  0x17   : > { %558 = vmatmul.mubr.msk.bf16.vlgmr.msra.gmra.mrb[0].mxu0 %vm289_vm0, %v603_v6  ;;  %562 = vmatmul.mubr.msk.bf16.vlgmr.msra.gmra.mrb[0].mxu1 %vm289_vm0, %v604_v7 }
  0xea   : > { %v559_v9 = vpop.f32.mrb[0].mxu0  ;;  %v563_v11 = vpop.f32.mrb[0].mxu1 }
  0xeb   : > { %v374_v12 = vmul.f32 %v559_v9, %v537_v8  ;;  %v378_v13 = vmul.f32 %v563_v11, %v537_v8  ;;  %v336_v14 = vpop.f32.mrb[1].mxu0  ;;  %v352_v15 = vpop.f32.mrb[1].mxu1 }
  0xec   : > { %v372_v16 = vmul.f32 %v537_v8, %v336_v14  ;;  %v376_v17 = vmul.f32 %v537_v8, %v352_v15  ;;  %v560_v18 = vpop.f32.mrb[2].mxu0  ;;  %v564_v19 = vpop.f32.mrb[2].mxu1 }
  0xed   : > { %v387_v20 = vadd.f32 %v538_v10, %v374_v12  ;;  %v391_v21 = vadd.f32 %v538_v10, %v378_v13  ;;  %v375_v22 = vmul.f32 %v560_v18, %v537_v8  ;;  %v379_v23 = vmul.f32 %v564_v19, %v537_v8  ;;  %v339_v24 = vpop.f32.mrb[3].mxu0  ;;  %v355_v25 = vpop.f32.mrb[3].mxu1 }
  0xee   : > { %v385_v26 = vadd.f32 %v538_v10, %v372_v16  ;;  %v389_v27 = vadd.f32 %v538_v10, %v376_v17  ;;  %v373_v28 = vmul.f32 %v537_v8, %v339_v24  ;;  %v377_v29 = vmul.f32 %v537_v8, %v355_v25 }
  0xef   : > { %v395_v30 = vmax.f32 %v387_v20, 0.0  ;;  %v399_v31 = vmax.f32 %v391_v21, 0.0  ;;  %v388_v32 = vadd.f32 %v538_v10, %v375_v22  ;;  %v392_v33 = vadd.f32 %v538_v10, %v379_v23 }
  0xf0   : > { %v393_v34 = vmax.f32 %v385_v26, 0.0  ;;  %v397_v35 = vmax.f32 %v389_v27, 0.0  ;;  %v386_v36 = vadd.f32 %v538_v10, %v373_v28  ;;  %v390_v37 = vadd.f32 %v538_v10, %v377_v29 }
  0xf1   : > { %403 = vst [vmem:[%s226_s9 + $0x10] sm:$0xff] %v395_v30  ;;  %407 = vst [vmem:[%s226_s9 + $0x30] sm:$0xff] %v399_v31  ;;  %v396_v38 = vmax.f32 %v388_v32, 0.0  ;;  %v400_v39 = vmax.f32 %v392_v33, 0.0 }
  0xf2   : > { %401 = vst [vmem:[%s226_s9] sm:$0xff] %v393_v34  ;;  %405 = vst [vmem:[%s226_s9 + $0x20] sm:$0xff] %v397_v35  ;;  %v394_v40 = vmax.f32 %v386_v36, 0.0  ;;  %v398_v41 = vmax.f32 %v390_v37, 0.0 }
  0xf3   : > { %404 = vst [vmem:[%s226_s9 + $0x18] sm:$0xff] %v396_v38  ;;  %408 = vst [vmem:[%s226_s9 + $0x38] sm:$0xff] %v400_v39 }
  0xf4   : > { %402 = vst [vmem:[%s226_s9 + $0x8] sm:$0xff] %v394_v40  ;;  %406 = vst [vmem:[%s226_s9 + $0x28] sm:$0xff] %v398_v41 }
  0xf5 PF: > { %s13_s14 = sadd.s32 1, %s627_s14   ;;  %s712_s12 = smov %s623_s13 }
  0xf6   : > { %p10_p5 = scmp.ge.s32.totalorder %s13_s14, 4   ;;  %s713_s13 = smov %s715_s15 }
  0xf8   :  { %12 = sbr.rel (!%p10_p5) target bundleno = 2 (0x2), region = 68 }

// kernel: image_encoder_forward.30
= control target key start
LH: loop header
LB: loop body
LE: loop exit
PB: predicated region body
PF: predicated region fallthrough
CT: control target
= control target key end

     0   :  { %s769_s12 = smov 0   ;;  %s771_s13 = smov 0   ;;  %s866_s0 = inlined_call_operand.vmem [shape: bf16[32,288], index: 0, kind: input, shape index: {}]   ;;  %s867_s1 = inlined_call_operand.vmem [shape: bf16[288,128], index: 1, kind: input, shape index: {}]   ;;  %s868_s2 = inlined_call_operand.vmem [shape: f32[2,128], index: 2, kind: input, shape index: {}]   ;;  %s869_s3 = inlined_call_operand.vmem [shape: f32[32,128], index: 3, kind: output, shape index: {}]  }
   0x1   :  { %s773_s14 = smov 0  }
   0x2 LB: > { %s25_s15 = sadd.s32 1, %s741_s13  ;;  %p610_p0 = scmp.ge.s32.totalorder %s745_s14, 1  ;;  %s745_s14 = sphi %s773_s14, %s13_s14   ;;  %s741_s13 = sphi %s771_s13, %s871_s13   ;;  %s737_s12 = sphi %s769_s12, %s870_s12  }
   0x3   : > { %p27_p1 = scmp.ge.s32.totalorder %s25_s15, 2  ;;  %p171_p2 = scmp.lt.s32.totalorder %s745_s14, 3 }
   0x5   : > { %s873_s15 = smov (%p27_p1, %s25_s15), 0  ;;  %p172_p3 = pnand %p610_p0, %p171_p2 }
   0x6   : > { %v701_v0 = vld [vmem:[%s867_s1 + $0x40] sm:$0xff] (!%p172_p3)   ;;  %v747_v2 = vmov (!%p172_p3), 0.0   ;;  %s611_s20 = sshll.u32 (!%p172_p3), %s737_s12, 1  ;;  %v703_v3 = vld [vmem:[%s867_s1 + $0x48] sm:$0xff] (!%p172_p3)   ;;  %v705_v5 = vld [vmem:[%s867_s1 + $0x50] sm:$0xff] (!%p172_p3)   ;;  %vm748_vm0 = vmmov (!%p172_p3), 0  }
   0x7   : > { %175 = sbr.rel (%p172_p3) target bundleno = 265 (0x109), region = 32  ;;  %v702_v1 = vld [vmem:[%s867_s1] sm:$0xff] (!%p172_p3)   ;;  %666 = vmatprep.subr.bf16.mxu1 (!%p172_p3), %v747_v2  ;;  %641 = vmatprep.subr.bf16.mxu0 (!%p172_p3), %v701_v0  ;;  %v704_v4 = vld [vmem:[%s867_s1 + $0x8] sm:$0xff] (!%p172_p3)   ;;  %p208_p4 = scmp.lt.s32.totalorder (!%p172_p3), %s611_s20, 3  ;;  %v706_v6 = vld [vmem:[%s867_s1 + $0x10] sm:$0xff] (!%p172_p3)   ;;  %vm395_vm1 = vcmask (!%p172_p3), 261120  }
   0x8   : > { %642 = vmatpush3.bf16.msra.mxu0 (!%p172_p3), %v702_v1  ;;  %670 = vmatprep.mubr.msk.bf16.mxu1 (!%p172_p3), %vm748_vm0, %v747_v2  ;;  %v707_v7 = vld [vmem:[%s867_s1 + $0x58] sm:$0xff] (!%p172_p3)   ;;  %v709_v9 = vld [vmem:[%s867_s1 + $0x60] sm:$0xff] (!%p172_p3)   ;;  %v711_v12 = vld [vmem:[%s867_s1 + $0x68] sm:$0xff] (!%p172_p3)  }
   0x9   : > { %643 = vmatprep.subr.bf16.mxu0 (!%p172_p3), %v703_v3  ;;  %v708_v8 = vld [vmem:[%s867_s1 + $0x18] sm:$0xff] (!%p172_p3)   ;;  %v715_v10 = vld [vmem:[%s867_s1 + $0x80] sm:$0xff] (!%p172_p3)   ;;  %v718_v13 = vld [vmem:[%s867_s1 + $0x88] sm:$0xff] (!%p172_p3)  }
   0xa   : > { %v710_v11 = vld [vmem:[%s867_s1 + $0x20] sm:$0xff] (!%p172_p3)   ;;  %667 = vmatpush3.bf16.msra.mxu1 (!%p172_p3), %v715_v10  ;;  %v712_v14 = vld [vmem:[%s867_s1 + $0x28] sm:$0xff] (!%p172_p3)   ;;  %v713_v16 = vld [vmem:[%s867_s1 + $0x70] sm:$0xff] (!%p172_p3)  }
   0xb   : > { %668 = vmatprep.subr.bf16.mxu1 (!%p172_p3), %v747_v2  ;;  %v714_v18 = vld [vmem:[%s867_s1 + $0x30] sm:$0xff] (!%p172_p3)   ;;  %v716_v19 = vld [vmem:[%s867_s1 + $0x78] sm:$0xff] (!%p172_p3)   ;;  %v637_v30 = vld [vmem:[%s868_s2] ss:$0 sm:$0xff] (!%p172_p3) }
   0xc   : > { %644 = vmatpush3.bf16.msra.mxu0 (!%p172_p3), %v704_v4  ;;  %v717_v20 = vld [vmem:[%s867_s1 + $0x38] sm:$0xff] (!%p172_p3)   ;;  %v638_v34 = vld [vmem:[%s868_s2 + $0x1] ss:$0 sm:$0xff] (!%p172_p3) }
   0xd   : > { %645 = vmatprep.subr.bf16.mxu0 (!%p172_p3), %v705_v5 }
   0xe   : > { %s875_s20 = smov (!%p208_p4, %s611_s20), 3  ;;  %669 = vmatpush3.bf16.msra.mxu1 %v718_v13 }
   0xf   : > { %s674_s8 = smul.u32 12, %s875_s20  ;;  %s614_s11 = sshll.u32 %s875_s20, 3 }
  0x10   : > { %646 = vmatpush3.bf16.msra.mxu0 %v706_v6  ;;  %s229_s17 = scalar_lea.vmem %s869_s3, %s614_s11 }
  0x11   : > { %647 = vmatprep.subr.bf16.mxu0 %v707_v7  ;;  %s212_s21 = scalar_lea.vmem %s866_s0, %s674_s8 }
  0x12   : > { %v721_v15 = vld [vmem:[%s212_s21 + $0x4] ss:$12 sps:$4 sm:$0xff]   ;;  %v722_v17 = vld [vmem:[%s212_s21 + $0x8] ss:$12 sps:$4 sm:$0xff]   ;;  %v719_v21 = vld [vmem:[%s212_s21] ss:$12 sps:$4 sm:$0xff]  }
  0x13   : > { %431 = vmatprep.mubr.bf16.mxu0 %v721_v15  ;;  %671 = vmatmul.mubr.msk.bf16.vlgmr.msra.gmra.mrb[0].mxu1 %vm395_vm1, %v722_v17 }
  0x14   : > { %648 = vmatpush3.bf16.msra.mxu0 %v708_v8 }
  0x15   : > { %649 = vmatprep.subr.bf16.mxu0 %v709_v9 }
  0x18   : > { %650 = vmatpush3.bf16.msra.mxu0 %v710_v11 }
  0x19   : > { %651 = vmatprep.subr.bf16.mxu0 %v711_v12 }
  0x1c   : > { %652 = vmatpush3.bf16.msra.mxu0 %v712_v14 }
  0x1d   : > { %653 = vmatprep.subr.bf16.mxu0 %v713_v16 }
  0x20   : > { %654 = vmatpush3.bf16.msra.mxu0 %v714_v18 }
  0x21   : > { %655 = vmatprep.subr.bf16.mxu0 %v716_v19 }
  0x24   : > { %656 = vmatpush3.bf16.msra.mxu0 %v717_v20 }
  0x27   : > { %432 = vmatmul.mubr.bf16.vlgmr.msra.gmra.mrb[0].mxu0 %v719_v21 }
  0xe6   : > { %v474_v22 = vpop.f32.mrb[0].mxu1 }
  0xe7   : > { %v672_v23 = vpop.f32.mrb[1].mxu1 }
  0xe8   : > { %v477_v24 = vpop.f32.mrb[2].mxu1 }
  0xe9   : > { %v673_v25 = vpop.f32.mrb[3].mxu1 }
  0xfa   : > { %v657_v26 = vpop.f32.mrb[0].mxu0 }
  0xfb   : > { %v658_v27 = vpop.f32.mrb[1].mxu0 }
  0xfc   : > { %v659_v28 = vadd.f32 %v658_v27, %v657_v26  ;;  %v660_v29 = vpop.f32.mrb[2].mxu0 }
  0xfd   : > { %v661_v31 = vpop.f32.mrb[3].mxu0 }
  0xfe   : > { %v475_v32 = vadd.f32 %v659_v28, %v474_v22  ;;  %v662_v33 = vadd.f32 %v661_v31, %v660_v29 }
 0x100   : > { %v486_v35 = vmul.f32 %v637_v30, %v475_v32  ;;  %v478_v36 = vadd.f32 %v662_v33, %v477_v24 }
 0x102   : > { %v493_v37 = vadd.f32 %v638_v34, %v486_v35  ;;  %v487_v38 = vmul.f32 %v637_v30, %v478_v36 }
 0x104   : > { %v495_v39 = vmax.f32 %v493_v37, 0.0  ;;  %v494_v40 = vadd.f32 %v638_v34, %v487_v38 }
 0x106   : > { %497 = vst [vmem:[%s229_s17] sm:$0xff] %v495_v39  ;;  %v496_v41 = vmax.f32 %v494_v40, 0.0 }
 0x108   : > { %498 = vst [vmem:[%s229_s17 + $0x8] sm:$0xff] %v496_v41 }
 0x109 PF: > { %s13_s14 = sadd.s32 1, %s745_s14   ;;  %s870_s12 = smov %s741_s13 }
 0x10a   : > { %p10_p5 = scmp.ge.s32.totalorder %s13_s14, 4   ;;  %s871_s13 = smov %s873_s15 }
 0x10c   :  { %12 = sbr.rel (!%p10_p5) target bundleno = 2 (0x2), region = 68 }

// kernel: image_encoder_forward.32
= control target key start
LH: loop header
LB: loop body
LE: loop exit
PB: predicated region body
PF: predicated region fallthrough
CT: control target
= control target key end

     0   :  { %s611_s15 = smov 0   ;;  %s613_s16 = smov 0   ;;  %s659_s0 = inlined_call_operand.vmem [shape: bf16[32,32], index: 0, kind: input, shape index: {}]   ;;  %s660_s1 = inlined_call_operand.vmem [shape: bf16[32,128], index: 1, kind: input, shape index: {}]   ;;  %s661_s2 = inlined_call_operand.vmem [shape: f32[2,128], index: 2, kind: input, shape index: {}]   ;;  %s662_s3 = inlined_call_operand.vmem [shape: f32[32,128], index: 3, kind: input, shape index: {}]   ;;  %s663_s4 = inlined_call_operand.vmem [shape: f32[32,128], index: 4, kind: output, shape index: {}]  }
   0x1   :  { %s615_s17 = smov 0  }
   0x2 LB: > { %s26_s18 = sadd.s32 1, %s578_s16  ;;  %p505_p0 = scmp.ge.s32.totalorder %s582_s17, 1  ;;  %s582_s17 = sphi %s615_s17, %s14_s17   ;;  %s578_s16 = sphi %s613_s16, %s665_s16   ;;  %s574_s15 = sphi %s611_s15, %s664_s15  }
   0x3   : > { %p28_p1 = scmp.ge.s32.totalorder %s26_s18, 2  ;;  %p211_p2 = scmp.lt.s32.totalorder %s582_s17, 3 }
   0x5   : > { %s667_s18 = smov (%p28_p1, %s26_s18), 0  ;;  %p212_p3 = pnand %p505_p0, %p211_p2 }
   0x6   : > { %v557_v0 = vld [vmem:[%s660_s1] sm:$0xff] (!%p212_p3)   ;;  %v584_v1 = vmov (!%p212_p3), 0.0   ;;  %v558_v2 = vld [vmem:[%s660_s1 + $0x8] sm:$0xff] (!%p212_p3)   ;;  %vm585_vm0 = vmmov (!%p212_p3), 0   ;;  %s506_s23 = sshll.u32 (!%p212_p3), %s574_s15, 1  ;;  %vm312_vm1 = vcmask (!%p212_p3), 261120  }
   0x7   : > { %215 = sbr.rel (%p212_p3) target bundleno = 241 (0xf1), region = 36  ;;  %523 = vmatprep.subr.bf16.mxu0 (!%p212_p3), %v584_v1  ;;  %527 = vmatprep.mubr.msk.bf16.mxu0 (!%p212_p3), %vm585_vm0, %v584_v1  ;;  %p257_p4 = scmp.lt.s32.totalorder (!%p212_p3), %s506_s23, 3  ;;  %v516_v4 = vld [vmem:[%s661_s2] ss:$0 sm:$0xff] (!%p212_p3)  ;;  %v517_v6 = vld [vmem:[%s661_s2 + $0x1] ss:$0 sm:$0xff] (!%p212_p3) }
   0x8   : > { %524 = vmatpush3.bf16.msra.mxu0 (!%p212_p3), %v557_v0 }
   0x9   : > { %525 = vmatprep.subr.bf16.mxu0 (!%p212_p3), %v584_v1 }
   0xc   : > { %526 = vmatpush3.bf16.msra.mxu0 (!%p212_p3), %v558_v2 }
   0xe   : > { %s669_s23 = smov (!%p257_p4, %s506_s23), 3 }
   0xf   : > { %s507_s24 = sshll.u32 %s669_s23, 2  ;;  %s509_s28 = sshll.u32 %s669_s23, 3 }
  0x10   : > { %s260_s27 = scalar_lea.vmem %s659_s0, %s507_s24  ;;  %s277_s7 = scalar_lea.vmem %s662_s3, %s509_s28 }
  0x11   : > { %v559_v3 = vld [vmem:[%s260_s27] sm:$0xff]   ;;  %v372_v14 = vld [vmem:[%s277_s7 + $0x8] sm:$0xff]  ;;  %s286_s12 = scalar_lea.vmem %s663_s4, %s509_s28 }
  0x12   : > { %528 = vmatmul.mubr.msk.bf16.vlgmr.msra.gmra.mrb[0].mxu0 %vm312_vm1, %v559_v3  ;;  %v371_v9 = vld [vmem:[%s277_s7] sm:$0xff] }
  0xe5   : > { %v350_v5 = vpop.f32.mrb[0].mxu0 }
  0xe6   : > { %v362_v7 = vmul.f32 %v516_v4, %v350_v5  ;;  %v529_v8 = vpop.f32.mrb[1].mxu0 }
  0xe7   : > { %v353_v10 = vpop.f32.mrb[2].mxu0 }
  0xe8   : > { %v369_v11 = vadd.f32 %v517_v6, %v362_v7  ;;  %v363_v12 = vmul.f32 %v516_v4, %v353_v10  ;;  %v530_v13 = vpop.f32.mrb[3].mxu0 }
  0xea   : > { %v373_v15 = vadd.f32 %v371_v9, %v369_v11  ;;  %v370_v16 = vadd.f32 %v517_v6, %v363_v12 }
  0xec   : > { %v375_v17 = vmax.f32 %v373_v15, 0.0  ;;  %v374_v18 = vadd.f32 %v372_v14, %v370_v16 }
  0xee   : > { %377 = vst [vmem:[%s286_s12] sm:$0xff] %v375_v17  ;;  %v376_v19 = vmax.f32 %v374_v18, 0.0 }
  0xf0   : > { %378 = vst [vmem:[%s286_s12 + $0x8] sm:$0xff] %v376_v19 }
  0xf1 PF: > { %s14_s17 = sadd.s32 1, %s582_s17   ;;  %s664_s15 = smov %s578_s16 }
  0xf2   : > { %p11_p5 = scmp.ge.s32.totalorder %s14_s17, 4   ;;  %s665_s16 = smov %s667_s18 }
  0xf4   :  { %13 = sbr.rel (!%p11_p5) target bundleno = 2 (0x2), region = 75 }

// kernel: image_encoder_forward.31
= control target key start
LH: loop header
LB: loop body
LE: loop exit
PB: predicated region body
PF: predicated region fallthrough
CT: control target
= control target key end

     0   :  { %s549_s12 = smov 0   ;;  %s551_s13 = smov 0   ;;  %s600_s0 = inlined_call_operand.vmem [shape: bf16[32,64], index: 0, kind: input, shape index: {}]   ;;  %s601_s1 = inlined_call_operand.vmem [shape: bf16[64,128], index: 1, kind: input, shape index: {}]   ;;  %s602_s2 = inlined_call_operand.vmem [shape: f32[2,128], index: 2, kind: input, shape index: {}]   ;;  %s603_s3 = inlined_call_operand.vmem [shape: f32[32,128], index: 3, kind: output, shape index: {}]  }
   0x1   :  { %s553_s14 = smov 0  }
   0x2 LB: > { %s25_s15 = sadd.s32 1, %s521_s13  ;;  %p440_p0 = scmp.ge.s32.totalorder %s525_s14, 1  ;;  %s525_s14 = sphi %s553_s14, %s13_s14   ;;  %s521_s13 = sphi %s551_s13, %s605_s13   ;;  %s517_s12 = sphi %s549_s12, %s604_s12  }
   0x3   : > { %p27_p1 = scmp.ge.s32.totalorder %s25_s15, 2  ;;  %p170_p2 = scmp.lt.s32.totalorder %s525_s14, 3 }
   0x5   : > { %s607_s15 = smov (%p27_p1, %s25_s15), 0  ;;  %p171_p3 = pnand %p440_p0, %p170_p2 }
   0x6   : > { %v498_v0 = vld [vmem:[%s601_s1] sm:$0xff] (!%p171_p3)   ;;  %v527_v1 = vmov (!%p171_p3), 0.0   ;;  %v499_v2 = vld [vmem:[%s601_s1 + $0x8] sm:$0xff] (!%p171_p3)   ;;  %vm528_vm0 = vmmov (!%p171_p3), 0   ;;  %s441_s20 = sshll.u32 (!%p171_p3), %s517_s12, 1  ;;  %v500_v3 = vld [vmem:[%s601_s1 + $0x10] sm:$0xff] (!%p171_p3)  }
   0x7   : > { %174 = sbr.rel (%p171_p3) target bundleno = 242 (0xf2), region = 32  ;;  %460 = vmatprep.subr.bf16.mxu0 (!%p171_p3), %v527_v1  ;;  %468 = vmatprep.mubr.msk.bf16.mxu0 (!%p171_p3), %vm528_vm0, %v527_v1  ;;  %p206_p4 = scmp.lt.s32.totalorder (!%p171_p3), %s441_s20, 3  ;;  %v501_v4 = vld [vmem:[%s601_s1 + $0x18] sm:$0xff] (!%p171_p3)   ;;  %vm268_vm1 = vcmask (!%p171_p3), 523264   ;;  %v451_v6 = vld [vmem:[%s602_s2] ss:$0 sm:$0xff] (!%p171_p3) }
   0x8   : > { %461 = vmatpush3.bf16.msra.mxu0 (!%p171_p3), %v498_v0  ;;  %v452_v8 = vld [vmem:[%s602_s2 + $0x1] ss:$0 sm:$0xff] (!%p171_p3) }
   0x9   : > { %462 = vmatprep.subr.bf16.mxu0 (!%p171_p3), %v527_v1 }
   0xc   : > { %463 = vmatpush3.bf16.msra.mxu0 (!%p171_p3), %v499_v2 }
   0xd   : > { %464 = vmatprep.subr.bf16.mxu0 (!%p171_p3), %v527_v1 }
   0xe   : > { %s609_s20 = smov (!%p206_p4, %s441_s20), 3 }
   0xf   : > { %s442_s23 = sshll.u32 %s609_s20, 2  ;;  %s444_s4 = sshll.u32 %s609_s20, 3 }
  0x10   : > { %s209_s26 = scalar_lea.vmem %s600_s0, %s442_s23  ;;  %465 = vmatpush3.bf16.msra.mxu0 %v500_v3  ;;  %s226_s9 = scalar_lea.vmem %s603_s3, %s444_s4 }
  0x11   : > { %466 = vmatprep.subr.bf16.mxu0 %v527_v1  ;;  %v502_v5 = vld [vmem:[%s209_s26] sm:$0xff]  }
  0x14   : > { %467 = vmatpush3.bf16.msra.mxu0 %v501_v4 }
  0x17   : > { %469 = vmatmul.mubr.msk.bf16.vlgmr.msra.gmra.mrb[0].mxu0 %vm268_vm1, %v502_v5 }
  0xea   : > { %v306_v7 = vpop.f32.mrb[0].mxu0 }
  0xeb   : > { %v318_v9 = vmul.f32 %v451_v6, %v306_v7  ;;  %v470_v10 = vpop.f32.mrb[1].mxu0 }
  0xec   : > { %v309_v11 = vpop.f32.mrb[2].mxu0 }
  0xed   : > { %v325_v12 = vadd.f32 %v452_v8, %v318_v9  ;;  %v319_v13 = vmul.f32 %v451_v6, %v309_v11  ;;  %v471_v14 = vpop.f32.mrb[3].mxu0 }
  0xef   : > { %327 = vst [vmem:[%s226_s9] sm:$0xff] %v325_v12  ;;  %v326_v15 = vadd.f32 %v452_v8, %v319_v13 }
  0xf1   : > { %328 = vst [vmem:[%s226_s9 + $0x8] sm:$0xff] %v326_v15 }
  0xf2 PF: > { %s13_s14 = sadd.s32 1, %s525_s14   ;;  %s604_s12 = smov %s521_s13 }
  0xf3   : > { %p10_p5 = scmp.ge.s32.totalorder %s13_s14, 4   ;;  %s605_s13 = smov %s607_s15 }
  0xf5   :  { %12 = sbr.rel (!%p10_p5) target bundleno = 2 (0x2), region = 68 }

// kernel: image_encoder_forward.33
= control target key start
LH: loop header
LB: loop body
LE: loop exit
PB: predicated region body
PF: predicated region fallthrough
CT: control target
= control target key end

     0   :  { %s599_s12 = smov 0   ;;  %s601_s13 = smov 0   ;;  %s666_s0 = inlined_call_operand.vmem [shape: bf16[32,128], index: 0, kind: input, shape index: {}]   ;;  %s667_s1 = inlined_call_operand.vmem [shape: bf16[128,128], index: 1, kind: input, shape index: {}]   ;;  %s668_s2 = inlined_call_operand.vmem [shape: f32[2,128], index: 2, kind: input, shape index: {}]   ;;  %s669_s3 = inlined_call_operand.vmem [shape: f32[32,128], index: 3, kind: output, shape index: {}]  }
   0x1   :  { %s603_s14 = smov 0  }
   0x2 LB: > { %s25_s15 = sadd.s32 1, %s571_s13  ;;  %p471_p0 = scmp.ge.s32.totalorder %s575_s14, 1  ;;  %s575_s14 = sphi %s603_s14, %s13_s14   ;;  %s571_s13 = sphi %s601_s13, %s671_s13   ;;  %s567_s12 = sphi %s599_s12, %s670_s12  }
   0x3   : > { %p27_p1 = scmp.ge.s32.totalorder %s25_s15, 2  ;;  %p170_p2 = scmp.lt.s32.totalorder %s575_s14, 3 }
   0x5   : > { %s673_s15 = smov (%p27_p1, %s25_s15), 0  ;;  %p171_p3 = pnand %p471_p0, %p170_p2 }
   0x6   : > { %v544_v0 = vld [vmem:[%s667_s1] sm:$0xff] (!%p171_p3)   ;;  %v577_v1 = vmov (!%p171_p3), 0.0   ;;  %v545_v2 = vld [vmem:[%s667_s1 + $0x8] sm:$0xff] (!%p171_p3)   ;;  %vm578_vm0 = vmmov (!%p171_p3), 0   ;;  %s472_s20 = sshll.u32 (!%p171_p3), %s567_s12, 1  ;;  %v546_v3 = vld [vmem:[%s667_s1 + $0x10] sm:$0xff] (!%p171_p3)  }
   0x7   : > { %174 = sbr.rel (%p171_p3) target bundleno = 260 (0x104), region = 32  ;;  %498 = vmatprep.subr.bf16.mxu0 (!%p171_p3), %v577_v1  ;;  %514 = vmatprep.mubr.msk.bf16.mxu0 (!%p171_p3), %vm578_vm0, %v577_v1  ;;  %p206_p4 = scmp.lt.s32.totalorder (!%p171_p3), %s472_s20, 3  ;;  %v547_v4 = vld [vmem:[%s667_s1 + $0x18] sm:$0xff] (!%p171_p3)   ;;  %v548_v5 = vld [vmem:[%s667_s1 + $0x20] sm:$0xff] (!%p171_p3)   ;;  %v549_v6 = vld [vmem:[%s667_s1 + $0x28] sm:$0xff] (!%p171_p3)  }
   0x8   : > { %499 = vmatpush3.bf16.msra.mxu0 (!%p171_p3), %v544_v0  ;;  %v550_v7 = vld [vmem:[%s667_s1 + $0x30] sm:$0xff] (!%p171_p3)   ;;  %v551_v8 = vld [vmem:[%s667_s1 + $0x38] sm:$0xff] (!%p171_p3)   ;;  %v485_v10 = vld [vmem:[%s668_s2] ss:$0 sm:$0xff] (!%p171_p3) }
   0x9   : > { %500 = vmatprep.subr.bf16.mxu0 (!%p171_p3), %v577_v1  ;;  %v486_v12 = vld [vmem:[%s668_s2 + $0x1] ss:$0 sm:$0xff] (!%p171_p3) }
   0xc   : > { %501 = vmatpush3.bf16.msra.mxu0 (!%p171_p3), %v545_v2 }
   0xd   : > { %502 = vmatprep.subr.bf16.mxu0 (!%p171_p3), %v577_v1 }
   0xe   : > { %s675_s20 = smov (!%p206_p4, %s472_s20), 3 }
   0xf   : > { %s473_s23 = sshll.u32 %s675_s20, 2  ;;  %s475_s17 = sshll.u32 %s675_s20, 3 }
  0x10   : > { %s209_s26 = scalar_lea.vmem %s666_s0, %s473_s23  ;;  %503 = vmatpush3.bf16.msra.mxu0 %v546_v3  ;;  %s226_s21 = scalar_lea.vmem %s669_s3, %s475_s17 }
  0x11   : > { %504 = vmatprep.subr.bf16.mxu0 %v577_v1  ;;  %v552_v9 = vld [vmem:[%s209_s26] sm:$0xff]  }
  0x14   : > { %505 = vmatpush3.bf16.msra.mxu0 %v547_v4 }
  0x15   : > { %506 = vmatprep.subr.bf16.mxu0 %v577_v1 }
  0x18   : > { %507 = vmatpush3.bf16.msra.mxu0 %v548_v5 }
  0x19   : > { %508 = vmatprep.subr.bf16.mxu0 %v577_v1 }
  0x1c   : > { %509 = vmatpush3.bf16.msra.mxu0 %v549_v6 }
  0x1d   : > { %510 = vmatprep.subr.bf16.mxu0 %v577_v1 }
  0x20   : > { %511 = vmatpush3.bf16.msra.mxu0 %v550_v7 }
  0x21   : > { %512 = vmatprep.subr.bf16.mxu0 %v577_v1 }
  0x24   : > { %513 = vmatpush3.bf16.msra.mxu0 %v551_v8 }
  0x27   : > { %515 = vmatmul.mubr.bf16.vlgmr.msra.gmra.mrb[0].mxu0 %v552_v9 }
  0xfa   : > { %v335_v11 = vpop.f32.mrb[0].mxu0 }
  0xfb   : > { %v347_v13 = vmul.f32 %v485_v10, %v335_v11  ;;  %v516_v14 = vpop.f32.mrb[1].mxu0 }
  0xfc   : > { %v338_v15 = vpop.f32.mrb[2].mxu0 }
  0xfd   : > { %v354_v16 = vadd.f32 %v486_v12, %v347_v13  ;;  %v348_v17 = vmul.f32 %v485_v10, %v338_v15  ;;  %v517_v18 = vpop.f32.mrb[3].mxu0 }
  0xff   : > { %v356_v19 = vmax.f32 %v354_v16, 0.0  ;;  %v355_v20 = vadd.f32 %v486_v12, %v348_v17 }
 0x101   : > { %358 = vst [vmem:[%s226_s21] sm:$0xff] %v356_v19  ;;  %v357_v21 = vmax.f32 %v355_v20, 0.0 }
 0x103   : > { %359 = vst [vmem:[%s226_s21 + $0x8] sm:$0xff] %v357_v21 }
 0x104 PF: > { %s13_s14 = sadd.s32 1, %s575_s14   ;;  %s670_s12 = smov %s571_s13 }
 0x105   : > { %p10_p5 = scmp.ge.s32.totalorder %s13_s14, 4   ;;  %s671_s13 = smov %s673_s15 }
 0x107   :  { %12 = sbr.rel (!%p10_p5) target bundleno = 2 (0x2), region = 68 }

// kernel: image_encoder_forward.34
= control target key start
LH: loop header
LB: loop body
LE: loop exit
PB: predicated region body
PF: predicated region fallthrough
CT: control target
= control target key end

     0   :  { %v633_v34 = vmov 0.0   ;;  %vm634_vm0 = vmmov 0   ;;  %vm334_vm1 = vcmask 523264   ;;  %s790_s1 = inlined_call_operand.vmem [shape: bf16[576,128], index: 1, kind: input, shape index: {}]   ;;  %s791_s0 = inlined_call_operand.vmem [shape: bf16[16,576], index: 0, kind: input, shape index: {}]   ;;  %s792_s2 = inlined_call_operand.vmem [shape: f32[2,128], index: 2, kind: input, shape index: {}]   ;;  %s793_s3 = inlined_call_operand.vmem [shape: f32[16,128], index: 3, kind: output, shape index: {}]  }
   0x1   :  { %v590_v0 = vld [vmem:[%s790_s1 + $0x40] sm:$0xff]   ;;  %v594_v4 = vld [vmem:[%s790_s1 + $0x48] sm:$0xff]   ;;  %v598_v8 = vld [vmem:[%s790_s1 + $0x50] sm:$0xff]  }
   0x2   :  { %v591_v1 = vld [vmem:[%s790_s1 + $0xc0] sm:$0xff]   ;;  %527 = vmatprep.subr.bf16.mxu0 %v590_v0  ;;  %v595_v5 = vld [vmem:[%s790_s1 + $0xc8] sm:$0xff]   ;;  %v599_v9 = vld [vmem:[%s790_s1 + $0xd0] sm:$0xff]  }
   0x3   :  { %v592_v2 = vld [vmem:[%s790_s1] sm:$0xff]   ;;  %549 = vmatprep.subr.bf16.mxu1 %v591_v1  ;;  %v596_v6 = vld [vmem:[%s790_s1 + $0x8] sm:$0xff]   ;;  %v600_v10 = vld [vmem:[%s790_s1 + $0x10] sm:$0xff]  }
   0x4   :  { %v593_v3 = vld [vmem:[%s790_s1 + $0x80] sm:$0xff]   ;;  %528 = vmatpush3.bf16.msra.mxu0 %v592_v2  ;;  %v597_v7 = vld [vmem:[%s790_s1 + $0x88] sm:$0xff]   ;;  %v601_v11 = vld [vmem:[%s790_s1 + $0x90] sm:$0xff]  }
   0x5   :  { %550 = vmatpush3.bf16.msra.mxu1 %v593_v3  ;;  %529 = vmatprep.subr.bf16.mxu0 %v594_v4  ;;  %v602_v12 = vld [vmem:[%s790_s1 + $0x58] sm:$0xff]   ;;  %v606_v16 = vld [vmem:[%s790_s1 + $0x60] sm:$0xff]   ;;  %v610_v20 = vld [vmem:[%s790_s1 + $0x68] sm:$0xff]  }
   0x6   :  { %551 = vmatprep.subr.bf16.mxu1 %v595_v5  ;;  %v603_v13 = vld [vmem:[%s790_s1 + $0xd8] sm:$0xff]   ;;  %v607_v17 = vld [vmem:[%s790_s1 + $0xe0] sm:$0xff]   ;;  %v611_v21 = vld [vmem:[%s790_s1 + $0xe8] sm:$0xff]  }
   0x7   :  { %v604_v14 = vld [vmem:[%s790_s1 + $0x18] sm:$0xff]   ;;  %v608_v18 = vld [vmem:[%s790_s1 + $0x20] sm:$0xff]   ;;  %v612_v22 = vld [vmem:[%s790_s1 + $0x28] sm:$0xff]  }
   0x8   :  { %530 = vmatpush3.bf16.msra.mxu0 %v596_v6  ;;  %v605_v15 = vld [vmem:[%s790_s1 + $0x98] sm:$0xff]   ;;  %v609_v19 = vld [vmem:[%s790_s1 + $0xa0] sm:$0xff]   ;;  %v613_v23 = vld [vmem:[%s790_s1 + $0xa8] sm:$0xff]  }
   0x9   :  { %552 = vmatpush3.bf16.msra.mxu1 %v597_v7  ;;  %531 = vmatprep.subr.bf16.mxu0 %v598_v8  ;;  %v614_v24 = vld [vmem:[%s790_s1 + $0x70] sm:$0xff]   ;;  %v618_v28 = vld [vmem:[%s790_s1 + $0x78] sm:$0xff]   ;;  %v627_v36 = vld [vmem:[%s791_s0 + $0xc] ss:$20 sps:$4 sm:$0xff]  }
   0xa   :  { %553 = vmatprep.subr.bf16.mxu1 %v599_v9  ;;  %v615_v25 = vld [vmem:[%s790_s1 + $0xf0] sm:$0xff]   ;;  %v619_v29 = vld [vmem:[%s790_s1 + $0xf8] sm:$0xff]   ;;  %v628_v37 = vld [vmem:[%s790_s1 + $0x100] sm:$0xff]   ;;  %411 = vmatprep.mubr.bf16.mxu1 %v627_v36 }
   0xb   :  { %v616_v26 = vld [vmem:[%s790_s1 + $0x30] sm:$0xff]   ;;  %v620_v30 = vld [vmem:[%s790_s1 + $0x38] sm:$0xff]   ;;  %v629_v38 = vld [vmem:[%s790_s1 + $0x108] sm:$0xff]  }
   0xc   :  { %532 = vmatpush3.bf16.msra.mxu0 %v600_v10  ;;  %v617_v27 = vld [vmem:[%s790_s1 + $0xb0] sm:$0xff]   ;;  %v621_v31 = vld [vmem:[%s790_s1 + $0xb8] sm:$0xff]   ;;  %v525_v57 = vld [vmem:[%s792_s2] ss:$0 sm:$0xff] }
   0xd   :  { %554 = vmatpush3.bf16.msra.mxu1 %v601_v11  ;;  %533 = vmatprep.subr.bf16.mxu0 %v602_v12  ;;  %v622_v32 = vld [vmem:[%s791_s0] ss:$20 sps:$4 sm:$0xff]   ;;  %v624_v33 = vld [vmem:[%s791_s0 + $0x4] ss:$20 sps:$4 sm:$0xff]   ;;  %v625_v35 = vld [vmem:[%s791_s0 + $0x8] ss:$20 sps:$4 sm:$0xff]  }
   0xe   :  { %555 = vmatprep.subr.bf16.mxu1 %v603_v13  ;;  %370 = vmatprep.mubr.bf16.mxu0 %v624_v33  ;;  %v630_v39 = vld [vmem:[%s790_s1 + $0x110] sm:$0xff]   ;;  %v631_v40 = vld [vmem:[%s790_s1 + $0x118] sm:$0xff]   ;;  %v526_v60 = vld [vmem:[%s792_s2 + $0x1] ss:$0 sm:$0xff] }
   0xf   :  { %v632_v41 = vld [vmem:[%s791_s0 + $0x10] ss:$20 sps:$4 sm:$0xff]  }
  0x10   :  { %534 = vmatpush3.bf16.msra.mxu0 %v604_v14 }
  0x11   :  { %556 = vmatpush3.bf16.msra.mxu1 %v605_v15  ;;  %535 = vmatprep.subr.bf16.mxu0 %v606_v16 }
  0x12   :  { %557 = vmatprep.subr.bf16.mxu1 %v607_v17 }
  0x14   :  { %536 = vmatpush3.bf16.msra.mxu0 %v608_v18 }
  0x15   :  { %558 = vmatpush3.bf16.msra.mxu1 %v609_v19  ;;  %537 = vmatprep.subr.bf16.mxu0 %v610_v20 }
  0x16   :  { %559 = vmatprep.subr.bf16.mxu1 %v611_v21 }
  0x18   :  { %538 = vmatpush3.bf16.msra.mxu0 %v612_v22 }
  0x19   :  { %560 = vmatpush3.bf16.msra.mxu1 %v613_v23  ;;  %539 = vmatprep.subr.bf16.mxu0 %v614_v24 }
  0x1a   :  { %561 = vmatprep.subr.bf16.mxu1 %v615_v25 }
  0x1c   :  { %540 = vmatpush3.bf16.msra.mxu0 %v616_v26 }
  0x1d   :  { %562 = vmatpush3.bf16.msra.mxu1 %v617_v27  ;;  %541 = vmatprep.subr.bf16.mxu0 %v618_v28 }
  0x1e   :  { %563 = vmatprep.subr.bf16.mxu1 %v619_v29 }
  0x20   :  { %542 = vmatpush3.bf16.msra.mxu0 %v620_v30 }
  0x21   :  { %564 = vmatpush3.bf16.msra.mxu1 %v621_v31  ;;  %576 = vmatprep.subr.bf16.mxu0 %v633_v34 }
  0x23   :  { %371 = vmatmul.mubr.bf16.vlgmr.msra.gmra.mrb[0].mxu0 %v622_v32 }
  0x24   :  { %412 = vmatmul.mubr.bf16.vlgmr.msra.gmra.mrb[0].mxu1 %v625_v35  ;;  %577 = vmatpush3.bf16.msra.mxu0 %v628_v37 }
  0x25   :  { %578 = vmatprep.subr.bf16.mxu0 %v633_v34  ;;  %584 = vmatprep.mubr.msk.bf16.mxu0 %vm634_vm0, %v633_v34 }
  0x28   :  { %579 = vmatpush3.bf16.msra.mxu0 %v629_v38 }
  0x29   :  { %580 = vmatprep.subr.bf16.mxu0 %v633_v34 }
  0x2c   :  { %581 = vmatpush3.bf16.msra.mxu0 %v630_v39 }
  0x2d   :  { %582 = vmatprep.subr.bf16.mxu0 %v633_v34 }
  0x30   :  { %583 = vmatpush3.bf16.msra.mxu0 %v631_v40 }
  0x33   :  { %585 = vmatmul.mubr.msk.bf16.vlgmr.msra.gmra.mrb[4].mxu0 %vm334_vm1, %v632_v41 }
  0xf6   :  { %v543_v42 = vpop.f32.mrb[0].mxu0 }
  0xf7   :  { %v565_v43 = vpop.f32.mrb[0].mxu1  ;;  %v544_v44 = vpop.f32.mrb[1].mxu0 }
  0xf8   :  { %v545_v45 = vadd.f32 %v544_v44, %v543_v42  ;;  %v566_v46 = vpop.f32.mrb[1].mxu1  ;;  %v546_v47 = vpop.f32.mrb[2].mxu0 }
  0xf9   :  { %v567_v48 = vadd.f32 %v566_v46, %v565_v43  ;;  %v568_v49 = vpop.f32.mrb[2].mxu1  ;;  %v547_v50 = vpop.f32.mrb[3].mxu0 }
  0xfa   :  { %v548_v51 = vadd.f32 %v547_v50, %v546_v47  ;;  %v569_v52 = vpop.f32.mrb[3].mxu1 }
  0xfb   :  { %v570_v53 = vadd.f32 %v569_v52, %v568_v49  ;;  %v414_v54 = vadd.f32 %v567_v48, %v545_v45 }
  0xfd   :  { %v417_v55 = vadd.f32 %v570_v53, %v548_v51 }
 0x106   :  { %v454_v56 = vpop.f32.mrb[4].mxu0 }
 0x107   :  { %v455_v58 = vadd.f32 %v454_v56, %v414_v54  ;;  %v586_v59 = vpop.f32.mrb[5].mxu0 }
 0x108   :  { %v457_v61 = vpop.f32.mrb[6].mxu0 }
 0x109   :  { %v466_v62 = vmul.f32 %v525_v57, %v455_v58  ;;  %v458_v63 = vadd.f32 %v457_v61, %v417_v55  ;;  %v587_v0 = vpop.f32.mrb[7].mxu0 }
 0x10b   :  { %v473_v1 = vadd.f32 %v526_v60, %v466_v62  ;;  %v467_v2 = vmul.f32 %v525_v57, %v458_v63 }
 0x10d   :  { %v475_v3 = vmax.f32 %v473_v1, 0.0  ;;  %v474_v4 = vadd.f32 %v526_v60, %v467_v2 }
 0x10f   :  { %477 = vst [vmem:[%s793_s3] sm:$0xff] %v475_v3  ;;  %v476_v5 = vmax.f32 %v474_v4, 0.0 }
 0x111   :  { %478 = vst [vmem:[%s793_s3 + $0x8] sm:$0xff] %v476_v5 }

// kernel: image_encoder_forward.35
= control target key start
LH: loop header
LB: loop body
LE: loop exit
PB: predicated region body
PF: predicated region fallthrough
CT: control target
= control target key end

     0   :  { %v247_v1 = vmov 0   ;;  %v164_v18 = vlaneseq  ;;  %s337_s1 = inlined_call_operand.vmem [shape: bf16[128,256], index: 1, kind: input, shape index: {}]   ;;  %s338_s0 = inlined_call_operand.vmem [shape: bf16[16,128], index: 0, kind: input, shape index: {}]   ;;  %s339_s2 = inlined_call_operand.vmem [shape: f32[2,256], index: 2, kind: input, shape index: {}]   ;;  %s340_s3 = inlined_call_operand.vmem [shape: f32[16,256], index: 3, kind: output, shape index: {}]  }
   0x1   :  { %v222_v0 = vld [vmem:[%s337_s1 + $0x4] ss:$8 sps:$4 sm:$0xff]   ;;  %151 = vmatprep.mubr.bf16.mxu0 %v247_v1  ;;  %v224_v2 = vld [vmem:[%s337_s1] ss:$8 sps:$4 sm:$0xff]   ;;  %v225_v3 = vld [vmem:[%s337_s1 + $0x14] ss:$8 sps:$4 sm:$0xff]  }
   0x2   :  { %119 = vmatprep.subr.bf16.mxu0 %v222_v0  ;;  %v227_v4 = vld [vmem:[%s337_s1 + $0x10] ss:$8 sps:$4 sm:$0xff]   ;;  %v228_v5 = vld [vmem:[%s337_s1 + $0x24] ss:$8 sps:$4 sm:$0xff]   ;;  %v230_v6 = vld [vmem:[%s337_s1 + $0x20] ss:$8 sps:$4 sm:$0xff]  }
   0x3   :  { %120 = vmatpush1.bf16.msra.mxu0 %v224_v2  ;;  %v231_v7 = vld [vmem:[%s337_s1 + $0x34] ss:$8 sps:$4 sm:$0xff]   ;;  %v233_v8 = vld [vmem:[%s337_s1 + $0x30] ss:$8 sps:$4 sm:$0xff]   ;;  %v234_v9 = vld [vmem:[%s337_s1 + $0x44] ss:$8 sps:$4 sm:$0xff]  }
   0x4   :  { %121 = vmatprep.subr.bf16.mxu0 %v225_v3  ;;  %v236_v10 = vld [vmem:[%s337_s1 + $0x40] ss:$8 sps:$4 sm:$0xff]   ;;  %v237_v11 = vld [vmem:[%s337_s1 + $0x54] ss:$8 sps:$4 sm:$0xff]   ;;  %v239_v12 = vld [vmem:[%s337_s1 + $0x50] ss:$8 sps:$4 sm:$0xff]  }
   0x5   :  { %v240_v13 = vld [vmem:[%s337_s1 + $0x64] ss:$8 sps:$4 sm:$0xff]   ;;  %v242_v14 = vld [vmem:[%s337_s1 + $0x60] ss:$8 sps:$4 sm:$0xff]   ;;  %v243_v15 = vld [vmem:[%s337_s1 + $0x74] ss:$8 sps:$4 sm:$0xff]  }
   0x6   :  { %v245_v16 = vld [vmem:[%s337_s1 + $0x70] ss:$8 sps:$4 sm:$0xff]   ;;  %v246_v17 = vld [vmem:[%s338_s0] sm:$0xff]   ;;  %v165_v19 = vshrl.u32 %v164_v18, 7 }
   0x7   :  { %122 = vmatpush1.bf16.msra.mxu0 %v227_v4  ;;  %v162_v21 = vld [vmem:[%s339_s2] ss:$2 sm:$0x3]  ;;  %v220_v23 = vld [vmem:[%s339_s2 + $0x1] ss:$2 sm:$0x3] }
   0x8   :  { %123 = vmatprep.subr.bf16.mxu0 %v228_v5  ;;  %v166_v20 = vsub.s32 0, %v165_v19  ;;  %v170_v22 = vsub.s32 1, %v165_v19 }
   0xa   :  { %v167_v24 = vrot.slane %v162_v21, %v166_v20  ;;  %v171_v25 = vrot.slane %v162_v21, %v170_v22  ;;  %v184_v26 = vrot.slane %v220_v23, %v166_v20  ;;  %v188_v28 = vrot.slane %v220_v23, %v170_v22 }
   0xb   :  { %124 = vmatpush1.bf16.msra.mxu0 %v230_v6 }
   0xc   :  { %125 = vmatprep.subr.bf16.mxu0 %v231_v7 }
   0xf   :  { %126 = vmatpush1.bf16.msra.mxu0 %v233_v8 }
  0x10   :  { %127 = vmatprep.subr.bf16.mxu0 %v234_v9 }
  0x13   :  { %128 = vmatpush1.bf16.msra.mxu0 %v236_v10 }
  0x14   :  { %129 = vmatprep.subr.bf16.mxu0 %v237_v11 }
  0x17   :  { %130 = vmatpush1.bf16.msra.mxu0 %v239_v12 }
  0x18   :  { %131 = vmatprep.subr.bf16.mxu0 %v240_v13 }
  0x1b   :  { %132 = vmatpush1.bf16.msra.mxu0 %v242_v14 }
  0x1c   :  { %133 = vmatprep.subr.bf16.mxu0 %v243_v15 }
  0x1f   :  { %134 = vmatpush1.bf16.msra.mxu0 %v245_v16 }
  0x22   :  { %152 = vmatmul.mubr.bf16.vlgmr.msra.gmra.mrb[0].mxu0 %v246_v17 }
  0xf5   :  { %v153_v27 = vpop.f32.mrb[0].mxu0 }
  0xf6   :  { %v174_v29 = vmul.f32 %v167_v24, %v153_v27  ;;  %v155_v30 = vpop.f32.mrb[1].mxu0 }
  0xf7   :  { %v175_v31 = vmul.f32 %v171_v25, %v155_v30  ;;  %v157_v32 = vpop.f32.mrb[2].mxu0 }
  0xf8   :  { %v191_v33 = vadd.f32 %v184_v26, %v174_v29  ;;  %v176_v34 = vmul.f32 %v167_v24, %v157_v32  ;;  %v159_v35 = vpop.f32.mrb[3].mxu0 }
  0xf9   :  { %v192_v36 = vadd.f32 %v188_v28, %v175_v31  ;;  %v177_v37 = vmul.f32 %v171_v25, %v159_v35 }
  0xfa   :  { %195 = vst [vmem:[%s340_s3] sm:$0xff] %v191_v33  ;;  %v193_v38 = vadd.f32 %v184_v26, %v176_v34 }
  0xfb   :  { %196 = vst [vmem:[%s340_s3 + $0x8] sm:$0xff] %v192_v36  ;;  %v194_v39 = vadd.f32 %v188_v28, %v177_v37 }
  0xfc   :  { %197 = vst [vmem:[%s340_s3 + $0x10] sm:$0xff] %v193_v38 }
  0xfd   :  { %198 = vst [vmem:[%s340_s3 + $0x18] sm:$0xff] %v194_v39 }

// kernel: image_encoder_forward.36
= control target key start
LH: loop header
LB: loop body
LE: loop exit
PB: predicated region body
PF: predicated region fallthrough
CT: control target
= control target key end

     0   :  { %v198_v1 = vmov 0   ;;  %vm73_vm0 = vcmask 523264   ;;  %v122_v10 = vlaneseq  ;;  %s281_s1 = inlined_call_operand.vmem [shape: bf16[64,256], index: 1, kind: input, shape index: {}]   ;;  %s282_s0 = inlined_call_operand.vmem [shape: bf16[16,64], index: 0, kind: input, shape index: {}]   ;;  %s283_s2 = inlined_call_operand.vmem [shape: f32[2,256], index: 2, kind: input, shape index: {}]   ;;  %s284_s3 = inlined_call_operand.vmem [shape: f32[16,256], index: 3, kind: input, shape index: {}]   ;;  %s285_s4 = inlined_call_operand.vmem [shape: f32[16,256], index: 4, kind: output, shape index: {}]  }
   0x1   :  { %v185_v0 = vld [vmem:[%s281_s1 + $0x4] ss:$8 sps:$4 sm:$0xff]   ;;  %109 = vmatprep.mubr.bf16.mxu0 %v198_v1  ;;  %v187_v2 = vld [vmem:[%s281_s1] ss:$8 sps:$4 sm:$0xff]   ;;  %v188_v3 = vld [vmem:[%s281_s1 + $0x14] ss:$8 sps:$4 sm:$0xff]  }
   0x2   :  { %77 = vmatprep.subr.bf16.mxu0 %v185_v0  ;;  %v190_v4 = vld [vmem:[%s281_s1 + $0x10] ss:$8 sps:$4 sm:$0xff]   ;;  %v191_v5 = vld [vmem:[%s281_s1 + $0x24] ss:$8 sps:$4 sm:$0xff]   ;;  %v193_v6 = vld [vmem:[%s281_s1 + $0x20] ss:$8 sps:$4 sm:$0xff]  }
   0x3   :  { %78 = vmatpush1.bf16.msra.mxu0 %v187_v2  ;;  %v194_v7 = vld [vmem:[%s281_s1 + $0x34] ss:$8 sps:$4 sm:$0xff]   ;;  %v196_v8 = vld [vmem:[%s281_s1 + $0x30] ss:$8 sps:$4 sm:$0xff]   ;;  %v197_v9 = vld [vmem:[%s282_s0] sm:$0xff]   ;;  %v123_v11 = vshrl.u32 %v122_v10, 7 }
   0x4   :  { %79 = vmatprep.subr.bf16.mxu0 %v188_v3  ;;  %v120_v13 = vld [vmem:[%s283_s2] ss:$2 sm:$0x3]  ;;  %v183_v15 = vld [vmem:[%s283_s2 + $0x1] ss:$2 sm:$0x3] }
   0x5   :  { %v124_v12 = vsub.s32 0, %v123_v11  ;;  %v128_v14 = vsub.s32 1, %v123_v11  ;;  %v153_v23 = vld [vmem:[%s284_s3] sm:$0xff]  ;;  %v154_v27 = vld [vmem:[%s284_s3 + $0x8] sm:$0xff]  ;;  %v155_v31 = vld [vmem:[%s284_s3 + $0x10] sm:$0xff] }
   0x6   :  { %v156_v35 = vld [vmem:[%s284_s3 + $0x18] sm:$0xff] }
   0x7   :  { %80 = vmatpush1.bf16.msra.mxu0 %v190_v4  ;;  %v125_v16 = vrot.slane %v120_v13, %v124_v12  ;;  %v129_v17 = vrot.slane %v120_v13, %v128_v14  ;;  %v142_v18 = vrot.slane %v183_v15, %v124_v12  ;;  %v146_v20 = vrot.slane %v183_v15, %v128_v14 }
   0x8   :  { %81 = vmatprep.subr.bf16.mxu0 %v191_v5 }
   0xb   :  { %82 = vmatpush1.bf16.msra.mxu0 %v193_v6 }
   0xc   :  { %83 = vmatprep.subr.bf16.mxu0 %v194_v7 }
   0xf   :  { %84 = vmatpush1.bf16.msra.mxu0 %v196_v8 }
  0x12   :  { %182 = vmatmul.mubr.msk.bf16.vlgmr.msra.gmra.mrb[0].mxu0 %vm73_vm0, %v197_v9 }
  0xe5   :  { %v111_v19 = vpop.f32.mrb[0].mxu0 }
  0xe6   :  { %v132_v21 = vmul.f32 %v125_v16, %v111_v19  ;;  %v113_v22 = vpop.f32.mrb[1].mxu0 }
  0xe7   :  { %v133_v24 = vmul.f32 %v129_v17, %v113_v22  ;;  %v115_v25 = vpop.f32.mrb[2].mxu0 }
  0xe8   :  { %v149_v26 = vadd.f32 %v142_v18, %v132_v21  ;;  %v134_v28 = vmul.f32 %v125_v16, %v115_v25  ;;  %v117_v29 = vpop.f32.mrb[3].mxu0 }
  0xe9   :  { %v150_v30 = vadd.f32 %v146_v20, %v133_v24  ;;  %v135_v32 = vmul.f32 %v129_v17, %v117_v29 }
  0xea   :  { %v157_v33 = vadd.f32 %v153_v23, %v149_v26  ;;  %v151_v34 = vadd.f32 %v142_v18, %v134_v28 }
  0xeb   :  { %v158_v36 = vadd.f32 %v154_v27, %v150_v30  ;;  %v152_v37 = vadd.f32 %v146_v20, %v135_v32 }
  0xec   :  { %v161_v38 = vmax.f32 %v157_v33, 0.0  ;;  %v159_v39 = vadd.f32 %v155_v31, %v151_v34 }
  0xed   :  { %v162_v40 = vmax.f32 %v158_v36, 0.0  ;;  %v160_v41 = vadd.f32 %v156_v35, %v152_v37 }
  0xee   :  { %165 = vst [vmem:[%s285_s4] sm:$0xff] %v161_v38  ;;  %v163_v42 = vmax.f32 %v159_v39, 0.0 }
  0xef   :  { %166 = vst [vmem:[%s285_s4 + $0x8] sm:$0xff] %v162_v40  ;;  %v164_v43 = vmax.f32 %v160_v41, 0.0 }
  0xf0   :  { %167 = vst [vmem:[%s285_s4 + $0x10] sm:$0xff] %v163_v42 }
  0xf1   :  { %168 = vst [vmem:[%s285_s4 + $0x18] sm:$0xff] %v164_v43 }

// kernel: image_encoder_forward.37
= control target key start
LH: loop header
LB: loop body
LE: loop exit
PB: predicated region body
PF: predicated region fallthrough
CT: control target
= control target key end

     0   :  { %v29_v2 = vlaneseq  ;;  %s86_s0 = inlined_call_operand.vmem [shape: f32[2,4,256], index: 0, kind: input, shape index: {}]   ;;  %s87_s1 = inlined_call_operand.vmem [shape: f32[2,1,256], index: 1, kind: output, shape index: {}]  }
   0x1   :  { %v8_v0 = vld [vmem:[%s86_s0] ss:$4 sm:$0x3]  ;;  %v40_v1 = vld [vmem:[%s86_s0 + $0x1] ss:$4 sm:$0x3] }
   0x2   :  { %v15_v3 = vmax.f32 %v8_v0, %v40_v1  ;;  %v42_v4 = vld [vmem:[%s86_s0 + $0x2] ss:$4 sm:$0x3]  ;;  %v44_v5 = vld [vmem:[%s86_s0 + $0x3] ss:$4 sm:$0x3] }
   0x3   :  { %v39_v6 = vld [vmem:[%s86_s0 + $0x8] ss:$4 sm:$0x3]  ;;  %v41_v8 = vld [vmem:[%s86_s0 + $0x9] ss:$4 sm:$0x3] }
   0x4   :  { %v21_v7 = vmax.f32 %v15_v3, %v42_v4  ;;  %v43_v9 = vld [vmem:[%s86_s0 + $0xa] ss:$4 sm:$0x3]  ;;  %vm31_vm0 = vcmp.lt.s32.totalorder %v29_v2, 256  ;;  %v16_v10 = vmax.f32 %v39_v6, %v41_v8 }
   0x5   :  { %v45_v12 = vld [vmem:[%s86_s0 + $0xb] ss:$4 sm:$0x3] }
   0x6   :  { %v27_v11 = vmax.f32 %v21_v7, %v44_v5  ;;  %v22_v13 = vmax.f32 %v16_v10, %v43_v9 }
   0x8   :  { %33 = vst.msk [vmem:[%s87_s1] sm:$0x3] %vm31_vm0, %v27_v11  ;;  %v28_v14 = vmax.f32 %v22_v13, %v45_v12 }
   0xa   :  { %34 = vst.msk [vmem:[%s87_s1 + $0x2] sm:$0x3] %vm31_vm0, %v28_v14 }

</bundles_post_ra>
